<compile_context>
chip_gen: v7x
topology: tpu7x:2x2x1
jax: 0.10.0
libtpu: 0.0.40
codegen_flags: <defaults>
</compile_context>

<pallas_src>
import functools
import math

import jax
import jax.numpy as jnp
from jax.experimental import pallas as pl
from jax.experimental.pallas import tpu as pltpu


VMEM_LIMIT = 32 * 1024 * 1024  # explicit scoped-VMEM limit (safe on v5e/v6e/v7x)


# ----------------------------------------------------------------------------
# helpers
# ----------------------------------------------------------------------------
def _round_up(x, m):
    return ((x + m - 1) // m) * m


def _pick_tile(dim, granule, cap):
    """(tile, padded_dim): one full block when small, capped tile otherwise."""
    if dim <= cap:
        t = _round_up(dim, granule)
        return t, t
    return cap, _round_up(dim, cap)


def _silu(x):
    return x * jax.nn.sigmoid(x)


# ----------------------------------------------------------------------------
# Fused matmul: bf16 MXU operands, f32 accumulation, bias + SiLU epilogue.
# nk==1 fast path skips the VMEM accumulator entirely.
# ----------------------------------------------------------------------------
def _mm_kernel_single(act):
    def kernel(a_ref, b_ref, bias_ref, o_ref):
        y = jnp.dot(a_ref[...], b_ref[...], preferred_element_type=jnp.float32)
        y = y + bias_ref[...]
        if act == "silu":
            y = y * jax.nn.sigmoid(y)
        o_ref[...] = y.astype(o_ref.dtype)
    return kernel


def _mm_kernel_multi(nk, act):
    def kernel(a_ref, b_ref, bias_ref, o_ref, acc_ref):
        @pl.when(pl.program_id(2) == 0)
        def _init():
            acc_ref[...] = jnp.zeros_like(acc_ref)

        acc_ref[...] += jnp.dot(a_ref[...], b_ref[...],
                                preferred_element_type=jnp.float32)

        @pl.when(pl.program_id(2) == nk - 1)
        def _fin():
            y = acc_ref[...] + bias_ref[...]
            if act == "silu":
                y = y * jax.nn.sigmoid(y)
            o_ref[...] = y.astype(o_ref.dtype)
    return kernel


def fused_matmul(a, b, bias=None, act=None, out_dtype=jnp.bfloat16):
    """[M,K] @ [K,N] (+bias, +activation). bf16 operands, f32 accumulate, 128-aligned K."""
    M, K = a.shape
    Kb, N = b.shape
    assert K == Kb
    a = a.astype(jnp.bfloat16)
    b = b.astype(jnp.bfloat16)
    TM, Mp = _pick_tile(M, 8, 512)
    TN, Np = _pick_tile(N, 128, 512)
    TK, Kp = _pick_tile(K, 128, 512)
    nk = Kp // TK
    a_p = jnp.pad(a, ((0, Mp - M), (0, Kp - K)))
    b_p = jnp.pad(b, ((0, Kp - K), (0, Np - N)))
    if bias is None:
        bias = jnp.zeros((N,), jnp.float32)
    bias_p = jnp.pad(bias.astype(jnp.float32), (0, Np - N)).reshape(1, Np)

    if nk == 1:
        out = pl.pallas_call(
            _mm_kernel_single(act),
            out_shape=jax.ShapeDtypeStruct((Mp, Np), out_dtype),
            grid_spec=pltpu.PrefetchScalarGridSpec(
                num_scalar_prefetch=0,
                grid=(Mp // TM, Np // TN),
                in_specs=[
                    pl.BlockSpec((TM, Kp), lambda i, j: (i, 0)),
                    pl.BlockSpec((Kp, TN), lambda i, j: (0, j)),
                    pl.BlockSpec((1, TN), lambda i, j: (0, j)),
                ],
                out_specs=pl.BlockSpec((TM, TN), lambda i, j: (i, j)),
            ),
            compiler_params=pltpu.CompilerParams(
                dimension_semantics=("parallel", "parallel"),
                vmem_limit_bytes=VMEM_LIMIT),
        )(a_p, b_p, bias_p)
    else:
        out = pl.pallas_call(
            _mm_kernel_multi(nk, act),
            out_shape=jax.ShapeDtypeStruct((Mp, Np), out_dtype),
            grid_spec=pltpu.PrefetchScalarGridSpec(
                num_scalar_prefetch=0,
                grid=(Mp // TM, Np // TN, nk),
                in_specs=[
                    pl.BlockSpec((TM, TK), lambda i, j, k: (i, k)),
                    pl.BlockSpec((TK, TN), lambda i, j, k: (k, j)),
                    pl.BlockSpec((1, TN), lambda i, j, k: (0, j)),
                ],
                out_specs=pl.BlockSpec((TM, TN), lambda i, j, k: (i, j)),
                scratch_shapes=[pltpu.VMEM((TM, TN), jnp.float32)],
            ),
            compiler_params=pltpu.CompilerParams(
                dimension_semantics=("parallel", "parallel", "arbitrary"),
                vmem_limit_bytes=VMEM_LIMIT),
        )(a_p, b_p, bias_p)
    return out[:M, :N]


# ----------------------------------------------------------------------------
# 3x3 / stride-1 / pad-1 conv: per-sample grid, in-kernel im2col (9 row-shifted
# bf16 matmuls, chunked accumulator), fused GN-affine + SiLU prologue with
# per-sample (1, Cin) scale/shift and a tiny (rows, 1) interior mask.
# ----------------------------------------------------------------------------
def _make_conv3x3_kernel(Wp, Rout, use_prologue, row_chunk=256):
    offsets = [di * Wp + dj for di in range(3) for dj in range(3)]

    def body(xs, w_ref, b_ref, o_ref):
        coutp = w_ref.shape[2]
        r0 = 0
        while r0 < Rout:
            L = min(row_chunk, Rout - r0)
            acc = jnp.zeros((L, coutp), jnp.float32)
            for t, off in enumerate(offsets):
                a = xs[r0 + off:r0 + off + L, :]
                acc = acc + jnp.dot(a, w_ref[t], preferred_element_type=jnp.float32)
            o_ref[0, r0:r0 + L, :] = (acc + b_ref[...]).astype(o_ref.dtype)
            r0 += L

    if use_prologue:
        def kernel(x_ref, w_ref, b_ref, sc_ref, sh_ref, m_ref, o_ref):
            xs = x_ref[0, :, :].astype(jnp.float32)
            # GN affine, interior-ring mask (keeps the zero-padding ring zero), SiLU.
            xs = (xs * sc_ref[0, :, :] + sh_ref[0, :, :]) * m_ref[...]
            xs = xs * jax.nn.sigmoid(xs)
            body(xs.astype(jnp.bfloat16), w_ref, b_ref, o_ref)
    else:
        def kernel(x_ref, w_ref, b_ref, o_ref):
            body(x_ref[0, :, :], w_ref, b_ref, o_ref)
    return kernel


def conv3x3(x, w, b, pre_scale=None, pre_shift=None, out_dtype=jnp.bfloat16):
    """NHWC 3x3 conv (stride 1, pad 1), bf16 in/out, f32 accumulation."""
    E, H, W, Cin = x.shape
    Cout = w.shape[0]
    Cinp = _round_up(Cin, 128)
    Coutp = _round_up(Cout, 128)
    Hp, Wp = H + 2, W + 2
    Rp = Hp * Wp
    Rout = _round_up(Rp, 8)                       # output rows (incl. discarded wraps)
    Rin = _round_up(Rout + 2 * Wp + 2, 8)         # tap overhang stays in-bounds

    xp = jnp.pad(x.astype(jnp.bfloat16), ((0, 0), (1, 1), (1, 1), (0, 0)))
    xp = xp.reshape(E, Rp, Cin)
    xp = jnp.pad(xp, ((0, 0), (0, Rin - Rp), (0, Cinp - Cin)))

    wk = jnp.transpose(w, (2, 3, 1, 0)).reshape(9, Cin, Cout)
    wk = jnp.pad(wk, ((0, 0), (0, Cinp - Cin), (0, Coutp - Cout))).astype(jnp.bfloat16)
    bk = jnp.pad(b.astype(jnp.float32), (0, Coutp - Cout)).reshape(1, Coutp)

    use_prologue = pre_scale is not None
    in_specs = [
        pl.BlockSpec((1, Rin, Cinp), lambda e: (e, 0, 0)),
        pl.BlockSpec((9, Cinp, Coutp), lambda e: (0, 0, 0)),
        pl.BlockSpec((1, Coutp), lambda e: (0, 0)),
    ]
    args = [xp, wk, bk]
    if use_prologue:
        sc = jnp.pad(pre_scale.astype(jnp.float32), ((0, 0), (0, Cinp - Cin)))
        sh = jnp.pad(pre_shift.astype(jnp.float32), ((0, 0), (0, Cinp - Cin)))
        sc = sc.reshape(E, 1, Cinp)
        sh = sh.reshape(E, 1, Cinp)
        ridx = jnp.arange(Rin)
        ri, rj = ridx // Wp, ridx % Wp
        mask = ((ri >= 1) & (ri <= H) & (rj >= 1) & (rj <= W)).astype(jnp.float32)
        mask = mask.reshape(Rin, 1)
        in_specs += [
            pl.BlockSpec((1, 1, Cinp), lambda e: (e, 0, 0)),
            pl.BlockSpec((1, 1, Cinp), lambda e: (e, 0, 0)),
            pl.BlockSpec((Rin, 1), lambda e: (0, 0)),
        ]
        args += [sc, sh, mask]

    out = pl.pallas_call(
        _make_conv3x3_kernel(Wp, Rout, use_prologue),
        out_shape=jax.ShapeDtypeStruct((E, Rout, Coutp), out_dtype),
        grid_spec=pltpu.PrefetchScalarGridSpec(
            num_scalar_prefetch=0,
            grid=(E,),
            in_specs=in_specs,
            out_specs=pl.BlockSpec((1, Rout, Coutp), lambda e: (e, 0, 0)),
        ),
        compiler_params=pltpu.CompilerParams(
            dimension_semantics=("parallel",), vmem_limit_bytes=VMEM_LIMIT),
    )(*args)

    out = out[:, :Rp, :Cout].reshape(E, Hp, Wp, Cout)
    return out[:, :H, :W, :]


def conv2d_strided(x, w, b, stride, padding, act=None, out_dtype=jnp.bfloat16):
    """Strided conv (the two stride-2 convs). Matmul + bias(+SiLU) fused in Pallas."""
    # TODO(synk): stride-2 im2col stays in XLA; only stride-1 3x3 convs do the
    #             shifted-tap accumulation fully in-kernel.
    E, H, W, Cin = x.shape
    Cout, _, kh, kw = w.shape
    xp = jnp.pad(x.astype(jnp.bfloat16),
                 ((0, 0), (padding, padding), (padding, padding), (0, 0)))
    Ho = (H + 2 * padding - kh) // stride + 1
    Wo = (W + 2 * padding - kw) // stride + 1
    cols = []
    for i in range(kh):
        for j in range(kw):
            cols.append(xp[:, i:i + stride * Ho:stride, j:j + stride * Wo:stride, :])
    a = jnp.concatenate(cols, axis=-1).reshape(E * Ho * Wo, kh * kw * Cin)
    wm = jnp.transpose(w, (2, 3, 1, 0)).reshape(kh * kw * Cin, Cout)
    y = fused_matmul(a, wm, b, act=act, out_dtype=out_dtype)
    return y.reshape(E, Ho, Wo, Cout)


def conv1x1(x, w, b, out_dtype=jnp.bfloat16):
    E, H, W, Cin = x.shape
    Cout = w.shape[0]
    y = fused_matmul(x.reshape(E * H * W, Cin), w.reshape(Cout, Cin).T, b,
                     out_dtype=out_dtype)
    return y.reshape(E, H, W, Cout)


# ----------------------------------------------------------------------------
# Fused cross-attention kernel (per ensemble member): GN affine + q/k/v proj
# (k,v from the shared prompt, computed in-kernel) + masked softmax over a
# 128-lane-padded key dim + PV + out-proj + residual add.
# ----------------------------------------------------------------------------
def _make_attn_kernel(scale, s_real):
    def kernel(x_ref, sc_ref, sh_ref, ctx_ref, wq_ref, wk_ref, wv_ref,
               wo_ref, bo_ref, o_ref):
        x = x_ref[0, :, :].astype(jnp.float32)                      # (HW, Cp)
        hs = (x * sc_ref[0, :, :] + sh_ref[0, :, :]).astype(jnp.bfloat16)
        ctx = ctx_ref[...]                                           # (Sp, Cctxp) bf16
        k = jnp.dot(ctx, wk_ref[...], preferred_element_type=jnp.float32)
        v = jnp.dot(ctx, wv_ref[...], preferred_element_type=jnp.float32)
        q = jnp.dot(hs, wq_ref[...], preferred_element_type=jnp.float32)
        s = jax.lax.dot_general(
            q.astype(jnp.bfloat16), k.astype(jnp.bfloat16),
            (((1,), (1,)), ((), ())), preferred_element_type=jnp.float32) * scale
        col = jax.lax.broadcasted_iota(jnp.int32, s.shape, 1)
        s = jnp.where(col < s_real, s, -1e30)                        # mask padded keys
        m = jnp.max(s, axis=-1, keepdims=True)
        p = jnp.exp(s - m)
        p = p * pl.reciprocal(jnp.sum(p, axis=-1, keepdims=True), approx=True)
        o = jnp.dot(p.astype(jnp.bfloat16), v.astype(jnp.bfloat16),
                    preferred_element_type=jnp.float32)
        o = jnp.dot(o.astype(jnp.bfloat16), wo_ref[...],
                    preferred_element_type=jnp.float32) + bo_ref[...]
        o_ref[0, :, :] = (x + o).astype(o_ref.dtype)                 # fused residual
    return kernel


def fused_cross_attention(x, scale, shift, p, ctx):
    """x: (E,H,W,C). Returns x + Attn(GN(x), ctx) in one kernel, grid over E."""
    E, H, W, C = x.shape
    HW = H * W
    HWp = _round_up(HW, 8)
    Cp = _round_up(C, 128)
    d = p["q_w"].shape[0]
    dp = _round_up(d, 128)
    S, Cctx = ctx.shape
    Sp = _round_up(S, 128)
    Cctxp = _round_up(Cctx, 128)

    x_flat = jnp.pad(x.astype(jnp.bfloat16).reshape(E, HW, C),
                     ((0, 0), (0, HWp - HW), (0, Cp - C)))
    sc = jnp.pad(scale.astype(jnp.float32), ((0, 0), (0, Cp - C))).reshape(E, 1, Cp)
    sh = jnp.pad(shift.astype(jnp.float32), ((0, 0), (0, Cp - C))).reshape(E, 1, Cp)
    ctx_p = jnp.pad(ctx.astype(jnp.bfloat16), ((0, Sp - S), (0, Cctxp - Cctx)))
    wq = jnp.pad(p["q_w"].T, ((0, Cp - C), (0, dp - d))).astype(jnp.bfloat16)
    wk = jnp.pad(p["k_w"].T, ((0, Cctxp - Cctx), (0, dp - d))).astype(jnp.bfloat16)
    wv = jnp.pad(p["v_w"].T, ((0, Cctxp - Cctx), (0, dp - d))).astype(jnp.bfloat16)
    wo = jnp.pad(p["o_w"].T, ((0, dp - d), (0, Cp - C))).astype(jnp.bfloat16)
    bo = jnp.pad(p["o_b"].astype(jnp.float32), (0, Cp - C)).reshape(1, Cp)

    out = pl.pallas_call(
        _make_attn_kernel(1.0 / math.sqrt(d), S),
        out_shape=jax.ShapeDtypeStruct((E, HWp, Cp), jnp.bfloat16),
        grid_spec=pltpu.PrefetchScalarGridSpec(
            num_scalar_prefetch=0,
            grid=(E,),
            in_specs=[
                pl.BlockSpec((1, HWp, Cp), lambda e: (e, 0, 0)),
                pl.BlockSpec((1, 1, Cp), lambda e: (e, 0, 0)),
                pl.BlockSpec((1, 1, Cp), lambda e: (e, 0, 0)),
                pl.BlockSpec((Sp, Cctxp), lambda e: (0, 0)),
                pl.BlockSpec((Cp, dp), lambda e: (0, 0)),
                pl.BlockSpec((Cctxp, dp), lambda e: (0, 0)),
                pl.BlockSpec((Cctxp, dp), lambda e: (0, 0)),
                pl.BlockSpec((dp, Cp), lambda e: (0, 0)),
                pl.BlockSpec((1, Cp), lambda e: (0, 0)),
            ],
            out_specs=pl.BlockSpec((1, HWp, Cp), lambda e: (e, 0, 0)),
        ),
        compiler_params=pltpu.CompilerParams(
            dimension_semantics=("parallel",), vmem_limit_bytes=VMEM_LIMIT),
    )(x_flat, sc, sh, ctx_p, wq, wk, wv, wo, bo)
    return out[:, :HW, :C].reshape(E, H, W, C)


# ----------------------------------------------------------------------------
# Ensemble mean: grid over lane chunks (parallel)
# ----------------------------------------------------------------------------
def _mean_kernel(x_ref, o_ref):
    o_ref[...] = jnp.mean(x_ref[...].astype(jnp.float32), axis=0, keepdims=True)


def pallas_ensemble_mean(x):
    """[E, ...] -> [1, ...] mean over the ensemble axis (mean(0, keepdim=True))."""
    E = x.shape[0]
    rest = x.shape[1:]
    flat = x.reshape(E, -1)
    n = flat.shape[1]
    TN, Np = _pick_tile(n, 128, 512)
    flat = jnp.pad(flat, ((0, 0), (0, Np - n)))
    out = pl.pallas_call(
        _mean_kernel,
        out_shape=jax.ShapeDtypeStruct((1, Np), jnp.float32),
        grid_spec=pltpu.PrefetchScalarGridSpec(
            num_scalar_prefetch=0,
            grid=(Np // TN,),
            in_specs=[pl.BlockSpec((E, TN), lambda i: (0, i))],
            out_specs=pl.BlockSpec((1, TN), lambda i: (0, i)),
        ),
        compiler_params=pltpu.CompilerParams(
            dimension_semantics=("parallel",), vmem_limit_bytes=VMEM_LIMIT),
    )(flat)
    return out[:, :n].reshape((1,) + rest)


# ----------------------------------------------------------------------------
# Building blocks (NHWC internally, bf16 activations)
# ----------------------------------------------------------------------------
def group_norm_scale_shift(x, gamma, beta, groups=8, eps=1e-5):
    """GroupNorm statistics in JAX (f32); returns per-(sample, channel) affine that the
    conv / attention kernel applies as a fused prologue."""
    E, H, W, C = x.shape
    xf = x.astype(jnp.float32).reshape(E, H * W, groups, C // groups)
    mean = xf.mean(axis=(1, 3))
    var = xf.var(axis=(1, 3))
    inv = jax.lax.rsqrt(var + eps)
    scale = jnp.repeat(inv, C // groups, axis=1) * gamma[None, :]
    shift = beta[None, :] - jnp.repeat(mean, C // groups, axis=1) * scale
    return scale, shift


def resnet_block(p, x, emb):
    x = x.astype(jnp.bfloat16)
    s1, t1 = group_norm_scale_shift(x, p["gn1_g"], p["gn1_b"])
    h = conv3x3(x, p["conv1_w"], p["conv1_b"], pre_scale=s1, pre_shift=t1)
    # temb projection: 4-row matmul, cheaper in plain XLA than a pallas launch.
    t = _silu(emb) @ p["temb_w"].T + p["temb_b"]
    h = (h.astype(jnp.float32) + t[:, None, None, :]).astype(jnp.bfloat16)
    s2, t2 = group_norm_scale_shift(h, p["gn2_g"], p["gn2_b"])
    h = conv3x3(h, p["conv2_w"], p["conv2_b"], pre_scale=s2, pre_shift=t2)
    if "skip_w" in p:
        x = conv1x1(x, p["skip_w"], p["skip_b"], out_dtype=jnp.bfloat16)
    return x + h


def cross_attn_block(p, x, ctx):
    scale, shift = group_norm_scale_shift(x, p["gn_g"], p["gn_b"])
    return fused_cross_attention(x, scale, shift, p, ctx)


def upsample_block(x, w, b):
    x = jnp.repeat(jnp.repeat(x, 2, axis=1), 2, axis=2)   # nearest x2 (NHWC)
    return conv3x3(x, w, b)


def timestep_embedding(t, dim, max_period=10000.0):
    half = dim // 2
    exponent = -jnp.log(max_period) * jnp.arange(half, dtype=jnp.float32) / half
    freqs = jnp.exp(exponent)
    args = t.astype(jnp.float32)[:, None] * freqs[None, :]
    emb = jnp.concatenate([jnp.sin(args), jnp.cos(args)], axis=-1)
    return jnp.concatenate([emb[:, half:], emb[:, :half]], axis=-1)  # flip_sin_to_cos


# ----------------------------------------------------------------------------
# Deterministic synthetic parameters (tiny SD-like UNet + VAE encoder)
# ----------------------------------------------------------------------------
C_MODEL = 32       # base UNet channels
C_LAT = 4          # latent channels
C_TEMB = 128       # time-embedding dim
C_CTX = 32         # prompt (cross-attention) feature dim
SEQ = 8            # prompt sequence length
T_PROJ = 32        # sinusoidal time_proj dim


def init_params(key):
    keys = iter(jax.random.split(key, 256))

    def W(shape, scale=0.05):
        return jax.random.normal(next(keys), shape, jnp.float32) * scale

    def B(shape):
        return jnp.zeros(shape, jnp.float32)

    def resnet(cin, cout):
        r = {
            "gn1_g": jnp.ones((cin,), jnp.float32), "gn1_b": B((cin,)),
            "conv1_w": W((cout, cin, 3, 3)), "conv1_b": B((cout,)),
            "temb_w": W((cout, C_TEMB)), "temb_b": B((cout,)),
            "gn2_g": jnp.ones((cout,), jnp.float32), "gn2_b": B((cout,)),
            "conv2_w": W((cout, cout, 3, 3)), "conv2_b": B((cout,)),
        }
        if cin != cout:
            r["skip_w"] = W((cout, cin, 1, 1))
            r["skip_b"] = B((cout,))
        return r

    def xattn(c, ctx):
        return {
            "gn_g": jnp.ones((c,), jnp.float32), "gn_b": B((c,)),
            "q_w": W((c, c)), "k_w": W((c, ctx)), "v_w": W((c, ctx)),
            "o_w": W((c, c)), "o_b": B((c,)),
        }

    p = {}
    p["vae_conv_w"] = W((8, 3, 3, 3)); p["vae_conv_b"] = B((8,))
    p["vae_quant_w"] = W((2 * C_LAT, 8, 1, 1)); p["vae_quant_b"] = B((2 * C_LAT,))
    p["time_w1"] = W((C_TEMB, T_PROJ)); p["time_b1"] = B((C_TEMB,))
    p["time_w2"] = W((C_TEMB, C_TEMB)); p["time_b2"] = B((C_TEMB,))
    p["conv_in_w"] = W((C_MODEL, C_LAT, 3, 3)); p["conv_in_b"] = B((C_MODEL,))
    p["down_res"] = resnet(C_MODEL, C_MODEL)
    p["down_ds_w"] = W((C_MODEL, C_MODEL, 3, 3)); p["down_ds_b"] = B((C_MODEL,))
    p["mid_res1"] = resnet(C_MODEL, C_MODEL)
    p["mid_attn"] = xattn(C_MODEL, C_CTX)
    p["mid_res2"] = resnet(C_MODEL, C_MODEL)
    p["up0_res"] = resnet(2 * C_MODEL, C_MODEL)
    p["up0_up_w"] = W((C_MODEL, C_MODEL, 3, 3)); p["up0_up_b"] = B((C_MODEL,))
    p["up1_res1"] = resnet(2 * C_MODEL, C_MODEL)
    p["up1_attn"] = xattn(C_MODEL, C_CTX)
    p["up1_res2"] = resnet(2 * C_MODEL, C_MODEL)
    return p


# ----------------------------------------------------------------------------
# SDFeaturizer.forward
# ----------------------------------------------------------------------------
@functools.partial(jax.jit, static_argnames=("t", "up_ft_index", "ensemble_size"))
def sd_featurizer_forward(params, img_nchw, key, t=261, up_ft_index=1, ensemble_size=4):
    """img_nchw: [1, 3, H, W]. Returns [1, c, h, w] mean-over-ensemble UNet up-block feature."""
    k_prompt, k_vae, k_noise = jax.random.split(key, 3)
    E = ensemble_size

    # img_tensor.repeat(ensemble_size, 1, 1, 1); NHWC internally.
    img = jnp.repeat(jnp.transpose(img_nchw.astype(jnp.float32), (0, 2, 3, 1)), E, axis=0)

    # Synthetic deterministic prompt embedding; identical per ensemble member, so
    # k/v are shared inside the attention kernel.
    ctx = jax.random.normal(k_prompt, (SEQ, C_CTX), jnp.float32)

    # VAE encode -> latent_dist.sample() * scaling_factor
    h = conv2d_strided(img, params["vae_conv_w"], params["vae_conv_b"],
                       stride=2, padding=1, act="silu")
    moments = conv1x1(h, params["vae_quant_w"], params["vae_quant_b"],
                      out_dtype=jnp.float32)
    mean, logvar = jnp.split(moments, 2, axis=-1)
    logvar = jnp.clip(logvar, -30.0, 20.0)
    eps = jax.random.normal(k_vae, mean.shape, jnp.float32)
    latents = (mean + jnp.exp(0.5 * logvar) * eps) * 0.18215

    # DDIM scheduler.add_noise (scaled_linear beta schedule, 1000 steps)
    betas = jnp.linspace(0.00085 ** 0.5, 0.012 ** 0.5, 1000, dtype=jnp.float32) ** 2
    alphas_cumprod = jnp.cumprod(1.0 - betas)
    acp_t = alphas_cumprod[t]
    noise = jax.random.normal(k_noise, latents.shape, jnp.float32)
    latents_noisy = jnp.sqrt(acp_t) * latents + jnp.sqrt(1.0 - acp_t) * noise

    # UNet time embedding: tiny E-row matmuls, kept in plain XLA (per perf review).
    t_emb = timestep_embedding(jnp.full((E,), t, jnp.float32), T_PROJ)
    emb = _silu(t_emb @ params["time_w1"].T + params["time_b1"])
    emb = emb @ params["time_w2"].T + params["time_b2"]

    # conv_in + down path
    sample = conv3x3(latents_noisy, params["conv_in_w"], params["conv_in_b"])   # [E,8,8,32]
    res0 = sample
    r0 = resnet_block(params["down_res"], sample, emb)
    ds = conv2d_strided(r0, params["down_ds_w"], params["down_ds_b"], stride=2, padding=1)

    # mid block
    sample = resnet_block(params["mid_res1"], ds, emb)
    sample = cross_attn_block(params["mid_attn"], sample, ctx)
    sample = resnet_block(params["mid_res2"], sample, emb)

    # up blocks (consume skip connections in reverse order)
    up_ft = {}
    sample = resnet_block(params["up0_res"], jnp.concatenate([sample, ds], axis=-1), emb)
    sample = upsample_block(sample, params["up0_up_w"], params["up0_up_b"])     # [E,8,8,32]
    up_ft[0] = sample

    sample = resnet_block(params["up1_res1"], jnp.concatenate([sample, r0], axis=-1), emb)
    sample = cross_attn_block(params["up1_attn"], sample, ctx)
    sample = resnet_block(params["up1_res2"], jnp.concatenate([sample, res0], axis=-1), emb)
    up_ft[1] = sample

    feat = pallas_ensemble_mean(up_ft[up_ft_index])     # [1, h, w, c]  mean(0, keepdim)
    return jnp.transpose(feat, (0, 3, 1, 2)).astype(jnp.float32)   # NCHW [1, c, h, w]


# ----------------------------------------------------------------------------
if __name__ == "__main__":
    root = jax.random.PRNGKey(0)
    k_params, k_img, k_fwd = jax.random.split(root, 3)

    params = init_params(k_params)
    img = jax.random.normal(k_img, (1, 3, 16, 16), jnp.float32)  # [1, C, H, W]

    out = sd_featurizer_forward(params, img, k_fwd, t=261, up_ft_index=1, ensemble_size=4)
    out = jax.block_until_ready(out)

    assert out.shape == (1, C_MODEL, 8, 8), out.shape
    assert bool(jnp.all(jnp.isfinite(out)))
    print("KERNEL_OK")
</pallas_src>

<mosaic_0001>
module attributes {stable_mosaic.version = 11 : i64} {
  func.func @kernel(%arg0: i32, %arg1: i32, %arg2: memref<256x128xbf16, #tpu.memory_space<vmem>>, %arg3: memref<128x128xbf16, #tpu.memory_space<vmem>>, %arg4: memref<1x128xf32, #tpu.memory_space<vmem>>, %arg5: memref<256x128xbf16, #tpu.memory_space<vmem>>) attributes {dimension_semantics = [#tpu.dimension_semantics<parallel>, #tpu.dimension_semantics<parallel>], iteration_bounds = array<i64: 1, 1>, scalar_prefetch = 0 : i64, scratch_operands = 0 : i64, tpu.core_type = #tpu.core_type<tc>, window_params = [{transform_indices = @transform_0, window_bounds = array<i64: 256, 128>}, {transform_indices = @transform_1, window_bounds = array<i64: 128, 128>}, {transform_indices = @transform_2, window_bounds = array<i64: 1, 128>}, {transform_indices = @transform_3, window_bounds = array<i64: 256, 128>}]} {
    %c0 = arith.constant 0 : index
    %c0_0 = arith.constant 0 : index
    %0 = vector.load %arg2[%c0, %c0_0] : memref<256x128xbf16, #tpu.memory_space<vmem>>, vector<256x128xbf16>
    %c0_1 = arith.constant 0 : index
    %c0_2 = arith.constant 0 : index
    %1 = vector.load %arg3[%c0_1, %c0_2] : memref<128x128xbf16, #tpu.memory_space<vmem>>, vector<128x128xbf16>
    %cst = arith.constant dense<0.000000e+00> : vector<256x128xf32>
    %2 = tpu.matmul %0, %1, %cst {dimension_numbers = #tpu.dot_dimension_numbers<[1], [0], [0], [1], [0, 0, 1, 1], [], []>} : vector<256x128xbf16>, vector<128x128xbf16>, vector<256x128xf32> -> vector<256x128xf32>
    %c0_3 = arith.constant 0 : index
    %c0_4 = arith.constant 0 : index
    %3 = vector.load %arg4[%c0_3, %c0_4] : memref<1x128xf32, #tpu.memory_space<vmem>>, vector<1x128xf32>
    %4 = vector.broadcast %3 : vector<1x128xf32> to vector<256x128xf32>
    %5 = arith.addf %2, %4 : vector<256x128xf32>
    %6 = arith.negf %5 : vector<256x128xf32>
    %7 = math.exp %6 : vector<256x128xf32>
    %cst_5 = arith.constant 1.000000e+00 : f32
    %8 = vector.broadcast %cst_5 : f32 to vector<256x128xf32>
    %9 = arith.addf %8, %7 : vector<256x128xf32>
    %10 = arith.divf %8, %9 : vector<256x128xf32>
    %11 = arith.mulf %5, %10 : vector<256x128xf32>
    %12 = arith.truncf %11 : vector<256x128xf32> to vector<256x128xbf16>
    %c0_6 = arith.constant 0 : index
    %c0_7 = arith.constant 0 : index
    %13 = vector.load %arg5[%c0_6, %c0_7] : memref<256x128xbf16, #tpu.memory_space<vmem>>, vector<256x128xbf16>
    tpu.vector_store %arg5[%c0_6, %c0_7], %12 {strides = array<i32>} : memref<256x128xbf16, #tpu.memory_space<vmem>>, vector<256x128xbf16>,
    return
  }
  func.func @transform_0(%arg0: i32, %arg1: i32) -> (i32, i32) {
    %c0_i32 = arith.constant 0 : i32
    %c0_i32_0 = arith.constant 0 : i32
    return %arg0, %c0_i32 : i32, i32
  }
  func.func @transform_1(%arg0: i32, %arg1: i32) -> (i32, i32) {
    %c0_i32 = arith.constant 0 : i32
    %c0_i32_0 = arith.constant 0 : i32
    return %c0_i32, %arg1 : i32, i32
  }
  func.func @transform_2(%arg0: i32, %arg1: i32) -> (i32, i32) {
    %c0_i32 = arith.constant 0 : i32
    %c0_i32_0 = arith.constant 0 : i32
    return %c0_i32, %arg1 : i32, i32
  }
  func.func @transform_3(%arg0: i32, %arg1: i32) -> (i32, i32) {
    %c0_i32 = arith.constant 0 : i32
    return %arg0, %arg1 : i32, i32
  }
}

module attributes {stable_mosaic.version = 11 : i64} {
  func.func @kernel(%arg0: i32, %arg1: i32, %arg2: memref<256x128xbf16, #tpu.memory_space<vmem>>, %arg3: memref<128x128xbf16, #tpu.memory_space<vmem>>, %arg4: memref<1x128xf32, #tpu.memory_space<vmem>>, %arg5: memref<256x128xf32, #tpu.memory_space<vmem>>) attributes {dimension_semantics = [#tpu.dimension_semantics<parallel>, #tpu.dimension_semantics<parallel>], iteration_bounds = array<i64: 1, 1>, scalar_prefetch = 0 : i64, scratch_operands = 0 : i64, tpu.core_type = #tpu.core_type<tc>, window_params = [{transform_indices = @transform_0, window_bounds = array<i64: 256, 128>}, {transform_indices = @transform_1, window_bounds = array<i64: 128, 128>}, {transform_indices = @transform_2, window_bounds = array<i64: 1, 128>}, {transform_indices = @transform_3, window_bounds = array<i64: 256, 128>}]} {
    %c0 = arith.constant 0 : index
    %c0_0 = arith.constant 0 : index
    %0 = vector.load %arg2[%c0, %c0_0] : memref<256x128xbf16, #tpu.memory_space<vmem>>, vector<256x128xbf16>
    %c0_1 = arith.constant 0 : index
    %c0_2 = arith.constant 0 : index
    %1 = vector.load %arg3[%c0_1, %c0_2] : memref<128x128xbf16, #tpu.memory_space<vmem>>, vector<128x128xbf16>
    %cst = arith.constant dense<0.000000e+00> : vector<256x128xf32>
    %2 = tpu.matmul %0, %1, %cst {dimension_numbers = #tpu.dot_dimension_numbers<[1], [0], [0], [1], [0, 0, 1, 1], [], []>} : vector<256x128xbf16>, vector<128x128xbf16>, vector<256x128xf32> -> vector<256x128xf32>
    %c0_3 = arith.constant 0 : index
    %c0_4 = arith.constant 0 : index
    %3 = vector.load %arg4[%c0_3, %c0_4] : memref<1x128xf32, #tpu.memory_space<vmem>>, vector<1x128xf32>
    %4 = vector.broadcast %3 : vector<1x128xf32> to vector<256x128xf32>
    %5 = arith.addf %2, %4 : vector<256x128xf32>
    %c0_5 = arith.constant 0 : index
    %c0_6 = arith.constant 0 : index
    %6 = vector.load %arg5[%c0_5, %c0_6] : memref<256x128xf32, #tpu.memory_space<vmem>>, vector<256x128xf32>
    tpu.vector_store %arg5[%c0_5, %c0_6], %5 {strides = array<i32>} : memref<256x128xf32, #tpu.memory_space<vmem>>, vector<256x128xf32>,
    return
  }
  func.func @transform_0(%arg0: i32, %arg1: i32) -> (i32, i32) {
    %c0_i32 = arith.constant 0 : i32
    %c0_i32_0 = arith.constant 0 : i32
    return %arg0, %c0_i32 : i32, i32
  }
  func.func @transform_1(%arg0: i32, %arg1: i32) -> (i32, i32) {
    %c0_i32 = arith.constant 0 : i32
    %c0_i32_0 = arith.constant 0 : i32
    return %c0_i32, %arg1 : i32, i32
  }
  func.func @transform_2(%arg0: i32, %arg1: i32) -> (i32, i32) {
    %c0_i32 = arith.constant 0 : i32
    %c0_i32_0 = arith.constant 0 : i32
    return %c0_i32, %arg1 : i32, i32
  }
  func.func @transform_3(%arg0: i32, %arg1: i32) -> (i32, i32) {
    %c0_i32 = arith.constant 0 : i32
    return %arg0, %arg1 : i32, i32
  }
}

module attributes {stable_mosaic.version = 11 : i64} {
  func.func @kernel(%arg0: i32, %arg1: memref<1x128x128xbf16, #tpu.memory_space<vmem>>, %arg2: memref<9x128x128xbf16, #tpu.memory_space<vmem>>, %arg3: memref<1x128xf32, #tpu.memory_space<vmem>>, %arg4: memref<1x104x128xbf16, #tpu.memory_space<vmem>>) attributes {dimension_semantics = [#tpu.dimension_semantics<parallel>], iteration_bounds = array<i64: 4>, scalar_prefetch = 0 : i64, scratch_operands = 0 : i64, tpu.core_type = #tpu.core_type<tc>, window_params = [{transform_indices = @transform_0, window_bounds = array<i64: 1, 128, 128>}, {pipeline_mode = #tpu.pipeline_mode<synchronous>, transform_indices = @transform_1, window_bounds = array<i64: 9, 128, 128>}, {pipeline_mode = #tpu.pipeline_mode<synchronous>, transform_indices = @transform_2, window_bounds = array<i64: 1, 128>}, {transform_indices = @transform_3, window_bounds = array<i64: 1, 104, 128>}]} {
    %c0 = arith.constant 0 : index
    %c0_0 = arith.constant 0 : index
    %c0_1 = arith.constant 0 : index
    %0 = vector.load %arg1[%c0, %c0_0, %c0_1] : memref<1x128x128xbf16, #tpu.memory_space<vmem>>, vector<1x128x128xbf16>
    %1 = vector.shape_cast %0 : vector<1x128x128xbf16> to vector<128x128xbf16>
    %cst = arith.constant 0.000000e+00 : f32
    %2 = vector.broadcast %cst : f32 to vector<104x128xf32>
    %3 = vector.extract_strided_slice %1 {offsets = [0, 0], sizes = [104, 128], strides = [1, 1]} : vector<128x128xbf16> to vector<104x128xbf16>
    %c0_2 = arith.constant 0 : index
    %c0_3 = arith.constant 0 : index
    %c0_4 = arith.constant 0 : index
    %4 = vector.load %arg2[%c0_2, %c0_3, %c0_4] : memref<9x128x128xbf16, #tpu.memory_space<vmem>>, vector<1x128x128xbf16>
    %5 = vector.shape_cast %4 : vector<1x128x128xbf16> to vector<128x128xbf16>
    %cst_5 = arith.constant dense<0.000000e+00> : vector<104x128xf32>
    %6 = tpu.matmul %3, %5, %cst_5 {dimension_numbers = #tpu.dot_dimension_numbers<[1], [0], [0], [1], [0, 0, 1, 1], [], []>} : vector<104x128xbf16>, vector<128x128xbf16>, vector<104x128xf32> -> vector<104x128xf32>
    %7 = arith.addf %2, %6 : vector<104x128xf32>
    %8 = vector.extract_strided_slice %1 {offsets = [1, 0], sizes = [104, 128], strides = [1, 1]} : vector<128x128xbf16> to vector<104x128xbf16>
    %c1 = arith.constant 1 : index
    %c0_6 = arith.constant 0 : index
    %c0_7 = arith.constant 0 : index
    %9 = vector.load %arg2[%c1, %c0_6, %c0_7] : memref<9x128x128xbf16, #tpu.memory_space<vmem>>, vector<1x128x128xbf16>
    %10 = vector.shape_cast %9 : vector<1x128x128xbf16> to vector<128x128xbf16>
    %cst_8 = arith.constant dense<0.000000e+00> : vector<104x128xf32>
    %11 = tpu.matmul %8, %10, %cst_8 {dimension_numbers = #tpu.dot_dimension_numbers<[1], [0], [0], [1], [0, 0, 1, 1], [], []>} : vector<104x128xbf16>, vector<128x128xbf16>, vector<104x128xf32> -> vector<104x128xf32>
    %12 = arith.addf %7, %11 : vector<104x128xf32>
    %13 = vector.extract_strided_slice %1 {offsets = [2, 0], sizes = [104, 128], strides = [1, 1]} : vector<128x128xbf16> to vector<104x128xbf16>
    %c2 = arith.constant 2 : index
    %c0_9 = arith.constant 0 : index
    %c0_10 = arith.constant 0 : index
    %14 = vector.load %arg2[%c2, %c0_9, %c0_10] : memref<9x128x128xbf16, #tpu.memory_space<vmem>>, vector<1x128x128xbf16>
    %15 = vector.shape_cast %14 : vector<1x128x128xbf16> to vector<128x128xbf16>
    %cst_11 = arith.constant dense<0.000000e+00> : vector<104x128xf32>
    %16 = tpu.matmul %13, %15, %cst_11 {dimension_numbers = #tpu.dot_dimension_numbers<[1], [0], [0], [1], [0, 0, 1, 1], [], []>} : vector<104x128xbf16>, vector<128x128xbf16>, vector<104x128xf32> -> vector<104x128xf32>
    %17 = arith.addf %12, %16 : vector<104x128xf32>
    %18 = vector.extract_strided_slice %1 {offsets = [10, 0], sizes = [104, 128], strides = [1, 1]} : vector<128x128xbf16> to vector<104x128xbf16>
    %c3 = arith.constant 3 : index
    %c0_12 = arith.constant 0 : index
    %c0_13 = arith.constant 0 : index
    %19 = vector.load %arg2[%c3, %c0_12, %c0_13] : memref<9x128x128xbf16, #tpu.memory_space<vmem>>, vector<1x128x128xbf16>
    %20 = vector.shape_cast %19 : vector<1x128x128xbf16> to vector<128x128xbf16>
    %cst_14 = arith.constant dense<0.000000e+00> : vector<104x128xf32>
    %21 = tpu.matmul %18, %20, %cst_14 {dimension_numbers = #tpu.dot_dimension_numbers<[1], [0], [0], [1], [0, 0, 1, 1], [], []>} : vector<104x128xbf16>, vector<128x128xbf16>, vector<104x128xf32> -> vector<104x128xf32>
    %22 = arith.addf %17, %21 : vector<104x128xf32>
    %23 = vector.extract_strided_slice %1 {offsets = [11, 0], sizes = [104, 128], strides = [1, 1]} : vector<128x128xbf16> to vector<104x128xbf16>
    %c4 = arith.constant 4 : index
    %c0_15 = arith.constant 0 : index
    %c0_16 = arith.constant 0 : index
    %24 = vector.load %arg2[%c4, %c0_15, %c0_16] : memref<9x128x128xbf16, #tpu.memory_space<vmem>>, vector<1x128x128xbf16>
    %25 = vector.shape_cast %24 : vector<1x128x128xbf16> to vector<128x128xbf16>
    %cst_17 = arith.constant dense<0.000000e+00> : vector<104x128xf32>
    %26 = tpu.matmul %23, %25, %cst_17 {dimension_numbers = #tpu.dot_dimension_numbers<[1], [0], [0], [1], [0, 0, 1, 1], [], []>} : vector<104x128xbf16>, vector<128x128xbf16>, vector<104x128xf32> -> vector<104x128xf32>
    %27 = arith.addf %22, %26 : vector<104x128xf32>
    %28 = vector.extract_strided_slice %1 {offsets = [12, 0], sizes = [104, 128], strides = [1, 1]} : vector<128x128xbf16> to vector<104x128xbf16>
    %c5 = arith.constant 5 : index
    %c0_18 = arith.constant 0 : index
    %c0_19 = arith.constant 0 : index
    %29 = vector.load %arg2[%c5, %c0_18, %c0_19] : memref<9x128x128xbf16, #tpu.memory_space<vmem>>, vector<1x128x128xbf16>
    %30 = vector.shape_cast %29 : vector<1x128x128xbf16> to vector<128x128xbf16>
    %cst_20 = arith.constant dense<0.000000e+00> : vector<104x128xf32>
    %31 = tpu.matmul %28, %30, %cst_20 {dimension_numbers = #tpu.dot_dimension_numbers<[1], [0], [0], [1], [0, 0, 1, 1], [], []>} : vector<104x128xbf16>, vector<128x128xbf16>, vector<104x128xf32> -> vector<104x128xf32>
    %32 = arith.addf %27, %31 : vector<104x128xf32>
    %33 = vector.extract_strided_slice %1 {offsets = [20, 0], sizes = [104, 128], strides = [1, 1]} : vector<128x128xbf16> to vector<104x128xbf16>
    %c6 = arith.constant 6 : index
    %c0_21 = arith.constant 0 : index
    %c0_22 = arith.constant 0 : index
    %34 = vector.load %arg2[%c6, %c0_21, %c0_22] : memref<9x128x128xbf16, #tpu.memory_space<vmem>>, vector<1x128x128xbf16>
    %35 = vector.shape_cast %34 : vector<1x128x128xbf16> to vector<128x128xbf16>
    %cst_23 = arith.constant dense<0.000000e+00> : vector<104x128xf32>
    %36 = tpu.matmul %33, %35, %cst_23 {dimension_numbers = #tpu.dot_dimension_numbers<[1], [0], [0], [1], [0, 0, 1, 1], [], []>} : vector<104x128xbf16>, vector<128x128xbf16>, vector<104x128xf32> -> vector<104x128xf32>
    %37 = arith.addf %32, %36 : vector<104x128xf32>
    %38 = vector.extract_strided_slice %1 {offsets = [21, 0], sizes = [104, 128], strides = [1, 1]} : vector<128x128xbf16> to vector<104x128xbf16>
    %c7 = arith.constant 7 : index
    %c0_24 = arith.constant 0 : index
    %c0_25 = arith.constant 0 : index
    %39 = vector.load %arg2[%c7, %c0_24, %c0_25] : memref<9x128x128xbf16, #tpu.memory_space<vmem>>, vector<1x128x128xbf16>
    %40 = vector.shape_cast %39 : vector<1x128x128xbf16> to vector<128x128xbf16>
    %cst_26 = arith.constant dense<0.000000e+00> : vector<104x128xf32>
    %41 = tpu.matmul %38, %40, %cst_26 {dimension_numbers = #tpu.dot_dimension_numbers<[1], [0], [0], [1], [0, 0, 1, 1], [], []>} : vector<104x128xbf16>, vector<128x128xbf16>, vector<104x128xf32> -> vector<104x128xf32>
    %42 = arith.addf %37, %41 : vector<104x128xf32>
    %43 = vector.extract_strided_slice %1 {offsets = [22, 0], sizes = [104, 128], strides = [1, 1]} : vector<128x128xbf16> to vector<104x128xbf16>
    %c8 = arith.constant 8 : index
    %c0_27 = arith.constant 0 : index
    %c0_28 = arith.constant 0 : index
    %44 = vector.load %arg2[%c8, %c0_27, %c0_28] : memref<9x128x128xbf16, #tpu.memory_space<vmem>>, vector<1x128x128xbf16>
    %45 = vector.shape_cast %44 : vector<1x128x128xbf16> to vector<128x128xbf16>
    %cst_29 = arith.constant dense<0.000000e+00> : vector<104x128xf32>
    %46 = tpu.matmul %43, %45, %cst_29 {dimension_numbers = #tpu.dot_dimension_numbers<[1], [0], [0], [1], [0, 0, 1, 1], [], []>} : vector<104x128xbf16>, vector<128x128xbf16>, vector<104x128xf32> -> vector<104x128xf32>
    %47 = arith.addf %42, %46 : vector<104x128xf32>
    %c0_30 = arith.constant 0 : index
    %c0_31 = arith.constant 0 : index
    %48 = vector.load %arg3[%c0_30, %c0_31] : memref<1x128xf32, #tpu.memory_space<vmem>>, vector<1x128xf32>
    %49 = vector.broadcast %48 : vector<1x128xf32> to vector<104x128xf32>
    %50 = arith.addf %47, %49 : vector<104x128xf32>
    %51 = arith.truncf %50 : vector<104x128xf32> to vector<104x128xbf16>
    %c0_32 = arith.constant 0 : index
    %c0_33 = arith.constant 0 : index
    %c0_34 = arith.constant 0 : index
    %52 = vector.load %arg4[%c0_32, %c0_33, %c0_34] : memref<1x104x128xbf16, #tpu.memory_space<vmem>>, vector<1x104x128xbf16>
    %53 = vector.shape_cast %52 : vector<1x104x128xbf16> to vector<104x128xbf16>
    %54 = vector.shape_cast %51 : vector<104x128xbf16> to vector<1x104x128xbf16>
    tpu.vector_store %arg4[%c0_32, %c0_33, %c0_34], %54 {strides = array<i32>} : memref<1x104x128xbf16, #tpu.memory_space<vmem>>, vector<1x104x128xbf16>,
    return
  }
  func.func @transform_0(%arg0: i32) -> (i32, i32, i32) {
    %c0_i32 = arith.constant 0 : i32
    %c0_i32_0 = arith.constant 0 : i32
    %c0_i32_1 = arith.constant 0 : i32
    return %arg0, %c0_i32, %c0_i32_0 : i32, i32, i32
  }
  func.func @transform_1(%arg0: i32) -> (i32, i32, i32) {
    %c0_i32 = arith.constant 0 : i32
    %c0_i32_0 = arith.constant 0 : i32
    %c0_i32_1 = arith.constant 0 : i32
    %c0_i32_2 = arith.constant 0 : i32
    return %c0_i32, %c0_i32_0, %c0_i32_1 : i32, i32, i32
  }
  func.func @transform_2(%arg0: i32) -> (i32, i32) {
    %c0_i32 = arith.constant 0 : i32
    %c0_i32_0 = arith.constant 0 : i32
    %c0_i32_1 = arith.constant 0 : i32
    return %c0_i32, %c0_i32_0 : i32, i32
  }
  func.func @transform_3(%arg0: i32) -> (i32, i32, i32) {
    %c0_i32 = arith.constant 0 : i32
    %c0_i32_0 = arith.constant 0 : i32
    %c0_i32_1 = arith.constant 0 : i32
    return %arg0, %c0_i32, %c0_i32_0 : i32, i32, i32
  }
}

module attributes {stable_mosaic.version = 11 : i64} {
  func.func @kernel(%arg0: i32, %arg1: memref<1x128x128xbf16, #tpu.memory_space<vmem>>, %arg2: memref<9x128x128xbf16, #tpu.memory_space<vmem>>, %arg3: memref<1x128xf32, #tpu.memory_space<vmem>>, %arg4: memref<1x1x128xf32, #tpu.memory_space<vmem>>, %arg5: memref<1x1x128xf32, #tpu.memory_space<vmem>>, %arg6: memref<128x1xf32, #tpu.memory_space<vmem>>, %arg7: memref<1x104x128xbf16, #tpu.memory_space<vmem>>) attributes {dimension_semantics = [#tpu.dimension_semantics<parallel>], iteration_bounds = array<i64: 4>, scalar_prefetch = 0 : i64, scratch_operands = 0 : i64, tpu.core_type = #tpu.core_type<tc>, window_params = [{transform_indices = @transform_0, window_bounds = array<i64: 1, 128, 128>}, {pipeline_mode = #tpu.pipeline_mode<synchronous>, transform_indices = @transform_1, window_bounds = array<i64: 9, 128, 128>}, {pipeline_mode = #tpu.pipeline_mode<synchronous>, transform_indices = @transform_2, window_bounds = array<i64: 1, 128>}, {transform_indices = @transform_3, window_bounds = array<i64: 1, 1, 128>}, {transform_indices = @transform_4, window_bounds = array<i64: 1, 1, 128>}, {pipeline_mode = #tpu.pipeline_mode<synchronous>, transform_indices = @transform_5, window_bounds = array<i64: 128, 1>}, {transform_indices = @transform_6, window_bounds = array<i64: 1, 104, 128>}]} {
    %c0 = arith.constant 0 : index
    %c0_0 = arith.constant 0 : index
    %c0_1 = arith.constant 0 : index
    %0 = vector.load %arg1[%c0, %c0_0, %c0_1] : memref<1x128x128xbf16, #tpu.memory_space<vmem>>, vector<1x128x128xbf16>
    %1 = vector.shape_cast %0 : vector<1x128x128xbf16> to vector<128x128xbf16>
    %2 = arith.extf %1 : vector<128x128xbf16> to vector<128x128xf32>
    %c0_2 = arith.constant 0 : index
    %c0_3 = arith.constant 0 : index
    %c0_4 = arith.constant 0 : index
    %3 = vector.load %arg4[%c0_2, %c0_3, %c0_4] : memref<1x1x128xf32, #tpu.memory_space<vmem>>, vector<1x1x128xf32>
    %4 = vector.shape_cast %3 : vector<1x1x128xf32> to vector<1x128xf32>
    %5 = vector.broadcast %4 : vector<1x128xf32> to vector<128x128xf32>
    %6 = arith.mulf %2, %5 : vector<128x128xf32>
    %c0_5 = arith.constant 0 : index
    %c0_6 = arith.constant 0 : index
    %c0_7 = arith.constant 0 : index
    %7 = vector.load %arg5[%c0_5, %c0_6, %c0_7] : memref<1x1x128xf32, #tpu.memory_space<vmem>>, vector<1x1x128xf32>
    %8 = vector.shape_cast %7 : vector<1x1x128xf32> to vector<1x128xf32>
    %9 = vector.broadcast %8 : vector<1x128xf32> to vector<128x128xf32>
    %10 = arith.addf %6, %9 : vector<128x128xf32>
    %c0_8 = arith.constant 0 : index
    %c0_9 = arith.constant 0 : index
    %11 = vector.load %arg6[%c0_8, %c0_9] : memref<128x1xf32, #tpu.memory_space<vmem>>, vector<128x1xf32>
    %12 = vector.broadcast %11 : vector<128x1xf32> to vector<128x128xf32>
    %13 = arith.mulf %10, %12 : vector<128x128xf32>
    %14 = arith.negf %13 : vector<128x128xf32>
    %15 = math.exp %14 : vector<128x128xf32>
    %cst = arith.constant 1.000000e+00 : f32
    %16 = vector.broadcast %cst : f32 to vector<128x128xf32>
    %17 = arith.addf %16, %15 : vector<128x128xf32>
    %18 = arith.divf %16, %17 : vector<128x128xf32>
    %19 = arith.mulf %13, %18 : vector<128x128xf32>
    %20 = arith.truncf %19 : vector<128x128xf32> to vector<128x128xbf16>
    %cst_10 = arith.constant 0.000000e+00 : f32
    %21 = vector.broadcast %cst_10 : f32 to vector<104x128xf32>
    %22 = vector.extract_strided_slice %20 {offsets = [0, 0], sizes = [104, 128], strides = [1, 1]} : vector<128x128xbf16> to vector<104x128xbf16>
    %c0_11 = arith.constant 0 : index
    %c0_12 = arith.constant 0 : index
    %c0_13 = arith.constant 0 : index
    %23 = vector.load %arg2[%c0_11, %c0_12, %c0_13] : memref<9x128x128xbf16, #tpu.memory_space<vmem>>, vector<1x128x128xbf16>
    %24 = vector.shape_cast %23 : vector<1x128x128xbf16> to vector<128x128xbf16>
    %cst_14 = arith.constant dense<0.000000e+00> : vector<104x128xf32>
    %25 = tpu.matmul %22, %24, %cst_14 {dimension_numbers = #tpu.dot_dimension_numbers<[1], [0], [0], [1], [0, 0, 1, 1], [], []>} : vector<104x128xbf16>, vector<128x128xbf16>, vector<104x128xf32> -> vector<104x128xf32>
    %26 = arith.addf %21, %25 : vector<104x128xf32>
    %27 = vector.extract_strided_slice %20 {offsets = [1, 0], sizes = [104, 128], strides = [1, 1]} : vector<128x128xbf16> to vector<104x128xbf16>
    %c1 = arith.constant 1 : index
    %c0_15 = arith.constant 0 : index
    %c0_16 = arith.constant 0 : index
    %28 = vector.load %arg2[%c1, %c0_15, %c0_16] : memref<9x128x128xbf16, #tpu.memory_space<vmem>>, vector<1x128x128xbf16>
    %29 = vector.shape_cast %28 : vector<1x128x128xbf16> to vector<128x128xbf16>
    %cst_17 = arith.constant dense<0.000000e+00> : vector<104x128xf32>
    %30 = tpu.matmul %27, %29, %cst_17 {dimension_numbers = #tpu.dot_dimension_numbers<[1], [0], [0], [1], [0, 0, 1, 1], [], []>} : vector<104x128xbf16>, vector<128x128xbf16>, vector<104x128xf32> -> vector<104x128xf32>
    %31 = arith.addf %26, %30 : vector<104x128xf32>
    %32 = vector.extract_strided_slice %20 {offsets = [2, 0], sizes = [104, 128], strides = [1, 1]} : vector<128x128xbf16> to vector<104x128xbf16>
    %c2 = arith.constant 2 : index
    %c0_18 = arith.constant 0 : index
    %c0_19 = arith.constant 0 : index
    %33 = vector.load %arg2[%c2, %c0_18, %c0_19] : memref<9x128x128xbf16, #tpu.memory_space<vmem>>, vector<1x128x128xbf16>
    %34 = vector.shape_cast %33 : vector<1x128x128xbf16> to vector<128x128xbf16>
    %cst_20 = arith.constant dense<0.000000e+00> : vector<104x128xf32>
    %35 = tpu.matmul %32, %34, %cst_20 {dimension_numbers = #tpu.dot_dimension_numbers<[1], [0], [0], [1], [0, 0, 1, 1], [], []>} : vector<104x128xbf16>, vector<128x128xbf16>, vector<104x128xf32> -> vector<104x128xf32>
    %36 = arith.addf %31, %35 : vector<104x128xf32>
    %37 = vector.extract_strided_slice %20 {offsets = [10, 0], sizes = [104, 128], strides = [1, 1]} : vector<128x128xbf16> to vector<104x128xbf16>
    %c3 = arith.constant 3 : index
    %c0_21 = arith.constant 0 : index
    %c0_22 = arith.constant 0 : index
    %38 = vector.load %arg2[%c3, %c0_21, %c0_22] : memref<9x128x128xbf16, #tpu.memory_space<vmem>>, vector<1x128x128xbf16>
    %39 = vector.shape_cast %38 : vector<1x128x128xbf16> to vector<128x128xbf16>
    %cst_23 = arith.constant dense<0.000000e+00> : vector<104x128xf32>
    %40 = tpu.matmul %37, %39, %cst_23 {dimension_numbers = #tpu.dot_dimension_numbers<[1], [0], [0], [1], [0, 0, 1, 1], [], []>} : vector<104x128xbf16>, vector<128x128xbf16>, vector<104x128xf32> -> vector<104x128xf32>
    %41 = arith.addf %36, %40 : vector<104x128xf32>
    %42 = vector.extract_strided_slice %20 {offsets = [11, 0], sizes = [104, 128], strides = [1, 1]} : vector<128x128xbf16> to vector<104x128xbf16>
    %c4 = arith.constant 4 : index
    %c0_24 = arith.constant 0 : index
    %c0_25 = arith.constant 0 : index
    %43 = vector.load %arg2[%c4, %c0_24, %c0_25] : memref<9x128x128xbf16, #tpu.memory_space<vmem>>, vector<1x128x128xbf16>
    %44 = vector.shape_cast %43 : vector<1x128x128xbf16> to vector<128x128xbf16>
    %cst_26 = arith.constant dense<0.000000e+00> : vector<104x128xf32>
    %45 = tpu.matmul %42, %44, %cst_26 {dimension_numbers = #tpu.dot_dimension_numbers<[1], [0], [0], [1], [0, 0, 1, 1], [], []>} : vector<104x128xbf16>, vector<128x128xbf16>, vector<104x128xf32> -> vector<104x128xf32>
    %46 = arith.addf %41, %45 : vector<104x128xf32>
    %47 = vector.extract_strided_slice %20 {offsets = [12, 0], sizes = [104, 128], strides = [1, 1]} : vector<128x128xbf16> to vector<104x128xbf16>
    %c5 = arith.constant 5 : index
    %c0_27 = arith.constant 0 : index
    %c0_28 = arith.constant 0 : index
    %48 = vector.load %arg2[%c5, %c0_27, %c0_28] : memref<9x128x128xbf16, #tpu.memory_space<vmem>>, vector<1x128x128xbf16>
    %49 = vector.shape_cast %48 : vector<1x128x128xbf16> to vector<128x128xbf16>
    %cst_29 = arith.constant dense<0.000000e+00> : vector<104x128xf32>
    %50 = tpu.matmul %47, %49, %cst_29 {dimension_numbers = #tpu.dot_dimension_numbers<[1], [0], [0], [1], [0, 0, 1, 1], [], []>} : vector<104x128xbf16>, vector<128x128xbf16>, vector<104x128xf32> -> vector<104x128xf32>
    %51 = arith.addf %46, %50 : vector<104x128xf32>
    %52 = vector.extract_strided_slice %20 {offsets = [20, 0], sizes = [104, 128], strides = [1, 1]} : vector<128x128xbf16> to vector<104x128xbf16>
    %c6 = arith.constant 6 : index
    %c0_30 = arith.constant 0 : index
    %c0_31 = arith.constant 0 : index
    %53 = vector.load %arg2[%c6, %c0_30, %c0_31] : memref<9x128x128xbf16, #tpu.memory_space<vmem>>, vector<1x128x128xbf16>
    %54 = vector.shape_cast %53 : vector<1x128x128xbf16> to vector<128x128xbf16>
    %cst_32 = arith.constant dense<0.000000e+00> : vector<104x128xf32>
    %55 = tpu.matmul %52, %54, %cst_32 {dimension_numbers = #tpu.dot_dimension_numbers<[1], [0], [0], [1], [0, 0, 1, 1], [], []>} : vector<104x128xbf16>, vector<128x128xbf16>, vector<104x128xf32> -> vector<104x128xf32>
    %56 = arith.addf %51, %55 : vector<104x128xf32>
    %57 = vector.extract_strided_slice %20 {offsets = [21, 0], sizes = [104, 128], strides = [1, 1]} : vector<128x128xbf16> to vector<104x128xbf16>
    %c7 = arith.constant 7 : index
    %c0_33 = arith.constant 0 : index
    %c0_34 = arith.constant 0 : index
    %58 = vector.load %arg2[%c7, %c0_33, %c0_34] : memref<9x128x128xbf16, #tpu.memory_space<vmem>>, vector<1x128x128xbf16>
    %59 = vector.shape_cast %58 : vector<1x128x128xbf16> to vector<128x128xbf16>
    %cst_35 = arith.constant dense<0.000000e+00> : vector<104x128xf32>
    %60 = tpu.matmul %57, %59, %cst_35 {dimension_numbers = #tpu.dot_dimension_numbers<[1], [0], [0], [1], [0, 0, 1, 1], [], []>} : vector<104x128xbf16>, vector<128x128xbf16>, vector<104x128xf32> -> vector<104x128xf32>
    %61 = arith.addf %56, %60 : vector<104x128xf32>
    %62 = vector.extract_strided_slice %20 {offsets = [22, 0], sizes = [104, 128], strides = [1, 1]} : vector<128x128xbf16> to vector<104x128xbf16>
    %c8 = arith.constant 8 : index
    %c0_36 = arith.constant 0 : index
    %c0_37 = arith.constant 0 : index
    %63 = vector.load %arg2[%c8, %c0_36, %c0_37] : memref<9x128x128xbf16, #tpu.memory_space<vmem>>, vector<1x128x128xbf16>
    %64 = vector.shape_cast %63 : vector<1x128x128xbf16> to vector<128x128xbf16>
    %cst_38 = arith.constant dense<0.000000e+00> : vector<104x128xf32>
    %65 = tpu.matmul %62, %64, %cst_38 {dimension_numbers = #tpu.dot_dimension_numbers<[1], [0], [0], [1], [0, 0, 1, 1], [], []>} : vector<104x128xbf16>, vector<128x128xbf16>, vector<104x128xf32> -> vector<104x128xf32>
    %66 = arith.addf %61, %65 : vector<104x128xf32>
    %c0_39 = arith.constant 0 : index
    %c0_40 = arith.constant 0 : index
    %67 = vector.load %arg3[%c0_39, %c0_40] : memref<1x128xf32, #tpu.memory_space<vmem>>, vector<1x128xf32>
    %68 = vector.broadcast %67 : vector<1x128xf32> to vector<104x128xf32>
    %69 = arith.addf %66, %68 : vector<104x128xf32>
    %70 = arith.truncf %69 : vector<104x128xf32> to vector<104x128xbf16>
    %c0_41 = arith.constant 0 : index
    %c0_42 = arith.constant 0 : index
    %c0_43 = arith.constant 0 : index
    %71 = vector.load %arg7[%c0_41, %c0_42, %c0_43] : memref<1x104x128xbf16, #tpu.memory_space<vmem>>, vector<1x104x128xbf16>
    %72 = vector.shape_cast %71 : vector<1x104x128xbf16> to vector<104x128xbf16>
    %73 = vector.shape_cast %70 : vector<104x128xbf16> to vector<1x104x128xbf16>
    tpu.vector_store %arg7[%c0_41, %c0_42, %c0_43], %73 {strides = array<i32>} : memref<1x104x128xbf16, #tpu.memory_space<vmem>>, vector<1x104x128xbf16>,
    return
  }
  func.func @transform_0(%arg0: i32) -> (i32, i32, i32) {
    %c0_i32 = arith.constant 0 : i32
    %c0_i32_0 = arith.constant 0 : i32
    %c0_i32_1 = arith.constant 0 : i32
    return %arg0, %c0_i32, %c0_i32_0 : i32, i32, i32
  }
  func.func @transform_1(%arg0: i32) -> (i32, i32, i32) {
    %c0_i32 = arith.constant 0 : i32
    %c0_i32_0 = arith.constant 0 : i32
    %c0_i32_1 = arith.constant 0 : i32
    %c0_i32_2 = arith.constant 0 : i32
    return %c0_i32, %c0_i32_0, %c0_i32_1 : i32, i32, i32
  }
  func.func @transform_2(%arg0: i32) -> (i32, i32) {
    %c0_i32 = arith.constant 0 : i32
    %c0_i32_0 = arith.constant 0 : i32
    %c0_i32_1 = arith.constant 0 : i32
    return %c0_i32, %c0_i32_0 : i32, i32
  }
  func.func @transform_3(%arg0: i32) -> (i32, i32, i32) {
    %c0_i32 = arith.constant 0 : i32
    %c0_i32_0 = arith.constant 0 : i32
    %c0_i32_1 = arith.constant 0 : i32
    return %arg0, %c0_i32, %c0_i32_0 : i32, i32, i32
  }
  func.func @transform_4(%arg0: i32) -> (i32, i32, i32) {
    %c0_i32 = arith.constant 0 : i32
    %c0_i32_0 = arith.constant 0 : i32
    %c0_i32_1 = arith.constant 0 : i32
    return %arg0, %c0_i32, %c0_i32_0 : i32, i32, i32
  }
  func.func @transform_5(%arg0: i32) -> (i32, i32) {
    %c0_i32 = arith.constant 0 : i32
    %c0_i32_0 = arith.constant 0 : i32
    %c0_i32_1 = arith.constant 0 : i32
    return %c0_i32, %c0_i32_0 : i32, i32
  }
  func.func @transform_6(%arg0: i32) -> (i32, i32, i32) {
    %c0_i32 = arith.constant 0 : i32
    %c0_i32_0 = arith.constant 0 : i32
    %c0_i32_1 = arith.constant 0 : i32
    return %arg0, %c0_i32, %c0_i32_0 : i32, i32, i32
  }
}

module attributes {stable_mosaic.version = 11 : i64} {
  func.func @kernel(%arg0: i32, %arg1: i32, %arg2: memref<64x384xbf16, #tpu.memory_space<vmem>>, %arg3: memref<384x128xbf16, #tpu.memory_space<vmem>>, %arg4: memref<1x128xf32, #tpu.memory_space<vmem>>, %arg5: memref<64x128xbf16, #tpu.memory_space<vmem>>) attributes {dimension_semantics = [#tpu.dimension_semantics<parallel>, #tpu.dimension_semantics<parallel>], iteration_bounds = array<i64: 1, 1>, scalar_prefetch = 0 : i64, scratch_operands = 0 : i64, tpu.core_type = #tpu.core_type<tc>, window_params = [{transform_indices = @transform_0, window_bounds = array<i64: 64, 384>}, {transform_indices = @transform_1, window_bounds = array<i64: 384, 128>}, {transform_indices = @transform_2, window_bounds = array<i64: 1, 128>}, {transform_indices = @transform_3, window_bounds = array<i64: 64, 128>}]} {
    %c0 = arith.constant 0 : index
    %c0_0 = arith.constant 0 : index
    %0 = vector.load %arg2[%c0, %c0_0] : memref<64x384xbf16, #tpu.memory_space<vmem>>, vector<64x384xbf16>
    %c0_1 = arith.constant 0 : index
    %c0_2 = arith.constant 0 : index
    %1 = vector.load %arg3[%c0_1, %c0_2] : memref<384x128xbf16, #tpu.memory_space<vmem>>, vector<384x128xbf16>
    %cst = arith.constant dense<0.000000e+00> : vector<64x128xf32>
    %2 = tpu.matmul %0, %1, %cst {dimension_numbers = #tpu.dot_dimension_numbers<[1], [0], [0], [1], [0, 0, 1, 1], [], []>} : vector<64x384xbf16>, vector<384x128xbf16>, vector<64x128xf32> -> vector<64x128xf32>
    %c0_3 = arith.constant 0 : index
    %c0_4 = arith.constant 0 : index
    %3 = vector.load %arg4[%c0_3, %c0_4] : memref<1x128xf32, #tpu.memory_space<vmem>>, vector<1x128xf32>
    %4 = vector.broadcast %3 : vector<1x128xf32> to vector<64x128xf32>
    %5 = arith.addf %2, %4 : vector<64x128xf32>
    %6 = arith.truncf %5 : vector<64x128xf32> to vector<64x128xbf16>
    %c0_5 = arith.constant 0 : index
    %c0_6 = arith.constant 0 : index
    %7 = vector.load %arg5[%c0_5, %c0_6] : memref<64x128xbf16, #tpu.memory_space<vmem>>, vector<64x128xbf16>
    tpu.vector_store %arg5[%c0_5, %c0_6], %6 {strides = array<i32>} : memref<64x128xbf16, #tpu.memory_space<vmem>>, vector<64x128xbf16>,
    return
  }
  func.func @transform_0(%arg0: i32, %arg1: i32) -> (i32, i32) {
    %c0_i32 = arith.constant 0 : i32
    %c0_i32_0 = arith.constant 0 : i32
    return %arg0, %c0_i32 : i32, i32
  }
  func.func @transform_1(%arg0: i32, %arg1: i32) -> (i32, i32) {
    %c0_i32 = arith.constant 0 : i32
    %c0_i32_0 = arith.constant 0 : i32
    return %c0_i32, %arg1 : i32, i32
  }
  func.func @transform_2(%arg0: i32, %arg1: i32) -> (i32, i32) {
    %c0_i32 = arith.constant 0 : i32
    %c0_i32_0 = arith.constant 0 : i32
    return %c0_i32, %arg1 : i32, i32
  }
  func.func @transform_3(%arg0: i32, %arg1: i32) -> (i32, i32) {
    %c0_i32 = arith.constant 0 : i32
    return %arg0, %arg1 : i32, i32
  }
}

module attributes {stable_mosaic.version = 11 : i64} {
  func.func @kernel(%arg0: i32, %arg1: memref<1x56x128xbf16, #tpu.memory_space<vmem>>, %arg2: memref<9x128x128xbf16, #tpu.memory_space<vmem>>, %arg3: memref<1x128xf32, #tpu.memory_space<vmem>>, %arg4: memref<1x1x128xf32, #tpu.memory_space<vmem>>, %arg5: memref<1x1x128xf32, #tpu.memory_space<vmem>>, %arg6: memref<56x1xf32, #tpu.memory_space<vmem>>, %arg7: memref<1x40x128xbf16, #tpu.memory_space<vmem>>) attributes {dimension_semantics = [#tpu.dimension_semantics<parallel>], iteration_bounds = array<i64: 4>, scalar_prefetch = 0 : i64, scratch_operands = 0 : i64, tpu.core_type = #tpu.core_type<tc>, window_params = [{transform_indices = @transform_0, window_bounds = array<i64: 1, 56, 128>}, {pipeline_mode = #tpu.pipeline_mode<synchronous>, transform_indices = @transform_1, window_bounds = array<i64: 9, 128, 128>}, {pipeline_mode = #tpu.pipeline_mode<synchronous>, transform_indices = @transform_2, window_bounds = array<i64: 1, 128>}, {transform_indices = @transform_3, window_bounds = array<i64: 1, 1, 128>}, {transform_indices = @transform_4, window_bounds = array<i64: 1, 1, 128>}, {pipeline_mode = #tpu.pipeline_mode<synchronous>, transform_indices = @transform_5, window_bounds = array<i64: 56, 1>}, {transform_indices = @transform_6, window_bounds = array<i64: 1, 40, 128>}]} {
    %c0 = arith.constant 0 : index
    %c0_0 = arith.constant 0 : index
    %c0_1 = arith.constant 0 : index
    %0 = vector.load %arg1[%c0, %c0_0, %c0_1] : memref<1x56x128xbf16, #tpu.memory_space<vmem>>, vector<1x56x128xbf16>
    %1 = vector.shape_cast %0 : vector<1x56x128xbf16> to vector<56x128xbf16>
    %2 = arith.extf %1 : vector<56x128xbf16> to vector<56x128xf32>
    %c0_2 = arith.constant 0 : index
    %c0_3 = arith.constant 0 : index
    %c0_4 = arith.constant 0 : index
    %3 = vector.load %arg4[%c0_2, %c0_3, %c0_4] : memref<1x1x128xf32, #tpu.memory_space<vmem>>, vector<1x1x128xf32>
    %4 = vector.shape_cast %3 : vector<1x1x128xf32> to vector<1x128xf32>
    %5 = vector.broadcast %4 : vector<1x128xf32> to vector<56x128xf32>
    %6 = arith.mulf %2, %5 : vector<56x128xf32>
    %c0_5 = arith.constant 0 : index
    %c0_6 = arith.constant 0 : index
    %c0_7 = arith.constant 0 : index
    %7 = vector.load %arg5[%c0_5, %c0_6, %c0_7] : memref<1x1x128xf32, #tpu.memory_space<vmem>>, vector<1x1x128xf32>
    %8 = vector.shape_cast %7 : vector<1x1x128xf32> to vector<1x128xf32>
    %9 = vector.broadcast %8 : vector<1x128xf32> to vector<56x128xf32>
    %10 = arith.addf %6, %9 : vector<56x128xf32>
    %c0_8 = arith.constant 0 : index
    %c0_9 = arith.constant 0 : index
    %11 = vector.load %arg6[%c0_8, %c0_9] : memref<56x1xf32, #tpu.memory_space<vmem>>, vector<56x1xf32>
    %12 = vector.broadcast %11 : vector<56x1xf32> to vector<56x128xf32>
    %13 = arith.mulf %10, %12 : vector<56x128xf32>
    %14 = arith.negf %13 : vector<56x128xf32>
    %15 = math.exp %14 : vector<56x128xf32>
    %cst = arith.constant 1.000000e+00 : f32
    %16 = vector.broadcast %cst : f32 to vector<56x128xf32>
    %17 = arith.addf %16, %15 : vector<56x128xf32>
    %18 = arith.divf %16, %17 : vector<56x128xf32>
    %19 = arith.mulf %13, %18 : vector<56x128xf32>
    %20 = arith.truncf %19 : vector<56x128xf32> to vector<56x128xbf16>
    %cst_10 = arith.constant 0.000000e+00 : f32
    %21 = vector.broadcast %cst_10 : f32 to vector<40x128xf32>
    %22 = vector.extract_strided_slice %20 {offsets = [0, 0], sizes = [40, 128], strides = [1, 1]} : vector<56x128xbf16> to vector<40x128xbf16>
    %c0_11 = arith.constant 0 : index
    %c0_12 = arith.constant 0 : index
    %c0_13 = arith.constant 0 : index
    %23 = vector.load %arg2[%c0_11, %c0_12, %c0_13] : memref<9x128x128xbf16, #tpu.memory_space<vmem>>, vector<1x128x128xbf16>
    %24 = vector.shape_cast %23 : vector<1x128x128xbf16> to vector<128x128xbf16>
    %cst_14 = arith.constant dense<0.000000e+00> : vector<40x128xf32>
    %25 = tpu.matmul %22, %24, %cst_14 {dimension_numbers = #tpu.dot_dimension_numbers<[1], [0], [0], [1], [0, 0, 1, 1], [], []>} : vector<40x128xbf16>, vector<128x128xbf16>, vector<40x128xf32> -> vector<40x128xf32>
    %26 = arith.addf %21, %25 : vector<40x128xf32>
    %27 = vector.extract_strided_slice %20 {offsets = [1, 0], sizes = [40, 128], strides = [1, 1]} : vector<56x128xbf16> to vector<40x128xbf16>
    %c1 = arith.constant 1 : index
    %c0_15 = arith.constant 0 : index
    %c0_16 = arith.constant 0 : index
    %28 = vector.load %arg2[%c1, %c0_15, %c0_16] : memref<9x128x128xbf16, #tpu.memory_space<vmem>>, vector<1x128x128xbf16>
    %29 = vector.shape_cast %28 : vector<1x128x128xbf16> to vector<128x128xbf16>
    %cst_17 = arith.constant dense<0.000000e+00> : vector<40x128xf32>
    %30 = tpu.matmul %27, %29, %cst_17 {dimension_numbers = #tpu.dot_dimension_numbers<[1], [0], [0], [1], [0, 0, 1, 1], [], []>} : vector<40x128xbf16>, vector<128x128xbf16>, vector<40x128xf32> -> vector<40x128xf32>
    %31 = arith.addf %26, %30 : vector<40x128xf32>
    %32 = vector.extract_strided_slice %20 {offsets = [2, 0], sizes = [40, 128], strides = [1, 1]} : vector<56x128xbf16> to vector<40x128xbf16>
    %c2 = arith.constant 2 : index
    %c0_18 = arith.constant 0 : index
    %c0_19 = arith.constant 0 : index
    %33 = vector.load %arg2[%c2, %c0_18, %c0_19] : memref<9x128x128xbf16, #tpu.memory_space<vmem>>, vector<1x128x128xbf16>
    %34 = vector.shape_cast %33 : vector<1x128x128xbf16> to vector<128x128xbf16>
    %cst_20 = arith.constant dense<0.000000e+00> : vector<40x128xf32>
    %35 = tpu.matmul %32, %34, %cst_20 {dimension_numbers = #tpu.dot_dimension_numbers<[1], [0], [0], [1], [0, 0, 1, 1], [], []>} : vector<40x128xbf16>, vector<128x128xbf16>, vector<40x128xf32> -> vector<40x128xf32>
    %36 = arith.addf %31, %35 : vector<40x128xf32>
    %37 = vector.extract_strided_slice %20 {offsets = [6, 0], sizes = [40, 128], strides = [1, 1]} : vector<56x128xbf16> to vector<40x128xbf16>
    %c3 = arith.constant 3 : index
    %c0_21 = arith.constant 0 : index
    %c0_22 = arith.constant 0 : index
    %38 = vector.load %arg2[%c3, %c0_21, %c0_22] : memref<9x128x128xbf16, #tpu.memory_space<vmem>>, vector<1x128x128xbf16>
    %39 = vector.shape_cast %38 : vector<1x128x128xbf16> to vector<128x128xbf16>
    %cst_23 = arith.constant dense<0.000000e+00> : vector<40x128xf32>
    %40 = tpu.matmul %37, %39, %cst_23 {dimension_numbers = #tpu.dot_dimension_numbers<[1], [0], [0], [1], [0, 0, 1, 1], [], []>} : vector<40x128xbf16>, vector<128x128xbf16>, vector<40x128xf32> -> vector<40x128xf32>
    %41 = arith.addf %36, %40 : vector<40x128xf32>
    %42 = vector.extract_strided_slice %20 {offsets = [7, 0], sizes = [40, 128], strides = [1, 1]} : vector<56x128xbf16> to vector<40x128xbf16>
    %c4 = arith.constant 4 : index
    %c0_24 = arith.constant 0 : index
    %c0_25 = arith.constant 0 : index
    %43 = vector.load %arg2[%c4, %c0_24, %c0_25] : memref<9x128x128xbf16, #tpu.memory_space<vmem>>, vector<1x128x128xbf16>
    %44 = vector.shape_cast %43 : vector<1x128x128xbf16> to vector<128x128xbf16>
    %cst_26 = arith.constant dense<0.000000e+00> : vector<40x128xf32>
    %45 = tpu.matmul %42, %44, %cst_26 {dimension_numbers = #tpu.dot_dimension_numbers<[1], [0], [0], [1], [0, 0, 1, 1], [], []>} : vector<40x128xbf16>, vector<128x128xbf16>, vector<40x128xf32> -> vector<40x128xf32>
    %46 = arith.addf %41, %45 : vector<40x128xf32>
    %47 = vector.extract_strided_slice %20 {offsets = [8, 0], sizes = [40, 128], strides = [1, 1]} : vector<56x128xbf16> to vector<40x128xbf16>
    %c5 = arith.constant 5 : index
    %c0_27 = arith.constant 0 : index
    %c0_28 = arith.constant 0 : index
    %48 = vector.load %arg2[%c5, %c0_27, %c0_28] : memref<9x128x128xbf16, #tpu.memory_space<vmem>>, vector<1x128x128xbf16>
    %49 = vector.shape_cast %48 : vector<1x128x128xbf16> to vector<128x128xbf16>
    %cst_29 = arith.constant dense<0.000000e+00> : vector<40x128xf32>
    %50 = tpu.matmul %47, %49, %cst_29 {dimension_numbers = #tpu.dot_dimension_numbers<[1], [0], [0], [1], [0, 0, 1, 1], [], []>} : vector<40x128xbf16>, vector<128x128xbf16>, vector<40x128xf32> -> vector<40x128xf32>
    %51 = arith.addf %46, %50 : vector<40x128xf32>
    %52 = vector.extract_strided_slice %20 {offsets = [12, 0], sizes = [40, 128], strides = [1, 1]} : vector<56x128xbf16> to vector<40x128xbf16>
    %c6 = arith.constant 6 : index
    %c0_30 = arith.constant 0 : index
    %c0_31 = arith.constant 0 : index
    %53 = vector.load %arg2[%c6, %c0_30, %c0_31] : memref<9x128x128xbf16, #tpu.memory_space<vmem>>, vector<1x128x128xbf16>
    %54 = vector.shape_cast %53 : vector<1x128x128xbf16> to vector<128x128xbf16>
    %cst_32 = arith.constant dense<0.000000e+00> : vector<40x128xf32>
    %55 = tpu.matmul %52, %54, %cst_32 {dimension_numbers = #tpu.dot_dimension_numbers<[1], [0], [0], [1], [0, 0, 1, 1], [], []>} : vector<40x128xbf16>, vector<128x128xbf16>, vector<40x128xf32> -> vector<40x128xf32>
    %56 = arith.addf %51, %55 : vector<40x128xf32>
    %57 = vector.extract_strided_slice %20 {offsets = [13, 0], sizes = [40, 128], strides = [1, 1]} : vector<56x128xbf16> to vector<40x128xbf16>
    %c7 = arith.constant 7 : index
    %c0_33 = arith.constant 0 : index
    %c0_34 = arith.constant 0 : index
    %58 = vector.load %arg2[%c7, %c0_33, %c0_34] : memref<9x128x128xbf16, #tpu.memory_space<vmem>>, vector<1x128x128xbf16>
    %59 = vector.shape_cast %58 : vector<1x128x128xbf16> to vector<128x128xbf16>
    %cst_35 = arith.constant dense<0.000000e+00> : vector<40x128xf32>
    %60 = tpu.matmul %57, %59, %cst_35 {dimension_numbers = #tpu.dot_dimension_numbers<[1], [0], [0], [1], [0, 0, 1, 1], [], []>} : vector<40x128xbf16>, vector<128x128xbf16>, vector<40x128xf32> -> vector<40x128xf32>
    %61 = arith.addf %56, %60 : vector<40x128xf32>
    %62 = vector.extract_strided_slice %20 {offsets = [14, 0], sizes = [40, 128], strides = [1, 1]} : vector<56x128xbf16> to vector<40x128xbf16>
    %c8 = arith.constant 8 : index
    %c0_36 = arith.constant 0 : index
    %c0_37 = arith.constant 0 : index
    %63 = vector.load %arg2[%c8, %c0_36, %c0_37] : memref<9x128x128xbf16, #tpu.memory_space<vmem>>, vector<1x128x128xbf16>
    %64 = vector.shape_cast %63 : vector<1x128x128xbf16> to vector<128x128xbf16>
    %cst_38 = arith.constant dense<0.000000e+00> : vector<40x128xf32>
    %65 = tpu.matmul %62, %64, %cst_38 {dimension_numbers = #tpu.dot_dimension_numbers<[1], [0], [0], [1], [0, 0, 1, 1], [], []>} : vector<40x128xbf16>, vector<128x128xbf16>, vector<40x128xf32> -> vector<40x128xf32>
    %66 = arith.addf %61, %65 : vector<40x128xf32>
    %c0_39 = arith.constant 0 : index
    %c0_40 = arith.constant 0 : index
    %67 = vector.load %arg3[%c0_39, %c0_40] : memref<1x128xf32, #tpu.memory_space<vmem>>, vector<1x128xf32>
    %68 = vector.broadcast %67 : vector<1x128xf32> to vector<40x128xf32>
    %69 = arith.addf %66, %68 : vector<40x128xf32>
    %70 = arith.truncf %69 : vector<40x128xf32> to vector<40x128xbf16>
    %c0_41 = arith.constant 0 : index
    %c0_42 = arith.constant 0 : index
    %c0_43 = arith.constant 0 : index
    %71 = vector.load %arg7[%c0_41, %c0_42, %c0_43] : memref<1x40x128xbf16, #tpu.memory_space<vmem>>, vector<1x40x128xbf16>
    %72 = vector.shape_cast %71 : vector<1x40x128xbf16> to vector<40x128xbf16>
    %73 = vector.shape_cast %70 : vector<40x128xbf16> to vector<1x40x128xbf16>
    tpu.vector_store %arg7[%c0_41, %c0_42, %c0_43], %73 {strides = array<i32>} : memref<1x40x128xbf16, #tpu.memory_space<vmem>>, vector<1x40x128xbf16>,
    return
  }
  func.func @transform_0(%arg0: i32) -> (i32, i32, i32) {
    %c0_i32 = arith.constant 0 : i32
    %c0_i32_0 = arith.constant 0 : i32
    %c0_i32_1 = arith.constant 0 : i32
    return %arg0, %c0_i32, %c0_i32_0 : i32, i32, i32
  }
  func.func @transform_1(%arg0: i32) -> (i32, i32, i32) {
    %c0_i32 = arith.constant 0 : i32
    %c0_i32_0 = arith.constant 0 : i32
    %c0_i32_1 = arith.constant 0 : i32
    %c0_i32_2 = arith.constant 0 : i32
    return %c0_i32, %c0_i32_0, %c0_i32_1 : i32, i32, i32
  }
  func.func @transform_2(%arg0: i32) -> (i32, i32) {
    %c0_i32 = arith.constant 0 : i32
    %c0_i32_0 = arith.constant 0 : i32
    %c0_i32_1 = arith.constant 0 : i32
    return %c0_i32, %c0_i32_0 : i32, i32
  }
  func.func @transform_3(%arg0: i32) -> (i32, i32, i32) {
    %c0_i32 = arith.constant 0 : i32
    %c0_i32_0 = arith.constant 0 : i32
    %c0_i32_1 = arith.constant 0 : i32
    return %arg0, %c0_i32, %c0_i32_0 : i32, i32, i32
  }
  func.func @transform_4(%arg0: i32) -> (i32, i32, i32) {
    %c0_i32 = arith.constant 0 : i32
    %c0_i32_0 = arith.constant 0 : i32
    %c0_i32_1 = arith.constant 0 : i32
    return %arg0, %c0_i32, %c0_i32_0 : i32, i32, i32
  }
  func.func @transform_5(%arg0: i32) -> (i32, i32) {
    %c0_i32 = arith.constant 0 : i32
    %c0_i32_0 = arith.constant 0 : i32
    %c0_i32_1 = arith.constant 0 : i32
    return %c0_i32, %c0_i32_0 : i32, i32
  }
  func.func @transform_6(%arg0: i32) -> (i32, i32, i32) {
    %c0_i32 = arith.constant 0 : i32
    %c0_i32_0 = arith.constant 0 : i32
    %c0_i32_1 = arith.constant 0 : i32
    return %arg0, %c0_i32, %c0_i32_0 : i32, i32, i32
  }
}

module attributes {stable_mosaic.version = 11 : i64} {
  func.func @kernel(%arg0: i32, %arg1: memref<1x16x128xbf16, #tpu.memory_space<vmem>>, %arg2: memref<1x1x128xf32, #tpu.memory_space<vmem>>, %arg3: memref<1x1x128xf32, #tpu.memory_space<vmem>>, %arg4: memref<128x128xbf16, #tpu.memory_space<vmem>>, %arg5: memref<128x128xbf16, #tpu.memory_space<vmem>>, %arg6: memref<128x128xbf16, #tpu.memory_space<vmem>>, %arg7: memref<128x128xbf16, #tpu.memory_space<vmem>>, %arg8: memref<128x128xbf16, #tpu.memory_space<vmem>>, %arg9: memref<1x128xf32, #tpu.memory_space<vmem>>, %arg10: memref<1x16x128xbf16, #tpu.memory_space<vmem>>) attributes {dimension_semantics = [#tpu.dimension_semantics<parallel>], iteration_bounds = array<i64: 4>, scalar_prefetch = 0 : i64, scratch_operands = 0 : i64, tpu.core_type = #tpu.core_type<tc>, window_params = [{transform_indices = @transform_0, window_bounds = array<i64: 1, 16, 128>}, {transform_indices = @transform_1, window_bounds = array<i64: 1, 1, 128>}, {transform_indices = @transform_2, window_bounds = array<i64: 1, 1, 128>}, {pipeline_mode = #tpu.pipeline_mode<synchronous>, transform_indices = @transform_3, window_bounds = array<i64: 128, 128>}, {pipeline_mode = #tpu.pipeline_mode<synchronous>, transform_indices = @transform_4, window_bounds = array<i64: 128, 128>}, {pipeline_mode = #tpu.pipeline_mode<synchronous>, transform_indices = @transform_5, window_bounds = array<i64: 128, 128>}, {pipeline_mode = #tpu.pipeline_mode<synchronous>, transform_indices = @transform_6, window_bounds = array<i64: 128, 128>}, {pipeline_mode = #tpu.pipeline_mode<synchronous>, transform_indices = @transform_7, window_bounds = array<i64: 128, 128>}, {pipeline_mode = #tpu.pipeline_mode<synchronous>, transform_indices = @transform_8, window_bounds = array<i64: 1, 128>}, {transform_indices = @transform_9, window_bounds = array<i64: 1, 16, 128>}]} {
    %c0 = arith.constant 0 : index
    %c0_0 = arith.constant 0 : index
    %c0_1 = arith.constant 0 : index
    %0 = vector.load %arg1[%c0, %c0_0, %c0_1] : memref<1x16x128xbf16, #tpu.memory_space<vmem>>, vector<1x16x128xbf16>
    %1 = vector.shape_cast %0 : vector<1x16x128xbf16> to vector<16x128xbf16>
    %2 = arith.extf %1 : vector<16x128xbf16> to vector<16x128xf32>
    %c0_2 = arith.constant 0 : index
    %c0_3 = arith.constant 0 : index
    %c0_4 = arith.constant 0 : index
    %3 = vector.load %arg2[%c0_2, %c0_3, %c0_4] : memref<1x1x128xf32, #tpu.memory_space<vmem>>, vector<1x1x128xf32>
    %4 = vector.shape_cast %3 : vector<1x1x128xf32> to vector<1x128xf32>
    %5 = vector.broadcast %4 : vector<1x128xf32> to vector<16x128xf32>
    %6 = arith.mulf %2, %5 : vector<16x128xf32>
    %c0_5 = arith.constant 0 : index
    %c0_6 = arith.constant 0 : index
    %c0_7 = arith.constant 0 : index
    %7 = vector.load %arg3[%c0_5, %c0_6, %c0_7] : memref<1x1x128xf32, #tpu.memory_space<vmem>>, vector<1x1x128xf32>
    %8 = vector.shape_cast %7 : vector<1x1x128xf32> to vector<1x128xf32>
    %9 = vector.broadcast %8 : vector<1x128xf32> to vector<16x128xf32>
    %10 = arith.addf %6, %9 : vector<16x128xf32>
    %11 = arith.truncf %10 : vector<16x128xf32> to vector<16x128xbf16>
    %c0_8 = arith.constant 0 : index
    %c0_9 = arith.constant 0 : index
    %12 = vector.load %arg4[%c0_8, %c0_9] : memref<128x128xbf16, #tpu.memory_space<vmem>>, vector<128x128xbf16>
    %c0_10 = arith.constant 0 : index
    %c0_11 = arith.constant 0 : index
    %13 = vector.load %arg6[%c0_10, %c0_11] : memref<128x128xbf16, #tpu.memory_space<vmem>>, vector<128x128xbf16>
    %cst = arith.constant dense<0.000000e+00> : vector<128x128xf32>
    %14 = tpu.matmul %12, %13, %cst {dimension_numbers = #tpu.dot_dimension_numbers<[1], [0], [0], [1], [0, 0, 1, 1], [], []>} : vector<128x128xbf16>, vector<128x128xbf16>, vector<128x128xf32> -> vector<128x128xf32>
    %c0_12 = arith.constant 0 : index
    %c0_13 = arith.constant 0 : index
    %15 = vector.load %arg7[%c0_12, %c0_13] : memref<128x128xbf16, #tpu.memory_space<vmem>>, vector<128x128xbf16>
    %cst_14 = arith.constant dense<0.000000e+00> : vector<128x128xf32>
    %16 = tpu.matmul %12, %15, %cst_14 {dimension_numbers = #tpu.dot_dimension_numbers<[1], [0], [0], [1], [0, 0, 1, 1], [], []>} : vector<128x128xbf16>, vector<128x128xbf16>, vector<128x128xf32> -> vector<128x128xf32>
    %c0_15 = arith.constant 0 : index
    %c0_16 = arith.constant 0 : index
    %17 = vector.load %arg5[%c0_15, %c0_16] : memref<128x128xbf16, #tpu.memory_space<vmem>>, vector<128x128xbf16>
    %cst_17 = arith.constant dense<0.000000e+00> : vector<16x128xf32>
    %18 = tpu.matmul %11, %17, %cst_17 {dimension_numbers = #tpu.dot_dimension_numbers<[1], [0], [0], [1], [0, 0, 1, 1], [], []>} : vector<16x128xbf16>, vector<128x128xbf16>, vector<16x128xf32> -> vector<16x128xf32>
    %19 = arith.truncf %18 : vector<16x128xf32> to vector<16x128xbf16>
    %20 = arith.truncf %14 : vector<128x128xf32> to vector<128x128xbf16>
    %cst_18 = arith.constant dense<0.000000e+00> : vector<16x128xf32>
    %21 = tpu.matmul %19, %20, %cst_18 {dimension_numbers = #tpu.dot_dimension_numbers<[1], [1], [0], [0], [0, 0, 1, 0], [], []>} : vector<16x128xbf16>, vector<128x128xbf16>, vector<16x128xf32> -> vector<16x128xf32>
    %cst_19 = arith.constant 0.176776692 : f32
    %22 = vector.broadcast %cst_19 : f32 to vector<16x128xf32>
    %23 = arith.mulf %21, %22 : vector<16x128xf32>
    %24 = tpu.iota {dimensions = array<i32: 1>} : vector<16x128xi32>
    %c8_i32 = arith.constant 8 : i32
    %25 = vector.broadcast %c8_i32 : i32 to vector<16x128xi32>
    %26 = arith.cmpi slt, %24, %25 : vector<16x128xi32>
    %cst_20 = arith.constant -1.000000e+30 : f32
    %27 = vector.broadcast %cst_20 : f32 to vector<16x128xf32>
    %28 = arith.select %26, %23, %27 : vector<16x128xi1>, vector<16x128xf32>
    %cst_21 = arith.constant dense<0xFF800000> : vector<16xf32>
    %29 = vector.multi_reduction <maximumf>, %28, %cst_21 [1] : vector<16x128xf32> to vector<16xf32>
    %30 = vector.shape_cast %29 : vector<16xf32> to vector<16x1xf32>
    %31 = vector.broadcast %30 : vector<16x1xf32> to vector<16x128xf32>
    %32 = arith.subf %28, %31 : vector<16x128xf32>
    %33 = math.exp %32 : vector<16x128xf32>
    %cst_22 = arith.constant dense<0.000000e+00> : vector<16xf32>
    %34 = vector.multi_reduction <add>, %33, %cst_22 [1] : vector<16x128xf32> to vector<16xf32>
    %35 = vector.shape_cast %34 : vector<16xf32> to vector<16x1xf32>
    %36 = tpu.reciprocal %35 {approx = true} : vector<16x1xf32> -> vector<16x1xf32>
    %37 = vector.broadcast %36 : vector<16x1xf32> to vector<16x128xf32>
    %38 = arith.mulf %33, %37 : vector<16x128xf32>
    %39 = arith.truncf %38 : vector<16x128xf32> to vector<16x128xbf16>
    %40 = arith.truncf %16 : vector<128x128xf32> to vector<128x128xbf16>
    %cst_23 = arith.constant dense<0.000000e+00> : vector<16x128xf32>
    %41 = tpu.matmul %39, %40, %cst_23 {dimension_numbers = #tpu.dot_dimension_numbers<[1], [0], [0], [1], [0, 0, 1, 1], [], []>} : vector<16x128xbf16>, vector<128x128xbf16>, vector<16x128xf32> -> vector<16x128xf32>
    %42 = arith.truncf %41 : vector<16x128xf32> to vector<16x128xbf16>
    %c0_24 = arith.constant 0 : index
    %c0_25 = arith.constant 0 : index
    %43 = vector.load %arg8[%c0_24, %c0_25] : memref<128x128xbf16, #tpu.memory_space<vmem>>, vector<128x128xbf16>
    %cst_26 = arith.constant dense<0.000000e+00> : vector<16x128xf32>
    %44 = tpu.matmul %42, %43, %cst_26 {dimension_numbers = #tpu.dot_dimension_numbers<[1], [0], [0], [1], [0, 0, 1, 1], [], []>} : vector<16x128xbf16>, vector<128x128xbf16>, vector<16x128xf32> -> vector<16x128xf32>
    %c0_27 = arith.constant 0 : index
    %c0_28 = arith.constant 0 : index
    %45 = vector.load %arg9[%c0_27, %c0_28] : memref<1x128xf32, #tpu.memory_space<vmem>>, vector<1x128xf32>
    %46 = vector.broadcast %45 : vector<1x128xf32> to vector<16x128xf32>
    %47 = arith.addf %44, %46 : vector<16x128xf32>
    %48 = arith.addf %2, %47 : vector<16x128xf32>
    %49 = arith.truncf %48 : vector<16x128xf32> to vector<16x128xbf16>
    %c0_29 = arith.constant 0 : index
    %c0_30 = arith.constant 0 : index
    %c0_31 = arith.constant 0 : index
    %50 = vector.load %arg10[%c0_29, %c0_30, %c0_31] : memref<1x16x128xbf16, #tpu.memory_space<vmem>>, vector<1x16x128xbf16>
    %51 = vector.shape_cast %50 : vector<1x16x128xbf16> to vector<16x128xbf16>
    %52 = vector.shape_cast %49 : vector<16x128xbf16> to vector<1x16x128xbf16>
    tpu.vector_store %arg10[%c0_29, %c0_30, %c0_31], %52 {strides = array<i32>} : memref<1x16x128xbf16, #tpu.memory_space<vmem>>, vector<1x16x128xbf16>,
    return
  }
  func.func @transform_0(%arg0: i32) -> (i32, i32, i32) {
    %c0_i32 = arith.constant 0 : i32
    %c0_i32_0 = arith.constant 0 : i32
    %c0_i32_1 = arith.constant 0 : i32
    return %arg0, %c0_i32, %c0_i32_0 : i32, i32, i32
  }
  func.func @transform_1(%arg0: i32) -> (i32, i32, i32) {
    %c0_i32 = arith.constant 0 : i32
    %c0_i32_0 = arith.constant 0 : i32
    %c0_i32_1 = arith.constant 0 : i32
    return %arg0, %c0_i32, %c0_i32_0 : i32, i32, i32
  }
  func.func @transform_2(%arg0: i32) -> (i32, i32, i32) {
    %c0_i32 = arith.constant 0 : i32
    %c0_i32_0 = arith.constant 0 : i32
    %c0_i32_1 = arith.constant 0 : i32
    return %arg0, %c0_i32, %c0_i32_0 : i32, i32, i32
  }
  func.func @transform_3(%arg0: i32) -> (i32, i32) {
    %c0_i32 = arith.constant 0 : i32
    %c0_i32_0 = arith.constant 0 : i32
    %c0_i32_1 = arith.constant 0 : i32
    return %c0_i32, %c0_i32_0 : i32, i32
  }
  func.func @transform_4(%arg0: i32) -> (i32, i32) {
    %c0_i32 = arith.constant 0 : i32
    %c0_i32_0 = arith.constant 0 : i32
    %c0_i32_1 = arith.constant 0 : i32
    return %c0_i32, %c0_i32_0 : i32, i32
  }
  func.func @transform_5(%arg0: i32) -> (i32, i32) {
    %c0_i32 = arith.constant 0 : i32
    %c0_i32_0 = arith.constant 0 : i32
    %c0_i32_1 = arith.constant 0 : i32
    return %c0_i32, %c0_i32_0 : i32, i32
  }
  func.func @transform_6(%arg0: i32) -> (i32, i32) {
    %c0_i32 = arith.constant 0 : i32
    %c0_i32_0 = arith.constant 0 : i32
    %c0_i32_1 = arith.constant 0 : i32
    return %c0_i32, %c0_i32_0 : i32, i32
  }
  func.func @transform_7(%arg0: i32) -> (i32, i32) {
    %c0_i32 = arith.constant 0 : i32
    %c0_i32_0 = arith.constant 0 : i32
    %c0_i32_1 = arith.constant 0 : i32
    return %c0_i32, %c0_i32_0 : i32, i32
  }
  func.func @transform_8(%arg0: i32) -> (i32, i32) {
    %c0_i32 = arith.constant 0 : i32
    %c0_i32_0 = arith.constant 0 : i32
    %c0_i32_1 = arith.constant 0 : i32
    return %c0_i32, %c0_i32_0 : i32, i32
  }
  func.func @transform_9(%arg0: i32) -> (i32, i32, i32) {
    %c0_i32 = arith.constant 0 : i32
    %c0_i32_0 = arith.constant 0 : i32
    %c0_i32_1 = arith.constant 0 : i32
    return %arg0, %c0_i32, %c0_i32_0 : i32, i32, i32
  }
}

module attributes {stable_mosaic.version = 11 : i64} {
  func.func @kernel(%arg0: i32, %arg1: i32, %arg2: memref<64x128xbf16, #tpu.memory_space<vmem>>, %arg3: memref<128x128xbf16, #tpu.memory_space<vmem>>, %arg4: memref<1x128xf32, #tpu.memory_space<vmem>>, %arg5: memref<64x128xbf16, #tpu.memory_space<vmem>>) attributes {dimension_semantics = [#tpu.dimension_semantics<parallel>, #tpu.dimension_semantics<parallel>], iteration_bounds = array<i64: 1, 1>, scalar_prefetch = 0 : i64, scratch_operands = 0 : i64, tpu.core_type = #tpu.core_type<tc>, window_params = [{transform_indices = @transform_0, window_bounds = array<i64: 64, 128>}, {transform_indices = @transform_1, window_bounds = array<i64: 128, 128>}, {transform_indices = @transform_2, window_bounds = array<i64: 1, 128>}, {transform_indices = @transform_3, window_bounds = array<i64: 64, 128>}]} {
    %c0 = arith.constant 0 : index
    %c0_0 = arith.constant 0 : index
    %0 = vector.load %arg2[%c0, %c0_0] : memref<64x128xbf16, #tpu.memory_space<vmem>>, vector<64x128xbf16>
    %c0_1 = arith.constant 0 : index
    %c0_2 = arith.constant 0 : index
    %1 = vector.load %arg3[%c0_1, %c0_2] : memref<128x128xbf16, #tpu.memory_space<vmem>>, vector<128x128xbf16>
    %cst = arith.constant dense<0.000000e+00> : vector<64x128xf32>
    %2 = tpu.matmul %0, %1, %cst {dimension_numbers = #tpu.dot_dimension_numbers<[1], [0], [0], [1], [0, 0, 1, 1], [], []>} : vector<64x128xbf16>, vector<128x128xbf16>, vector<64x128xf32> -> vector<64x128xf32>
    %c0_3 = arith.constant 0 : index
    %c0_4 = arith.constant 0 : index
    %3 = vector.load %arg4[%c0_3, %c0_4] : memref<1x128xf32, #tpu.memory_space<vmem>>, vector<1x128xf32>
    %4 = vector.broadcast %3 : vector<1x128xf32> to vector<64x128xf32>
    %5 = arith.addf %2, %4 : vector<64x128xf32>
    %6 = arith.truncf %5 : vector<64x128xf32> to vector<64x128xbf16>
    %c0_5 = arith.constant 0 : index
    %c0_6 = arith.constant 0 : index
    %7 = vector.load %arg5[%c0_5, %c0_6] : memref<64x128xbf16, #tpu.memory_space<vmem>>, vector<64x128xbf16>
    tpu.vector_store %arg5[%c0_5, %c0_6], %6 {strides = array<i32>} : memref<64x128xbf16, #tpu.memory_space<vmem>>, vector<64x128xbf16>,
    return
  }
  func.func @transform_0(%arg0: i32, %arg1: i32) -> (i32, i32) {
    %c0_i32 = arith.constant 0 : i32
    %c0_i32_0 = arith.constant 0 : i32
    return %arg0, %c0_i32 : i32, i32
  }
  func.func @transform_1(%arg0: i32, %arg1: i32) -> (i32, i32) {
    %c0_i32 = arith.constant 0 : i32
    %c0_i32_0 = arith.constant 0 : i32
    return %c0_i32, %arg1 : i32, i32
  }
  func.func @transform_2(%arg0: i32, %arg1: i32) -> (i32, i32) {
    %c0_i32 = arith.constant 0 : i32
    %c0_i32_0 = arith.constant 0 : i32
    return %c0_i32, %arg1 : i32, i32
  }
  func.func @transform_3(%arg0: i32, %arg1: i32) -> (i32, i32) {
    %c0_i32 = arith.constant 0 : i32
    return %arg0, %arg1 : i32, i32
  }
}

module attributes {stable_mosaic.version = 11 : i64} {
  func.func @kernel(%arg0: i32, %arg1: i32, %arg2: memref<256x128xbf16, #tpu.memory_space<vmem>>, %arg3: memref<128x128xbf16, #tpu.memory_space<vmem>>, %arg4: memref<1x128xf32, #tpu.memory_space<vmem>>, %arg5: memref<256x128xbf16, #tpu.memory_space<vmem>>) attributes {dimension_semantics = [#tpu.dimension_semantics<parallel>, #tpu.dimension_semantics<parallel>], iteration_bounds = array<i64: 1, 1>, scalar_prefetch = 0 : i64, scratch_operands = 0 : i64, tpu.core_type = #tpu.core_type<tc>, window_params = [{transform_indices = @transform_0, window_bounds = array<i64: 256, 128>}, {transform_indices = @transform_1, window_bounds = array<i64: 128, 128>}, {transform_indices = @transform_2, window_bounds = array<i64: 1, 128>}, {transform_indices = @transform_3, window_bounds = array<i64: 256, 128>}]} {
    %c0 = arith.constant 0 : index
    %c0_0 = arith.constant 0 : index
    %0 = vector.load %arg2[%c0, %c0_0] : memref<256x128xbf16, #tpu.memory_space<vmem>>, vector<256x128xbf16>
    %c0_1 = arith.constant 0 : index
    %c0_2 = arith.constant 0 : index
    %1 = vector.load %arg3[%c0_1, %c0_2] : memref<128x128xbf16, #tpu.memory_space<vmem>>, vector<128x128xbf16>
    %cst = arith.constant dense<0.000000e+00> : vector<256x128xf32>
    %2 = tpu.matmul %0, %1, %cst {dimension_numbers = #tpu.dot_dimension_numbers<[1], [0], [0], [1], [0, 0, 1, 1], [], []>} : vector<256x128xbf16>, vector<128x128xbf16>, vector<256x128xf32> -> vector<256x128xf32>
    %c0_3 = arith.constant 0 : index
    %c0_4 = arith.constant 0 : index
    %3 = vector.load %arg4[%c0_3, %c0_4] : memref<1x128xf32, #tpu.memory_space<vmem>>, vector<1x128xf32>
    %4 = vector.broadcast %3 : vector<1x128xf32> to vector<256x128xf32>
    %5 = arith.addf %2, %4 : vector<256x128xf32>
    %6 = arith.truncf %5 : vector<256x128xf32> to vector<256x128xbf16>
    %c0_5 = arith.constant 0 : index
    %c0_6 = arith.constant 0 : index
    %7 = vector.load %arg5[%c0_5, %c0_6] : memref<256x128xbf16, #tpu.memory_space<vmem>>, vector<256x128xbf16>
    tpu.vector_store %arg5[%c0_5, %c0_6], %6 {strides = array<i32>} : memref<256x128xbf16, #tpu.memory_space<vmem>>, vector<256x128xbf16>,
    return
  }
  func.func @transform_0(%arg0: i32, %arg1: i32) -> (i32, i32) {
    %c0_i32 = arith.constant 0 : i32
    %c0_i32_0 = arith.constant 0 : i32
    return %arg0, %c0_i32 : i32, i32
  }
  func.func @transform_1(%arg0: i32, %arg1: i32) -> (i32, i32) {
    %c0_i32 = arith.constant 0 : i32
    %c0_i32_0 = arith.constant 0 : i32
    return %c0_i32, %arg1 : i32, i32
  }
  func.func @transform_2(%arg0: i32, %arg1: i32) -> (i32, i32) {
    %c0_i32 = arith.constant 0 : i32
    %c0_i32_0 = arith.constant 0 : i32
    return %c0_i32, %arg1 : i32, i32
  }
  func.func @transform_3(%arg0: i32, %arg1: i32) -> (i32, i32) {
    %c0_i32 = arith.constant 0 : i32
    return %arg0, %arg1 : i32, i32
  }
}

module attributes {stable_mosaic.version = 11 : i64} {
  func.func @kernel(%arg0: i32, %arg1: memref<1x64x128xbf16, #tpu.memory_space<vmem>>, %arg2: memref<1x1x128xf32, #tpu.memory_space<vmem>>, %arg3: memref<1x1x128xf32, #tpu.memory_space<vmem>>, %arg4: memref<128x128xbf16, #tpu.memory_space<vmem>>, %arg5: memref<128x128xbf16, #tpu.memory_space<vmem>>, %arg6: memref<128x128xbf16, #tpu.memory_space<vmem>>, %arg7: memref<128x128xbf16, #tpu.memory_space<vmem>>, %arg8: memref<128x128xbf16, #tpu.memory_space<vmem>>, %arg9: memref<1x128xf32, #tpu.memory_space<vmem>>, %arg10: memref<1x64x128xbf16, #tpu.memory_space<vmem>>) attributes {dimension_semantics = [#tpu.dimension_semantics<parallel>], iteration_bounds = array<i64: 4>, scalar_prefetch = 0 : i64, scratch_operands = 0 : i64, tpu.core_type = #tpu.core_type<tc>, window_params = [{transform_indices = @transform_0, window_bounds = array<i64: 1, 64, 128>}, {transform_indices = @transform_1, window_bounds = array<i64: 1, 1, 128>}, {transform_indices = @transform_2, window_bounds = array<i64: 1, 1, 128>}, {pipeline_mode = #tpu.pipeline_mode<synchronous>, transform_indices = @transform_3, window_bounds = array<i64: 128, 128>}, {pipeline_mode = #tpu.pipeline_mode<synchronous>, transform_indices = @transform_4, window_bounds = array<i64: 128, 128>}, {pipeline_mode = #tpu.pipeline_mode<synchronous>, transform_indices = @transform_5, window_bounds = array<i64: 128, 128>}, {pipeline_mode = #tpu.pipeline_mode<synchronous>, transform_indices = @transform_6, window_bounds = array<i64: 128, 128>}, {pipeline_mode = #tpu.pipeline_mode<synchronous>, transform_indices = @transform_7, window_bounds = array<i64: 128, 128>}, {pipeline_mode = #tpu.pipeline_mode<synchronous>, transform_indices = @transform_8, window_bounds = array<i64: 1, 128>}, {transform_indices = @transform_9, window_bounds = array<i64: 1, 64, 128>}]} {
    %c0 = arith.constant 0 : index
    %c0_0 = arith.constant 0 : index
    %c0_1 = arith.constant 0 : index
    %0 = vector.load %arg1[%c0, %c0_0, %c0_1] : memref<1x64x128xbf16, #tpu.memory_space<vmem>>, vector<1x64x128xbf16>
    %1 = vector.shape_cast %0 : vector<1x64x128xbf16> to vector<64x128xbf16>
    %2 = arith.extf %1 : vector<64x128xbf16> to vector<64x128xf32>
    %c0_2 = arith.constant 0 : index
    %c0_3 = arith.constant 0 : index
    %c0_4 = arith.constant 0 : index
    %3 = vector.load %arg2[%c0_2, %c0_3, %c0_4] : memref<1x1x128xf32, #tpu.memory_space<vmem>>, vector<1x1x128xf32>
    %4 = vector.shape_cast %3 : vector<1x1x128xf32> to vector<1x128xf32>
    %5 = vector.broadcast %4 : vector<1x128xf32> to vector<64x128xf32>
    %6 = arith.mulf %2, %5 : vector<64x128xf32>
    %c0_5 = arith.constant 0 : index
    %c0_6 = arith.constant 0 : index
    %c0_7 = arith.constant 0 : index
    %7 = vector.load %arg3[%c0_5, %c0_6, %c0_7] : memref<1x1x128xf32, #tpu.memory_space<vmem>>, vector<1x1x128xf32>
    %8 = vector.shape_cast %7 : vector<1x1x128xf32> to vector<1x128xf32>
    %9 = vector.broadcast %8 : vector<1x128xf32> to vector<64x128xf32>
    %10 = arith.addf %6, %9 : vector<64x128xf32>
    %11 = arith.truncf %10 : vector<64x128xf32> to vector<64x128xbf16>
    %c0_8 = arith.constant 0 : index
    %c0_9 = arith.constant 0 : index
    %12 = vector.load %arg4[%c0_8, %c0_9] : memref<128x128xbf16, #tpu.memory_space<vmem>>, vector<128x128xbf16>
    %c0_10 = arith.constant 0 : index
    %c0_11 = arith.constant 0 : index
    %13 = vector.load %arg6[%c0_10, %c0_11] : memref<128x128xbf16, #tpu.memory_space<vmem>>, vector<128x128xbf16>
    %cst = arith.constant dense<0.000000e+00> : vector<128x128xf32>
    %14 = tpu.matmul %12, %13, %cst {dimension_numbers = #tpu.dot_dimension_numbers<[1], [0], [0], [1], [0, 0, 1, 1], [], []>} : vector<128x128xbf16>, vector<128x128xbf16>, vector<128x128xf32> -> vector<128x128xf32>
    %c0_12 = arith.constant 0 : index
    %c0_13 = arith.constant 0 : index
    %15 = vector.load %arg7[%c0_12, %c0_13] : memref<128x128xbf16, #tpu.memory_space<vmem>>, vector<128x128xbf16>
    %cst_14 = arith.constant dense<0.000000e+00> : vector<128x128xf32>
    %16 = tpu.matmul %12, %15, %cst_14 {dimension_numbers = #tpu.dot_dimension_numbers<[1], [0], [0], [1], [0, 0, 1, 1], [], []>} : vector<128x128xbf16>, vector<128x128xbf16>, vector<128x128xf32> -> vector<128x128xf32>
    %c0_15 = arith.constant 0 : index
    %c0_16 = arith.constant 0 : index
    %17 = vector.load %arg5[%c0_15, %c0_16] : memref<128x128xbf16, #tpu.memory_space<vmem>>, vector<128x128xbf16>
    %cst_17 = arith.constant dense<0.000000e+00> : vector<64x128xf32>
    %18 = tpu.matmul %11, %17, %cst_17 {dimension_numbers = #tpu.dot_dimension_numbers<[1], [0], [0], [1], [0, 0, 1, 1], [], []>} : vector<64x128xbf16>, vector<128x128xbf16>, vector<64x128xf32> -> vector<64x128xf32>
    %19 = arith.truncf %18 : vector<64x128xf32> to vector<64x128xbf16>
    %20 = arith.truncf %14 : vector<128x128xf32> to vector<128x128xbf16>
    %cst_18 = arith.constant dense<0.000000e+00> : vector<64x128xf32>
    %21 = tpu.matmul %19, %20, %cst_18 {dimension_numbers = #tpu.dot_dimension_numbers<[1], [1], [0], [0], [0, 0, 1, 0], [], []>} : vector<64x128xbf16>, vector<128x128xbf16>, vector<64x128xf32> -> vector<64x128xf32>
    %cst_19 = arith.constant 0.176776692 : f32
    %22 = vector.broadcast %cst_19 : f32 to vector<64x128xf32>
    %23 = arith.mulf %21, %22 : vector<64x128xf32>
    %24 = tpu.iota {dimensions = array<i32: 1>} : vector<64x128xi32>
    %c8_i32 = arith.constant 8 : i32
    %25 = vector.broadcast %c8_i32 : i32 to vector<64x128xi32>
    %26 = arith.cmpi slt, %24, %25 : vector<64x128xi32>
    %cst_20 = arith.constant -1.000000e+30 : f32
    %27 = vector.broadcast %cst_20 : f32 to vector<64x128xf32>
    %28 = arith.select %26, %23, %27 : vector<64x128xi1>, vector<64x128xf32>
    %cst_21 = arith.constant dense<0xFF800000> : vector<64xf32>
    %29 = vector.multi_reduction <maximumf>, %28, %cst_21 [1] : vector<64x128xf32> to vector<64xf32>
    %30 = vector.shape_cast %29 : vector<64xf32> to vector<64x1xf32>
    %31 = vector.broadcast %30 : vector<64x1xf32> to vector<64x128xf32>
    %32 = arith.subf %28, %31 : vector<64x128xf32>
    %33 = math.exp %32 : vector<64x128xf32>
    %cst_22 = arith.constant dense<0.000000e+00> : vector<64xf32>
    %34 = vector.multi_reduction <add>, %33, %cst_22 [1] : vector<64x128xf32> to vector<64xf32>
    %35 = vector.shape_cast %34 : vector<64xf32> to vector<64x1xf32>
    %36 = tpu.reciprocal %35 {approx = true} : vector<64x1xf32> -> vector<64x1xf32>
    %37 = vector.broadcast %36 : vector<64x1xf32> to vector<64x128xf32>
    %38 = arith.mulf %33, %37 : vector<64x128xf32>
    %39 = arith.truncf %38 : vector<64x128xf32> to vector<64x128xbf16>
    %40 = arith.truncf %16 : vector<128x128xf32> to vector<128x128xbf16>
    %cst_23 = arith.constant dense<0.000000e+00> : vector<64x128xf32>
    %41 = tpu.matmul %39, %40, %cst_23 {dimension_numbers = #tpu.dot_dimension_numbers<[1], [0], [0], [1], [0, 0, 1, 1], [], []>} : vector<64x128xbf16>, vector<128x128xbf16>, vector<64x128xf32> -> vector<64x128xf32>
    %42 = arith.truncf %41 : vector<64x128xf32> to vector<64x128xbf16>
    %c0_24 = arith.constant 0 : index
    %c0_25 = arith.constant 0 : index
    %43 = vector.load %arg8[%c0_24, %c0_25] : memref<128x128xbf16, #tpu.memory_space<vmem>>, vector<128x128xbf16>
    %cst_26 = arith.constant dense<0.000000e+00> : vector<64x128xf32>
    %44 = tpu.matmul %42, %43, %cst_26 {dimension_numbers = #tpu.dot_dimension_numbers<[1], [0], [0], [1], [0, 0, 1, 1], [], []>} : vector<64x128xbf16>, vector<128x128xbf16>, vector<64x128xf32> -> vector<64x128xf32>
    %c0_27 = arith.constant 0 : index
    %c0_28 = arith.constant 0 : index
    %45 = vector.load %arg9[%c0_27, %c0_28] : memref<1x128xf32, #tpu.memory_space<vmem>>, vector<1x128xf32>
    %46 = vector.broadcast %45 : vector<1x128xf32> to vector<64x128xf32>
    %47 = arith.addf %44, %46 : vector<64x128xf32>
    %48 = arith.addf %2, %47 : vector<64x128xf32>
    %49 = arith.truncf %48 : vector<64x128xf32> to vector<64x128xbf16>
    %c0_29 = arith.constant 0 : index
    %c0_30 = arith.constant 0 : index
    %c0_31 = arith.constant 0 : index
    %50 = vector.load %arg10[%c0_29, %c0_30, %c0_31] : memref<1x64x128xbf16, #tpu.memory_space<vmem>>, vector<1x64x128xbf16>
    %51 = vector.shape_cast %50 : vector<1x64x128xbf16> to vector<64x128xbf16>
    %52 = vector.shape_cast %49 : vector<64x128xbf16> to vector<1x64x128xbf16>
    tpu.vector_store %arg10[%c0_29, %c0_30, %c0_31], %52 {strides = array<i32>} : memref<1x64x128xbf16, #tpu.memory_space<vmem>>, vector<1x64x128xbf16>,
    return
  }
  func.func @transform_0(%arg0: i32) -> (i32, i32, i32) {
    %c0_i32 = arith.constant 0 : i32
    %c0_i32_0 = arith.constant 0 : i32
    %c0_i32_1 = arith.constant 0 : i32
    return %arg0, %c0_i32, %c0_i32_0 : i32, i32, i32
  }
  func.func @transform_1(%arg0: i32) -> (i32, i32, i32) {
    %c0_i32 = arith.constant 0 : i32
    %c0_i32_0 = arith.constant 0 : i32
    %c0_i32_1 = arith.constant 0 : i32
    return %arg0, %c0_i32, %c0_i32_0 : i32, i32, i32
  }
  func.func @transform_2(%arg0: i32) -> (i32, i32, i32) {
    %c0_i32 = arith.constant 0 : i32
    %c0_i32_0 = arith.constant 0 : i32
    %c0_i32_1 = arith.constant 0 : i32
    return %arg0, %c0_i32, %c0_i32_0 : i32, i32, i32
  }
  func.func @transform_3(%arg0: i32) -> (i32, i32) {
    %c0_i32 = arith.constant 0 : i32
    %c0_i32_0 = arith.constant 0 : i32
    %c0_i32_1 = arith.constant 0 : i32
    return %c0_i32, %c0_i32_0 : i32, i32
  }
  func.func @transform_4(%arg0: i32) -> (i32, i32) {
    %c0_i32 = arith.constant 0 : i32
    %c0_i32_0 = arith.constant 0 : i32
    %c0_i32_1 = arith.constant 0 : i32
    return %c0_i32, %c0_i32_0 : i32, i32
  }
  func.func @transform_5(%arg0: i32) -> (i32, i32) {
    %c0_i32 = arith.constant 0 : i32
    %c0_i32_0 = arith.constant 0 : i32
    %c0_i32_1 = arith.constant 0 : i32
    return %c0_i32, %c0_i32_0 : i32, i32
  }
  func.func @transform_6(%arg0: i32) -> (i32, i32) {
    %c0_i32 = arith.constant 0 : i32
    %c0_i32_0 = arith.constant 0 : i32
    %c0_i32_1 = arith.constant 0 : i32
    return %c0_i32, %c0_i32_0 : i32, i32
  }
  func.func @transform_7(%arg0: i32) -> (i32, i32) {
    %c0_i32 = arith.constant 0 : i32
    %c0_i32_0 = arith.constant 0 : i32
    %c0_i32_1 = arith.constant 0 : i32
    return %c0_i32, %c0_i32_0 : i32, i32
  }
  func.func @transform_8(%arg0: i32) -> (i32, i32) {
    %c0_i32 = arith.constant 0 : i32
    %c0_i32_0 = arith.constant 0 : i32
    %c0_i32_1 = arith.constant 0 : i32
    return %c0_i32, %c0_i32_0 : i32, i32
  }
  func.func @transform_9(%arg0: i32) -> (i32, i32, i32) {
    %c0_i32 = arith.constant 0 : i32
    %c0_i32_0 = arith.constant 0 : i32
    %c0_i32_1 = arith.constant 0 : i32
    return %arg0, %c0_i32, %c0_i32_0 : i32, i32, i32
  }
}

module attributes {stable_mosaic.version = 11 : i64} {
  func.func @_mean_kernel(%arg0: i32, %arg1: memref<4x512xbf16, #tpu.memory_space<vmem>>, %arg2: memref<1x512xf32, #tpu.memory_space<vmem>>) attributes {dimension_semantics = [#tpu.dimension_semantics<parallel>], iteration_bounds = array<i64: 4>, scalar_prefetch = 0 : i64, scratch_operands = 0 : i64, tpu.core_type = #tpu.core_type<tc>, window_params = [{transform_indices = @transform_0, window_bounds = array<i64: 4, 512>}, {transform_indices = @transform_1, window_bounds = array<i64: 1, 512>}]} {
    %c0 = arith.constant 0 : index
    %c0_0 = arith.constant 0 : index
    %0 = vector.load %arg1[%c0, %c0_0] : memref<4x512xbf16, #tpu.memory_space<vmem>>, vector<4x512xbf16>
    %1 = arith.extf %0 : vector<4x512xbf16> to vector<4x512xf32>
    %cst = arith.constant dense<0.000000e+00> : vector<512xf32>
    %2 = vector.multi_reduction <add>, %1, %cst [0] : vector<4x512xf32> to vector<512xf32>
    %3 = vector.shape_cast %2 : vector<512xf32> to vector<1x512xf32>
    %cst_1 = arith.constant 4.000000e+00 : f32
    %4 = vector.broadcast %cst_1 : f32 to vector<1x512xf32>
    %5 = arith.divf %3, %4 : vector<1x512xf32>
    %c0_2 = arith.constant 0 : index
    %c0_3 = arith.constant 0 : index
    %6 = vector.load %arg2[%c0_2, %c0_3] : memref<1x512xf32, #tpu.memory_space<vmem>>, vector<1x512xf32>
    tpu.vector_store %arg2[%c0_2, %c0_3], %5 {strides = array<i32>} : memref<1x512xf32, #tpu.memory_space<vmem>>, vector<1x512xf32>,
    return
  }
  func.func @transform_0(%arg0: i32) -> (i32, i32) {
    %c0_i32 = arith.constant 0 : i32
    %c0_i32_0 = arith.constant 0 : i32
    return %c0_i32, %arg0 : i32, i32
  }
  func.func @transform_1(%arg0: i32) -> (i32, i32) {
    %c0_i32 = arith.constant 0 : i32
    %c0_i32_0 = arith.constant 0 : i32
    return %c0_i32, %arg0 : i32, i32
  }
}

</mosaic_0001>

<bundles_post_ra>
// kernel: sd_featurizer_forward.26
= control target key start
LH: loop header
LB: loop body
LE: loop exit
PB: predicated region body
PF: predicated region fallthrough
CT: control target
= control target key end

     0   :  { %s773_s1 = inlined_call_operand.vmem [shape: bf16[128,128], index: 1, kind: input, shape index: {}]   ;;  %s774_s0 = inlined_call_operand.vmem [shape: bf16[256,128], index: 0, kind: input, shape index: {}]   ;;  %s775_s2 = inlined_call_operand.vmem [shape: f32[1,128], index: 2, kind: input, shape index: {}]   ;;  %s776_s3 = inlined_call_operand.vmem [shape: f32[256,128], index: 3, kind: output, shape index: {}]  }
   0x1   :  { %v524_v0 = vld [vmem:[%s773_s1] sm:$0xff]   ;;  %v525_v1 = vld [vmem:[%s773_s1 + $0x8] sm:$0xff]   ;;  %v526_v2 = vld [vmem:[%s773_s1 + $0x10] sm:$0xff]  }
   0x2   :  { %460 = vmatprep.subr.bf16.mxu0 %v524_v0  ;;  %508 = vmatprep.subr.bf16.mxu1 %v524_v0  ;;  %v527_v3 = vld [vmem:[%s773_s1 + $0x18] sm:$0xff]   ;;  %v532_v4 = vld [vmem:[%s774_s0] sm:$0xff]   ;;  %v529_v7 = vld [vmem:[%s773_s1 + $0x28] sm:$0xff]  }
   0x3   :  { %461 = vmatpush3.bf16.msra.mxu0 %v524_v0  ;;  %516 = vmatpush3.bf16.msra.mxu1 %v524_v0  ;;  %v533_v5 = vld [vmem:[%s774_s0 + $0x40] sm:$0xff]   ;;  %v530_v8 = vld [vmem:[%s773_s1 + $0x30] sm:$0xff]   ;;  %v531_v9 = vld [vmem:[%s773_s1 + $0x38] sm:$0xff]  }
   0x4   :  { %462 = vmatprep.subr.bf16.mxu0 %v525_v1  ;;  %509 = vmatprep.subr.bf16.mxu1 %v525_v1  ;;  %v528_v6 = vld [vmem:[%s773_s1 + $0x20] sm:$0xff]   ;;  %v534_v10 = vld [vmem:[%s774_s0 + $0x8] sm:$0xff]   ;;  %v536_v12 = vld [vmem:[%s774_s0 + $0x10] sm:$0xff]  }
   0x5   :  { %476 = vmatprep.mubr.bf16.mxu0 %v532_v4  ;;  %492 = vmatprep.mubr.bf16.mxu1 %v533_v5  ;;  %v535_v11 = vld [vmem:[%s774_s0 + $0x48] sm:$0xff]   ;;  %v537_v13 = vld [vmem:[%s774_s0 + $0x50] sm:$0xff]   ;;  %v538_v14 = vld [vmem:[%s774_s0 + $0x18] sm:$0xff]  }
   0x6   :  { %v539_v15 = vld [vmem:[%s774_s0 + $0x58] sm:$0xff]   ;;  %v540_v16 = vld [vmem:[%s774_s0 + $0x20] sm:$0xff]   ;;  %v542_v18 = vld [vmem:[%s774_s0 + $0x28] sm:$0xff]  }
   0x7   :  { %463 = vmatpush3.bf16.msra.mxu0 %v525_v1  ;;  %517 = vmatpush3.bf16.msra.mxu1 %v525_v1  ;;  %v541_v17 = vld [vmem:[%s774_s0 + $0x60] sm:$0xff]   ;;  %v543_v19 = vld [vmem:[%s774_s0 + $0x68] sm:$0xff]   ;;  %v544_v20 = vld [vmem:[%s774_s0 + $0x30] sm:$0xff]  }
   0x8   :  { %464 = vmatprep.subr.bf16.mxu0 %v526_v2  ;;  %510 = vmatprep.subr.bf16.mxu1 %v526_v2  ;;  %v545_v21 = vld [vmem:[%s774_s0 + $0x70] sm:$0xff]   ;;  %v546_v22 = vld [vmem:[%s774_s0 + $0x38] sm:$0xff]   ;;  %v643_v24 = vld [vmem:[%s775_s2] ss:$0 sm:$0xff] }
   0x9   :  { %v547_v23 = vld [vmem:[%s774_s0 + $0x78] sm:$0xff]  }
   0xb   :  { %465 = vmatpush3.bf16.msra.mxu0 %v526_v2  ;;  %518 = vmatpush3.bf16.msra.mxu1 %v526_v2 }
   0xc   :  { %466 = vmatprep.subr.bf16.mxu0 %v527_v3  ;;  %511 = vmatprep.subr.bf16.mxu1 %v527_v3 }
   0xf   :  { %467 = vmatpush3.bf16.msra.mxu0 %v527_v3  ;;  %519 = vmatpush3.bf16.msra.mxu1 %v527_v3 }
  0x10   :  { %468 = vmatprep.subr.bf16.mxu0 %v528_v6  ;;  %512 = vmatprep.subr.bf16.mxu1 %v528_v6 }
  0x13   :  { %469 = vmatpush3.bf16.msra.mxu0 %v528_v6  ;;  %520 = vmatpush3.bf16.msra.mxu1 %v528_v6 }
  0x14   :  { %470 = vmatprep.subr.bf16.mxu0 %v529_v7  ;;  %513 = vmatprep.subr.bf16.mxu1 %v529_v7 }
  0x17   :  { %471 = vmatpush3.bf16.msra.mxu0 %v529_v7  ;;  %521 = vmatpush3.bf16.msra.mxu1 %v529_v7 }
  0x18   :  { %472 = vmatprep.subr.bf16.mxu0 %v530_v8  ;;  %514 = vmatprep.subr.bf16.mxu1 %v530_v8 }
  0x1b   :  { %473 = vmatpush3.bf16.msra.mxu0 %v530_v8  ;;  %522 = vmatpush3.bf16.msra.mxu1 %v530_v8 }
  0x1c   :  { %474 = vmatprep.subr.bf16.mxu0 %v531_v9  ;;  %515 = vmatprep.subr.bf16.mxu1 %v531_v9 }
  0x1f   :  { %475 = vmatpush3.bf16.msra.mxu0 %v531_v9  ;;  %523 = vmatpush3.bf16.msra.mxu1 %v531_v9 }
  0x22   :  { %477 = vmatmul.mubr.bf16.vlgmr.msra.gmra.mrb[0].mxu0 %v534_v10  ;;  %493 = vmatmul.mubr.bf16.vlgmr.msra.gmra.mrb[0].mxu1 %v535_v11 }
  0x23   :  { %480 = vmatprep.mubr.bf16.mxu0 %v536_v12  ;;  %496 = vmatprep.mubr.bf16.mxu1 %v537_v13 }
  0x2a   :  { %481 = vmatmul.mubr.bf16.gmra.mrb[4].mxu0 %v538_v14  ;;  %497 = vmatmul.mubr.bf16.gmra.mrb[4].mxu1 %v539_v15 }
  0x2b   :  { %484 = vmatprep.mubr.bf16.mxu0 %v540_v16  ;;  %500 = vmatprep.mubr.bf16.mxu1 %v541_v17 }
  0x32   :  { %485 = vmatmul.mubr.bf16.gmra.mrb[8].mxu0 %v542_v18  ;;  %501 = vmatmul.mubr.bf16.gmra.mrb[8].mxu1 %v543_v19 }
  0x33   :  { %488 = vmatprep.mubr.bf16.mxu0 %v544_v20  ;;  %504 = vmatprep.mubr.bf16.mxu1 %v545_v21 }
  0x3a   :  { %489 = vmatmul.mubr.bf16.gmra.mrb[12].mxu0 %v546_v22  ;;  %505 = vmatmul.mubr.bf16.gmra.mrb[12].mxu1 %v547_v23 }
  0xf5   :  { %v478_v25 = vpop.f32.mrb[0].mxu0  ;;  %v494_v26 = vpop.f32.mrb[0].mxu1 }
  0xf6   :  { %v257_v27 = vadd.f32 %v478_v25, %v643_v24  ;;  %v321_v28 = vadd.f32 %v494_v26, %v643_v24  ;;  %v248_v29 = vpop.f32.mrb[1].mxu0  ;;  %v312_v30 = vpop.f32.mrb[1].mxu1 }
  0xf7   :  { %v249_v31 = vadd.f32 %v643_v24, %v248_v29  ;;  %v313_v32 = vadd.f32 %v643_v24, %v312_v30  ;;  %v479_v33 = vpop.f32.mrb[2].mxu0  ;;  %v495_v34 = vpop.f32.mrb[2].mxu1 }
  0xf8   :  { %377 = vst [vmem:[%s776_s3 + $0x10] sm:$0xff] %v257_v27  ;;  %393 = vst [vmem:[%s776_s3 + $0x90] sm:$0xff] %v321_v28  ;;  %v260_v35 = vadd.f32 %v479_v33, %v643_v24  ;;  %v324_v36 = vadd.f32 %v495_v34, %v643_v24  ;;  %v251_v37 = vpop.f32.mrb[3].mxu0  ;;  %v315_v38 = vpop.f32.mrb[3].mxu1 }
  0xf9   :  { %375 = vst [vmem:[%s776_s3] sm:$0xff] %v249_v31  ;;  %391 = vst [vmem:[%s776_s3 + $0x80] sm:$0xff] %v313_v32  ;;  %v252_v39 = vadd.f32 %v643_v24, %v251_v37  ;;  %v316_v40 = vadd.f32 %v643_v24, %v315_v38 }
  0xfa   :  { %378 = vst [vmem:[%s776_s3 + $0x18] sm:$0xff] %v260_v35  ;;  %394 = vst [vmem:[%s776_s3 + $0x98] sm:$0xff] %v324_v36 }
  0xfb   :  { %376 = vst [vmem:[%s776_s3 + $0x8] sm:$0xff] %v252_v39  ;;  %392 = vst [vmem:[%s776_s3 + $0x88] sm:$0xff] %v316_v40 }
  0xfd   :  { %v482_v41 = vpop.f32.mrb[4].mxu0  ;;  %v498_v42 = vpop.f32.mrb[4].mxu1 }
  0xfe   :  { %v273_v43 = vadd.f32 %v482_v41, %v643_v24  ;;  %v337_v44 = vadd.f32 %v498_v42, %v643_v24  ;;  %v264_v45 = vpop.f32.mrb[5].mxu0  ;;  %v328_v46 = vpop.f32.mrb[5].mxu1 }
  0xff   :  { %v265_v47 = vadd.f32 %v643_v24, %v264_v45  ;;  %v329_v48 = vadd.f32 %v643_v24, %v328_v46  ;;  %v483_v49 = vpop.f32.mrb[6].mxu0  ;;  %v499_v50 = vpop.f32.mrb[6].mxu1 }
 0x100   :  { %381 = vst [vmem:[%s776_s3 + $0x30] sm:$0xff] %v273_v43  ;;  %397 = vst [vmem:[%s776_s3 + $0xb0] sm:$0xff] %v337_v44  ;;  %v276_v51 = vadd.f32 %v483_v49, %v643_v24  ;;  %v340_v52 = vadd.f32 %v499_v50, %v643_v24  ;;  %v267_v53 = vpop.f32.mrb[7].mxu0  ;;  %v331_v54 = vpop.f32.mrb[7].mxu1 }
 0x101   :  { %379 = vst [vmem:[%s776_s3 + $0x20] sm:$0xff] %v265_v47  ;;  %395 = vst [vmem:[%s776_s3 + $0xa0] sm:$0xff] %v329_v48  ;;  %v268_v55 = vadd.f32 %v643_v24, %v267_v53  ;;  %v332_v56 = vadd.f32 %v643_v24, %v331_v54 }
 0x102   :  { %382 = vst [vmem:[%s776_s3 + $0x38] sm:$0xff] %v276_v51  ;;  %398 = vst [vmem:[%s776_s3 + $0xb8] sm:$0xff] %v340_v52 }
 0x103   :  { %380 = vst [vmem:[%s776_s3 + $0x28] sm:$0xff] %v268_v55  ;;  %396 = vst [vmem:[%s776_s3 + $0xa8] sm:$0xff] %v332_v56 }
 0x105   :  { %v486_v57 = vpop.f32.mrb[8].mxu0  ;;  %v502_v58 = vpop.f32.mrb[8].mxu1 }
 0x106   :  { %v289_v59 = vadd.f32 %v486_v57, %v643_v24  ;;  %v353_v60 = vadd.f32 %v502_v58, %v643_v24  ;;  %v280_v61 = vpop.f32.mrb[9].mxu0  ;;  %v344_v62 = vpop.f32.mrb[9].mxu1 }
 0x107   :  { %v281_v63 = vadd.f32 %v643_v24, %v280_v61  ;;  %v345_v0 = vadd.f32 %v643_v24, %v344_v62  ;;  %v487_v1 = vpop.f32.mrb[10].mxu0  ;;  %v503_v2 = vpop.f32.mrb[10].mxu1 }
 0x108   :  { %385 = vst [vmem:[%s776_s3 + $0x50] sm:$0xff] %v289_v59  ;;  %401 = vst [vmem:[%s776_s3 + $0xd0] sm:$0xff] %v353_v60  ;;  %v292_v3 = vadd.f32 %v487_v1, %v643_v24  ;;  %v356_v4 = vadd.f32 %v503_v2, %v643_v24  ;;  %v283_v5 = vpop.f32.mrb[11].mxu0  ;;  %v347_v6 = vpop.f32.mrb[11].mxu1 }
 0x109   :  { %383 = vst [vmem:[%s776_s3 + $0x40] sm:$0xff] %v281_v63  ;;  %399 = vst [vmem:[%s776_s3 + $0xc0] sm:$0xff] %v345_v0  ;;  %v284_v7 = vadd.f32 %v643_v24, %v283_v5  ;;  %v348_v8 = vadd.f32 %v643_v24, %v347_v6 }
 0x10a   :  { %386 = vst [vmem:[%s776_s3 + $0x58] sm:$0xff] %v292_v3  ;;  %402 = vst [vmem:[%s776_s3 + $0xd8] sm:$0xff] %v356_v4 }
 0x10b   :  { %384 = vst [vmem:[%s776_s3 + $0x48] sm:$0xff] %v284_v7  ;;  %400 = vst [vmem:[%s776_s3 + $0xc8] sm:$0xff] %v348_v8 }
 0x10d   :  { %v490_v9 = vpop.f32.mrb[12].mxu0  ;;  %v506_v10 = vpop.f32.mrb[12].mxu1 }
 0x10e   :  { %v305_v11 = vadd.f32 %v490_v9, %v643_v24  ;;  %v369_v12 = vadd.f32 %v506_v10, %v643_v24  ;;  %v296_v13 = vpop.f32.mrb[13].mxu0  ;;  %v360_v14 = vpop.f32.mrb[13].mxu1 }
 0x10f   :  { %v297_v15 = vadd.f32 %v643_v24, %v296_v13  ;;  %v361_v16 = vadd.f32 %v643_v24, %v360_v14  ;;  %v491_v17 = vpop.f32.mrb[14].mxu0  ;;  %v507_v18 = vpop.f32.mrb[14].mxu1 }
 0x110   :  { %389 = vst [vmem:[%s776_s3 + $0x70] sm:$0xff] %v305_v11  ;;  %405 = vst [vmem:[%s776_s3 + $0xf0] sm:$0xff] %v369_v12  ;;  %v308_v19 = vadd.f32 %v491_v17, %v643_v24  ;;  %v372_v20 = vadd.f32 %v507_v18, %v643_v24  ;;  %v299_v21 = vpop.f32.mrb[15].mxu0  ;;  %v363_v22 = vpop.f32.mrb[15].mxu1 }
 0x111   :  { %387 = vst [vmem:[%s776_s3 + $0x60] sm:$0xff] %v297_v15  ;;  %403 = vst [vmem:[%s776_s3 + $0xe0] sm:$0xff] %v361_v16  ;;  %v300_v23 = vadd.f32 %v643_v24, %v299_v21  ;;  %v364_v25 = vadd.f32 %v643_v24, %v363_v22 }
 0x112   :  { %390 = vst [vmem:[%s776_s3 + $0x78] sm:$0xff] %v308_v19  ;;  %406 = vst [vmem:[%s776_s3 + $0xf8] sm:$0xff] %v372_v20 }
 0x113   :  { %388 = vst [vmem:[%s776_s3 + $0x68] sm:$0xff] %v300_v23  ;;  %404 = vst [vmem:[%s776_s3 + $0xe8] sm:$0xff] %v364_v25 }

// kernel: sd_featurizer_forward.25
= control target key start
LH: loop header
LB: loop body
LE: loop exit
PB: predicated region body
PF: predicated region fallthrough
CT: control target
= control target key end

     0   :  { %s1551_s1 = inlined_call_operand.vmem [shape: bf16[128,128], index: 1, kind: input, shape index: {}]   ;;  %s1552_s0 = inlined_call_operand.vmem [shape: bf16[256,128], index: 0, kind: input, shape index: {}]   ;;  %s1553_s2 = inlined_call_operand.vmem [shape: f32[1,128], index: 2, kind: input, shape index: {}]   ;;  %s1554_s3 = inlined_call_operand.vmem [shape: bf16[256,128], index: 3, kind: output, shape index: {}]  }
   0x1   :  { %v1067_v0 = vld [vmem:[%s1551_s1] sm:$0xff]   ;;  %v1068_v1 = vld [vmem:[%s1551_s1 + $0x8] sm:$0xff]   ;;  %v1069_v2 = vld [vmem:[%s1551_s1 + $0x10] sm:$0xff]  }
   0x2   :  { %1003 = vmatprep.subr.bf16.mxu0 %v1067_v0  ;;  %1051 = vmatprep.subr.bf16.mxu1 %v1067_v0  ;;  %v1070_v3 = vld [vmem:[%s1551_s1 + $0x18] sm:$0xff]   ;;  %v1075_v4 = vld [vmem:[%s1552_s0] sm:$0xff]   ;;  %v1072_v7 = vld [vmem:[%s1551_s1 + $0x28] sm:$0xff]  }
   0x3   :  { %1004 = vmatpush3.bf16.msra.mxu0 %v1067_v0  ;;  %1059 = vmatpush3.bf16.msra.mxu1 %v1067_v0  ;;  %v1076_v5 = vld [vmem:[%s1552_s0 + $0x40] sm:$0xff]   ;;  %v1073_v8 = vld [vmem:[%s1551_s1 + $0x30] sm:$0xff]   ;;  %v1074_v9 = vld [vmem:[%s1551_s1 + $0x38] sm:$0xff]  }
   0x4   :  { %1005 = vmatprep.subr.bf16.mxu0 %v1068_v1  ;;  %1052 = vmatprep.subr.bf16.mxu1 %v1068_v1  ;;  %v1071_v6 = vld [vmem:[%s1551_s1 + $0x20] sm:$0xff]   ;;  %v1077_v10 = vld [vmem:[%s1552_s0 + $0x8] sm:$0xff]   ;;  %v1079_v12 = vld [vmem:[%s1552_s0 + $0x10] sm:$0xff]  }
   0x5   :  { %1019 = vmatprep.mubr.bf16.mxu0 %v1075_v4  ;;  %1035 = vmatprep.mubr.bf16.mxu1 %v1076_v5  ;;  %v1078_v11 = vld [vmem:[%s1552_s0 + $0x48] sm:$0xff]   ;;  %v1080_v13 = vld [vmem:[%s1552_s0 + $0x50] sm:$0xff]   ;;  %v1081_v14 = vld [vmem:[%s1552_s0 + $0x18] sm:$0xff]  }
   0x6   :  { %v1082_v15 = vld [vmem:[%s1552_s0 + $0x58] sm:$0xff]   ;;  %v1083_v16 = vld [vmem:[%s1552_s0 + $0x20] sm:$0xff]   ;;  %v1085_v18 = vld [vmem:[%s1552_s0 + $0x28] sm:$0xff]  }
   0x7   :  { %1006 = vmatpush3.bf16.msra.mxu0 %v1068_v1  ;;  %1060 = vmatpush3.bf16.msra.mxu1 %v1068_v1  ;;  %v1084_v17 = vld [vmem:[%s1552_s0 + $0x60] sm:$0xff]   ;;  %v1086_v19 = vld [vmem:[%s1552_s0 + $0x68] sm:$0xff]   ;;  %v1087_v20 = vld [vmem:[%s1552_s0 + $0x30] sm:$0xff]  }
   0x8   :  { %1007 = vmatprep.subr.bf16.mxu0 %v1069_v2  ;;  %1053 = vmatprep.subr.bf16.mxu1 %v1069_v2  ;;  %v1088_v21 = vld [vmem:[%s1552_s0 + $0x70] sm:$0xff]   ;;  %v1089_v22 = vld [vmem:[%s1552_s0 + $0x38] sm:$0xff]   ;;  %v1314_v24 = vld [vmem:[%s1553_s2] ss:$0 sm:$0xff] }
   0x9   :  { %v1090_v23 = vld [vmem:[%s1552_s0 + $0x78] sm:$0xff]  }
   0xb   :  { %1008 = vmatpush3.bf16.msra.mxu0 %v1069_v2  ;;  %1061 = vmatpush3.bf16.msra.mxu1 %v1069_v2 }
   0xc   :  { %1009 = vmatprep.subr.bf16.mxu0 %v1070_v3  ;;  %1054 = vmatprep.subr.bf16.mxu1 %v1070_v3 }
   0xf   :  { %1010 = vmatpush3.bf16.msra.mxu0 %v1070_v3  ;;  %1062 = vmatpush3.bf16.msra.mxu1 %v1070_v3 }
  0x10   :  { %1011 = vmatprep.subr.bf16.mxu0 %v1071_v6  ;;  %1055 = vmatprep.subr.bf16.mxu1 %v1071_v6 }
  0x13   :  { %1012 = vmatpush3.bf16.msra.mxu0 %v1071_v6  ;;  %1063 = vmatpush3.bf16.msra.mxu1 %v1071_v6 }
  0x14   :  { %1013 = vmatprep.subr.bf16.mxu0 %v1072_v7  ;;  %1056 = vmatprep.subr.bf16.mxu1 %v1072_v7 }
  0x17   :  { %1014 = vmatpush3.bf16.msra.mxu0 %v1072_v7  ;;  %1064 = vmatpush3.bf16.msra.mxu1 %v1072_v7 }
  0x18   :  { %1015 = vmatprep.subr.bf16.mxu0 %v1073_v8  ;;  %1057 = vmatprep.subr.bf16.mxu1 %v1073_v8 }
  0x1b   :  { %1016 = vmatpush3.bf16.msra.mxu0 %v1073_v8  ;;  %1065 = vmatpush3.bf16.msra.mxu1 %v1073_v8 }
  0x1c   :  { %1017 = vmatprep.subr.bf16.mxu0 %v1074_v9  ;;  %1058 = vmatprep.subr.bf16.mxu1 %v1074_v9 }
  0x1f   :  { %1018 = vmatpush3.bf16.msra.mxu0 %v1074_v9  ;;  %1066 = vmatpush3.bf16.msra.mxu1 %v1074_v9 }
  0x22   :  { %1020 = vmatmul.mubr.bf16.vlgmr.msra.gmra.mrb[0].mxu0 %v1077_v10  ;;  %1036 = vmatmul.mubr.bf16.vlgmr.msra.gmra.mrb[0].mxu1 %v1078_v11 }
  0x23   :  { %1023 = vmatprep.mubr.bf16.mxu0 %v1079_v12  ;;  %1039 = vmatprep.mubr.bf16.mxu1 %v1080_v13 }
  0x2a   :  { %1024 = vmatmul.mubr.bf16.gmra.mrb[4].mxu0 %v1081_v14  ;;  %1040 = vmatmul.mubr.bf16.gmra.mrb[4].mxu1 %v1082_v15 }
  0x2b   :  { %1027 = vmatprep.mubr.bf16.mxu0 %v1083_v16  ;;  %1043 = vmatprep.mubr.bf16.mxu1 %v1084_v17 }
  0x32   :  { %1028 = vmatmul.mubr.bf16.gmra.mrb[8].mxu0 %v1085_v18  ;;  %1044 = vmatmul.mubr.bf16.gmra.mrb[8].mxu1 %v1086_v19 }
  0x33   :  { %1031 = vmatprep.mubr.bf16.mxu0 %v1087_v20  ;;  %1047 = vmatprep.mubr.bf16.mxu1 %v1088_v21 }
  0x3a   :  { %1032 = vmatmul.mubr.bf16.gmra.mrb[12].mxu0 %v1089_v22  ;;  %1048 = vmatmul.mubr.bf16.gmra.mrb[12].mxu1 %v1090_v23 }
  0xf5   :  { %v1021_v25 = vpop.f32.mrb[0].mxu0  ;;  %v1037_v26 = vpop.f32.mrb[0].mxu1 }
  0xf6   :  { %v1317_v27 = vadd.f32 %v1021_v25, %v1314_v24  ;;  %v1320_v28 = vadd.f32 %v1037_v26, %v1314_v24  ;;  %v248_v29 = vpop.f32.mrb[1].mxu0  ;;  %v312_v30 = vpop.f32.mrb[1].mxu1 }
  0xf7   :  { %v1323_v31 = vadd.f32 %v1314_v24, %v248_v29  ;;  %v1326_v32 = vadd.f32 %v1314_v24, %v312_v30  ;;  %v1022_v33 = vpop.f32.mrb[2].mxu0  ;;  %v1038_v34 = vpop.f32.mrb[2].mxu1 }
  0xf8   :  { %v790_v35 = vmul.f32 -1.442695, %v1317_v27  ;;  %v806_v36 = vmul.f32 -1.442695, %v1320_v28  ;;  %v1331_v37 = vadd.f32 %v1022_v33, %v1314_v24  ;;  %v1334_v38 = vadd.f32 %v1038_v34, %v1314_v24  ;;  %v251_v39 = vpop.f32.mrb[3].mxu0  ;;  %v315_v40 = vpop.f32.mrb[3].mxu1 }
  0xf9   :  { %v788_v41 = vmul.f32 -1.442695, %v1323_v31  ;;  %v804_v42 = vmul.f32 -1.442695, %v1326_v32  ;;  %v1339_v43 = vadd.f32 %v1314_v24, %v251_v39  ;;  %v1342_v44 = vadd.f32 %v1314_v24, %v315_v40 }
  0xfa   :  { %1091 = vpow2.f32 %v790_v35  ;;  %v791_v45 = vmul.f32 -1.442695, %v1331_v37  ;;  %v807_v46 = vmul.f32 -1.442695, %v1334_v38 }
  0xfb   :  { %1093 = vpow2.f32 %v806_v36  ;;  %v789_v47 = vmul.f32 -1.442695, %v1339_v43  ;;  %v805_v48 = vmul.f32 -1.442695, %v1342_v44 }
  0xfc   :  { %1095 = vpow2.f32 %v788_v41 }
  0xfd   :  { %1097 = vpow2.f32 %v804_v42  ;;  %v1025_v49 = vpop.f32.mrb[4].mxu0  ;;  %v1041_v50 = vpop.f32.mrb[4].mxu1 }
  0xfe   :  { %1099 = vpow2.f32 %v791_v45  ;;  %v1349_v51 = vadd.f32 %v1025_v49, %v1314_v24  ;;  %v1352_v52 = vadd.f32 %v1041_v50, %v1314_v24  ;;  %v264_v53 = vpop.f32.mrb[5].mxu0  ;;  %v328_v54 = vpop.f32.mrb[5].mxu1 }
  0xff   :  { %1101 = vpow2.f32 %v807_v46  ;;  %v1355_v55 = vadd.f32 %v1314_v24, %v264_v53  ;;  %v1358_v56 = vadd.f32 %v1314_v24, %v328_v54  ;;  %v1026_v57 = vpop.f32.mrb[6].mxu0  ;;  %v1042_v58 = vpop.f32.mrb[6].mxu1 }
 0x100   :  { %1103 = vpow2.f32 %v789_v47  ;;  %v794_v59 = vmul.f32 -1.442695, %v1349_v51  ;;  %v810_v60 = vmul.f32 -1.442695, %v1352_v52  ;;  %v1363_v61 = vadd.f32 %v1026_v57, %v1314_v24  ;;  %v267_v62 = vpop.f32.mrb[7].mxu0  ;;  %v331_v63 = vpop.f32.mrb[7].mxu1 }
 0x101   :  { %1105 = vpow2.f32 %v805_v48  ;;  %v792_v0 = vmul.f32 -1.442695, %v1355_v55  ;;  %v808_v1 = vmul.f32 -1.442695, %v1358_v56  ;;  %v1369_v21 = vadd.f32 %v1042_v58, %v1314_v24 }
 0x102   :  { %1107 = vpow2.f32 %v794_v59  ;;  %v795_v2 = vmul.f32 -1.442695, %v1363_v61  ;;  %v1372_v26 = vadd.f32 %v1314_v24, %v267_v62  ;;  %v1376_v40 = vadd.f32 %v1314_v24, %v331_v63 }
 0x103   :  { %1109 = vpow2.f32 %v810_v60  ;;  %v811_v39 = vmul.f32 -1.442695, %v1369_v21 }
 0x104   :  { %v1092_v3 = vpop.eup %1091  ;;  %1111 = vpow2.f32 %v792_v0  ;;  %v793_v46 = vmul.f32 -1.442695, %v1372_v26 }
 0x105   :  { %v1094_v4 = vpop.eup %1093  ;;  %v473_v5 = vadd.f32 1.0, %v1092_v3  ;;  %1113 = vpow2.f32 %v808_v1  ;;  %v1029_v6 = vpop.f32.mrb[8].mxu0 }
 0x106   :  { %v1045_v7 = vpop.f32.mrb[8].mxu1  ;;  %v1096_v8 = vpop.eup %1095  ;;  %v489_v9 = vadd.f32 1.0, %v1094_v4  ;;  %1115 = vpow2.f32 %v795_v2  ;;  %v1380_v47 = vadd.f32 %v1029_v6, %v1314_v24 }
 0x107   :  { %v280_v10 = vpop.f32.mrb[9].mxu0  ;;  %v344_v11 = vpop.f32.mrb[9].mxu1  ;;  %1117 = vrcp.f32 %v473_v5  ;;  %v471_v13 = vadd.f32 1.0, %v1096_v8  ;;  %v1385_v54 = vadd.f32 %v1045_v7, %v1314_v24 }
 0x108   :  { %v1098_v12 = vpop.eup %1097  ;;  %v1030_v14 = vpop.f32.mrb[10].mxu0  ;;  %1119 = vrcp.f32 %v489_v9  ;;  %v1388_v57 = vadd.f32 %v1314_v24, %v280_v10  ;;  %v1395_v63 = vadd.f32 %v1314_v24, %v344_v11  ;;  %v809_v9 = vmul.f32 -1.442695, %v1376_v40 }
 0x109   :  { %v1046_v15 = vpop.f32.mrb[10].mxu1  ;;  %v1100_v16 = vpop.eup %1099  ;;  %v487_v17 = vadd.f32 1.0, %v1098_v12  ;;  %1121 = vrcp.f32 %v471_v13  ;;  %v1398_v0 = vadd.f32 %v1030_v14, %v1314_v24  ;;  %v798_v11 = vmul.f32 -1.442695, %v1380_v47 }
 0x10a   :  { %v283_v18 = vpop.f32.mrb[11].mxu0  ;;  %v1102_v19 = vpop.eup %1101  ;;  %v474_v20 = vadd.f32 1.0, %v1100_v16  ;;  %v1405_v5 = vadd.f32 %v1046_v15, %v1314_v24  ;;  %v814_v12 = vmul.f32 -1.442695, %v1385_v54  ;;  %v796_v14 = vmul.f32 -1.442695, %v1388_v57 }
 0x10b   :  { %v347_v22 = vpop.f32.mrb[11].mxu1  ;;  %v1104_v23 = vpop.eup %1103  ;;  %1123 = vrcp.f32 %v487_v17  ;;  %v490_v25 = vadd.f32 1.0, %v1102_v19  ;;  %v1408_v6 = vadd.f32 %v1314_v24, %v283_v18  ;;  %v812_v15 = vmul.f32 -1.442695, %v1395_v63 }
 0x10c   :  { %v1106_v29 = vpop.eup %1105  ;;  %1125 = vrcp.f32 %v474_v20  ;;  %v472_v30 = vadd.f32 1.0, %v1104_v23  ;;  %v1418_v16 = vadd.f32 %v1314_v24, %v347_v22  ;;  %v799_v18 = vmul.f32 -1.442695, %v1398_v0 }
 0x10d   :  { %v1108_v33 = vpop.eup %1107  ;;  %1127 = vrcp.f32 %v490_v25  ;;  %v488_v34 = vadd.f32 1.0, %v1106_v29  ;;  %v1033_v41 = vpop.f32.mrb[12].mxu0  ;;  %v815_v19 = vmul.f32 -1.442695, %v1405_v5  ;;  %v797_v20 = vmul.f32 -1.442695, %v1408_v6 }
 0x10e   :  { %v1110_v35 = vpop.eup %1109  ;;  %1129 = vrcp.f32 %v472_v30  ;;  %v477_v36 = vadd.f32 1.0, %v1108_v33  ;;  %v1049_v48 = vpop.f32.mrb[12].mxu1  ;;  %v1426_v30 = vadd.f32 %v1033_v41, %v1314_v24 }
 0x10f   :  { %v1112_v42 = vpop.eup %1111  ;;  %1131 = vrcp.f32 %v488_v34  ;;  %v493_v45 = vadd.f32 1.0, %v1110_v35  ;;  %v1382_v49 = vpop.f32.mrb[13].mxu0  ;;  %v1431_v35 = vadd.f32 %v1049_v48, %v1314_v24 }
 0x110   :  { %v1114_v50 = vpop.eup %1113  ;;  %1133 = vrcp.f32 %v477_v36  ;;  %v475_v53 = vadd.f32 1.0, %v1112_v42  ;;  %v1390_v58 = vpop.f32.mrb[13].mxu1 }
 0x111   :  { %v1392_v59 = vpop.f32.mrb[14].mxu0  ;;  %v1116_v60 = vpop.eup %1115  ;;  %1135 = vrcp.f32 %v493_v45  ;;  %v491_v62 = vadd.f32 1.0, %v1114_v50  ;;  %v818_v50 = vmul.f32 -1.442695, %v1431_v35 }
 0x112   :  { %v1400_v1 = vpop.f32.mrb[14].mxu1  ;;  %v1402_v2 = vpop.f32.mrb[15].mxu0  ;;  %1137 = vrcp.f32 %v475_v53  ;;  %v478_v4 = vadd.f32 1.0, %v1116_v60 }
 0x113   :  { %v1118_v3 = vpop.eup %1117  ;;  %v1410_v7 = vpop.f32.mrb[15].mxu1  ;;  %1139 = vrcp.f32 %v491_v62 }
 0x114   :  { %v1120_v8 = vpop.eup %1119  ;;  %1141 = vrcp.f32 %v478_v4  ;;  %v569_v25 = vmul.f32 %v1118_v3, %v1317_v27 }
 0x115   :  { %v1122_v10 = vpop.eup %1121  ;;  %1143 = vpow2.f32 %v811_v39  ;;  %v585_v22 = vmul.f32 %v1120_v8, %v1320_v28 }
 0x116   :  { %v1124_v13 = vpop.eup %1123  ;;  %1145 = vpow2.f32 %v793_v46  ;;  %v567_v39 = vmul.f32 %v1122_v10, %v1323_v31  ;;  %v813_v31 = vmul.f32 -1.442695, %v1418_v16 }
 0x117   :  { %v1126_v17 = vpop.eup %1125  ;;  %1147 = vpow2.f32 %v809_v9  ;;  %v583_v41 = vmul.f32 %v1124_v13, %v1326_v32 }
 0x118   :  { %v1128_v23 = vpop.eup %1127  ;;  %v570_v29 = vmul.f32 %v1126_v17, %v1331_v37  ;;  %1149 = vpow2.f32 %v798_v11 }
 0x119   :  { %v1130_v33 = vpop.eup %1129  ;;  %v586_v34 = vmul.f32 %v1128_v23, %v1334_v38  ;;  %1151 = vpow2.f32 %v814_v12 }
 0x11a   :  { %v1132_v36 = vpop.eup %1131  ;;  %v892_v42 = vpack.c.bf16 %v570_v29, %v569_v25  ;;  %v568_v27 = vmul.f32 %v1130_v33, %v1339_v43  ;;  %1153 = vpow2.f32 %v796_v14  ;;  %v802_v43 = vmul.f32 -1.442695, %v1426_v30 }
 0x11b   :  { %v1134_v37 = vpop.eup %1133  ;;  %v932_v45 = vpack.c.bf16 %v586_v34, %v585_v22  ;;  %v584_v46 = vmul.f32 %v1132_v36, %v1342_v44  ;;  %1155 = vpow2.f32 %v812_v15  ;;  %v1465_v29 = vadd.f32 %v1314_v24, %v1382_v49 }
 0x11c   :  { %v1437_v28 = vpop.eup %1135  ;;  %964 = vst [vmem:[%s1554_s3 + $0x8] sm:$0xff] %v892_v42   ;;  %v887_v38 = vpack.c.bf16 %v568_v27, %v567_v39  ;;  %1157 = vpow2.f32 %v799_v18  ;;  %v573_v62 = vmul.f32 %v1134_v37, %v1349_v51  ;;  %v1469_v34 = vadd.f32 %v1314_v24, %v1390_v58 }
 0x11d   :  { %v1443_v48 = vpop.eup %1137  ;;  %972 = vst [vmem:[%s1554_s3 + $0x48] sm:$0xff] %v932_v45   ;;  %v927_v32 = vpack.c.bf16 %v584_v46, %v583_v41  ;;  %1159 = vpow2.f32 %v815_v19  ;;  %v1473_v42 = vadd.f32 %v1392_v59, %v1314_v24  ;;  %v1477_v49 = vadd.f32 %v1400_v1, %v1314_v24 }
 0x11e   :  { %v1449_v44 = vpop.eup %1139  ;;  %888 = vst [vmem:[%s1554_s3] sm:$0xff] %v887_v38   ;;  %1161 = vpow2.f32 %v797_v20  ;;  %v1481_v41 = vadd.f32 %v1314_v24, %v1402_v2  ;;  %v800_v45 = vmul.f32 -1.442695, %v1465_v29  ;;  %v816_v59 = vmul.f32 -1.442695, %v1469_v34 }
 0x11f   :  { %v1142_v53 = vpop.eup %1141  ;;  %971 = vst [vmem:[%s1554_s3 + $0x40] sm:$0xff] %v927_v32   ;;  %1163 = vpow2.f32 %v813_v31  ;;  %v1487_v38 = vadd.f32 %v1314_v24, %v1410_v7  ;;  %v589_v1 = vmul.f32 %v1437_v28, %v1352_v52  ;;  %v803_v2 = vmul.f32 -1.442695, %v1473_v42 }
 0x120   :  { %v1144_v60 = vpop.eup %1143  ;;  %v574_v3 = vmul.f32 %v1142_v53, %v1363_v61  ;;  %1165 = vpow2.f32 %v802_v43  ;;  %v587_v7 = vmul.f32 %v1449_v44, %v1358_v56 }
 0x121   :  { %v1146_v4 = vpop.eup %1145  ;;  %v494_v8 = vadd.f32 1.0, %v1144_v60  ;;  %1167 = vpow2.f32 %v818_v50  ;;  %v571_v50 = vmul.f32 %v1443_v48, %v1355_v55  ;;  %v819_v60 = vmul.f32 -1.442695, %v1477_v49 }
 0x122   :  { %v1148_v9 = vpop.eup %1147  ;;  %v902_v10 = vpack.c.bf16 %v574_v3, %v573_v62  ;;  %v476_v11 = vadd.f32 1.0, %v1146_v4  ;;  %v801_v62 = vmul.f32 -1.442695, %v1481_v41  ;;  %v817_v4 = vmul.f32 -1.442695, %v1487_v38 }
 0x123   :  { %v1150_v12 = vpop.eup %1149  ;;  %1169 = vrcp.f32 %v494_v8  ;;  %v492_v13 = vadd.f32 1.0, %v1148_v9 }
 0x124   :  { %v1152_v14 = vpop.eup %1151  ;;  %966 = vst [vmem:[%s1554_s3 + $0x18] sm:$0xff] %v902_v10   ;;  %1171 = vrcp.f32 %v476_v11  ;;  %v481_v51 = vadd.f32 1.0, %v1150_v12 }
 0x125   :  { %v1154_v15 = vpop.eup %1153  ;;  %1173 = vrcp.f32 %v492_v13  ;;  %v497_v61 = vadd.f32 1.0, %v1152_v14 }
 0x126   :  { %v1156_v17 = vpop.eup %1155  ;;  %1175 = vrcp.f32 %v481_v51  ;;  %v479_v18 = vadd.f32 1.0, %v1154_v15 }
 0x127   :  { %v1158_v19 = vpop.eup %1157  ;;  %1177 = vrcp.f32 %v497_v61  ;;  %v495_v20 = vadd.f32 1.0, %v1156_v17 }
 0x128   :  { %v1160_v23 = vpop.eup %1159  ;;  %1179 = vrcp.f32 %v479_v18  ;;  %v482_v25 = vadd.f32 1.0, %v1158_v19 }
 0x129   :  { %v1162_v33 = vpop.eup %1161  ;;  %1181 = vrcp.f32 %v495_v20  ;;  %v498_v22 = vadd.f32 1.0, %v1160_v23 }
 0x12a   :  { %v1164_v36 = vpop.eup %1163  ;;  %1183 = vrcp.f32 %v482_v25  ;;  %v480_v39 = vadd.f32 1.0, %v1162_v33 }
 0x12b   :  { %v1166_v27 = vpop.eup %1165  ;;  %1185 = vrcp.f32 %v498_v22  ;;  %v496_v37 = vadd.f32 1.0, %v1164_v36 }
 0x12c   :  { %v1168_v58 = vpop.eup %1167  ;;  %1187 = vrcp.f32 %v480_v39  ;;  %v485_v15 = vadd.f32 1.0, %v1166_v27 }
 0x12d   :  { %v1170_v46 = vpop.eup %1169  ;;  %1189 = vrcp.f32 %v496_v37  ;;  %v501_v18 = vadd.f32 1.0, %v1168_v58 }
 0x12e   :  { %v1172_v31 = vpop.eup %1171  ;;  %v590_v32 = vmul.f32 %v1170_v46, %v1369_v21  ;;  %1191 = vpow2.f32 %v800_v45 }
 0x12f   :  { %v1174_v43 = vpop.eup %1173  ;;  %v572_v53 = vmul.f32 %v1172_v31, %v1372_v26  ;;  %1193 = vpow2.f32 %v816_v59 }
 0x130   :  { %v1176_v24 = vpop.eup %1175  ;;  %v942_v3 = vpack.c.bf16 %v590_v32, %v589_v1  ;;  %v588_v52 = vmul.f32 %v1174_v43, %v1376_v40  ;;  %1195 = vpow2.f32 %v803_v2 }
 0x131   :  { %v1178_v21 = vpop.eup %1177  ;;  %v897_v28 = vpack.c.bf16 %v572_v53, %v571_v50  ;;  %1197 = vpow2.f32 %v819_v60  ;;  %v577_v44 = vmul.f32 %v1176_v24, %v1380_v47 }
 0x132   :  { %v1180_v55 = vpop.eup %1179  ;;  %974 = vst [vmem:[%s1554_s3 + $0x58] sm:$0xff] %v942_v3   ;;  %v937_v26 = vpack.c.bf16 %v588_v52, %v587_v7  ;;  %1199 = vpow2.f32 %v801_v62  ;;  %v593_v10 = vmul.f32 %v1178_v21, %v1385_v54 }
 0x133   :  { %v1182_v48 = vpop.eup %1181  ;;  %965 = vst [vmem:[%s1554_s3 + $0x10] sm:$0xff] %v897_v28   ;;  %1201 = vpow2.f32 %v817_v4  ;;  %v575_v13 = vmul.f32 %v1180_v55, %v1388_v57 }
 0x134   :  { %v1184_v56 = vpop.eup %1183  ;;  %973 = vst [vmem:[%s1554_s3 + $0x50] sm:$0xff] %v937_v26   ;;  %v591_v61 = vmul.f32 %v1182_v48, %v1395_v63  ;;  %1203 = vrcp.f32 %v485_v15 }
 0x135   :  { %v1186_v40 = vpop.eup %1185  ;;  %v578_v8 = vmul.f32 %v1184_v56, %v1398_v0  ;;  %1205 = vrcp.f32 %v501_v18 }
 0x136   :  { %v1188_v9 = vpop.eup %1187  ;;  %v594_v11 = vmul.f32 %v1186_v40, %v1405_v5 }
 0x137   :  { %v1190_v12 = vpop.eup %1189  ;;  %v912_v14 = vpack.c.bf16 %v578_v8, %v577_v44  ;;  %v576_v51 = vmul.f32 %v1188_v9, %v1408_v6 }
 0x138   :  { %v952_v17 = vpack.c.bf16 %v594_v11, %v593_v10  ;;  %v592_v47 = vmul.f32 %v1190_v12, %v1418_v16  ;;  %v1192_v0 = vpop.eup %1191 }
 0x139   :  { %968 = vst [vmem:[%s1554_s3 + $0x28] sm:$0xff] %v912_v14   ;;  %v907_v54 = vpack.c.bf16 %v576_v51, %v575_v13  ;;  %v1194_v5 = vpop.eup %1193  ;;  %v483_v63 = vadd.f32 1.0, %v1192_v0 }
 0x13a   :  { %976 = vst [vmem:[%s1554_s3 + $0x68] sm:$0xff] %v952_v17   ;;  %v947_v57 = vpack.c.bf16 %v592_v47, %v591_v61  ;;  %v1196_v6 = vpop.eup %1195  ;;  %v499_v16 = vadd.f32 1.0, %v1194_v5 }
 0x13b   :  { %967 = vst [vmem:[%s1554_s3 + $0x20] sm:$0xff] %v907_v54   ;;  %v1198_v19 = vpop.eup %1197  ;;  %1207 = vrcp.f32 %v483_v63  ;;  %v486_v20 = vadd.f32 1.0, %v1196_v6 }
 0x13c   :  { %975 = vst [vmem:[%s1554_s3 + $0x60] sm:$0xff] %v947_v57   ;;  %v1200_v23 = vpop.eup %1199  ;;  %1209 = vrcp.f32 %v499_v16  ;;  %v502_v25 = vadd.f32 1.0, %v1198_v19 }
 0x13d   :  { %v1202_v33 = vpop.eup %1201  ;;  %1211 = vrcp.f32 %v486_v20  ;;  %v484_v22 = vadd.f32 1.0, %v1200_v23 }
 0x13e   :  { %1213 = vrcp.f32 %v502_v25  ;;  %v500_v36 = vadd.f32 1.0, %v1202_v33  ;;  %v1204_v39 = vpop.eup %1203 }
 0x13f   :  { %1215 = vrcp.f32 %v484_v22  ;;  %v1206_v27 = vpop.eup %1205  ;;  %v581_v59 = vmul.f32 %v1204_v39, %v1426_v30 }
 0x140   :  { %1217 = vrcp.f32 %v500_v36  ;;  %v597_v32 = vmul.f32 %v1206_v27, %v1431_v35 }
 0x145   :  { %v1208_v37 = vpop.eup %1207 }
 0x146   :  { %v1210_v58 = vpop.eup %1209  ;;  %v579_v50 = vmul.f32 %v1208_v37, %v1465_v29 }
 0x147   :  { %v1212_v45 = vpop.eup %1211  ;;  %v595_v62 = vmul.f32 %v1210_v58, %v1469_v34 }
 0x148   :  { %v1214_v46 = vpop.eup %1213  ;;  %v582_v31 = vmul.f32 %v1212_v45, %v1473_v42 }
 0x149   :  { %v1216_v1 = vpop.eup %1215  ;;  %v598_v2 = vmul.f32 %v1214_v46, %v1477_v49 }
 0x14a   :  { %v1218_v43 = vpop.eup %1217  ;;  %v922_v53 = vpack.c.bf16 %v582_v31, %v581_v59  ;;  %v580_v60 = vmul.f32 %v1216_v1, %v1481_v41 }
 0x14b   :  { %v962_v24 = vpack.c.bf16 %v598_v2, %v597_v32  ;;  %v596_v7 = vmul.f32 %v1218_v43, %v1487_v38 }
 0x14c   :  { %970 = vst [vmem:[%s1554_s3 + $0x38] sm:$0xff] %v922_v53   ;;  %v917_v30 = vpack.c.bf16 %v580_v60, %v579_v50 }
 0x14d   :  { %978 = vst [vmem:[%s1554_s3 + $0x78] sm:$0xff] %v962_v24   ;;  %v957_v35 = vpack.c.bf16 %v596_v7, %v595_v62 }
 0x14e   :  { %969 = vst [vmem:[%s1554_s3 + $0x30] sm:$0xff] %v917_v30  }
 0x14f   :  { %977 = vst [vmem:[%s1554_s3 + $0x70] sm:$0xff] %v957_v35  }

// kernel: sd_featurizer_forward.27
= control target key start
LH: loop header
LB: loop body
LE: loop exit
PB: predicated region body
PF: predicated region fallthrough
CT: control target
= control target key end

     0   :  { %s3092_s12 = smov 0   ;;  %s4012_s0 = inlined_call_operand.vmem [shape: bf16[4,128,128], index: 0, kind: input, shape index: {}]   ;;  %s4013_s1 = inlined_call_operand.vmem [shape: bf16[9,128,128], index: 1, kind: input, shape index: {}]   ;;  %s4014_s2 = inlined_call_operand.vmem [shape: f32[1,128], index: 2, kind: input, shape index: {}]   ;;  %s4015_s3 = inlined_call_operand.vmem [shape: bf16[4,104,128], index: 3, kind: output, shape index: {}]  }
   0x1 LB: > { %s2127_s13 = sadd.s32 4294967295, %s3068_s12   ;;  %p2131_p0 = scmp.ge.s32.totalorder %s3068_s12, 1  ;;  %s3068_s12 = sphi %s3092_s12, %s13_s12  }
   0x2   : > { %p137_p1 = scmp.lt.s32.totalorder %s3068_s12, 5 }
   0x4   : > { %p138_p2 = pnand %p2131_p0, %p137_p1 }
   0x5   : > { %v2974_v0 = vld [vmem:[%s4013_s1 + $0x40] sm:$0xff] (!%p138_p2)   ;;  %v3070_v1 = vmov (!%p138_p2), 0.0   ;;  %v2975_v2 = vld [vmem:[%s4013_s1 + $0x48] sm:$0xff] (!%p138_p2)   ;;  %p161_p3 = scmp.lt.s32.totalorder (!%p138_p2), %s2127_s13, 3  ;;  %vm3071_vm0 = vmmov (!%p138_p2), 0   ;;  %v2976_v3 = vld [vmem:[%s4013_s1 + $0x50] sm:$0xff] (!%p138_p2)  }
   0x6   : > { %141 = sbr.rel (%p138_p2) target bundleno = 507 (0x1fb), region = 32  ;;  %2551 = vmatprep.subr.bf16.mxu0 (!%p138_p2), %v3070_v1  ;;  %2947 = vmatprep.subr.bf16.mxu1 (!%p138_p2), %v3070_v1  ;;  %v2977_v9 = vld [vmem:[%s4013_s1 + $0x58] sm:$0xff] (!%p138_p2)   ;;  %v2978_v16 = vld [vmem:[%s4013_s1 + $0x60] sm:$0xff] (!%p138_p2)   ;;  %v2979_v23 = vld [vmem:[%s4013_s1 + $0x68] sm:$0xff] (!%p138_p2)   ;;  %vm256_vm1 = vsmask.f32 (!%p138_p2), 7424 }
   0x7   : > { %2552 = vmatpush3.bf16.msra.mxu0 (!%p138_p2), %v2974_v0  ;;  %2955 = vmatpush3.bf16.msra.mxu1 (!%p138_p2), %v2974_v0  ;;  %v2980_v27 = vld [vmem:[%s4013_s1 + $0x70] sm:$0xff] (!%p138_p2)   ;;  %v2981_v42 = vld [vmem:[%s4013_s1 + $0x78] sm:$0xff] (!%p138_p2)   ;;  %v2986_v47 = vld [vmem:[%s4013_s1] sm:$0xff] (!%p138_p2)   ;;  %vm616_vm2 = vcmask (!%p138_p2), 1046528   ;;  %vm998_vm3 = vsmask.f32 (!%p138_p2), 6400 }
   0x8   : > { %2553 = vmatprep.subr.bf16.mxu0 (!%p138_p2), %v3070_v1  ;;  %2948 = vmatprep.subr.bf16.mxu1 (!%p138_p2), %v3070_v1  ;;  %v2987_v48 = vld [vmem:[%s4013_s1 + $0x80] sm:$0xff] (!%p138_p2)   ;;  %v2988_v55 = vld [vmem:[%s4013_s1 + $0x8] sm:$0xff] (!%p138_p2)   ;;  %v2991_v62 = vld [vmem:[%s4013_s1 + $0x10] sm:$0xff] (!%p138_p2)   ;;  %vm1234_vm4 = vcmask (!%p138_p2), 1045504   ;;  %vm1610_vm5 = vsmask.f32 (!%p138_p2), 5376 }
   0x9   : > { %2567 = vmatprep.mubr.msk.bf16.mxu0 (!%p138_p2), %vm3071_vm0, %v3070_v1  ;;  %2583 = vmatprep.mubr.msk.bf16.mxu1 (!%p138_p2), %vm3071_vm0, %v3070_v1  ;;  %v2989_v56 = vld [vmem:[%s4013_s1 + $0x88] sm:$0xff] (!%p138_p2)   ;;  %v2992_v63 = vld [vmem:[%s4013_s1 + $0x90] sm:$0xff] (!%p138_p2)   ;;  %vm1816_vm6 = vcmask (!%p138_p2), 1044480  }
   0xb   : > { %2554 = vmatpush3.bf16.msra.mxu0 (!%p138_p2), %v2975_v2  ;;  %2956 = vmatpush3.bf16.msra.mxu1 (!%p138_p2), %v2975_v2 }
   0xc   : > { %2555 = vmatprep.subr.bf16.mxu0 (!%p138_p2), %v3070_v1  ;;  %2949 = vmatprep.subr.bf16.mxu1 (!%p138_p2), %v3070_v1 }
   0xd   : > { %s4017_s13 = smov (!%p161_p3, %s2127_s13), 3 }
   0xe   : > { %s2367_s20 = sshll.u32 %s4017_s13, 6  ;;  %s2963_s18 = smul.u32 52, %s4017_s13 }
   0xf   : > { %s3125_s23 = scalar_lea.vmem %s4012_s0, %s2367_s20  ;;  %2556 = vmatpush3.bf16.msra.mxu0 %v2976_v3  ;;  %2957 = vmatpush3.bf16.msra.mxu1 %v2976_v3 }
  0x10   : > { %v173_v4 = vld [vmem:[%s3125_s23 + $0x4] sm:$0xf]  ;;  %v174_v5 = vld [vmem:[%s3125_s23 + $0x8] sm:$0xf]  ;;  %v172_v6 = vld [vmem:[%s3125_s23] sm:$0xf]  ;;  %2557 = vmatprep.subr.bf16.mxu0 %v3070_v1  ;;  %2950 = vmatprep.subr.bf16.mxu1 %v3070_v1  ;;  %s3978_s21 = scalar_lea.vmem %s4015_s3, %s2963_s18 }
  0x11   : > { %v180_v7 = vld [vmem:[%s3125_s23 + $0x20] sm:$0xf]  ;;  %v3131_v8 = vcombine.low %v173_v4, %v174_v5  ;;  %v181_v10 = vld [vmem:[%s3125_s23 + $0x24] sm:$0xf]  ;;  %v182_v11 = vld [vmem:[%s3125_s23 + $0x28] sm:$0xf]  ;;  %v3141_v13 = vcombine.low %v172_v6, %v173_v4 }
  0x12   : > { %v175_v12 = vld [vmem:[%s3125_s23 + $0xc] sm:$0xf]  ;;  %v3143_v14 = vcombine.low %v180_v7, %v181_v10  ;;  %v3145_v15 = vcombine.low %v181_v10, %v182_v11  ;;  %v176_v22 = vld [vmem:[%s3125_s23 + $0x10] sm:$0xf]  ;;  %v177_v32 = vld [vmem:[%s3125_s23 + $0x14] sm:$0xf] }
  0x13   : > { %2558 = vmatpush3.bf16.msra.mxu0 %v2977_v9  ;;  %2958 = vmatpush3.bf16.msra.mxu1 %v2977_v9  ;;  %v183_v17 = vld [vmem:[%s3125_s23 + $0x2c] sm:$0xf]  ;;  %v3153_v18 = vcombine.low %v174_v5, %v175_v12  ;;  %v260_v19 = vshll.u32 %v3141_v13, 16  ;;  %v3163_v24 = vcombine.low %v175_v12, %v176_v22  ;;  %v258_v25 = vshrl.u32 %v3141_v13, 16  ;;  %v3180_v33 = vld [vmem:[%s3125_s23 + $0x30] sm:$0xf] }
  0x14   : > { %2559 = vmatprep.subr.bf16.mxu0 %v3070_v1  ;;  %2951 = vmatprep.subr.bf16.mxu1 %v3070_v1  ;;  %v289_v20 = vshll.u32 %v3143_v14, 16  ;;  %v3157_v21 = vcombine.low %v182_v11, %v183_v17  ;;  %v293_v29 = vshrl.u32 %v3143_v14, 16  ;;  %v3183_v34 = vld [vmem:[%s3125_s23 + $0x34] sm:$0xf]  ;;  %v178_v35 = vld [vmem:[%s3125_s23 + $0x18] sm:$0xf]  ;;  %v3188_v37 = vcombine.low %v183_v17, %v3180_v33 }
  0x15   : > { %v265_v26 = vshll.u32 %v3153_v18, 16  ;;  %v262_v28 = vrot.slane %v260_v19, 1  ;;  %v179_v36 = vld [vmem:[%s3125_s23 + $0x1c] sm:$0xf]  ;;  %v3192_v38 = vcombine.low %v177_v32, %v178_v35  ;;  %v3206_v45 = vcombine.low %v176_v22, %v177_v32 }
  0x16   : > { %v3175_v30 = vrot.slane %v289_v20, 1  ;;  %v297_v31 = vshll.u32 %v3157_v21, 16  ;;  %v3194_v39 = vcombine.low %v179_v36, %v180_v7  ;;  %v3210_v46 = vcombine.low %v3180_v33, %v3183_v34  ;;  %v2993_v11 = vld [vmem:[%s4013_s1 + $0x18] sm:$0xff]  }
  0x17   : > { %2560 = vmatpush3.bf16.msra.mxu0 %v2978_v16  ;;  %2959 = vmatpush3.bf16.msra.mxu1 %v2978_v16  ;;  %v263_v40 = vor.u32 %v262_v28, %v258_v25  ;;  %v267_v41 = vrot.slane %v265_v26, 1  ;;  %v269_v49 = vshrl.u32 %v3153_v18, 16  ;;  %v301_v50 = vshrl.u32 %v3157_v21, 16  ;;  %v2994_v12 = vld [vmem:[%s4013_s1 + $0x98] sm:$0xff]   ;;  %v2997_v28 = vld [vmem:[%s4013_s1 + $0x20] sm:$0xff]  }
  0x18   : > { %2561 = vmatprep.subr.bf16.mxu0 %v3070_v1  ;;  %2952 = vmatprep.subr.bf16.mxu1 %v3070_v1  ;;  %v295_v43 = vor.u32 %v293_v29, %v3175_v30  ;;  %v299_v44 = vrot.slane %v297_v31, 1  ;;  %v273_v53 = vshll.u32 %v3206_v45, 16  ;;  %v305_v54 = vshll.u32 %v3210_v46, 16 }
  0x19   : > { %v268_v51 = vsel %vm256_vm1, %v263_v40, %v267_v41  ;;  %v271_v57 = vor.u32 %v269_v49, %v267_v41  ;;  %v3242_v61 = vcombine.low %v178_v35, %v179_v36  ;;  %v812_v0 = vrot.slane %v3131_v8, 1 }
  0x1a   : > { %v300_v52 = vsel %vm256_vm1, %v295_v43, %v299_v44  ;;  %v275_v58 = vrot.slane %v273_v53, 1  ;;  %v303_v59 = vor.u32 %v301_v50, %v299_v44  ;;  %v307_v60 = vrot.slane %v305_v54, 1  ;;  %v2998_v43 = vld [vmem:[%s4013_s1 + $0xa0] sm:$0xff]  }
  0x1b   : > { %2562 = vmatpush3.bf16.msra.mxu0 %v2979_v23  ;;  %2960 = vmatpush3.bf16.msra.mxu1 %v2979_v23  ;;  %v277_v2 = vshrl.u32 %v3206_v45, 16  ;;  %v813_v3 = vrot.slane %v3163_v24, 1  ;;  %v281_v6 = vshll.u32 %v3242_v61, 16  ;;  %v1000_v7 = vshrl.u32 %v3131_v8, 16 }
  0x1c   : > { %2563 = vmatprep.subr.bf16.mxu0 %v3070_v1  ;;  %2953 = vmatprep.subr.bf16.mxu1 %v3070_v1  ;;  %v276_v4 = vsel %vm256_vm1, %v271_v57, %v275_v58  ;;  %v308_v5 = vsel %vm256_vm1, %v303_v59, %v307_v60  ;;  %v1003_v10 = vshll.u32 %v3131_v8, 16  ;;  %v309_v16 = vshrl.u32 %v3210_v46, 16 }
  0x1d   : > { %v3266_v9 = vsel %vm616_vm2, %v812_v0, %v813_v3  ;;  %v1002_v17 = vrot.slane %v1000_v7, 1  ;;  %v279_v22 = vor.u32 %v277_v2, %v275_v58  ;;  %v283_v23 = vrot.slane %v281_v6, 1  ;;  %v3000_v58 = vld [vmem:[%s4013_s1 + $0xa8] sm:$0xff]  }
  0x1e   : > { %v1005_v19 = vrot.slane %v1003_v10, 2  ;;  %v1008_v25 = vshrl.u32 %v3163_v24, 16  ;;  %v311_v35 = vor.u32 %v309_v16, %v307_v60  ;;  %v285_v36 = vshrl.u32 %v3242_v61, 16  ;;  %v3002_v10 = vld [vmem:[%s4013_s1 + $0xb0] sm:$0xff]  }
  0x1f   : > { %2564 = vmatpush3.bf16.msra.mxu0 %v2980_v27  ;;  %2961 = vmatpush3.bf16.msra.mxu1 %v2980_v27  ;;  %v1011_v27 = vshll.u32 %v3163_v24, 16  ;;  %v815_v44 = vrot.slane %v3192_v38, 1  ;;  %v1020_v57 = vshll.u32 %v3192_v38, 16  ;;  %v1029_v0 = vshll.u32 %v3194_v39, 16 }
  0x20   : > { %2565 = vmatprep.subr.bf16.mxu0 %v3070_v1  ;;  %2954 = vmatprep.subr.bf16.mxu1 %v3070_v1  ;;  %v1010_v32 = vrot.slane %v1008_v25, 1  ;;  %v1006_v40 = vor.u32 %v1005_v19, %v1002_v17  ;;  %v819_v7 = vrot.slane %v3145_v15, 1  ;;  %v3003_v25 = vld [vmem:[%s4013_s1 + $0x38] sm:$0xff]  }
  0x21   : > { %v1013_v41 = vrot.slane %v1011_v27, 2  ;;  %v1022_v60 = vrot.slane %v1020_v57, 2  ;;  %v1031_v17 = vrot.slane %v1029_v0, 2  ;;  %v617_v27 = vrot.slane %v3141_v13, 1  ;;  %v3006_v0 = vld [vmem:[%s4013_s1 + $0x100] sm:$0xff]  }
  0x23   : > { %2566 = vmatpush3.bf16.msra.mxu0 %v2981_v42  ;;  %2962 = vmatpush3.bf16.msra.mxu1 %v2981_v42  ;;  %v284_v42 = vsel %vm256_vm1, %v279_v22, %v283_v23 }
  0x24   : > { %2595 = vmatprep.subr.bf16.mxu1 %v3070_v1  ;;  %2639 = vmatprep.subr.bf16.mxu0 %v3070_v1 }
  0x26   : > { %2568 = vmatmul.mubr.bf16.vlgmr.msra.gmra.mrb[0].mxu0 %v268_v51  ;;  %2584 = vmatmul.mubr.bf16.vlgmr.msra.gmra.mrb[0].mxu1 %v300_v52  ;;  %v1017_v51 = vshrl.u32 %v3192_v38, 16  ;;  %v2999_v52 = vld [vmem:[%s4013_s1 + $0x28] sm:$0xff]  }
  0x27   : > { %2596 = vmatpush3.bf16.msra.mxu1 %v2986_v47  ;;  %2640 = vmatpush3.bf16.msra.mxu0 %v2987_v48  ;;  %v1014_v47 = vor.u32 %v1013_v41, %v1010_v32  ;;  %v3302_v48 = vsel %vm616_vm2, %v813_v3, %v815_v44  ;;  %v3004_v41 = vld [vmem:[%s4013_s1 + $0xb8] sm:$0xff]  }
  0x28   : > { %2597 = vmatprep.subr.bf16.mxu1 %v3070_v1  ;;  %2641 = vmatprep.subr.bf16.mxu0 %v3070_v1  ;;  %v1019_v59 = vrot.slane %v1017_v51, 1 }
  0x29   : > { %2571 = vmatprep.mubr.msk.bf16.mxu0 %vm3071_vm0, %v3070_v1  ;;  %2587 = vmatprep.mubr.msk.bf16.mxu1 %vm3071_vm0, %v3070_v1 }
  0x2b   : > { %2598 = vmatpush3.bf16.msra.mxu1 %v2988_v55  ;;  %2642 = vmatpush3.bf16.msra.mxu0 %v2989_v56  ;;  %v287_v55 = vor.u32 %v285_v36, %v283_v23  ;;  %v3311_v56 = vsel %vm998_vm3, %v1006_v40, %v1014_v47  ;;  %v1038_v23 = vshll.u32 %v3145_v15, 16 }
  0x2c   : > { %2599 = vmatprep.subr.bf16.mxu1 %v3070_v1  ;;  %2643 = vmatprep.subr.bf16.mxu0 %v3070_v1 }
  0x2d   : > { %v292_v3 = vsel %vm256_vm1, %v287_v55, %v3175_v30  ;;  %v1035_v30 = vshrl.u32 %v3145_v15, 16  ;;  %v1040_v40 = vrot.slane %v1038_v23, 2 }
  0x2e   : > { %2572 = vmatmul.mubr.bf16.gmra.mrb[4].mxu0 %v276_v4  ;;  %2588 = vmatmul.mubr.bf16.gmra.mrb[4].mxu1 %v308_v5  ;;  %v3001_v4 = vld [vmem:[%s4013_s1 + $0x30] sm:$0xff]   ;;  %v1023_v5 = vor.u32 %v1022_v60, %v1019_v59  ;;  %v3373_v59 = vld [vmem:[%s3125_s23 + $0x38] sm:$0xf] }
  0x2f   : > { %2600 = vmatpush3.bf16.msra.mxu1 %v2991_v62  ;;  %2644 = vmatpush3.bf16.msra.mxu0 %v2992_v63  ;;  %v817_v62 = vrot.slane %v3194_v39, 1  ;;  %v1026_v63 = vshrl.u32 %v3194_v39, 16  ;;  %v1037_v32 = vrot.slane %v1035_v30, 1 }
  0x30   : > { %2601 = vmatprep.subr.bf16.mxu1 %v3070_v1  ;;  %2645 = vmatprep.subr.bf16.mxu0 %v3070_v1  ;;  %v3342_v19 = vsel %vm998_vm3, %v1014_v47, %v1023_v5  ;;  %v1047_v47 = vshll.u32 %v3188_v37, 16 }
  0x31   : > { %2575 = vmatprep.mubr.msk.bf16.mxu0 %vm3071_vm0, %v3070_v1  ;;  %2591 = vmatprep.mubr.msk.bf16.mxu1 %vm3071_vm0, %v3070_v1  ;;  %v3345_v22 = vsel %vm616_vm2, %v817_v62, %v819_v7  ;;  %v1041_v51 = vor.u32 %v1040_v40, %v1037_v32 }
  0x33   : > { %2602 = vmatpush3.bf16.msra.mxu1 %v2993_v11  ;;  %2646 = vmatpush3.bf16.msra.mxu0 %v2994_v12  ;;  %v3336_v11 = vsel %vm616_vm2, %v815_v44, %v817_v62  ;;  %v1028_v12 = vrot.slane %v1026_v63, 1  ;;  %v1044_v44 = vshrl.u32 %v3188_v37, 16  ;;  %v3380_v62 = vcombine.low %v3183_v34, %v3373_v59 }
  0x34   : > { %2603 = vmatprep.subr.bf16.mxu1 %v3070_v1  ;;  %2647 = vmatprep.subr.bf16.mxu0 %v3070_v1 }
  0x35   : > { %v1046_v57 = vrot.slane %v1044_v44, 1  ;;  %v1056_v34 = vshll.u32 %v3380_v62, 16  ;;  %v3010_v44 = vld [vmem:[%s4013_s1 + $0x110] sm:$0xff]  }
  0x36   : > { %2576 = vmatmul.mubr.bf16.gmra.mrb[8].mxu0 %v284_v42  ;;  %2592 = vmatmul.mubr.bf16.gmra.mrb[8].mxu1 %v311_v35  ;;  %v618_v35 = vrot.slane %v3153_v18, 1 }
  0x37   : > { %2604 = vmatpush3.bf16.msra.mxu1 %v2997_v28  ;;  %2648 = vmatpush3.bf16.msra.mxu0 %v2998_v43  ;;  %v1032_v28 = vor.u32 %v1031_v17, %v1028_v12  ;;  %v821_v43 = vrot.slane %v3188_v37, 1  ;;  %v3007_v12 = vld [vmem:[%s4013_s1 + $0xc8] sm:$0xff]   ;;  %v1058_v23 = vrot.slane %v1056_v34, 2 }
  0x38   : > { %2605 = vmatprep.subr.bf16.mxu1 %v3070_v1  ;;  %2649 = vmatprep.subr.bf16.mxu0 %v3070_v1  ;;  %v619_v63 = vsel %vm616_vm2, %v617_v27, %v618_v35  ;;  %v3015_v34 = vld [vmem:[%s4013_s1 + $0xe8] sm:$0xff]  }
  0x39   : > { %2579 = vmatprep.mubr.msk.bf16.mxu0 %vm3071_vm0, %v3070_v1  ;;  %2611 = vmatprep.mubr.msk.bf16.mxu1 %vm3071_vm0, %v3070_v1  ;;  %v3357_v42 = vsel %vm998_vm3, %v1023_v5, %v1032_v28  ;;  %v3370_v55 = vsel %vm616_vm2, %v819_v7, %v821_v43  ;;  %v3376_v60 = vsel %vm998_vm3, %v1032_v28, %v1041_v51  ;;  %v1053_v5 = vshrl.u32 %v3380_v62, 16 }
  0x3b   : > { %2606 = vmatpush3.bf16.msra.mxu1 %v2999_v52  ;;  %2650 = vmatpush3.bf16.msra.mxu0 %v3000_v58  ;;  %v3005_v52 = vld [vmem:[%s4013_s1 + $0xc0] sm:$0xff]   ;;  %v1049_v58 = vrot.slane %v1047_v47, 2  ;;  %v1055_v30 = vrot.slane %v1053_v5, 1  ;;  %v1246_v5 = vrot.slane %v3380_v62, 2 }
  0x3c   : > { %2607 = vmatprep.subr.bf16.mxu1 %v3070_v1  ;;  %2651 = vmatprep.subr.bf16.mxu0 %v3070_v1 }
  0x3d   : > { %v3413_v27 = vor.u32 %v1058_v23, %v1055_v30  ;;  %v3017_v23 = vld [vmem:[%s4013_s1 + $0xf0] sm:$0xff]  }
  0x3e   : > { %2580 = vmatmul.mubr.bf16.gmra.mrb[12].mxu0 %v292_v3  ;;  %v1050_v3 = vor.u32 %v1049_v58, %v1046_v57  ;;  %v3012_v57 = vld [vmem:[%s4013_s1 + $0x118] sm:$0xff]  }
  0x3f   : > { %2608 = vmatpush3.bf16.msra.mxu1 %v3001_v4  ;;  %2652 = vmatpush3.bf16.msra.mxu0 %v3002_v10  ;;  %v823_v4 = vrot.slane %v3380_v62, 1  ;;  %v1235_v10 = vrot.slane %v3131_v8, 2  ;;  %v620_v8 = vrot.slane %v3206_v45, 1  ;;  %v1619_v62 = vrot.slane %v281_v6, 3 }
  0x40   : > { %2609 = vmatprep.subr.bf16.mxu1 %v3070_v1  ;;  %2653 = vmatprep.subr.bf16.mxu0 %v3070_v1  ;;  %v3392_v7 = vsel %vm998_vm3, %v1041_v51, %v1050_v3  ;;  %v3423_v32 = vsel %vm998_vm3, %v1050_v3, %v3413_v27  ;;  %v624_v3 = vrot.slane %v3143_v14, 1  ;;  %v1622_v6 = vrot.slane %v293_v29, 2 }
  0x41   : > { %2655 = vmatprep.mubr.msk.bf16.mxu0 %vm3071_vm0, %v3070_v1  ;;  %v3402_v17 = vsel %vm616_vm2, %v821_v43, %v823_v4  ;;  %v621_v43 = vsel %vm616_vm2, %v618_v35, %v620_v8  ;;  %v622_v35 = vrot.slane %v3242_v61, 1 }
  0x43   : > { %2610 = vmatpush3.bf16.msra.mxu1 %v3003_v25  ;;  %2654 = vmatpush3.bf16.msra.mxu0 %v3004_v41  ;;  %v1236_v25 = vrot.slane %v3163_v24, 2  ;;  %v1238_v24 = vrot.slane %v3192_v38, 2  ;;  %v1240_v41 = vrot.slane %v3194_v39, 2  ;;  %v3009_v38 = vld [vmem:[%s4013_s1 + $0xd0] sm:$0xff]   ;;  %v1242_v39 = vrot.slane %v3145_v15, 2 }
  0x44   : > { %2683 = vmatprep.subr.bf16.mxu1 %v3070_v1  ;;  %2727 = vmatprep.subr.bf16.mxu0 %v3070_v1  ;;  %v1244_v15 = vrot.slane %v3188_v37, 2  ;;  %v3014_v37 = vld [vmem:[%s4013_s1 + $0x120] sm:$0xff]   ;;  %v625_v30 = vsel %vm616_vm2, %v622_v35, %v624_v3 }
  0x45   : > { %v3416_v28 = vsel %vm1234_vm4, %v1235_v10, %v1236_v25  ;;  %v3426_v40 = vsel %vm1234_vm4, %v1236_v25, %v1238_v24  ;;  %v3439_v47 = vsel %vm1234_vm4, %v1238_v24, %v1240_v41  ;;  %v3445_v51 = vsel %vm1234_vm4, %v1240_v41, %v1242_v39  ;;  %v3016_v10 = vld [vmem:[%s4013_s1 + $0x128] sm:$0xff]   ;;  %v3018_v25 = vld [vmem:[%s4013_s1 + $0x130] sm:$0xff]   ;;  %v3021_v24 = vld [vmem:[%s4013_s1 + $0x138] sm:$0xff]  }
  0x46   : > { %2612 = vmatmul.mubr.bf16.vlgmr.msra.gmra.mrb[12].mxu1 %v3141_v13  ;;  %2656 = vmatmul.mubr.bf16.vlgmr.msra.gmra.mrb[16].mxu0 %v619_v63  ;;  %v3008_v13 = vld [vmem:[%s4013_s1 + $0x108] sm:$0xff]   ;;  %v3461_v58 = vsel %vm1234_vm4, %v1242_v39, %v1244_v15  ;;  %v3013_v63 = vld [vmem:[%s4013_s1 + $0xe0] sm:$0xff]   ;;  %v1612_v41 = vrot.slane %v265_v26, 3  ;;  %v628_v26 = vrot.slane %v3210_v46, 1 }
  0x47   : > { %2684 = vmatpush3.bf16.msra.mxu1 %v3005_v52  ;;  %2728 = vmatpush3.bf16.msra.mxu0 %v3006_v0  ;;  %v3011_v52 = vld [vmem:[%s4013_s1 + $0xd8] sm:$0xff]   ;;  %v623_v0 = vsel %vm616_vm2, %v620_v8, %v622_v35  ;;  %v626_v8 = vrot.slane %v3157_v21, 1 }
  0x48   : > { %2615 = vmatprep.mubr.msk.bf16.mxu1 %vm3071_vm0, %v3070_v1  ;;  %2659 = vmatprep.mubr.msk.bf16.mxu0 %vm3071_vm0, %v3070_v1 }
  0x49   : > { %2685 = vmatprep.subr.bf16.mxu1 %v3070_v1  ;;  %2729 = vmatprep.subr.bf16.mxu0 %v3070_v1  ;;  %v627_v39 = vsel %vm616_vm2, %v624_v3, %v626_v8  ;;  %v629_v35 = vsel %vm616_vm2, %v626_v8, %v628_v26  ;;  %v3038_v3 = vld [vmem:[%s4013_s1 + $0x168] sm:$0xff]   ;;  %v1429_v8 = vrot.slane %v3143_v14, 2 }
  0x4b   : > { %2686 = vmatpush3.bf16.msra.mxu1 %v3007_v12  ;;  %2730 = vmatpush3.bf16.msra.mxu0 %v3008_v13  ;;  %v3490_v12 = vsel %vm1234_vm4, %v1244_v15, %v1246_v5  ;;  %v3020_v13 = vld [vmem:[%s4013_s1 + $0xf8] sm:$0xff]   ;;  %v3024_v15 = vld [vmem:[%s4013_s1 + $0x140] sm:$0xff]  }
  0x4c   : > { %2687 = vmatprep.subr.bf16.mxu1 %v3070_v1  ;;  %2731 = vmatprep.subr.bf16.mxu0 %v3070_v1 }
  0x4e   : > { %2616 = vmatmul.mubr.bf16.gmra.mrb[16].mxu1 %v3153_v18  ;;  %2660 = vmatmul.mubr.bf16.gmra.mrb[20].mxu0 %v621_v43  ;;  %v1611_v43 = vrot.slane %v269_v49, 2 }
  0x4f   : > { %2619 = vmatprep.mubr.msk.bf16.mxu1 %vm3071_vm0, %v3070_v1  ;;  %2663 = vmatprep.mubr.msk.bf16.mxu0 %vm3071_vm0, %v3070_v1 }
  0x50   : > { %2688 = vmatpush3.bf16.msra.mxu1 %v3009_v38  ;;  %2732 = vmatpush3.bf16.msra.mxu0 %v3010_v44  ;;  %v1615_v38 = vrot.slane %v273_v53, 3  ;;  %v1614_v44 = vrot.slane %v277_v2, 2  ;;  %v1613_v49 = vor.u32 %v1612_v41, %v1611_v43  ;;  %v3053_v41 = vld [vmem:[%s4013_s1 + $0x1e0] sm:$0xff]  }
  0x51   : > { %2689 = vmatprep.subr.bf16.mxu1 %v3070_v1  ;;  %2733 = vmatprep.subr.bf16.mxu0 %v3070_v1  ;;  %v3054_v43 = vld [vmem:[%s4013_s1 + $0x220] sm:$0xff]  }
  0x52   : > { %v3532_v53 = vor.u32 %v1615_v38, %v1614_v44  ;;  %v1431_v38 = vrot.slane %v3157_v21, 2  ;;  %v3055_v44 = vld [vmem:[%s4013_s1 + $0x1e8] sm:$0xff]  }
  0x54   : > { %2690 = vmatpush3.bf16.msra.mxu1 %v3011_v52  ;;  %2734 = vmatpush3.bf16.msra.mxu0 %v3012_v57  ;;  %v3536_v2 = vsel %vm1610_vm5, %v1613_v49, %v3532_v53  ;;  %v2166_v52 = vcombine.low %v3180_v33, %v3180_v33  ;;  %v3025_v57 = vld [vmem:[%s4013_s1 + $0x180] sm:$0xff]   ;;  %v3027_v33 = vld [vmem:[%s4013_s1 + $0x148] sm:$0xff]   ;;  %v3059_v49 = vld [vmem:[%s4013_s1 + $0x230] sm:$0xff]  }
  0x55   : > { %2691 = vmatprep.subr.bf16.mxu1 %v3070_v1  ;;  %2735 = vmatprep.subr.bf16.mxu0 %v3070_v1 }
  0x56   : > { %2620 = vmatmul.mubr.bf16.gmra.mrb[20].mxu1 %v3206_v45  ;;  %2664 = vmatmul.mubr.bf16.gmra.mrb[24].mxu0 %v623_v0  ;;  %v3032_v0 = vld [vmem:[%s4013_s1 + $0x158] sm:$0xff]  }
  0x57   : > { %2623 = vmatprep.mubr.msk.bf16.mxu1 %vm3071_vm0, %v3070_v1  ;;  %2667 = vmatprep.mubr.msk.bf16.mxu0 %vm3071_vm0, %v3070_v1 }
  0x58   : > { %2692 = vmatpush3.bf16.msra.mxu1 %v3013_v63  ;;  %2736 = vmatpush3.bf16.msra.mxu0 %v3014_v37  ;;  %v3028_v63 = vld [vmem:[%s4013_s1 + $0x188] sm:$0xff]   ;;  %v3034_v37 = vld [vmem:[%s4013_s1 + $0x198] sm:$0xff]  }
  0x59   : > { %2693 = vmatprep.subr.bf16.mxu1 %v3070_v1  ;;  %2737 = vmatprep.subr.bf16.mxu0 %v3070_v1 }
  0x5c   : > { %2694 = vmatpush3.bf16.msra.mxu1 %v3015_v34  ;;  %2738 = vmatpush3.bf16.msra.mxu0 %v3016_v10  ;;  %v3039_v34 = vld [vmem:[%s4013_s1 + $0x1a8] sm:$0xff]   ;;  %v3043_v10 = vld [vmem:[%s4013_s1 + $0x178] sm:$0xff]  }
  0x5d   : > { %2695 = vmatprep.subr.bf16.mxu1 %v3070_v1  ;;  %2739 = vmatprep.subr.bf16.mxu0 %v3070_v1 }
  0x5e   : > { %2624 = vmatmul.mubr.bf16.gmra.mrb[24].mxu1 %v3242_v61  ;;  %2668 = vmatmul.mubr.bf16.gmra.mrb[28].mxu0 %v625_v30  ;;  %v3044_v30 = vld [vmem:[%s4013_s1 + $0x1b8] sm:$0xff]  }
  0x5f   : > { %2627 = vmatprep.mubr.msk.bf16.mxu1 %vm3071_vm0, %v3070_v1  ;;  %2671 = vmatprep.mubr.msk.bf16.mxu0 %vm3071_vm0, %v3070_v1 }
  0x60   : > { %2696 = vmatpush3.bf16.msra.mxu1 %v3017_v23  ;;  %2740 = vmatpush3.bf16.msra.mxu0 %v3018_v25  ;;  %v3049_v23 = vld [vmem:[%s4013_s1 + $0x1d0] sm:$0xff]  }
  0x61   : > { %2697 = vmatprep.subr.bf16.mxu1 %v3070_v1  ;;  %2741 = vmatprep.subr.bf16.mxu0 %v3070_v1  ;;  %v3050_v25 = vld [vmem:[%s4013_s1 + $0x210] sm:$0xff]  }
  0x64   : > { %2698 = vmatpush3.bf16.msra.mxu1 %v3020_v13  ;;  %2742 = vmatpush3.bf16.msra.mxu0 %v3021_v24  ;;  %v3051_v13 = vld [vmem:[%s4013_s1 + $0x1d8] sm:$0xff]  }
  0x65   : > { %2771 = vmatprep.subr.bf16.mxu1 %v3070_v1  ;;  %2815 = vmatprep.subr.bf16.mxu0 %v3070_v1  ;;  %v3052_v24 = vld [vmem:[%s4013_s1 + $0x218] sm:$0xff]  }
  0x66   : > { %2628 = vmatmul.mubr.bf16.gmra.mrb[28].mxu1 %v3143_v14  ;;  %2672 = vmatmul.mubr.bf16.gmra.mrb[32].mxu0 %v627_v39  ;;  %v1432_v39 = vsel %vm1234_vm4, %v1429_v8, %v1431_v38 }
  0x67   : > { %2631 = vmatprep.mubr.msk.bf16.mxu1 %vm3071_vm0, %v3070_v1  ;;  %2675 = vmatprep.mubr.msk.bf16.mxu0 %vm3071_vm0, %v3070_v1 }
  0x6e   : > { %2632 = vmatmul.mubr.bf16.gmra.mrb[32].mxu1 %v3157_v21  ;;  %2676 = vmatmul.mubr.bf16.gmra.mrb[36].mxu0 %v629_v35  ;;  %v1433_v35 = vrot.slane %v3210_v46, 2 }
  0x6f   : > { %2635 = vmatprep.mubr.msk.bf16.mxu1 %vm3071_vm0, %v3070_v1  ;;  %2679 = vmatprep.mubr.msk.bf16.mxu0 %vm3071_vm0, %v3070_v1 }
  0x76   : > { %2636 = vmatmul.mubr.bf16.gmra.mrb[36].mxu1 %v2166_v52  ;;  %2680 = vmatmul.mubr.bf16.gmra.mrb[40].mxu0 %v628_v26  ;;  %v3058_v26 = vld [vmem:[%s4013_s1 + $0x1f0] sm:$0xff]   ;;  %v187_v52 = vld [vmem:[%s3125_s23 + $0x3c] sm:$0xf] }
  0x77   : > { %2699 = vmatprep.mubr.msk.bf16.mxu1 %vm3071_vm0, %v3070_v1  ;;  %2743 = vmatprep.mubr.msk.bf16.mxu0 %vm3071_vm0, %v3070_v1 }
  0x7e   : > { %2700 = vmatmul.mubr.bf16.vlgmr.msra.gmra.mrb[40].mxu1 %v3266_v9  ;;  %2744 = vmatmul.mubr.bf16.vlgmr.msra.gmra.mrb[44].mxu0 %v3311_v56  ;;  %v3029_v9 = vld [vmem:[%s4013_s1 + $0x150] sm:$0xff]  }
  0x7f   : > { %2772 = vmatpush3.bf16.msra.mxu1 %v3024_v15  ;;  %2816 = vmatpush3.bf16.msra.mxu0 %v3025_v57  ;;  %v3031_v56 = vld [vmem:[%s4013_s1 + $0x190] sm:$0xff]   ;;  %v3060_v15 = vld [vmem:[%s4013_s1 + $0x1f8] sm:$0xff]   ;;  %v1434_v57 = vsel %vm1234_vm4, %v1431_v38, %v1433_v35 }
  0x80   : > { %2703 = vmatprep.mubr.msk.bf16.mxu1 %vm3071_vm0, %v3070_v1  ;;  %2747 = vmatprep.mubr.msk.bf16.mxu0 %vm3071_vm0, %v3070_v1 }
  0x81   : > { %2773 = vmatprep.subr.bf16.mxu1 %v3070_v1  ;;  %2817 = vmatprep.subr.bf16.mxu0 %v3070_v1 }
  0x83   : > { %2774 = vmatpush3.bf16.msra.mxu1 %v3027_v33  ;;  %2818 = vmatpush3.bf16.msra.mxu0 %v3028_v63  ;;  %v3752_v33 = vcombine.low %v3373_v59, %v187_v52  ;;  %v1817_v59 = vrot.slane %v3153_v18, 3 }
  0x84   : > { %2775 = vmatprep.subr.bf16.mxu1 %v3070_v1  ;;  %2819 = vmatprep.subr.bf16.mxu0 %v3070_v1 }
  0x85   : > { %v1435_v63 = vrot.slane %v3752_v33, 2  ;;  %v1828_v52 = vrot.slane %v3752_v33, 3 }
  0x86   : > { %2704 = vmatmul.mubr.bf16.gmra.mrb[44].mxu1 %v3302_v48  ;;  %2748 = vmatmul.mubr.bf16.gmra.mrb[48].mxu0 %v3342_v19  ;;  %v3035_v48 = vld [vmem:[%s4013_s1 + $0x160] sm:$0xff]  }
  0x87   : > { %2707 = vmatprep.mubr.msk.bf16.mxu1 %vm3071_vm0, %v3070_v1  ;;  %2751 = vmatprep.mubr.msk.bf16.mxu0 %vm3071_vm0, %v3070_v1  ;;  %v3036_v19 = vld [vmem:[%s4013_s1 + $0x1a0] sm:$0xff]  }
  0x88   : > { %2776 = vmatpush3.bf16.msra.mxu1 %v3029_v9  ;;  %2820 = vmatpush3.bf16.msra.mxu0 %v3031_v56  ;;  %v1436_v9 = vsel %vm1234_vm4, %v1433_v35, %v1435_v63  ;;  %v1618_v56 = vrot.slane %v285_v36, 2 }
  0x89   : > { %2777 = vmatprep.subr.bf16.mxu1 %v3070_v1  ;;  %2821 = vmatprep.subr.bf16.mxu0 %v3070_v1 }
  0x8c   : > { %2778 = vmatpush3.bf16.msra.mxu1 %v3032_v0  ;;  %2822 = vmatpush3.bf16.msra.mxu0 %v3034_v37  ;;  %v1822_v0 = vrot.slane %v3143_v14, 3  ;;  %v1627_v14 = vrot.slane %v297_v31, 3  ;;  %v1630_v31 = vrot.slane %v309_v16, 2 }
  0x8d   : > { %2779 = vmatprep.subr.bf16.mxu1 %v3070_v1  ;;  %2823 = vmatprep.subr.bf16.mxu0 %v3070_v1 }
  0x8e   : > { %2708 = vmatmul.mubr.bf16.gmra.mrb[48].mxu1 %v3336_v11  ;;  %2752 = vmatmul.mubr.bf16.gmra.mrb[52].mxu0 %v3357_v42  ;;  %v3041_v11 = vld [vmem:[%s4013_s1 + $0x170] sm:$0xff]  }
  0x8f   : > { %2711 = vmatprep.mubr.msk.bf16.mxu1 %vm3071_vm0, %v3070_v1  ;;  %2755 = vmatprep.mubr.msk.bf16.mxu0 %vm3071_vm0, %v3070_v1  ;;  %v3042_v42 = vld [vmem:[%s4013_s1 + $0x1b0] sm:$0xff]  }
  0x90   : > { %2780 = vmatpush3.bf16.msra.mxu1 %v3035_v48  ;;  %2824 = vmatpush3.bf16.msra.mxu0 %v3036_v19 }
  0x91   : > { %2781 = vmatprep.subr.bf16.mxu1 %v3070_v1  ;;  %2825 = vmatprep.subr.bf16.mxu0 %v3070_v1 }
  0x94   : > { %2782 = vmatpush3.bf16.msra.mxu1 %v3038_v3  ;;  %2826 = vmatpush3.bf16.msra.mxu0 %v3039_v34 }
  0x95   : > { %2783 = vmatprep.subr.bf16.mxu1 %v3070_v1  ;;  %2827 = vmatprep.subr.bf16.mxu0 %v3070_v1 }
  0x96   : > { %2712 = vmatmul.mubr.bf16.gmra.mrb[52].mxu1 %v3345_v22  ;;  %2756 = vmatmul.mubr.bf16.gmra.mrb[56].mxu0 %v3376_v60  ;;  %v1424_v22 = vrot.slane %v3153_v18, 2  ;;  %v1620_v18 = vor.u32 %v1619_v62, %v1618_v56 }
  0x97   : > { %2715 = vmatprep.mubr.msk.bf16.mxu1 %vm3071_vm0, %v3070_v1  ;;  %2759 = vmatprep.mubr.msk.bf16.mxu0 %vm3071_vm0, %v3070_v1 }
  0x98   : > { %2784 = vmatpush3.bf16.msra.mxu1 %v3041_v11  ;;  %2828 = vmatpush3.bf16.msra.mxu0 %v3042_v42  ;;  %v1626_v11 = vrot.slane %v301_v50, 2 }
  0x99   : > { %2785 = vmatprep.subr.bf16.mxu1 %v3070_v1  ;;  %2829 = vmatprep.subr.bf16.mxu0 %v3070_v1 }
  0x9c   : > { %2786 = vmatpush3.bf16.msra.mxu1 %v3043_v10  ;;  %2830 = vmatpush3.bf16.msra.mxu0 %v3044_v30  ;;  %v1628_v30 = vor.u32 %v1627_v14, %v1626_v11 }
  0x9d   : > { %2859 = vmatprep.subr.bf16.mxu1 %v3070_v1  ;;  %2903 = vmatprep.subr.bf16.mxu0 %v3070_v1 }
  0x9e   : > { %2716 = vmatmul.mubr.bf16.gmra.mrb[56].mxu1 %v3370_v55  ;;  %2760 = vmatmul.mubr.bf16.gmra.mrb[60].mxu0 %v3392_v7  ;;  %v1425_v55 = vrot.slane %v3206_v45, 2  ;;  %v3045_v7 = vld [vmem:[%s4013_s1 + $0x1c0] sm:$0xff]  }
  0x9f   : > { %2719 = vmatprep.mubr.msk.bf16.mxu1 %vm3071_vm0, %v3070_v1  ;;  %2763 = vmatprep.mubr.msk.bf16.mxu0 %vm3071_vm0, %v3070_v1 }
  0xa0   : > { %v1426_v60 = vsel %vm1234_vm4, %v1424_v22, %v1425_v55  ;;  %v1824_v22 = vrot.slane %v3157_v21, 3  ;;  %v1631_v21 = vrot.slane %v305_v54, 3 }
  0xa2   : > { %v1632_v16 = vor.u32 %v1631_v21, %v1630_v31 }
  0xa4   : > { %v1633_v38 = vsel %vm1610_vm5, %v1628_v30, %v1632_v16 }
  0xa6   : > { %2720 = vmatmul.mubr.bf16.gmra.mrb[60].mxu1 %v3402_v17  ;;  %2764 = vmatmul.mubr.bf16.gmra.mrb[64].mxu0 %v3423_v32  ;;  %v1427_v17 = vrot.slane %v3242_v61, 2  ;;  %v3048_v32 = vld [vmem:[%s4013_s1 + $0x208] sm:$0xff]  }
  0xa7   : > { %2723 = vmatprep.mubr.msk.bf16.mxu1 %vm3071_vm0, %v3070_v1  ;;  %2767 = vmatprep.mubr.msk.bf16.mxu0 %vm3071_vm0, %v3070_v1 }
  0xae   : > { %2724 = vmatmul.mubr.bf16.gmra.mrb[64].mxu1 %v823_v4  ;;  %2768 = vmatmul.mubr.bf16.gmra.mrb[68].mxu0 %v3413_v27  ;;  %v3046_v4 = vld [vmem:[%s4013_s1 + $0x200] sm:$0xff]   ;;  %v3047_v27 = vld [vmem:[%s4013_s1 + $0x1c8] sm:$0xff]  }
  0xaf   : > { %2787 = vmatprep.mubr.msk.bf16.mxu1 %vm3071_vm0, %v3070_v1  ;;  %2831 = vmatprep.mubr.msk.bf16.mxu0 %vm3071_vm0, %v3070_v1 }
  0xb6   : > { %2788 = vmatmul.mubr.bf16.vlgmr.msra.gmra.mrb[68].mxu1 %v3416_v28  ;;  %2832 = vmatmul.mubr.bf16.vlgmr.msra.gmra.mrb[72].mxu0 %v1426_v60  ;;  %v1428_v28 = vsel %vm1234_vm4, %v1425_v55, %v1427_v17 }
  0xb7   : > { %2860 = vmatpush3.bf16.msra.mxu1 %v3045_v7  ;;  %2904 = vmatpush3.bf16.msra.mxu0 %v3046_v4 }
  0xb8   : > { %2791 = vmatprep.mubr.msk.bf16.mxu1 %vm3071_vm0, %v3070_v1  ;;  %2835 = vmatprep.mubr.msk.bf16.mxu0 %vm3071_vm0, %v3070_v1 }
  0xb9   : > { %2861 = vmatprep.subr.bf16.mxu1 %v3070_v1  ;;  %2905 = vmatprep.subr.bf16.mxu0 %v3070_v1 }
  0xbb   : > { %2862 = vmatpush3.bf16.msra.mxu1 %v3047_v27  ;;  %2906 = vmatpush3.bf16.msra.mxu0 %v3048_v32  ;;  %v1825_v27 = vsel %vm1816_vm6, %v1822_v0, %v1824_v22 }
  0xbc   : > { %2863 = vmatprep.subr.bf16.mxu1 %v3070_v1  ;;  %2907 = vmatprep.subr.bf16.mxu0 %v3070_v1 }
  0xbe   : > { %2792 = vmatmul.mubr.bf16.gmra.mrb[72].mxu1 %v3426_v40  ;;  %2836 = vmatmul.mubr.bf16.gmra.mrb[76].mxu0 %v1428_v28  ;;  %v1430_v40 = vsel %vm1234_vm4, %v1427_v17, %v1429_v8  ;;  %v1635_v8 = vshrl.u32 %v3752_v33, 16 }
  0xbf   : > { %2795 = vmatprep.mubr.msk.bf16.mxu1 %vm3071_vm0, %v3070_v1  ;;  %2839 = vmatprep.mubr.msk.bf16.mxu0 %vm3071_vm0, %v3070_v1 }
  0xc0   : > { %2864 = vmatpush3.bf16.msra.mxu1 %v3049_v23  ;;  %2908 = vmatpush3.bf16.msra.mxu0 %v3050_v25  ;;  %v1826_v25 = vrot.slane %v3210_v46, 3 }
  0xc1   : > { %2865 = vmatprep.subr.bf16.mxu1 %v3070_v1  ;;  %2909 = vmatprep.subr.bf16.mxu0 %v3070_v1 }
  0xc4   : > { %2866 = vmatpush3.bf16.msra.mxu1 %v3051_v13  ;;  %2910 = vmatpush3.bf16.msra.mxu0 %v3052_v24  ;;  %v1638_v13 = vshll.u32 %v3752_v33, 16 }
  0xc5   : > { %2867 = vmatprep.subr.bf16.mxu1 %v3070_v1  ;;  %2911 = vmatprep.subr.bf16.mxu0 %v3070_v1 }
  0xc6   : > { %2796 = vmatmul.mubr.bf16.gmra.mrb[76].mxu1 %v3439_v47  ;;  %2840 = vmatmul.mubr.bf16.gmra.mrb[80].mxu0 %v1430_v40  ;;  %v3056_v47 = vld [vmem:[%s4013_s1 + $0x228] sm:$0xff]  }
  0xc7   : > { %2799 = vmatprep.mubr.msk.bf16.mxu1 %vm3071_vm0, %v3070_v1  ;;  %2843 = vmatprep.mubr.msk.bf16.mxu0 %vm3071_vm0, %v3070_v1 }
  0xc8   : > { %2868 = vmatpush3.bf16.msra.mxu1 %v3053_v41  ;;  %2912 = vmatpush3.bf16.msra.mxu0 %v3054_v43 }
  0xc9   : > { %2869 = vmatprep.subr.bf16.mxu1 %v3070_v1  ;;  %2913 = vmatprep.subr.bf16.mxu0 %v3070_v1 }
  0xcc   : > { %2870 = vmatpush3.bf16.msra.mxu1 %v3055_v44  ;;  %2914 = vmatpush3.bf16.msra.mxu0 %v3056_v47  ;;  %v1827_v44 = vsel %vm1816_vm6, %v1824_v22, %v1826_v25 }
  0xcd   : > { %2871 = vmatprep.subr.bf16.mxu1 %v3070_v1  ;;  %2915 = vmatprep.subr.bf16.mxu0 %v3070_v1 }
  0xce   : > { %2800 = vmatmul.mubr.bf16.gmra.mrb[80].mxu1 %v3445_v51  ;;  %2844 = vmatmul.mubr.bf16.gmra.mrb[84].mxu0 %v1432_v39  ;;  %v3061_v51 = vld [vmem:[%s4013_s1 + $0x238] sm:$0xff]   ;;  %v1637_v39 = vrot.slane %v1635_v8, 2 }
  0xcf   : > { %2803 = vmatprep.mubr.msk.bf16.mxu1 %vm3071_vm0, %v3070_v1  ;;  %2847 = vmatprep.mubr.msk.bf16.mxu0 %vm3071_vm0, %v3070_v1 }
  0xd0   : > { %2872 = vmatpush3.bf16.msra.mxu1 %v3058_v26  ;;  %2916 = vmatpush3.bf16.msra.mxu0 %v3059_v49  ;;  %v1640_v26 = vrot.slane %v1638_v13, 3 }
  0xd1   : > { %2873 = vmatprep.subr.bf16.mxu1 %v3070_v1  ;;  %2917 = vmatprep.subr.bf16.mxu0 %v3070_v1 }
  0xd2   : > { %v1641_v46 = vor.u32 %v1640_v26, %v1637_v39 }
  0xd4   : > { %2874 = vmatpush3.bf16.msra.mxu1 %v3060_v15  ;;  %2918 = vmatpush3.bf16.msra.mxu0 %v3061_v51 }
  0xd6   : > { %2804 = vmatmul.mubr.bf16.gmra.mrb[84].mxu1 %v3461_v58  ;;  %2848 = vmatmul.mubr.bf16.gmra.mrb[88].mxu0 %v1434_v57  ;;  %v1818_v58 = vrot.slane %v3206_v45, 3  ;;  %v1820_v45 = vrot.slane %v3242_v61, 3 }
  0xd7   : > { %2807 = vmatprep.mubr.msk.bf16.mxu1 %vm3071_vm0, %v3070_v1  ;;  %2851 = vmatprep.mubr.msk.bf16.mxu0 %vm3071_vm0, %v3070_v1 }
  0xd8   : > { %v1821_v36 = vsel %vm1816_vm6, %v1818_v58, %v1820_v45  ;;  %v1823_v34 = vsel %vm1816_vm6, %v1820_v45, %v1822_v0 }
  0xde   : > { %2808 = vmatmul.mubr.bf16.gmra.mrb[88].mxu1 %v3490_v12  ;;  %2852 = vmatmul.mubr.bf16.gmra.mrb[92].mxu0 %v1436_v9  ;;  %v1819_v12 = vsel %vm1816_vm6, %v1817_v59, %v1818_v58  ;;  %v1829_v9 = vsel %vm1816_vm6, %v1826_v25, %v1828_v52 }
  0xdf   : > { %2811 = vmatprep.mubr.msk.bf16.mxu1 %vm3071_vm0, %v3070_v1  ;;  %2855 = vmatprep.mubr.msk.bf16.mxu0 %vm3071_vm0, %v3070_v1 }
  0xe6   : > { %2812 = vmatmul.mubr.bf16.gmra.mrb[92].mxu1 %v1246_v5  ;;  %2856 = vmatmul.mubr.bf16.gmra.mrb[96].mxu0 %v1435_v63  ;;  %v1621_v5 = vsel %vm1610_vm5, %v3532_v53, %v1620_v18  ;;  %v1642_v63 = vsel %vm1610_vm5, %v1632_v16, %v1641_v46 }
  0xe7   : > { %2875 = vmatprep.mubr.msk.bf16.mxu1 %vm3071_vm0, %v3070_v1  ;;  %2919 = vmatprep.mubr.msk.bf16.mxu0 %vm3071_vm0, %v3070_v1 }
  0xee   : > { %2876 = vmatmul.mubr.bf16.vlgmr.msra.gmra.mrb[96].mxu1 %v3536_v2  ;;  %2920 = vmatmul.mubr.bf16.vlgmr.msra.gmra.mrb[100].mxu0 %v1819_v12  ;;  %v1623_v2 = vrot.slane %v289_v20, 3 }
  0xef   : > { %2879 = vmatprep.mubr.msk.bf16.mxu1 %vm3071_vm0, %v3070_v1  ;;  %2923 = vmatprep.mubr.msk.bf16.mxu0 %vm3071_vm0, %v3070_v1 }
  0xf0   : > { %v1624_v61 = vor.u32 %v1623_v2, %v1622_v6 }
  0xf2   : > { %v1625_v3 = vsel %vm1610_vm5, %v1620_v18, %v1624_v61  ;;  %v1629_v17 = vsel %vm1610_vm5, %v1624_v61, %v1628_v30 }
  0xf6   : > { %2880 = vmatmul.mubr.bf16.gmra.mrb[100].mxu1 %v1621_v5  ;;  %2924 = vmatmul.mubr.bf16.gmra.mrb[104].mxu0 %v1821_v36 }
  0xf7   : > { %2883 = vmatprep.mubr.msk.bf16.mxu1 %vm3071_vm0, %v3070_v1  ;;  %2927 = vmatprep.mubr.msk.bf16.mxu0 %vm3071_vm0, %v3070_v1 }
  0xf9   : > { %v3797_v53 = vpop.f32.mrb[0].mxu0  ;;  %v3799_v37 = vpop.f32.mrb[0].mxu1 }
  0xfa   : > { %v2569_v48 = vpop.f32.mrb[1].mxu0  ;;  %v2585_v29 = vpop.f32.mrb[1].mxu1 }
  0xfb   : > { %v3801_v19 = vpop.f32.mrb[2].mxu0  ;;  %v3803_v20 = vpop.f32.mrb[2].mxu1 }
  0xfc   : > { %v2570_v42 = vpop.f32.mrb[3].mxu0  ;;  %v2586_v10 = vpop.f32.mrb[3].mxu1 }
  0xfe   : > { %2884 = vmatmul.mubr.bf16.gmra.mrb[104].mxu1 %v1625_v3  ;;  %2928 = vmatmul.mubr.bf16.gmra.mrb[108].mxu0 %v1823_v34 }
  0xff   : > { %2887 = vmatprep.mubr.msk.bf16.mxu1 %vm3071_vm0, %v3070_v1  ;;  %2931 = vmatprep.mubr.msk.bf16.mxu0 %vm3071_vm0, %v3070_v1 }
 0x101   : > { %v3816_v55 = vpop.f32.mrb[4].mxu0  ;;  %v3818_v60 = vpop.f32.mrb[4].mxu1 }
 0x102   : > { %v2573_v50 = vpop.f32.mrb[5].mxu0  ;;  %v2589_v7 = vpop.f32.mrb[5].mxu1 }
 0x103   : > { %v3822_v4 = vpop.f32.mrb[6].mxu0  ;;  %v3826_v32 = vpop.f32.mrb[6].mxu1 }
 0x104   : > { %v2574_v28 = vpop.f32.mrb[7].mxu0  ;;  %v2590_v23 = vpop.f32.mrb[7].mxu1 }
 0x106   : > { %2888 = vmatmul.mubr.bf16.gmra.mrb[108].mxu1 %v1629_v17  ;;  %2932 = vmatmul.mubr.bf16.gmra.mrb[112].mxu0 %v1825_v27 }
 0x107   : > { %2891 = vmatprep.mubr.msk.bf16.mxu1 %vm3071_vm0, %v3070_v1  ;;  %2935 = vmatprep.mubr.msk.bf16.mxu0 %vm3071_vm0, %v3070_v1 }
 0x109   : > { %v417_v24 = vpop.f32.mrb[8].mxu0  ;;  %v3837_v40 = vpop.f32.mrb[8].mxu1 }
 0x10a   : > { %v2577_v54 = vpop.f32.mrb[9].mxu0  ;;  %v2593_v41 = vpop.f32.mrb[9].mxu1 }
 0x10b   : > { %v420_v43 = vpop.f32.mrb[10].mxu0  ;;  %v452_v47 = vpop.f32.mrb[10].mxu1 }
 0x10c   : > { %v2578_v49 = vpop.f32.mrb[11].mxu0  ;;  %v2594_v35 = vpop.f32.mrb[11].mxu1 }
 0x10e   : > { %2892 = vmatmul.mubr.bf16.gmra.mrb[112].mxu1 %v1633_v38  ;;  %2936 = vmatmul.mubr.bf16.gmra.mrb[116].mxu0 %v1827_v44 }
 0x10f   : > { %2895 = vmatprep.mubr.msk.bf16.mxu1 %vm3071_vm0, %v3070_v1  ;;  %2939 = vmatprep.mubr.msk.bf16.mxu0 %vm3071_vm0, %v3070_v1 }
 0x111   : > { %v425_v15 = vpop.f32.mrb[12].mxu0 }
 0x112   : > { %v2581_v51 = vpop.f32.mrb[13].mxu0 }
 0x113   : > { %v428_v57 = vpop.f32.mrb[14].mxu0 }
 0x114   : > { %v2582_v59 = vpop.f32.mrb[15].mxu0 }
 0x116   : > { %2896 = vmatmul.mubr.bf16.gmra.mrb[116].mxu1 %v1642_v63  ;;  %2940 = vmatmul.mubr.bf16.gmra.mrb[120].mxu0 %v1829_v9 }
 0x117   : > { %2899 = vmatprep.mubr.msk.bf16.mxu1 %vm3071_vm0, %v3070_v1  ;;  %2943 = vmatprep.mubr.msk.bf16.mxu0 %vm3071_vm0, %v3070_v1 }
 0x119   : > { %v545_v58 = vpop.f32.mrb[12].mxu1  ;;  %v719_v12 = vpop.f32.mrb[16].mxu0 }
 0x11a   : > { %v546_v33 = vadd.f32 %v545_v58, %v3797_v53  ;;  %v2613_v56 = vpop.f32.mrb[13].mxu1  ;;  %v2657_v62 = vpop.f32.mrb[17].mxu0 }
 0x11b   : > { %v548_v18 = vpop.f32.mrb[14].mxu1  ;;  %v722_v45 = vpop.f32.mrb[18].mxu0 }
 0x11c   : > { %v3853_v5 = vadd.f32 %v719_v12, %v546_v33  ;;  %v549_v36 = vadd.f32 %v548_v18, %v3801_v19  ;;  %v2614_v6 = vpop.f32.mrb[15].mxu1  ;;  %v2658_v2 = vpop.f32.mrb[19].mxu0 }
 0x11e   : > { %v3856_v61 = vadd.f32 %v722_v45, %v549_v36  ;;  %2900 = vmatmul.mubr.bf16.gmra.mrb[120].mxu1 %v1641_v46  ;;  %2944 = vmatmul.mubr.bf16.gmra.mrb[124].mxu0 %v1828_v52 }
 0x121   : > { %v553_v0 = vpop.f32.mrb[16].mxu1  ;;  %v727_v1 = vpop.f32.mrb[20].mxu0 }
 0x122   : > { %v554_v48 = vadd.f32 %v553_v0, %v3816_v55  ;;  %v2617_v29 = vpop.f32.mrb[17].mxu1  ;;  %v2661_v53 = vpop.f32.mrb[21].mxu0 }
 0x123   : > { %v556_v3 = vpop.f32.mrb[18].mxu1  ;;  %v730_v34 = vpop.f32.mrb[22].mxu0 }
 0x124   : > { %v3859_v11 = vadd.f32 %v727_v1, %v554_v48  ;;  %v557_v14 = vadd.f32 %v556_v3, %v3822_v4  ;;  %v2618_v42 = vpop.f32.mrb[19].mxu1  ;;  %v2662_v19 = vpop.f32.mrb[23].mxu0 }
 0x126   : > { %v3862_v10 = vadd.f32 %v730_v34, %v557_v14 }
 0x129   : > { %v561_v30 = vpop.f32.mrb[20].mxu1  ;;  %v735_v22 = vpop.f32.mrb[24].mxu0 }
 0x12a   : > { %v562_v50 = vadd.f32 %v561_v30, %v417_v24  ;;  %v2621_v7 = vpop.f32.mrb[21].mxu1  ;;  %v2665_v31 = vpop.f32.mrb[25].mxu0 }
 0x12b   : > { %v564_v17 = vpop.f32.mrb[22].mxu1  ;;  %v738_v27 = vpop.f32.mrb[26].mxu0 }
 0x12c   : > { %v3864_v55 = vadd.f32 %v735_v22, %v562_v50  ;;  %v565_v21 = vadd.f32 %v564_v17, %v420_v43  ;;  %v2622_v28 = vpop.f32.mrb[23].mxu1  ;;  %v2666_v23 = vpop.f32.mrb[27].mxu0 }
 0x12e   : > { %v3866_v16 = vadd.f32 %v738_v27, %v565_v21 }
 0x131   : > { %v569_v25 = vpop.f32.mrb[24].mxu1  ;;  %v743_v4 = vpop.f32.mrb[28].mxu0 }
 0x132   : > { %v570_v8 = vadd.f32 %v569_v25, %v425_v15  ;;  %v2625_v13 = vpop.f32.mrb[25].mxu1  ;;  %v2669_v54 = vpop.f32.mrb[29].mxu0 }
 0x133   : > { %v572_v41 = vpop.f32.mrb[26].mxu1  ;;  %v746_v38 = vpop.f32.mrb[30].mxu0 }
 0x134   : > { %v3868_v44 = vadd.f32 %v743_v4, %v570_v8  ;;  %v573_v24 = vadd.f32 %v572_v41, %v428_v57  ;;  %v2626_v47 = vpop.f32.mrb[27].mxu1  ;;  %v2670_v39 = vpop.f32.mrb[31].mxu0 }
 0x136   : > { %v3870_v26 = vadd.f32 %v746_v38, %v573_v24 }
 0x139   : > { %v577_v49 = vpop.f32.mrb[28].mxu1  ;;  %v751_v43 = vpop.f32.mrb[32].mxu0 }
 0x13a   : > { %v578_v35 = vadd.f32 %v577_v49, %v3799_v37  ;;  %v2629_v46 = vpop.f32.mrb[29].mxu1  ;;  %v2673_v52 = vpop.f32.mrb[33].mxu0 }
 0x13b   : > { %v580_v51 = vpop.f32.mrb[30].mxu1  ;;  %v754_v63 = vpop.f32.mrb[34].mxu0 }
 0x13c   : > { %v3873_v15 = vadd.f32 %v751_v43, %v578_v35  ;;  %v581_v9 = vadd.f32 %v580_v51, %v3803_v20  ;;  %v2630_v59 = vpop.f32.mrb[31].mxu1  ;;  %v2674_v58 = vpop.f32.mrb[35].mxu0 }
 0x13e   : > { %v3876_v12 = vadd.f32 %v754_v63, %v581_v9 }
 0x141   : > { %v585_v57 = vpop.f32.mrb[32].mxu1  ;;  %v759_v33 = vpop.f32.mrb[36].mxu0 }
 0x142   : > { %v586_v56 = vadd.f32 %v585_v57, %v3818_v60  ;;  %v2633_v62 = vpop.f32.mrb[33].mxu1  ;;  %v2677_v18 = vpop.f32.mrb[37].mxu0 }
 0x143   : > { %v588_v45 = vpop.f32.mrb[34].mxu1  ;;  %v762_v37 = vpop.f32.mrb[38].mxu0 }
 0x144   : > { %v3879_v36 = vadd.f32 %v759_v33, %v586_v56  ;;  %v589_v6 = vadd.f32 %v588_v45, %v3826_v32  ;;  %v2634_v2 = vpop.f32.mrb[35].mxu1  ;;  %v2678_v0 = vpop.f32.mrb[39].mxu0 }
 0x146   : > { %v3882_v1 = vadd.f32 %v762_v37, %v589_v6 }
 0x149   : > { %v593_v20 = vpop.f32.mrb[36].mxu1  ;;  %v767_v48 = vpop.f32.mrb[40].mxu0 }
 0x14a   : > { %v594_v29 = vadd.f32 %v593_v20, %v3837_v40  ;;  %v2637_v53 = vpop.f32.mrb[37].mxu1  ;;  %v2681_v3 = vpop.f32.mrb[41].mxu0 }
 0x14b   : > { %v596_v34 = vpop.f32.mrb[38].mxu1  ;;  %v770_v60 = vpop.f32.mrb[42].mxu0 }
 0x14c   : > { %v3885_v14 = vadd.f32 %v767_v48, %v594_v29  ;;  %v2638_v42 = vpop.f32.mrb[39].mxu1  ;;  %v2682_v19 = vpop.f32.mrb[43].mxu0 }
 0x151   : > { %v914_v30 = vpop.f32.mrb[40].mxu1  ;;  %v1150_v22 = vpop.f32.mrb[44].mxu0 }
 0x152   : > { %v968_v32 = vadd.f32 %v914_v30, %v3853_v5  ;;  %v2701_v50 = vpop.f32.mrb[41].mxu1  ;;  %v2745_v7 = vpop.f32.mrb[45].mxu0 }
 0x153   : > { %v917_v31 = vpop.f32.mrb[42].mxu1  ;;  %v1153_v17 = vpop.f32.mrb[46].mxu0 }
 0x154   : > { %v3888_v27 = vadd.f32 %v1150_v22, %v968_v32  ;;  %v969_v40 = vadd.f32 %v917_v31, %v3856_v61  ;;  %v2702_v21 = vpop.f32.mrb[43].mxu1  ;;  %v2746_v28 = vpop.f32.mrb[47].mxu0 }
 0x156   : > { %v3891_v23 = vadd.f32 %v1153_v17, %v969_v40 }
 0x159   : > { %v922_v25 = vpop.f32.mrb[44].mxu1  ;;  %v1158_v4 = vpop.f32.mrb[48].mxu0 }
 0x15a   : > { %v970_v8 = vadd.f32 %v922_v25, %v3859_v11  ;;  %v2705_v13 = vpop.f32.mrb[45].mxu1  ;;  %v2749_v54 = vpop.f32.mrb[49].mxu0 }
 0x15b   : > { %v925_v41 = vpop.f32.mrb[46].mxu1  ;;  %v1161_v5 = vpop.f32.mrb[50].mxu0 }
 0x15c   : > { %v3894_v38 = vadd.f32 %v1158_v4, %v970_v8  ;;  %v971_v24 = vadd.f32 %v925_v41, %v3862_v10  ;;  %v2706_v47 = vpop.f32.mrb[47].mxu1  ;;  %v2750_v39 = vpop.f32.mrb[51].mxu0 }
 0x15e   : > { %v3897_v49 = vadd.f32 %v1161_v5, %v971_v24 }
 0x161   : > { %v930_v61 = vpop.f32.mrb[48].mxu1  ;;  %v1166_v43 = vpop.f32.mrb[52].mxu0 }
 0x162   : > { %v972_v35 = vadd.f32 %v930_v61, %v3864_v55  ;;  %v2709_v46 = vpop.f32.mrb[49].mxu1  ;;  %v2753_v52 = vpop.f32.mrb[53].mxu0 }
 0x163   : > { %v933_v51 = vpop.f32.mrb[50].mxu1  ;;  %v1169_v11 = vpop.f32.mrb[54].mxu0 }
 0x164   : > { %v3900_v63 = vadd.f32 %v1166_v43, %v972_v35  ;;  %v973_v9 = vadd.f32 %v933_v51, %v3866_v16  ;;  %v2710_v59 = vpop.f32.mrb[51].mxu1  ;;  %v2754_v58 = vpop.f32.mrb[55].mxu0 }
 0x166   : > { %v3903_v57 = vadd.f32 %v1169_v11, %v973_v9 }
 0x169   : > { %v938_v10 = vpop.f32.mrb[52].mxu1  ;;  %v1174_v33 = vpop.f32.mrb[56].mxu0 }
 0x16a   : > { %v974_v56 = vadd.f32 %v938_v10, %v3868_v44  ;;  %v2713_v62 = vpop.f32.mrb[53].mxu1  ;;  %v2757_v18 = vpop.f32.mrb[57].mxu0 }
 0x16b   : > { %v941_v45 = vpop.f32.mrb[54].mxu1  ;;  %v1177_v55 = vpop.f32.mrb[58].mxu0 }
 0x16c   : > { %v3906_v37 = vadd.f32 %v1174_v33, %v974_v56  ;;  %v975_v6 = vadd.f32 %v941_v45, %v3870_v26  ;;  %v2714_v2 = vpop.f32.mrb[55].mxu1  ;;  %v2758_v0 = vpop.f32.mrb[59].mxu0 }
 0x16e   : > { %v3909_v20 = vadd.f32 %v1177_v55, %v975_v6 }
 0x171   : > { %v946_v16 = vpop.f32.mrb[56].mxu1  ;;  %v1182_v48 = vpop.f32.mrb[60].mxu0 }
 0x172   : > { %v976_v29 = vadd.f32 %v946_v16, %v3873_v15  ;;  %v2717_v53 = vpop.f32.mrb[57].mxu1  ;;  %v2761_v3 = vpop.f32.mrb[61].mxu0 }
 0x173   : > { %v949_v34 = vpop.f32.mrb[58].mxu1  ;;  %v1185_v44 = vpop.f32.mrb[62].mxu0 }
 0x174   : > { %v3912_v60 = vadd.f32 %v1182_v48, %v976_v29  ;;  %v977_v42 = vadd.f32 %v949_v34, %v3876_v12  ;;  %v2718_v19 = vpop.f32.mrb[59].mxu1  ;;  %v2762_v30 = vpop.f32.mrb[63].mxu0 }
 0x176   : > { %v3915_v22 = vadd.f32 %v1185_v44, %v977_v42 }
 0x179   : > { %v954_v26 = vpop.f32.mrb[60].mxu1  ;;  %v1190_v32 = vpop.f32.mrb[64].mxu0 }
 0x17a   : > { %v978_v50 = vadd.f32 %v954_v26, %v3879_v36  ;;  %v2721_v7 = vpop.f32.mrb[61].mxu1  ;;  %v2765_v31 = vpop.f32.mrb[65].mxu0 }
 0x17b   : > { %v957_v17 = vpop.f32.mrb[62].mxu1  ;;  %v1193_v15 = vpop.f32.mrb[66].mxu0 }
 0x17c   : > { %v3918_v40 = vadd.f32 %v1190_v32, %v978_v50  ;;  %v979_v21 = vadd.f32 %v957_v17, %v3882_v1  ;;  %v2722_v28 = vpop.f32.mrb[63].mxu1  ;;  %v2766_v25 = vpop.f32.mrb[67].mxu0 }
 0x17e   : > { %v3921_v4 = vadd.f32 %v1193_v15, %v979_v21 }
 0x181   : > { %v962_v12 = vpop.f32.mrb[64].mxu1  ;;  %v1198_v8 = vpop.f32.mrb[68].mxu0 }
 0x182   : > { %v980_v13 = vadd.f32 %v962_v12, %v3885_v14  ;;  %v2725_v54 = vpop.f32.mrb[65].mxu1  ;;  %v2769_v41 = vpop.f32.mrb[69].mxu0 }
 0x183   : > { %v965_v5 = vpop.f32.mrb[66].mxu1  ;;  %v1201_v36 = vpop.f32.mrb[70].mxu0 }
 0x184   : > { %v3924_v24 = vadd.f32 %v1198_v8, %v980_v13  ;;  %v2726_v47 = vpop.f32.mrb[67].mxu1  ;;  %v2770_v39 = vpop.f32.mrb[71].mxu0 }
 0x189   : > { %v1337_v61 = vpop.f32.mrb[68].mxu1  ;;  %v1526_v43 = vpop.f32.mrb[72].mxu0 }
 0x18a   : > { %v1391_v1 = vadd.f32 %v1337_v61, %v3888_v27  ;;  %v2789_v35 = vpop.f32.mrb[69].mxu1  ;;  %v2833_v46 = vpop.f32.mrb[73].mxu0 }
 0x18b   : > { %v1340_v52 = vpop.f32.mrb[70].mxu1  ;;  %v1529_v51 = vpop.f32.mrb[74].mxu0 }
 0x18c   : > { %v3927_v11 = vadd.f32 %v1526_v43, %v1391_v1  ;;  %v1392_v14 = vadd.f32 %v1340_v52, %v3891_v23  ;;  %v2790_v9 = vpop.f32.mrb[71].mxu1  ;;  %v2834_v59 = vpop.f32.mrb[75].mxu0 }
 0x18e   : > { %v3930_v58 = vadd.f32 %v1529_v51, %v1392_v14 }
 0x191   : > { %v1345_v10 = vpop.f32.mrb[72].mxu1  ;;  %v1534_v33 = vpop.f32.mrb[76].mxu0 }
 0x192   : > { %v1393_v56 = vadd.f32 %v1345_v10, %v3894_v38  ;;  %v2793_v62 = vpop.f32.mrb[73].mxu1  ;;  %v2837_v18 = vpop.f32.mrb[77].mxu0 }
 0x193   : > { %v1348_v45 = vpop.f32.mrb[74].mxu1  ;;  %v1537_v27 = vpop.f32.mrb[78].mxu0 }
 0x194   : > { %v3933_v55 = vadd.f32 %v1534_v33, %v1393_v56  ;;  %v1394_v6 = vadd.f32 %v1348_v45, %v3897_v49  ;;  %v2794_v2 = vpop.f32.mrb[75].mxu1  ;;  %v2838_v0 = vpop.f32.mrb[79].mxu0 }
 0x196   : > { %v3936_v16 = vadd.f32 %v1537_v27, %v1394_v6 }
 0x199   : > { %v1353_v23 = vpop.f32.mrb[76].mxu1  ;;  %v1542_v48 = vpop.f32.mrb[80].mxu0 }
 0x19a   : > { %v1395_v29 = vadd.f32 %v1353_v23, %v3900_v63  ;;  %v2797_v53 = vpop.f32.mrb[77].mxu1  ;;  %v2841_v3 = vpop.f32.mrb[81].mxu0 }
 0x19b   : > { %v1356_v34 = vpop.f32.mrb[78].mxu1  ;;  %v1545_v38 = vpop.f32.mrb[82].mxu0 }
 0x19c   : > { %v3939_v44 = vadd.f32 %v1542_v48, %v1395_v29  ;;  %v1396_v42 = vadd.f32 %v1356_v34, %v3903_v57  ;;  %v2798_v19 = vpop.f32.mrb[79].mxu1  ;;  %v2842_v30 = vpop.f32.mrb[83].mxu0 }
 0x19d   : > { %v3970_v30 = vld [vmem:[%s4014_s2] ss:$0 sm:$0xff] }
 0x19e   : > { %v3942_v26 = vadd.f32 %v1545_v38, %v1396_v42 }
 0x1a1   : > { %v1361_v49 = vpop.f32.mrb[80].mxu1  ;;  %v1550_v32 = vpop.f32.mrb[84].mxu0 }
 0x1a2   : > { %v1397_v50 = vadd.f32 %v1361_v49, %v3906_v37  ;;  %v2801_v7 = vpop.f32.mrb[81].mxu1  ;;  %v2845_v31 = vpop.f32.mrb[85].mxu0 }
 0x1a3   : > { %v1364_v17 = vpop.f32.mrb[82].mxu1  ;;  %v1553_v63 = vpop.f32.mrb[86].mxu0 }
 0x1a4   : > { %v3945_v15 = vadd.f32 %v1550_v32, %v1397_v50  ;;  %v1398_v21 = vadd.f32 %v1364_v17, %v3909_v20  ;;  %v2802_v28 = vpop.f32.mrb[83].mxu1  ;;  %v2846_v25 = vpop.f32.mrb[87].mxu0 }
 0x1a6   : > { %v3948_v12 = vadd.f32 %v1553_v63, %v1398_v21 }
 0x1a9   : > { %v1369_v57 = vpop.f32.mrb[84].mxu1  ;;  %v1558_v8 = vpop.f32.mrb[88].mxu0 }
 0x1aa   : > { %v1399_v13 = vadd.f32 %v1369_v57, %v3912_v60  ;;  %v2805_v54 = vpop.f32.mrb[85].mxu1  ;;  %v2849_v41 = vpop.f32.mrb[89].mxu0 }
 0x1ab   : > { %v1372_v5 = vpop.f32.mrb[86].mxu1  ;;  %v1561_v37 = vpop.f32.mrb[90].mxu0 }
 0x1ac   : > { %v3951_v36 = vadd.f32 %v1558_v8, %v1399_v13  ;;  %v1400_v47 = vadd.f32 %v1372_v5, %v3915_v22  ;;  %v2806_v39 = vpop.f32.mrb[87].mxu1  ;;  %v2850_v61 = vpop.f32.mrb[91].mxu0 }
 0x1ae   : > { %v3954_v43 = vadd.f32 %v1561_v37, %v1400_v47 }
 0x1b1   : > { %v1377_v20 = vpop.f32.mrb[88].mxu1  ;;  %v1566_v1 = vpop.f32.mrb[92].mxu0 }
 0x1b2   : > { %v1401_v35 = vadd.f32 %v1377_v20, %v3918_v40  ;;  %v2809_v46 = vpop.f32.mrb[89].mxu1  ;;  %v2853_v52 = vpop.f32.mrb[93].mxu0 }
 0x1b3   : > { %v1380_v51 = vpop.f32.mrb[90].mxu1  ;;  %v1569_v60 = vpop.f32.mrb[94].mxu0 }
 0x1b4   : > { %v3957_v14 = vadd.f32 %v1566_v1, %v1401_v35  ;;  %v1402_v9 = vadd.f32 %v1380_v51, %v3921_v4  ;;  %v2810_v59 = vpop.f32.mrb[91].mxu1  ;;  %v2854_v10 = vpop.f32.mrb[95].mxu0 }
 0x1b6   : > { %v3960_v33 = vadd.f32 %v1569_v60, %v1402_v9 }
 0x1b9   : > { %v1385_v22 = vpop.f32.mrb[92].mxu1  ;;  %v1574_v56 = vpop.f32.mrb[96].mxu0 }
 0x1ba   : > { %v1403_v62 = vadd.f32 %v1385_v22, %v3924_v24  ;;  %v2813_v18 = vpop.f32.mrb[93].mxu1  ;;  %v2857_v45 = vpop.f32.mrb[97].mxu0 }
 0x1bb   : > { %v1388_v27 = vpop.f32.mrb[94].mxu1  ;;  %v1577_v40 = vpop.f32.mrb[98].mxu0 }
 0x1bc   : > { %v3963_v6 = vadd.f32 %v1574_v56, %v1403_v62  ;;  %v2814_v2 = vpop.f32.mrb[95].mxu1  ;;  %v2858_v0 = vpop.f32.mrb[99].mxu0 }
 0x1c1   : > { %v1732_v23 = vpop.f32.mrb[96].mxu1  ;;  %v1919_v48 = vpop.f32.mrb[100].mxu0 }
 0x1c2   : > { %v1786_v4 = vadd.f32 %v1732_v23, %v3927_v11  ;;  %v2877_v29 = vpop.f32.mrb[97].mxu1  ;;  %v2921_v53 = vpop.f32.mrb[101].mxu0 }
 0x1c3   : > { %v1735_v3 = vpop.f32.mrb[98].mxu1  ;;  %v1922_v34 = vpop.f32.mrb[102].mxu0 }
 0x1c4   : > { %v1973_v38 = vadd.f32 %v1919_v48, %v1786_v4  ;;  %v1787_v24 = vadd.f32 %v1735_v3, %v3930_v58  ;;  %v2878_v42 = vpop.f32.mrb[99].mxu1  ;;  %v2922_v19 = vpop.f32.mrb[103].mxu0 }
 0x1c6   : > { %v1974_v49 = vadd.f32 %v1922_v34, %v1787_v24  ;;  %v1993_v32 = vadd.f32 %v3970_v30, %v1973_v38 }
 0x1c8   : > { %v1994_v11 = vadd.f32 %v3970_v30, %v1974_v49 }
 0x1c9   : > { %v1740_v58 = vpop.f32.mrb[100].mxu1  ;;  %v1927_v50 = vpop.f32.mrb[104].mxu0 }
 0x1ca   : > { %v2384_v7 = vpack.c.bf16 %v1994_v11, %v1993_v32  ;;  %v1788_v31 = vadd.f32 %v1740_v58, %v3933_v55  ;;  %v2881_v17 = vpop.f32.mrb[101].mxu1  ;;  %v2925_v63 = vpop.f32.mrb[105].mxu0 }
 0x1cb   : > { %v1743_v21 = vpop.f32.mrb[102].mxu1  ;;  %v1930_v28 = vpop.f32.mrb[106].mxu0 }
 0x1cc   : > { %2385 = vst [vmem:[%s3978_s21] sm:$0xff] %v2384_v7   ;;  %v1975_v25 = vadd.f32 %v1927_v50, %v1788_v31  ;;  %v1789_v57 = vadd.f32 %v1743_v21, %v3936_v16  ;;  %v2882_v8 = vpop.f32.mrb[103].mxu1  ;;  %v2926_v13 = vpop.f32.mrb[107].mxu0 }
 0x1ce   : > { %v1976_v54 = vadd.f32 %v1930_v28, %v1789_v57  ;;  %v1995_v41 = vadd.f32 %v3970_v30, %v1975_v25 }
 0x1d0   : > { %v1996_v5 = vadd.f32 %v3970_v30, %v1976_v54 }
 0x1d1   : > { %v1748_v37 = vpop.f32.mrb[104].mxu1  ;;  %v1935_v47 = vpop.f32.mrb[108].mxu0 }
 0x1d2   : > { %v2389_v39 = vpack.c.bf16 %v1996_v5, %v1995_v41  ;;  %v1790_v55 = vadd.f32 %v1748_v37, %v3939_v44  ;;  %v2885_v61 = vpop.f32.mrb[105].mxu1  ;;  %v2929_v20 = vpop.f32.mrb[109].mxu0 }
 0x1d3   : > { %v1751_v1 = vpop.f32.mrb[106].mxu1  ;;  %v1938_v35 = vpop.f32.mrb[110].mxu0 }
 0x1d4   : > { %2411 = vst [vmem:[%s3978_s21 + $0x8] sm:$0xff] %v2389_v39   ;;  %v1977_v46 = vadd.f32 %v1935_v47, %v1790_v55  ;;  %v1791_v16 = vadd.f32 %v1751_v1, %v3942_v26  ;;  %v2886_v52 = vpop.f32.mrb[107].mxu1  ;;  %v2930_v51 = vpop.f32.mrb[111].mxu0 }
 0x1d6   : > { %v1978_v60 = vadd.f32 %v1938_v35, %v1791_v16  ;;  %v1997_v9 = vadd.f32 %v3970_v30, %v1977_v46 }
 0x1d8   : > { %v1998_v59 = vadd.f32 %v3970_v30, %v1978_v60 }
 0x1d9   : > { %v1756_v10 = vpop.f32.mrb[108].mxu1  ;;  %v1943_v22 = vpop.f32.mrb[112].mxu0 }
 0x1da   : > { %v2394_v56 = vpack.c.bf16 %v1998_v59, %v1997_v9  ;;  %v1792_v44 = vadd.f32 %v1756_v10, %v3945_v15  ;;  %v2889_v62 = vpop.f32.mrb[109].mxu1  ;;  %v2933_v18 = vpop.f32.mrb[113].mxu0 }
 0x1db   : > { %v1759_v45 = vpop.f32.mrb[110].mxu1  ;;  %v1946_v27 = vpop.f32.mrb[114].mxu0 }
 0x1dc   : > { %2412 = vst [vmem:[%s3978_s21 + $0x10] sm:$0xff] %v2394_v56   ;;  %v1979_v40 = vadd.f32 %v1943_v22, %v1792_v44  ;;  %v1793_v26 = vadd.f32 %v1759_v45, %v3948_v12  ;;  %v2890_v2 = vpop.f32.mrb[111].mxu1  ;;  %v2934_v0 = vpop.f32.mrb[115].mxu0 }
 0x1de   : > { %v1980_v23 = vadd.f32 %v1946_v27, %v1793_v26  ;;  %v1999_v48 = vadd.f32 %v3970_v30, %v1979_v40 }
 0x1e0   : > { %v2000_v4 = vadd.f32 %v3970_v30, %v1980_v23 }
 0x1e1   : > { %v1764_v29 = vpop.f32.mrb[112].mxu1  ;;  %v1951_v53 = vpop.f32.mrb[116].mxu0 }
 0x1e2   : > { %v2399_v3 = vpack.c.bf16 %v2000_v4, %v1999_v48  ;;  %v1794_v15 = vadd.f32 %v1764_v29, %v3951_v36  ;;  %v2893_v34 = vpop.f32.mrb[113].mxu1  ;;  %v2937_v38 = vpop.f32.mrb[117].mxu0 }
 0x1e3   : > { %v1767_v24 = vpop.f32.mrb[114].mxu1  ;;  %v1954_v42 = vpop.f32.mrb[118].mxu0 }
 0x1e4   : > { %2413 = vst [vmem:[%s3978_s21 + $0x18] sm:$0xff] %v2399_v3   ;;  %v1981_v19 = vadd.f32 %v1951_v53, %v1794_v15  ;;  %v1795_v12 = vadd.f32 %v1767_v24, %v3954_v43  ;;  %v2894_v49 = vpop.f32.mrb[115].mxu1  ;;  %v2938_v32 = vpop.f32.mrb[119].mxu0 }
 0x1e6   : > { %v1982_v11 = vadd.f32 %v1954_v42, %v1795_v12  ;;  %v2001_v58 = vadd.f32 %v3970_v30, %v1981_v19 }
 0x1e8   : > { %v2002_v50 = vadd.f32 %v3970_v30, %v1982_v11 }
 0x1e9   : > { %v1772_v7 = vpop.f32.mrb[116].mxu1  ;;  %v1959_v31 = vpop.f32.mrb[120].mxu0 }
 0x1ea   : > { %v2404_v17 = vpack.c.bf16 %v2002_v50, %v2001_v58  ;;  %v1796_v36 = vadd.f32 %v1772_v7, %v3957_v14  ;;  %v2897_v63 = vpop.f32.mrb[117].mxu1  ;;  %v2941_v21 = vpop.f32.mrb[121].mxu0 }
 0x1eb   : > { %v1775_v28 = vpop.f32.mrb[118].mxu1  ;;  %v1962_v25 = vpop.f32.mrb[122].mxu0 }
 0x1ec   : > { %2414 = vst [vmem:[%s3978_s21 + $0x20] sm:$0xff] %v2404_v17   ;;  %v1983_v57 = vadd.f32 %v1959_v31, %v1796_v36  ;;  %v1797_v43 = vadd.f32 %v1775_v28, %v3960_v33  ;;  %v2898_v8 = vpop.f32.mrb[119].mxu1  ;;  %v2942_v13 = vpop.f32.mrb[123].mxu0 }
 0x1ee   : > { %v1984_v54 = vadd.f32 %v1962_v25, %v1797_v43  ;;  %v2003_v41 = vadd.f32 %v3970_v30, %v1983_v57 }
 0x1f0   : > { %v2004_v5 = vadd.f32 %v3970_v30, %v1984_v54 }
 0x1f1   : > { %v1780_v37 = vpop.f32.mrb[120].mxu1  ;;  %v1967_v47 = vpop.f32.mrb[124].mxu0 }
 0x1f2   : > { %v2409_v14 = vpack.c.bf16 %v2004_v5, %v2003_v41  ;;  %v1798_v39 = vadd.f32 %v1780_v37, %v3963_v6  ;;  %v2901_v55 = vpop.f32.mrb[121].mxu1  ;;  %v2945_v61 = vpop.f32.mrb[125].mxu0 }
 0x1f3   : > { %v1783_v20 = vpop.f32.mrb[122].mxu1  ;;  %v1970_v1 = vpop.f32.mrb[126].mxu0 }
 0x1f4   : > { %2415 = vst [vmem:[%s3978_s21 + $0x28] sm:$0xff] %v2409_v14   ;;  %v1985_v35 = vadd.f32 %v1967_v47, %v1798_v39  ;;  %v2902_v33 = vpop.f32.mrb[123].mxu1  ;;  %v2946_v46 = vpop.f32.mrb[127].mxu0 }
 0x1f6   : > { %v2005_v16 = vadd.f32 %v3970_v30, %v1985_v35 }
 0x1f8   : > { %v2380_v52 = vpack.c.bf16 %v2005_v16, %v2005_v16 }
 0x1fa   : > { %2071 = vst [vmem:[%s3978_s21 + $0x30] sm:$0xf] %v2380_v52 }
 0x1fb PF: > { %s13_s12 = sadd.s32 1, %s3068_s12  }
 0x1fc   : > { %p10_p4 = scmp.ge.s32.totalorder %s13_s12, 6  }
 0x1fe   :  { %12 = sbr.rel (!%p10_p4) target bundleno = 1 (0x1), region = 70 }

// kernel: sd_featurizer_forward.28
= control target key start
LH: loop header
LB: loop body
LE: loop exit
PB: predicated region body
PF: predicated region fallthrough
CT: control target
= control target key end

     0   :  { %s3549_s21 = smov 0   ;;  %s4629_s0 = inlined_call_operand.vmem [shape: bf16[4,128,128], index: 0, kind: input, shape index: {}]   ;;  %s4630_s1 = inlined_call_operand.vmem [shape: bf16[9,128,128], index: 1, kind: input, shape index: {}]   ;;  %s4631_s2 = inlined_call_operand.vmem [shape: f32[1,128], index: 2, kind: input, shape index: {}]   ;;  %s4632_s3 = inlined_call_operand.vmem [shape: f32[4,1,128], index: 3, kind: input, shape index: {}]   ;;  %s4633_s4 = inlined_call_operand.vmem [shape: f32[4,1,128], index: 4, kind: input, shape index: {}]   ;;  %s4634_s5 = inlined_call_operand.vmem [shape: f32[128,1], index: 5, kind: input, shape index: {}]   ;;  %s4635_s6 = inlined_call_operand.vmem [shape: bf16[4,104,128], index: 6, kind: output, shape index: {}]  }
   0x1 LB: > { %s2476_s22 = sadd.s32 4294967295, %s3509_s21   ;;  %p2480_p0 = scmp.ge.s32.totalorder %s3509_s21, 1  ;;  %s3509_s21 = sphi %s3549_s21, %s16_s21  }
   0x2   : > { %p228_p1 = scmp.lt.s32.totalorder %s3509_s21, 5 }
   0x4   : > { %p229_p2 = pnand %p2480_p0, %p228_p1 }
   0x5   : > { %v367_v0 = vld [vmem:[%s4634_s5 + $0x40] sm:$0xff] (!%p229_p2)  ;;  %v3511_v2 = vmov (!%p229_p2), 0   ;;  %v368_v3 = vld [vmem:[%s4634_s5 + $0x48] sm:$0xff] (!%p229_p2)  ;;  %v369_v5 = vld [vmem:[%s4634_s5 + $0x50] sm:$0xff] (!%p229_p2)  ;;  %p264_p3 = scmp.lt.s32.totalorder (!%p229_p2), %s2476_s22, 3  ;;  %v3512_v13 = vmov (!%p229_p2), 0.0  }
   0x6   : > { %232 = sbr.rel (%p229_p2) target bundleno = 654 (0x28e), region = 44  ;;  %v359_v1 = vld [vmem:[%s4634_s5] sm:$0xff] (!%p229_p2)  ;;  %3366 = vset.pattern.permute.xlu1 (!%p229_p2), %v3511_v2  ;;  %3365 = vset.pattern.permute.xlu0 (!%p229_p2), %v3511_v2  ;;  %v360_v4 = vld [vmem:[%s4634_s5 + $0x8] sm:$0xff] (!%p229_p2)  ;;  %v370_v6 = vld [vmem:[%s4634_s5 + $0x58] sm:$0xff] (!%p229_p2)  ;;  %vm3513_vm0 = vmmov (!%p229_p2), 0   ;;  %vm1171_vm2 = vcmask (!%p229_p2), 1042432  }
   0x7   : > { %417 = vperm.xlu0 (!%p229_p2), %3365, %v367_v0   ;;  %377 = vperm.xlu1 (!%p229_p2), %3366, %v359_v1   ;;  %v361_v7 = vld [vmem:[%s4634_s5 + $0x10] sm:$0xff] (!%p229_p2)  ;;  %v362_v8 = vld [vmem:[%s4634_s5 + $0x18] sm:$0xff] (!%p229_p2)  ;;  %v363_v9 = vld [vmem:[%s4634_s5 + $0x20] sm:$0xff] (!%p229_p2)  ;;  %vm624_vm1 = vsmask.f32 (!%p229_p2), 7424  ;;  %vm1570_vm4 = vcmask (!%p229_p2), 1041408  }
   0x8   : > { %v364_v10 = vld [vmem:[%s4634_s5 + $0x28] sm:$0xff] (!%p229_p2)  ;;  %v3367_v11 = vld [vmem:[%s4630_s1 + $0x40] sm:$0xff] (!%p229_p2)   ;;  %3337 = vmatprep.subr.bf16.mxu1 (!%p229_p2), %v3512_v13  ;;  %2941 = vmatprep.subr.bf16.mxu0 (!%p229_p2), %v3512_v13  ;;  %v365_v16 = vld [vmem:[%s4634_s5 + $0x30] sm:$0xff] (!%p229_p2)  ;;  %vm1360_vm3 = vsmask.f32 (!%p229_p2), 2304  ;;  %vm1759_vm5 = vcmask (!%p229_p2), 1045504  }
   0x9   : > { %v371_v12 = vld [vmem:[%s4634_s5 + $0x60] sm:$0xff] (!%p229_p2)  ;;  %v372_v14 = vld [vmem:[%s4634_s5 + $0x68] sm:$0xff] (!%p229_p2)  ;;  %3345 = vmatpush3.bf16.msra.mxu1 (!%p229_p2), %v3367_v11  ;;  %2942 = vmatpush3.bf16.msra.mxu0 (!%p229_p2), %v3367_v11  ;;  %v366_v17 = vld [vmem:[%s4634_s5 + $0x38] sm:$0xff] (!%p229_p2)  ;;  %vm2147_vm6 = vcmask (!%p229_p2), 1044480   ;;  %vm1946_vm7 = vsmask.f32 (!%p229_p2), 5376 }
   0xa   : > { %3338 = vmatprep.subr.bf16.mxu1 (!%p229_p2), %v3512_v13  ;;  %v3368_v15 = vld [vmem:[%s4630_s1 + $0x48] sm:$0xff] (!%p229_p2)   ;;  %2943 = vmatprep.subr.bf16.mxu0 (!%p229_p2), %v3512_v13  ;;  %v3369_v18 = vld [vmem:[%s4630_s1 + $0x50] sm:$0xff] (!%p229_p2)   ;;  %v374_v20 = vld [vmem:[%s4634_s5 + $0x78] sm:$0xff] (!%p229_p2)  ;;  %vm983_vm8 = vcmask (!%p229_p2), 1046528  }
   0xb   : > { %422 = vperm.xlu0 (!%p229_p2), %3365, %v368_v3   ;;  %382 = vperm.xlu1 (!%p229_p2), %3366, %v360_v4   ;;  %v373_v19 = vld [vmem:[%s4634_s5 + $0x70] sm:$0xff] (!%p229_p2)  ;;  %v3370_v26 = vld [vmem:[%s4630_s1 + $0x58] sm:$0xff] (!%p229_p2)   ;;  %v3371_v31 = vld [vmem:[%s4630_s1 + $0x60] sm:$0xff] (!%p229_p2)  }
   0xc   : > { %v3372_v32 = vld [vmem:[%s4630_s1 + $0x68] sm:$0xff] (!%p229_p2)   ;;  %v3373_v33 = vld [vmem:[%s4630_s1 + $0x70] sm:$0xff] (!%p229_p2)   ;;  %v3374_v34 = vld [vmem:[%s4630_s1 + $0x78] sm:$0xff] (!%p229_p2)   ;;  %2973 = vmatprep.mubr.msk.bf16.mxu1 (!%p229_p2), %vm3513_vm0, %v3512_v13  ;;  %2957 = vmatprep.mubr.msk.bf16.mxu0 (!%p229_p2), %vm3513_vm0, %v3512_v13 }
   0xd   : > { %s4637_s22 = smov (!%p264_p3, %s2476_s22), 3  ;;  %3346 = vmatpush3.bf16.msra.mxu1 %v3368_v15  ;;  %2944 = vmatpush3.bf16.msra.mxu0 %v3368_v15 }
   0xe   : > { %s2718_s9 = sshll.u32 %s4637_s22, 6  ;;  %s271_s12 = scalar_lea.vmem %s4632_s3, %s4637_s22  ;;  %3339 = vmatprep.subr.bf16.mxu1 %v3512_v13  ;;  %2945 = vmatprep.subr.bf16.mxu0 %v3512_v13 }
   0xf   : > { %427 = vperm.xlu0 %3365, %v369_v5   ;;  %432 = vperm.xlu1 %3366, %v370_v6   ;;  %s3634_s23 = scalar_lea.vmem %s4629_s0, %s2718_s9  ;;  %s274_s26 = scalar_lea.vmem %s4633_s4, %s4637_s22  ;;  %v3640_v21 = vld [vmem:[%s271_s12] ss:$0 sm:$0xff] }
  0x10   : > { %v2800_v22 = vld [vmem:[%s3634_s23 + $0x38] sm:$0xff]   ;;  %v3643_v25 = vld [vmem:[%s274_s26] ss:$0 sm:$0xff]  ;;  %v2798_v39 = vld [vmem:[%s3634_s23 + $0x28] sm:$0xff]   ;;  %s3353_s11 = smul.u32 52, %s4637_s22 }
  0x11   : > { %3347 = vmatpush3.bf16.msra.mxu1 %v3369_v18  ;;  %2946 = vmatpush3.bf16.msra.mxu0 %v3369_v18  ;;  %v2762_v23 = vunpack.c.l.bf16 %v2800_v22  ;;  %v2763_v24 = vunpack.c.h.bf16 %v2800_v22  ;;  %v2797_v35 = vld [vmem:[%s3634_s23 + $0x20] sm:$0xff]   ;;  %v2754_v44 = vunpack.c.l.bf16 %v2798_v39  ;;  %v2755_v45 = vunpack.c.h.bf16 %v2798_v39  ;;  %v2794_v50 = vld [vmem:[%s3634_s23 + $0x8] sm:$0xff]   ;;  %v2795_v61 = vld [vmem:[%s3634_s23 + $0x10] sm:$0xff]  }
  0x12   : > { %3340 = vmatprep.subr.bf16.mxu1 %v3512_v13  ;;  %2947 = vmatprep.subr.bf16.mxu0 %v3512_v13  ;;  %v2733_v36 = vld [vmem:[%s3634_s23] sm:$0xff]   ;;  %v2750_v37 = vunpack.c.l.bf16 %v2797_v35  ;;  %v2751_v42 = vunpack.c.h.bf16 %v2797_v35  ;;  %v2738_v55 = vunpack.c.l.bf16 %v2794_v50  ;;  %v2739_v56 = vunpack.c.h.bf16 %v2794_v50  ;;  %v2796_v22 = vld [vmem:[%s3634_s23 + $0x18] sm:$0xff]   ;;  %s4597_s14 = scalar_lea.vmem %s4635_s6, %s3353_s11 }
  0x13   : > { %387 = vperm.xlu0 %3365, %v361_v7   ;;  %392 = vperm.xlu1 %3366, %v362_v8   ;;  %v334_v27 = vmul.f32 %v2762_v23, %v3640_v21  ;;  %v335_v28 = vmul.f32 %v2763_v24, %v3640_v21  ;;  %v2734_v38 = vunpack.c.l.bf16 %v2733_v36  ;;  %v2735_v43 = vunpack.c.h.bf16 %v2733_v36  ;;  %v2799_v7 = vld [vmem:[%s3634_s23 + $0x30] sm:$0xff]  }
  0x14   : > { %v328_v40 = vmul.f32 %v2750_v37, %v3640_v21  ;;  %v329_v48 = vmul.f32 %v2751_v42, %v3640_v21  ;;  %v330_v51 = vmul.f32 %v2754_v44, %v3640_v21  ;;  %v331_v54 = vmul.f32 %v2755_v45, %v3640_v21 }
  0x15   : > { %3348 = vmatpush3.bf16.msra.mxu1 %v3370_v26  ;;  %v3653_v29 = vadd.f32 %v3643_v25, %v334_v27  ;;  %v3656_v30 = vadd.f32 %v3643_v25, %v335_v28  ;;  %2948 = vmatpush3.bf16.msra.mxu0 %v3370_v26  ;;  %v320_v41 = vmul.f32 %v2734_v38, %v3640_v21  ;;  %v2742_v6 = vunpack.c.l.bf16 %v2795_v61 }
  0x16   : > { %3341 = vmatprep.subr.bf16.mxu1 %v3512_v13  ;;  %2949 = vmatprep.subr.bf16.mxu0 %v3512_v13  ;;  %v351_v46 = vadd.f32 %v3643_v25, %v328_v40  ;;  %v321_v49 = vmul.f32 %v2735_v43, %v3640_v21  ;;  %v352_v59 = vadd.f32 %v3643_v25, %v329_v48  ;;  %v2747_v37 = vunpack.c.h.bf16 %v2796_v22 }
  0x17   : > { %397 = vperm.xlu0 %3365, %v363_v9   ;;  %402 = vperm.xlu1 %3366, %v364_v10   ;;  %v343_v47 = vadd.f32 %v3643_v25, %v320_v41  ;;  %v353_v0 = vadd.f32 %v3643_v25, %v330_v51  ;;  %v354_v3 = vadd.f32 %v3643_v25, %v331_v54  ;;  %v2743_v10 = vunpack.c.h.bf16 %v2795_v61 }
  0x18   : > { %v344_v60 = vadd.f32 %v3643_v25, %v321_v49  ;;  %v322_v4 = vmul.f32 %v2738_v55, %v3640_v21  ;;  %v323_v5 = vmul.f32 %v2739_v56, %v3640_v21  ;;  %v327_v51 = vmul.f32 %v2747_v37, %v3640_v21 }
  0x19   : > { %3349 = vmatpush3.bf16.msra.mxu1 %v3371_v31  ;;  %2950 = vmatpush3.bf16.msra.mxu0 %v3371_v31  ;;  %v325_v26 = vmul.f32 %v2743_v10, %v3640_v21 }
  0x1a   : > { %3342 = vmatprep.subr.bf16.mxu1 %v3512_v13  ;;  %2951 = vmatprep.subr.bf16.mxu0 %v3512_v13  ;;  %v346_v18 = vadd.f32 %v3643_v25, %v323_v5 }
  0x1b   : > { %437 = vperm.xlu0 %3365, %v371_v12   ;;  %442 = vperm.xlu1 %3366, %v372_v14   ;;  %v2758_v14 = vunpack.c.l.bf16 %v2799_v7  ;;  %v348_v40 = vadd.f32 %v3643_v25, %v325_v26 }
  0x1d   : > { %3350 = vmatpush3.bf16.msra.mxu1 %v3372_v32  ;;  %2952 = vmatpush3.bf16.msra.mxu0 %v3372_v32  ;;  %v332_v31 = vmul.f32 %v2758_v14, %v3640_v21  ;;  %v2746_v32 = vunpack.c.l.bf16 %v2796_v22 }
  0x1e   : > { %3343 = vmatprep.subr.bf16.mxu1 %v3512_v13  ;;  %2953 = vmatprep.subr.bf16.mxu0 %v3512_v13 }
  0x1f   : > { %407 = vperm.xlu0 %3365, %v365_v16   ;;  %412 = vperm.xlu1 %3366, %v366_v17   ;;  %v345_v17 = vadd.f32 %v3643_v25, %v322_v4  ;;  %v355_v43 = vadd.f32 %v3643_v25, %v332_v31  ;;  %v326_v44 = vmul.f32 %v2746_v32, %v3640_v21 }
  0x21   : > { %3351 = vmatpush3.bf16.msra.mxu1 %v3373_v33  ;;  %2954 = vmatpush3.bf16.msra.mxu0 %v3373_v33 }
  0x22   : > { %3344 = vmatprep.subr.bf16.mxu1 %v3512_v13  ;;  %2955 = vmatprep.subr.bf16.mxu0 %v3512_v13 }
  0x23   : > { %447 = vperm.xlu0 %3365, %v373_v19   ;;  %452 = vperm.xlu1 %3366, %v374_v20   ;;  %v324_v19 = vmul.f32 %v2742_v6, %v3640_v21  ;;  %v2759_v20 = vunpack.c.h.bf16 %v2799_v7 }
  0x25   : > { %3352 = vmatpush3.bf16.msra.mxu1 %v3374_v34  ;;  %2956 = vmatpush3.bf16.msra.mxu0 %v3374_v34  ;;  %v347_v35 = vadd.f32 %v3643_v25, %v324_v19  ;;  %v333_v36 = vmul.f32 %v2759_v20, %v3640_v21 }
  0x26   : > { %2985 = vmatprep.subr.bf16.mxu1 %v3512_v13  ;;  %3029 = vmatprep.subr.bf16.mxu0 %v3512_v13 }
  0x27   : > { %v356_v50 = vadd.f32 %v3643_v25, %v333_v36 }
  0x86   : > { %v418_v52 = vpop.permute.xlu0 %417  ;;  %v378_v53 = vpop.permute.xlu1 %377 }
  0x87   : > { %v3696_v57 = vmul.f32 %v418_v52, %v351_v46  ;;  %v3698_v58 = vmul.f32 %v378_v53, %v343_v47 }
  0x89   : > { %v2494_v62 = vmul.f32 -1.442695, %v3696_v57  ;;  %v2486_v63 = vmul.f32 -1.442695, %v3698_v58 }
  0x8a   : > { %v423_v1 = vpop.permute.xlu0 %422  ;;  %v383_v2 = vpop.permute.xlu1 %382 }
  0x8b   : > { %3439 = vpow2.f32 %v2494_v62  ;;  %v3710_v8 = vmul.f32 %v423_v1, %v352_v59  ;;  %v3712_v9 = vmul.f32 %v383_v2, %v344_v60  ;;  %v349_v59 = vadd.f32 %v3643_v25, %v326_v44 }
  0x8c   : > { %3441 = vpow2.f32 %v2486_v63 }
  0x8d   : > { %v2495_v11 = vmul.f32 -1.442695, %v3710_v8  ;;  %v2487_v12 = vmul.f32 -1.442695, %v3712_v9 }
  0x8e   : > { %v428_v15 = vpop.permute.xlu0 %427  ;;  %v433_v16 = vpop.permute.xlu1 %432 }
  0x8f   : > { %3443 = vpow2.f32 %v2495_v11  ;;  %v3720_v23 = vmul.f32 %v428_v15, %v353_v0  ;;  %v3722_v24 = vmul.f32 %v433_v16, %v354_v3  ;;  %v350_v0 = vadd.f32 %v3643_v25, %v327_v51 }
  0x90   : > { %3445 = vpow2.f32 %v2487_v12 }
  0x91   : > { %v2496_v27 = vmul.f32 -1.442695, %v3720_v23  ;;  %v2497_v28 = vmul.f32 -1.442695, %v3722_v24 }
  0x92   : > { %v388_v33 = vpop.permute.xlu0 %387  ;;  %v393_v34 = vpop.permute.xlu1 %392 }
  0x93   : > { %3447 = vpow2.f32 %v2496_v27  ;;  %v3730_v38 = vmul.f32 %v388_v33, %v345_v17  ;;  %v3732_v39 = vmul.f32 %v393_v34, %v346_v18 }
  0x94   : > { %3449 = vpow2.f32 %v2497_v28 }
  0x95   : > { %v3440_v41 = vpop.eup %3439  ;;  %v2488_v42 = vmul.f32 -1.442695, %v3730_v38  ;;  %v2489_v47 = vmul.f32 -1.442695, %v3732_v39 }
  0x96   : > { %v3442_v45 = vpop.eup %3441  ;;  %v527_v46 = vadd.f32 1.0, %v3440_v41  ;;  %v398_v48 = vpop.permute.xlu0 %397 }
  0x97   : > { %v403_v49 = vpop.permute.xlu1 %402  ;;  %v519_v52 = vadd.f32 1.0, %v3442_v45  ;;  %3451 = vpow2.f32 %v2488_v42  ;;  %v3741_v53 = vmul.f32 %v398_v48, %v347_v35 }
  0x98   : > { %v3743_v54 = vmul.f32 %v403_v49, %v348_v40  ;;  %3453 = vrcp.f32 %v527_v46 }
  0x99   : > { %v3444_v55 = vpop.eup %3443  ;;  %3455 = vrcp.f32 %v519_v52  ;;  %v2490_v56 = vmul.f32 -1.442695, %v3741_v53 }
  0x9a   : > { %v3446_v60 = vpop.eup %3445  ;;  %v528_v61 = vadd.f32 1.0, %v3444_v55  ;;  %3457 = vpow2.f32 %v2489_v47  ;;  %v2491_v62 = vmul.f32 -1.442695, %v3743_v54  ;;  %v438_v63 = vpop.permute.xlu0 %437 }
  0x9b   : > { %v443_v21 = vpop.permute.xlu1 %442  ;;  %v520_v1 = vadd.f32 1.0, %v3446_v60  ;;  %3459 = vpow2.f32 %v2490_v56  ;;  %v3749_v2 = vmul.f32 %v438_v63, %v355_v43 }
  0x9c   : > { %v3751_v3 = vmul.f32 %v443_v21, %v356_v50  ;;  %3461 = vrcp.f32 %v528_v61 }
  0x9d   : > { %v3448_v4 = vpop.eup %3447  ;;  %3463 = vrcp.f32 %v520_v1  ;;  %v2498_v5 = vmul.f32 -1.442695, %v3749_v2 }
  0x9e   : > { %v3450_v6 = vpop.eup %3449  ;;  %v529_v7 = vadd.f32 1.0, %v3448_v4  ;;  %3465 = vpow2.f32 %v2491_v62  ;;  %v2499_v10 = vmul.f32 -1.442695, %v3751_v3  ;;  %v408_v11 = vpop.permute.xlu0 %407 }
  0x9f   : > { %v413_v12 = vpop.permute.xlu1 %412  ;;  %v530_v14 = vadd.f32 1.0, %v3450_v6  ;;  %3467 = vpow2.f32 %v2498_v5  ;;  %v3755_v25 = vmul.f32 %v408_v11, %v349_v59 }
  0xa0   : > { %v3757_v15 = vmul.f32 %v413_v12, %v350_v0  ;;  %3469 = vrcp.f32 %v529_v7 }
  0xa1   : > { %v3452_v16 = vpop.eup %3451  ;;  %3471 = vrcp.f32 %v530_v14  ;;  %v2492_v17 = vmul.f32 -1.442695, %v3755_v25  ;;  %v3375_v14 = vld [vmem:[%s4630_s1] sm:$0xff]  }
  0xa2   : > { %v2493_v18 = vmul.f32 -1.442695, %v3757_v15  ;;  %v3454_v19 = vpop.eup %3453  ;;  %v521_v20 = vadd.f32 1.0, %v3452_v16  ;;  %3473 = vpow2.f32 %v2499_v10  ;;  %v448_v22 = vpop.permute.xlu0 %447 }
  0xa3   : > { %v453_v26 = vpop.permute.xlu1 %452  ;;  %v3456_v27 = vpop.eup %3455  ;;  %3475 = vpow2.f32 %v2492_v17  ;;  %v3762_v28 = vmul.f32 %v448_v22, %v3653_v29  ;;  %v575_v42 = vmul.f32 %v3454_v19, %v3696_v57 }
  0xa4   : > { %v3765_v31 = vmul.f32 %v453_v26, %v3656_v30  ;;  %v3458_v32 = vpop.eup %3457  ;;  %3477 = vrcp.f32 %v521_v20  ;;  %v567_v30 = vmul.f32 %v3456_v27, %v3698_v58 }
  0xa5   : > { %v3460_v33 = vpop.eup %3459  ;;  %v522_v34 = vadd.f32 1.0, %v3458_v32  ;;  %3479 = vpow2.f32 %v2493_v18  ;;  %v2500_v35 = vmul.f32 -1.442695, %v3762_v28 }
  0xa6   : > { %v3462_v36 = vpop.eup %3461  ;;  %v523_v37 = vadd.f32 1.0, %v3460_v33  ;;  %v2501_v40 = vmul.f32 -1.442695, %v3765_v31 }
  0xa7   : > { %v3464_v41 = vpop.eup %3463  ;;  %v576_v29 = vmul.f32 %v3462_v36, %v3710_v8  ;;  %3481 = vrcp.f32 %v522_v34 }
  0xa8   : > { %v3466_v43 = vpop.eup %3465  ;;  %v568_v44 = vmul.f32 %v3464_v41, %v3712_v9  ;;  %3483 = vrcp.f32 %v523_v37  ;;  %v3376_v41 = vld [vmem:[%s4630_s1 + $0x8] sm:$0xff]  }
  0xa9   : > { %v3468_v45 = vpop.eup %3467  ;;  %v3773_v46 = vpack.c.bf16 %v576_v29, %v575_v42  ;;  %v524_v47 = vadd.f32 1.0, %v3466_v43  ;;  %3485 = vpow2.f32 %v2500_v35 }
  0xaa   : > { %v3470_v48 = vpop.eup %3469  ;;  %v3775_v49 = vpack.c.bf16 %v568_v44, %v567_v30  ;;  %v531_v50 = vadd.f32 1.0, %v3468_v45  ;;  %3487 = vpow2.f32 %v2501_v40  ;;  %v3377_v45 = vld [vmem:[%s4630_s1 + $0x80] sm:$0xff]  }
  0xab   : > { %v3472_v57 = vpop.eup %3471  ;;  %v577_v8 = vmul.f32 %v3470_v48, %v3720_v23  ;;  %3489 = vrcp.f32 %v524_v47  ;;  %v3779_v51 = vshll.u32 %v3773_v46, 16  ;;  %v3788_v63 = vshrl.u32 %v3773_v46, 16 }
  0xac   : > { %v3474_v58 = vpop.eup %3473  ;;  %v578_v9 = vmul.f32 %v3472_v57, %v3722_v24  ;;  %3491 = vrcp.f32 %v531_v50  ;;  %v626_v52 = vshrl.u32 %v3775_v49, 16  ;;  %v628_v60 = vshll.u32 %v3775_v49, 16 }
  0xad   : > { %v3476_v55 = vpop.eup %3475  ;;  %v532_v56 = vadd.f32 1.0, %v3474_v58  ;;  %v659_v59 = vrot.slane %v3779_v51, 1  ;;  %v1376_v16 = vrot.slane %v3788_v63, 5  ;;  %v1377_v19 = vrot.slane %v3779_v51, 6 }
  0xae   : > { %v3478_v61 = vpop.eup %3477  ;;  %v3785_v62 = vpack.c.bf16 %v578_v9, %v577_v8  ;;  %v525_v23 = vadd.f32 1.0, %v3476_v55  ;;  %v3790_v0 = vrot.slane %v626_v52, 5  ;;  %v630_v7 = vrot.slane %v628_v60, 1  ;;  %v3378_v9 = vld [vmem:[%s4630_s1 + $0x10] sm:$0xff]  }
  0xaf   : > { %v3480_v21 = vpop.eup %3479  ;;  %3493 = vrcp.f32 %v532_v56  ;;  %v569_v24 = vmul.f32 %v3478_v61, %v3730_v38  ;;  %v663_v6 = vor.u32 %v3788_v63, %v659_v59  ;;  %v3799_v10 = vrot.slane %v628_v60, 6 }
  0xb0   : > { %3495 = vrcp.f32 %v525_v23  ;;  %v526_v1 = vadd.f32 1.0, %v3480_v21  ;;  %v3794_v4 = vshll.u32 %v3785_v62, 16  ;;  %v631_v34 = vor.u32 %v630_v7, %v626_v52  ;;  %v3379_v21 = vld [vmem:[%s4630_s1 + $0x88] sm:$0xff]  }
  0xb1   : > { %v3482_v5 = vpop.eup %3481  ;;  %v1363_v18 = vor.u32 %v3799_v10, %v3790_v0  ;;  %v1172_v35 = vrot.slane %v3775_v49, 5  ;;  %v3817_v36 = vor.u32 %v1377_v19, %v1376_v16 }
  0xb2   : > { %v3484_v11 = vpop.eup %3483  ;;  %v570_v12 = vmul.f32 %v3482_v5, %v3732_v39  ;;  %3497 = vrcp.f32 %v526_v1  ;;  %v667_v38 = vrot.slane %v3794_v4, 1 }
  0xb3   : > { %v3486_v17 = vpop.eup %3485  ;;  %v571_v39 = vmul.f32 %v3484_v11, %v3741_v53  ;;  %v3380_v11 = vld [vmem:[%s4630_s1 + $0x18] sm:$0xff]  }
  0xb4   : > { %v3488_v20 = vpop.eup %3487  ;;  %v3810_v22 = vpack.c.bf16 %v570_v12, %v569_v24  ;;  %v533_v26 = vadd.f32 1.0, %v3486_v17  ;;  %v668_v27 = vsel %vm624_vm1, %v663_v6, %v667_v38  ;;  %v1381_v24 = vrot.slane %v3794_v4, 6 }
  0xb5   : > { %v3490_v32 = vpop.eup %3489  ;;  %v534_v33 = vadd.f32 1.0, %v3488_v20  ;;  %2974 = vmatmul.mubr.bf16.vlgmr.msra.gmra.mrb[0].mxu1 %v668_v27 }
  0xb6   : > { %v3492_v37 = vpop.eup %3491  ;;  %v572_v40 = vmul.f32 %v3490_v32, %v3743_v54  ;;  %3499 = vrcp.f32 %v533_v26  ;;  %2986 = vmatpush3.bf16.msra.mxu1 %v3375_v14  ;;  %v3821_v53 = vshll.u32 %v3810_v22, 16  ;;  %2977 = vmatprep.mubr.msk.bf16.mxu1 %vm3513_vm0, %v3512_v13  ;;  %v3829_v42 = vshrl.u32 %v3810_v22, 16 }
  0xb7   : > { %v579_v29 = vmul.f32 %v3492_v37, %v3749_v2  ;;  %3501 = vrcp.f32 %v534_v33  ;;  %2987 = vmatprep.subr.bf16.mxu1 %v3512_v13  ;;  %v3834_v54 = vshrl.u32 %v3785_v62, 16  ;;  %v1173_v43 = vrot.slane %v3810_v22, 5 }
  0xb8   : > { %v3837_v30 = vpack.c.bf16 %v572_v40, %v571_v39  ;;  %v635_v44 = vrot.slane %v3821_v53, 1  ;;  %v1364_v47 = vrot.slane %v3829_v42, 5  ;;  %v1365_v2 = vrot.slane %v3821_v53, 6  ;;  %v3381_v39 = vld [vmem:[%s4630_s1 + $0x90] sm:$0xff]   ;;  %v3382_v40 = vld [vmem:[%s4630_s1 + $0x20] sm:$0xff]  }
  0xb9   : > { %v3494_v48 = vpop.eup %3493  ;;  %v3846_v50 = vsel %vm1171_vm2, %v1172_v35, %v1173_v43  ;;  %v1380_v60 = vrot.slane %v3834_v54, 5  ;;  %v671_v19 = vor.u32 %v3834_v54, %v667_v38 }
  0xba   : > { %v3496_v57 = vpop.eup %3495  ;;  %v580_v8 = vmul.f32 %v3494_v48, %v3751_v3  ;;  %v636_v58 = vsel %vm624_vm1, %v631_v34, %v635_v44  ;;  %2988 = vmatpush3.bf16.msra.mxu1 %v3376_v41  ;;  %v3854_v52 = vshll.u32 %v3837_v30, 16  ;;  %v3859_v56 = vshrl.u32 %v3837_v30, 16 }
  0xbb   : > { %v573_v55 = vmul.f32 %v3496_v57, %v3755_v25  ;;  %2958 = vmatmul.mubr.bf16.vlgmr.msra.gmra.mrb[0].mxu0 %v636_v58  ;;  %2989 = vmatprep.subr.bf16.mxu1 %v3512_v13  ;;  %v1366_v3 = vor.u32 %v1365_v2, %v1364_v47  ;;  %v1175_v25 = vrot.slane %v3837_v30, 5  ;;  %v1382_v26 = vor.u32 %v1381_v24, %v1380_v60 }
  0xbc   : > { %v3498_v61 = vpop.eup %3497  ;;  %v3862_v23 = vpack.c.bf16 %v580_v8, %v579_v29  ;;  %3030 = vmatpush3.bf16.msra.mxu0 %v3377_v45  ;;  %2961 = vmatprep.mubr.msk.bf16.mxu0 %vm3513_vm0, %v3512_v13  ;;  %v1369_v0 = vrot.slane %v3854_v52, 6  ;;  %v1368_v6 = vrot.slane %v3859_v56, 5  ;;  %v643_v7 = vrot.slane %v3854_v52, 1  ;;  %v3384_v8 = vld [vmem:[%s4630_s1 + $0x28] sm:$0xff]  }
  0xbd   : > { %v574_v1 = vmul.f32 %v3498_v61, %v3757_v15  ;;  %3031 = vmatprep.subr.bf16.mxu0 %v3512_v13  ;;  %v3875_v5 = vsel %vm1360_vm3, %v1363_v18, %v1366_v3  ;;  %v3892_v14 = vsel %vm1171_vm2, %v1173_v43, %v1175_v25  ;;  %v639_v18 = vor.u32 %v3829_v42, %v635_v44 }
  0xbe   : > { %2990 = vmatpush3.bf16.msra.mxu1 %v3378_v9  ;;  %v3880_v10 = vshll.u32 %v3862_v23, 16  ;;  %v3889_v15 = vshrl.u32 %v3862_v23, 16  ;;  %v1370_v16 = vor.u32 %v1369_v0, %v1368_v6  ;;  %v3935_v2 = vsel %vm1360_vm3, %v3817_v36, %v1382_v26 }
  0xbf   : > { %v3885_v12 = vpack.c.bf16 %v574_v1, %v573_v55  ;;  %2991 = vmatprep.subr.bf16.mxu1 %v3512_v13  ;;  %v644_v35 = vsel %vm624_vm1, %v639_v18, %v643_v7  ;;  %v647_v57 = vor.u32 %v3859_v56, %v643_v7  ;;  %v1571_v7 = vrot.slane %v3775_v49, 6 }
  0xc0   : > { %v3500_v17 = vpop.eup %3499  ;;  %3032 = vmatpush3.bf16.msra.mxu0 %v3379_v21  ;;  %v675_v20 = vrot.slane %v3880_v10, 1  ;;  %v3918_v41 = vsel %vm1360_vm3, %v1366_v3, %v1370_v16  ;;  %v1384_v29 = vrot.slane %v3889_v15, 5  ;;  %v1385_v48 = vrot.slane %v3880_v10, 6  ;;  %v3385_v21 = vld [vmem:[%s4630_s1 + $0xa0] sm:$0xff]  }
  0xc1   : > { %v3502_v27 = vpop.eup %3501  ;;  %v581_v32 = vmul.f32 %v3500_v17, %v3762_v28  ;;  %3033 = vmatprep.subr.bf16.mxu0 %v3512_v13  ;;  %v3905_v33 = vshll.u32 %v3885_v12, 16  ;;  %v3908_v34 = vshrl.u32 %v3885_v12, 16  ;;  %v1177_v44 = vrot.slane %v3885_v12, 5 }
  0xc2   : > { %v582_v38 = vmul.f32 %v3502_v27, %v3765_v31  ;;  %v676_v37 = vsel %vm624_vm1, %v671_v19, %v675_v20  ;;  %2992 = vmatpush3.bf16.msra.mxu1 %v3380_v11  ;;  %v3383_v31 = vld [vmem:[%s4630_s1 + $0x98] sm:$0xff]   ;;  %v679_v55 = vor.u32 %v3889_v15, %v675_v20  ;;  %v1386_v3 = vor.u32 %v1385_v48, %v1384_v29  ;;  %v3387_v27 = vld [vmem:[%s4630_s1 + $0xa8] sm:$0xff]  }
  0xc3   : > { %2962 = vmatmul.mubr.bf16.gmra.mrb[4].mxu0 %v644_v35  ;;  %2978 = vmatmul.mubr.bf16.gmra.mrb[4].mxu1 %v676_v37  ;;  %v651_v28 = vrot.slane %v3905_v33, 1  ;;  %v1372_v45 = vrot.slane %v3908_v34, 5  ;;  %v1373_v47 = vrot.slane %v3905_v33, 6  ;;  %v3947_v58 = vsel %vm1171_vm2, %v1175_v25, %v1177_v44 }
  0xc4   : > { %v3921_v43 = vpack.c.bf16 %v582_v38, %v581_v32  ;;  %3034 = vmatpush3.bf16.msra.mxu0 %v3381_v39  ;;  %2993 = vmatprep.subr.bf16.mxu1 %v3512_v13  ;;  %v3966_v1 = vsel %vm1360_vm3, %v1382_v26, %v1386_v3  ;;  %v1572_v11 = vrot.slane %v3810_v22, 6  ;;  %v1760_v17 = vrot.slane %v3810_v22, 2 }
  0xc5   : > { %3035 = vmatprep.subr.bf16.mxu0 %v3512_v13  ;;  %2965 = vmatprep.mubr.msk.bf16.mxu0 %vm3513_vm0, %v3512_v13  ;;  %v1374_v9 = vor.u32 %v1373_v47, %v1372_v45  ;;  %v652_v61 = vsel %vm624_vm1, %v647_v57, %v651_v28  ;;  %v1761_v18 = vrot.slane %v3837_v30, 2  ;;  %v1574_v19 = vrot.slane %v3837_v30, 6  ;;  %v3389_v45 = vld [vmem:[%s4630_s1 + $0xb0] sm:$0xff]  }
  0xc6   : > { %2994 = vmatpush3.bf16.msra.mxu1 %v3382_v40  ;;  %2981 = vmatprep.mubr.msk.bf16.mxu1 %vm3513_vm0, %v3512_v13  ;;  %v1389_v60 = vshrl.u32 %v3921_v43, 16  ;;  %v1392_v24 = vshll.u32 %v3921_v43, 16  ;;  %v3981_v20 = vsel %vm1570_vm4, %v1571_v7, %v1572_v11  ;;  %v1763_v39 = vrot.slane %v3885_v12, 2 }
  0xc7   : > { %2995 = vmatprep.subr.bf16.mxu1 %v3512_v13  ;;  %v3957_v0 = vsel %vm1360_vm3, %v1370_v16, %v1374_v9  ;;  %v3961_v25 = vsel %vm1360_vm3, %v1374_v9, %v3817_v36  ;;  %v3386_v36 = vld [vmem:[%s4630_s1 + $0x30] sm:$0xff]   ;;  %v1576_v26 = vrot.slane %v3885_v12, 6  ;;  %v3990_v38 = vsel %vm1759_vm5, %v1760_v17, %v1761_v18  ;;  %v3391_v9 = vld [vmem:[%s4630_s1 + $0xc0] sm:$0xff]  }
  0xc8   : > { %3036 = vmatpush3.bf16.msra.mxu0 %v3383_v31  ;;  %v1391_v6 = vrot.slane %v1389_v60, 5  ;;  %v1394_v16 = vrot.slane %v1392_v24, 6  ;;  %v3993_v35 = vsel %vm1570_vm4, %v1572_v11, %v1574_v19  ;;  %v655_v37 = vor.u32 %v3908_v34, %v651_v28  ;;  %v3388_v31 = vld [vmem:[%s4630_s1 + $0x38] sm:$0xff]  }
  0xc9   : > { %3037 = vmatprep.subr.bf16.mxu0 %v3512_v13  ;;  %v4002_v40 = vsel %vm1759_vm5, %v1761_v18, %v1763_v39  ;;  %v4007_v29 = vsel %vm1570_vm4, %v1574_v19, %v1576_v26  ;;  %v1947_v47 = vrot.slane %v3829_v42, 2  ;;  %v1948_v48 = vrot.slane %v3821_v53, 3 }
  0xca   : > { %2996 = vmatpush3.bf16.msra.mxu1 %v3384_v8  ;;  %v1395_v32 = vor.u32 %v1394_v16, %v1391_v6  ;;  %v660_v57 = vsel %vm624_vm1, %v655_v37, %v659_v59  ;;  %v1950_v8 = vrot.slane %v3859_v56, 2  ;;  %v2148_v42 = vrot.slane %v3810_v22, 3  ;;  %v3392_v37 = vld [vmem:[%s4630_s1 + $0x100] sm:$0xff]  }
  0xcb   : > { %2966 = vmatmul.mubr.bf16.gmra.mrb[8].mxu0 %v652_v61  ;;  %2982 = vmatmul.mubr.bf16.gmra.mrb[8].mxu1 %v679_v55  ;;  %v1949_v55 = vor.u32 %v1948_v48, %v1947_v47  ;;  %v2149_v53 = vrot.slane %v3837_v30, 3  ;;  %v1954_v59 = vrot.slane %v3908_v34, 2  ;;  %v1955_v56 = vrot.slane %v3905_v33, 3  ;;  %v3395_v48 = vld [vmem:[%s4630_s1 + $0xd0] sm:$0xff]  }
  0xcc   : > { %3038 = vmatpush3.bf16.msra.mxu0 %v3385_v21  ;;  %2997 = vmatprep.subr.bf16.mxu1 %v3512_v13  ;;  %v4015_v28 = vsel %vm1360_vm3, %v1386_v3, %v1395_v32  ;;  %v1951_v3 = vrot.slane %v3854_v52, 3  ;;  %v2151_v61 = vrot.slane %v3885_v12, 3  ;;  %v1958_v21 = vrot.slane %v3788_v63, 2  ;;  %v3390_v52 = vld [vmem:[%s4630_s1 + $0xb8] sm:$0xff]  }
  0xcd   : > { %3039 = vmatprep.subr.bf16.mxu0 %v3512_v13  ;;  %2969 = vmatprep.mubr.msk.bf16.mxu0 %vm3513_vm0, %v3512_v13  ;;  %v4045_v7 = vsel %vm2147_vm6, %v2148_v42, %v2149_v53  ;;  %v1959_v34 = vrot.slane %v3779_v51, 3  ;;  %v1956_v63 = vor.u32 %v1955_v56, %v1954_v59  ;;  %v1962_v11 = vrot.slane %v3834_v54, 2  ;;  %v3393_v51 = vld [vmem:[%s4630_s1 + $0xc8] sm:$0xff]   ;;  %v3399_v42 = vld [vmem:[%s4630_s1 + $0xe0] sm:$0xff]  }
  0xce   : > { %2998 = vmatpush3.bf16.msra.mxu1 %v3386_v36  ;;  %3001 = vmatprep.mubr.msk.bf16.mxu1 %vm3513_vm0, %v3512_v13  ;;  %v1952_v6 = vor.u32 %v1951_v3, %v1950_v8  ;;  %v4053_v33 = vsel %vm2147_vm6, %v2149_v53, %v2151_v61  ;;  %v1963_v36 = vrot.slane %v3794_v4, 3  ;;  %v985_v16 = vrot.slane %v3810_v22, 1  ;;  %v3398_v53 = vld [vmem:[%s4630_s1 + $0x118] sm:$0xff]   ;;  %v3401_v56 = vld [vmem:[%s4630_s1 + $0xe8] sm:$0xff]  }
  0xcf   : > { %2999 = vmatprep.subr.bf16.mxu1 %v3512_v13  ;;  %v1960_v18 = vor.u32 %v1959_v34, %v1958_v21  ;;  %v1966_v19 = vrot.slane %v3889_v15, 2  ;;  %v984_v32 = vrot.slane %v3775_v49, 1  ;;  %v989_v59 = vrot.slane %v3885_v12, 1  ;;  %v3400_v21 = vld [vmem:[%s4630_s1 + $0x120] sm:$0xff]   ;;  %v3405_v34 = vld [vmem:[%s4630_s1 + $0xf8] sm:$0xff]  }
  0xd0   : > { %3040 = vmatpush3.bf16.msra.mxu0 %v3387_v27  ;;  %v4064_v17 = vsel %vm1946_vm7, %v1949_v55, %v1952_v6  ;;  %v4068_v54 = vsel %vm1946_vm7, %v1952_v6, %v1956_v63  ;;  %v1964_v4 = vor.u32 %v1963_v36, %v1962_v11  ;;  %v1967_v27 = vrot.slane %v3880_v10, 3  ;;  %v3397_v55 = vld [vmem:[%s4630_s1 + $0xd8] sm:$0xff]   ;;  %v3402_v6 = vld [vmem:[%s4630_s1 + $0x128] sm:$0xff]   ;;  %v3404_v11 = vld [vmem:[%s4630_s1 + $0x130] sm:$0xff]  }
  0xd1   : > { %3041 = vmatprep.subr.bf16.mxu0 %v3512_v13  ;;  %v986_v47 = vsel %vm983_vm8, %v984_v32, %v985_v16  ;;  %v3409_v32 = vld [vmem:[%s4630_s1 + $0x148] sm:$0xff]  }
  0xd2   : > { %3000 = vmatpush3.bf16.msra.mxu1 %v3388_v31  ;;  %v4077_v31 = vsel %vm1946_vm7, %v1956_v63, %v1960_v18  ;;  %v4083_v15 = vsel %vm1946_vm7, %v1960_v18, %v1964_v4  ;;  %v1968_v10 = vor.u32 %v1967_v27, %v1966_v19  ;;  %v991_v63 = vrot.slane %v3773_v46, 1  ;;  %v3407_v27 = vld [vmem:[%s4630_s1 + $0x140] sm:$0xff]  }
  0xd3   : > { %2970 = vmatmul.mubr.bf16.gmra.mrb[12].mxu0 %v660_v57  ;;  %3073 = vmatprep.subr.bf16.mxu1 %v3512_v13 }
  0xd4   : > { %3042 = vmatpush3.bf16.msra.mxu0 %v3389_v45  ;;  %3045 = vmatprep.mubr.msk.bf16.mxu0 %vm3513_vm0, %v3512_v13  ;;  %v1970_v45 = vrot.slane %v1389_v60, 2  ;;  %v4093_v60 = vsel %vm1946_vm7, %v1964_v4, %v1968_v10  ;;  %v992_v36 = vsel %vm983_vm8, %v989_v59, %v991_v63  ;;  %v995_v4 = vrot.slane %v3862_v23, 1 }
  0xd5   : > { %3002 = vmatmul.mubr.bf16.vlgmr.msra.gmra.mrb[12].mxu1 %v3775_v49  ;;  %3043 = vmatprep.subr.bf16.mxu0 %v3512_v13  ;;  %v1971_v49 = vrot.slane %v1392_v24, 3  ;;  %v3394_v24 = vld [vmem:[%s4630_s1 + $0x108] sm:$0xff]  }
  0xd6   : > { %3074 = vmatpush3.bf16.msra.mxu1 %v3391_v9  ;;  %3005 = vmatprep.mubr.msk.bf16.mxu1 %vm3513_vm0, %v3512_v13  ;;  %v987_v9 = vrot.slane %v3837_v30, 1 }
  0xd7   : > { %3075 = vmatprep.subr.bf16.mxu1 %v3512_v13  ;;  %v4095_v57 = vor.u32 %v1971_v49, %v1970_v45  ;;  %v3411_v45 = vld [vmem:[%s4630_s1 + $0x150] sm:$0xff]   ;;  %v3414_v49 = vld [vmem:[%s4630_s1 + $0x198] sm:$0xff]  }
  0xd8   : > { %3044 = vmatpush3.bf16.msra.mxu0 %v3390_v52  ;;  %v988_v3 = vsel %vm983_vm8, %v985_v16, %v987_v9  ;;  %v3403_v52 = vld [vmem:[%s4630_s1 + $0xf0] sm:$0xff]   ;;  %v3406_v16 = vld [vmem:[%s4630_s1 + $0x138] sm:$0xff]  }
  0xd9   : > { %3117 = vmatprep.subr.bf16.mxu0 %v3512_v13  ;;  %v4106_v8 = vsel %vm1946_vm7, %v1968_v10, %v4095_v57  ;;  %v3412_v10 = vld [vmem:[%s4630_s1 + $0x190] sm:$0xff]  }
  0xda   : > { %3076 = vmatpush3.bf16.msra.mxu1 %v3393_v51  ;;  %v993_v51 = vrot.slane %v3785_v62, 1 }
  0xdb   : > { %3046 = vmatmul.mubr.bf16.vlgmr.msra.gmra.mrb[16].mxu0 %v986_v47  ;;  %3077 = vmatprep.subr.bf16.mxu1 %v3512_v13  ;;  %v3416_v47 = vld [vmem:[%s4630_s1 + $0x1a0] sm:$0xff]  }
  0xdc   : > { %3118 = vmatpush3.bf16.msra.mxu0 %v3392_v37  ;;  %3049 = vmatprep.mubr.msk.bf16.mxu0 %vm3513_vm0, %v3512_v13  ;;  %v994_v18 = vsel %vm983_vm8, %v991_v63, %v993_v51  ;;  %v996_v19 = vsel %vm983_vm8, %v993_v51, %v995_v4  ;;  %v3408_v37 = vld [vmem:[%s4630_s1 + $0x180] sm:$0xff]   ;;  %v3435_v63 = vld [vmem:[%s4630_s1 + $0x1f0] sm:$0xff]  }
  0xdd   : > { %3006 = vmatmul.mubr.bf16.gmra.mrb[16].mxu1 %v3810_v22  ;;  %3119 = vmatprep.subr.bf16.mxu0 %v3512_v13  ;;  %v3396_v22 = vld [vmem:[%s4630_s1 + $0x110] sm:$0xff]  }
  0xde   : > { %3009 = vmatprep.mubr.msk.bf16.mxu1 %vm3513_vm0, %v3512_v13  ;;  %3078 = vmatpush3.bf16.msra.mxu1 %v3395_v48  ;;  %v3419_v48 = vld [vmem:[%s4630_s1 + $0x170] sm:$0xff]  }
  0xdf   : > { %3079 = vmatprep.subr.bf16.mxu1 %v3512_v13  ;;  %v3436_v51 = vld [vmem:[%s4630_s1 + $0x230] sm:$0xff]  }
  0xe0   : > { %3120 = vmatpush3.bf16.msra.mxu0 %v3394_v24 }
  0xe1   : > { %3121 = vmatprep.subr.bf16.mxu0 %v3512_v13 }
  0xe2   : > { %3080 = vmatpush3.bf16.msra.mxu1 %v3397_v55  ;;  %v3420_v55 = vld [vmem:[%s4630_s1 + $0x1b0] sm:$0xff]  }
  0xe3   : > { %3050 = vmatmul.mubr.bf16.gmra.mrb[20].mxu0 %v988_v3  ;;  %3081 = vmatprep.subr.bf16.mxu1 %v3512_v13  ;;  %v3422_v3 = vld [vmem:[%s4630_s1 + $0x1b8] sm:$0xff]  }
  0xe4   : > { %3122 = vmatpush3.bf16.msra.mxu0 %v3396_v22  ;;  %3053 = vmatprep.mubr.msk.bf16.mxu0 %vm3513_vm0, %v3512_v13 }
  0xe5   : > { %3010 = vmatmul.mubr.bf16.gmra.mrb[20].mxu1 %v3837_v30  ;;  %3123 = vmatprep.subr.bf16.mxu0 %v3512_v13  ;;  %v990_v30 = vsel %vm983_vm8, %v987_v9, %v989_v59  ;;  %v3418_v9 = vld [vmem:[%s4630_s1 + $0x1a8] sm:$0xff]  }
  0xe6   : > { %3013 = vmatprep.mubr.msk.bf16.mxu1 %vm3513_vm0, %v3512_v13  ;;  %3082 = vmatpush3.bf16.msra.mxu1 %v3399_v42 }
  0xe7   : > { %3083 = vmatprep.subr.bf16.mxu1 %v3512_v13 }
  0xe8   : > { %3124 = vmatpush3.bf16.msra.mxu0 %v3398_v53  ;;  %v1185_v53 = vrot.slane %v3921_v43, 5 }
  0xe9   : > { %3125 = vmatprep.subr.bf16.mxu0 %v3512_v13 }
  0xea   : > { %3084 = vmatpush3.bf16.msra.mxu1 %v3401_v56  ;;  %v3424_v56 = vld [vmem:[%s4630_s1 + $0x200] sm:$0xff]  }
  0xeb   : > { %3054 = vmatmul.mubr.bf16.gmra.mrb[24].mxu0 %v990_v30  ;;  %3085 = vmatprep.subr.bf16.mxu1 %v3512_v13  ;;  %v3430_v30 = vld [vmem:[%s4630_s1 + $0x218] sm:$0xff]  }
  0xec   : > { %3057 = vmatprep.mubr.msk.bf16.mxu0 %vm3513_vm0, %v3512_v13  ;;  %3126 = vmatpush3.bf16.msra.mxu0 %v3400_v21  ;;  %v3428_v21 = vld [vmem:[%s4630_s1 + $0x210] sm:$0xff]  }
  0xed   : > { %3014 = vmatmul.mubr.bf16.gmra.mrb[24].mxu1 %v3885_v12  ;;  %3127 = vmatprep.subr.bf16.mxu0 %v3512_v13 }
  0xee   : > { %3017 = vmatprep.mubr.msk.bf16.mxu1 %vm3513_vm0, %v3512_v13  ;;  %3086 = vmatpush3.bf16.msra.mxu1 %v3403_v52  ;;  %v1765_v52 = vrot.slane %v3773_v46, 2 }
  0xef   : > { %3087 = vmatprep.subr.bf16.mxu1 %v3512_v13 }
  0xf0   : > { %3128 = vmatpush3.bf16.msra.mxu0 %v3402_v6  ;;  %v3432_v6 = vld [vmem:[%s4630_s1 + $0x220] sm:$0xff]  }
  0xf1   : > { %3129 = vmatprep.subr.bf16.mxu0 %v3512_v13 }
  0xf2   : > { %3088 = vmatpush3.bf16.msra.mxu1 %v3405_v34  ;;  %v1578_v34 = vrot.slane %v3773_v46, 6 }
  0xf3   : > { %3058 = vmatmul.mubr.bf16.gmra.mrb[28].mxu0 %v992_v36  ;;  %3161 = vmatprep.subr.bf16.mxu1 %v3512_v13  ;;  %v1767_v36 = vrot.slane %v3785_v62, 2 }
  0xf4   : > { %3061 = vmatprep.mubr.msk.bf16.mxu0 %vm3513_vm0, %v3512_v13  ;;  %3130 = vmatpush3.bf16.msra.mxu0 %v3404_v11  ;;  %v1579_v11 = vsel %vm1570_vm4, %v1576_v26, %v1578_v34  ;;  %v3437_v26 = vld [vmem:[%s4630_s1 + $0x1f8] sm:$0xff]  }
  0xf5   : > { %3018 = vmatmul.mubr.bf16.gmra.mrb[28].mxu1 %v3773_v46  ;;  %3131 = vmatprep.subr.bf16.mxu0 %v3512_v13 }
  0xf6   : > { %3021 = vmatprep.mubr.msk.bf16.mxu1 %vm3513_vm0, %v3512_v13 }
  0xf8   : > { %3132 = vmatpush3.bf16.msra.mxu0 %v3406_v16  ;;  %v1580_v16 = vrot.slane %v3785_v62, 6 }
  0xf9   : > { %3205 = vmatprep.subr.bf16.mxu0 %v3512_v13 }
  0xfb   : > { %3062 = vmatmul.mubr.bf16.gmra.mrb[32].mxu0 %v994_v18  ;;  %v1768_v18 = vsel %vm1759_vm5, %v1765_v52, %v1767_v36 }
  0xfc   : > { %3065 = vmatprep.mubr.msk.bf16.mxu0 %vm3513_vm0, %v3512_v13 }
  0xfd   : > { %3022 = vmatmul.mubr.bf16.gmra.mrb[32].mxu1 %v3785_v62 }
  0xfe   : > { %3025 = vmatprep.mubr.msk.bf16.mxu1 %vm3513_vm0, %v3512_v13 }
 0x103   : > { %3066 = vmatmul.mubr.bf16.gmra.mrb[36].mxu0 %v996_v19  ;;  %v3438_v19 = vld [vmem:[%s4630_s1 + $0x238] sm:$0xff]  }
 0x104   : > { %3069 = vmatprep.mubr.msk.bf16.mxu0 %vm3513_vm0, %v3512_v13 }
 0x105   : > { %3026 = vmatmul.mubr.bf16.gmra.mrb[36].mxu1 %v3862_v23 }
 0x106   : > { %3089 = vmatprep.mubr.msk.bf16.mxu1 %vm3513_vm0, %v3512_v13 }
 0x10b   : > { %3070 = vmatmul.mubr.bf16.gmra.mrb[40].mxu0 %v995_v4  ;;  %v1581_v4 = vsel %vm1570_vm4, %v1578_v34, %v1580_v16 }
 0x10c   : > { %3133 = vmatprep.mubr.msk.bf16.mxu0 %vm3513_vm0, %v3512_v13 }
 0x10d   : > { %3090 = vmatmul.mubr.bf16.vlgmr.msra.gmra.mrb[40].mxu1 %v3846_v50  ;;  %v3410_v50 = vld [vmem:[%s4630_s1 + $0x188] sm:$0xff]  }
 0x10e   : > { %3162 = vmatpush3.bf16.msra.mxu1 %v3407_v27  ;;  %3093 = vmatprep.mubr.msk.bf16.mxu1 %vm3513_vm0, %v3512_v13  ;;  %v1769_v27 = vrot.slane %v3862_v23, 2 }
 0x10f   : > { %3163 = vmatprep.subr.bf16.mxu1 %v3512_v13 }
 0x112   : > { %3164 = vmatpush3.bf16.msra.mxu1 %v3409_v32  ;;  %v1582_v32 = vrot.slane %v3862_v23, 6 }
 0x113   : > { %3134 = vmatmul.mubr.bf16.vlgmr.msra.gmra.mrb[44].mxu0 %v3875_v5  ;;  %3165 = vmatprep.subr.bf16.mxu1 %v3512_v13  ;;  %v3413_v5 = vld [vmem:[%s4630_s1 + $0x158] sm:$0xff]  }
 0x114   : > { %3206 = vmatpush3.bf16.msra.mxu0 %v3408_v37  ;;  %3137 = vmatprep.mubr.msk.bf16.mxu0 %vm3513_vm0, %v3512_v13  ;;  %v1770_v37 = vsel %vm1759_vm5, %v1767_v36, %v1769_v27 }
 0x115   : > { %3094 = vmatmul.mubr.bf16.gmra.mrb[44].mxu1 %v3892_v14  ;;  %3207 = vmatprep.subr.bf16.mxu0 %v3512_v13  ;;  %v3415_v14 = vld [vmem:[%s4630_s1 + $0x160] sm:$0xff]  }
 0x116   : > { %3097 = vmatprep.mubr.msk.bf16.mxu1 %vm3513_vm0, %v3512_v13  ;;  %3166 = vmatpush3.bf16.msra.mxu1 %v3411_v45  ;;  %v1583_v45 = vsel %vm1570_vm4, %v1580_v16, %v1582_v32 }
 0x117   : > { %3167 = vmatprep.subr.bf16.mxu1 %v3512_v13 }
 0x118   : > { %3208 = vmatpush3.bf16.msra.mxu0 %v3410_v50  ;;  %v1771_v50 = vrot.slane %v3921_v43, 2 }
 0x119   : > { %3209 = vmatprep.subr.bf16.mxu0 %v3512_v13 }
 0x11a   : > { %3168 = vmatpush3.bf16.msra.mxu1 %v3413_v5  ;;  %v1584_v5 = vrot.slane %v3921_v43, 6 }
 0x11b   : > { %3138 = vmatmul.mubr.bf16.gmra.mrb[48].mxu0 %v3918_v41  ;;  %3169 = vmatprep.subr.bf16.mxu1 %v3512_v13  ;;  %v3417_v41 = vld [vmem:[%s4630_s1 + $0x168] sm:$0xff]  }
 0x11c   : > { %3210 = vmatpush3.bf16.msra.mxu0 %v3412_v10  ;;  %3141 = vmatprep.mubr.msk.bf16.mxu0 %vm3513_vm0, %v3512_v13  ;;  %v1772_v10 = vsel %vm1759_vm5, %v1769_v27, %v1771_v50 }
 0x11d   : > { %3098 = vmatmul.mubr.bf16.gmra.mrb[48].mxu1 %v3947_v58  ;;  %3211 = vmatprep.subr.bf16.mxu0 %v3512_v13  ;;  %v1179_v58 = vrot.slane %v3773_v46, 5 }
 0x11e   : > { %3101 = vmatprep.mubr.msk.bf16.mxu1 %vm3513_vm0, %v3512_v13  ;;  %3170 = vmatpush3.bf16.msra.mxu1 %v3415_v14  ;;  %v1585_v14 = vsel %vm1570_vm4, %v1582_v32, %v1584_v5 }
 0x11f   : > { %3171 = vmatprep.subr.bf16.mxu1 %v3512_v13  ;;  %v1180_v24 = vsel %vm1171_vm2, %v1177_v44, %v1179_v58  ;;  %v1181_v44 = vrot.slane %v3785_v62, 5 }
 0x120   : > { %3212 = vmatpush3.bf16.msra.mxu0 %v3414_v49 }
 0x121   : > { %3213 = vmatprep.subr.bf16.mxu0 %v3512_v13  ;;  %v1182_v22 = vsel %vm1171_vm2, %v1179_v58, %v1181_v44 }
 0x122   : > { %3172 = vmatpush3.bf16.msra.mxu1 %v3417_v41 }
 0x123   : > { %3142 = vmatmul.mubr.bf16.gmra.mrb[52].mxu0 %v3957_v0  ;;  %3173 = vmatprep.subr.bf16.mxu1 %v3512_v13  ;;  %v3421_v0 = vld [vmem:[%s4630_s1 + $0x178] sm:$0xff]  }
 0x124   : > { %3145 = vmatprep.mubr.msk.bf16.mxu0 %vm3513_vm0, %v3512_v13  ;;  %3214 = vmatpush3.bf16.msra.mxu0 %v3416_v47 }
 0x125   : > { %3102 = vmatmul.mubr.bf16.gmra.mrb[52].mxu1 %v1180_v24  ;;  %3215 = vmatprep.subr.bf16.mxu0 %v3512_v13 }
 0x126   : > { %3105 = vmatprep.mubr.msk.bf16.mxu1 %vm3513_vm0, %v3512_v13  ;;  %3174 = vmatpush3.bf16.msra.mxu1 %v3419_v48  ;;  %v2153_v48 = vrot.slane %v3773_v46, 3 }
 0x127   : > { %3175 = vmatprep.subr.bf16.mxu1 %v3512_v13 }
 0x128   : > { %3216 = vmatpush3.bf16.msra.mxu0 %v3418_v9  ;;  %v2154_v9 = vsel %vm2147_vm6, %v2151_v61, %v2153_v48 }
 0x129   : > { %3217 = vmatprep.subr.bf16.mxu0 %v3512_v13 }
 0x12a   : > { %3176 = vmatpush3.bf16.msra.mxu1 %v3421_v0  ;;  %v2155_v0 = vrot.slane %v3785_v62, 3 }
 0x12b   : > { %3146 = vmatmul.mubr.bf16.gmra.mrb[56].mxu0 %v3961_v25  ;;  %3249 = vmatprep.subr.bf16.mxu1 %v3512_v13  ;;  %v1183_v25 = vrot.slane %v3862_v23, 5 }
 0x12c   : > { %3149 = vmatprep.mubr.msk.bf16.mxu0 %vm3513_vm0, %v3512_v13  ;;  %3218 = vmatpush3.bf16.msra.mxu0 %v3420_v55 }
 0x12d   : > { %3106 = vmatmul.mubr.bf16.gmra.mrb[56].mxu1 %v1182_v22  ;;  %3219 = vmatprep.subr.bf16.mxu0 %v3512_v13  ;;  %v1184_v42 = vsel %vm1171_vm2, %v1181_v44, %v1183_v25  ;;  %v1186_v59 = vsel %vm1171_vm2, %v1183_v25, %v1185_v53  ;;  %v2157_v25 = vrot.slane %v3862_v23, 3  ;;  %v2159_v23 = vrot.slane %v3921_v43, 3 }
 0x12e   : > { %3109 = vmatprep.mubr.msk.bf16.mxu1 %vm3513_vm0, %v3512_v13 }
 0x130   : > { %3220 = vmatpush3.bf16.msra.mxu0 %v3422_v3  ;;  %v2156_v3 = vsel %vm2147_vm6, %v2153_v48, %v2155_v0 }
 0x131   : > { %3293 = vmatprep.subr.bf16.mxu0 %v3512_v13 }
 0x133   : > { %3150 = vmatmul.mubr.bf16.gmra.mrb[60].mxu0 %v3935_v2  ;;  %v3423_v2 = vld [vmem:[%s4630_s1 + $0x1c0] sm:$0xff]  }
 0x134   : > { %3153 = vmatprep.mubr.msk.bf16.mxu0 %vm3513_vm0, %v3512_v13 }
 0x135   : > { %3110 = vmatmul.mubr.bf16.gmra.mrb[60].mxu1 %v1184_v42 }
 0x136   : > { %3113 = vmatprep.mubr.msk.bf16.mxu1 %vm3513_vm0, %v3512_v13 }
 0x13b   : > { %3154 = vmatmul.mubr.bf16.gmra.mrb[64].mxu0 %v3966_v1  ;;  %v3425_v1 = vld [vmem:[%s4630_s1 + $0x1c8] sm:$0xff]  }
 0x13c   : > { %3157 = vmatprep.mubr.msk.bf16.mxu0 %vm3513_vm0, %v3512_v13 }
 0x13d   : > { %3114 = vmatmul.mubr.bf16.gmra.mrb[64].mxu1 %v1186_v59 }
 0x13e   : > { %3177 = vmatprep.mubr.msk.bf16.mxu1 %vm3513_vm0, %v3512_v13 }
 0x143   : > { %3158 = vmatmul.mubr.bf16.gmra.mrb[68].mxu0 %v4015_v28  ;;  %v3427_v28 = vld [vmem:[%s4630_s1 + $0x1d0] sm:$0xff]  }
 0x144   : > { %3221 = vmatprep.mubr.msk.bf16.mxu0 %vm3513_vm0, %v3512_v13 }
 0x145   : > { %3178 = vmatmul.mubr.bf16.vlgmr.msra.gmra.mrb[68].mxu1 %v3981_v20  ;;  %v3426_v20 = vld [vmem:[%s4630_s1 + $0x208] sm:$0xff]  }
 0x146   : > { %3250 = vmatpush3.bf16.msra.mxu1 %v3423_v2  ;;  %3181 = vmatprep.mubr.msk.bf16.mxu1 %vm3513_vm0, %v3512_v13 }
 0x147   : > { %3251 = vmatprep.subr.bf16.mxu1 %v3512_v13 }
 0x14a   : > { %3252 = vmatpush3.bf16.msra.mxu1 %v3425_v1 }
 0x14b   : > { %3222 = vmatmul.mubr.bf16.vlgmr.msra.gmra.mrb[72].mxu0 %v3990_v38  ;;  %3253 = vmatprep.subr.bf16.mxu1 %v3512_v13  ;;  %v3429_v38 = vld [vmem:[%s4630_s1 + $0x1d8] sm:$0xff]  }
 0x14c   : > { %3294 = vmatpush3.bf16.msra.mxu0 %v3424_v56  ;;  %3225 = vmatprep.mubr.msk.bf16.mxu0 %vm3513_vm0, %v3512_v13 }
 0x14d   : > { %3182 = vmatmul.mubr.bf16.gmra.mrb[72].mxu1 %v3993_v35  ;;  %3295 = vmatprep.subr.bf16.mxu0 %v3512_v13  ;;  %v3431_v35 = vld [vmem:[%s4630_s1 + $0x1e0] sm:$0xff]  }
 0x14e   : > { %3185 = vmatprep.mubr.msk.bf16.mxu1 %vm3513_vm0, %v3512_v13  ;;  %3254 = vmatpush3.bf16.msra.mxu1 %v3427_v28  ;;  %v2158_v28 = vsel %vm2147_vm6, %v2155_v0, %v2157_v25 }
 0x14f   : > { %3255 = vmatprep.subr.bf16.mxu1 %v3512_v13 }
 0x150   : > { %3296 = vmatpush3.bf16.msra.mxu0 %v3426_v20 }
 0x151   : > { %3297 = vmatprep.subr.bf16.mxu0 %v3512_v13 }
 0x152   : > { %3256 = vmatpush3.bf16.msra.mxu1 %v3429_v38 }
 0x153   : > { %3226 = vmatmul.mubr.bf16.gmra.mrb[76].mxu0 %v4002_v40  ;;  %3257 = vmatprep.subr.bf16.mxu1 %v3512_v13  ;;  %v3433_v40 = vld [vmem:[%s4630_s1 + $0x1e8] sm:$0xff]  }
 0x154   : > { %3298 = vmatpush3.bf16.msra.mxu0 %v3428_v21  ;;  %3229 = vmatprep.mubr.msk.bf16.mxu0 %vm3513_vm0, %v3512_v13 }
 0x155   : > { %3186 = vmatmul.mubr.bf16.gmra.mrb[76].mxu1 %v4007_v29  ;;  %3299 = vmatprep.subr.bf16.mxu0 %v3512_v13  ;;  %v1766_v29 = vsel %vm1759_vm5, %v1763_v39, %v1765_v52  ;;  %v3434_v39 = vld [vmem:[%s4630_s1 + $0x228] sm:$0xff]  }
 0x156   : > { %3189 = vmatprep.mubr.msk.bf16.mxu1 %vm3513_vm0, %v3512_v13  ;;  %3258 = vmatpush3.bf16.msra.mxu1 %v3431_v35 }
 0x157   : > { %3259 = vmatprep.subr.bf16.mxu1 %v3512_v13 }
 0x158   : > { %3300 = vmatpush3.bf16.msra.mxu0 %v3430_v30 }
 0x159   : > { %3301 = vmatprep.subr.bf16.mxu0 %v3512_v13 }
 0x15a   : > { %3260 = vmatpush3.bf16.msra.mxu1 %v3433_v40 }
 0x15b   : > { %3230 = vmatmul.mubr.bf16.gmra.mrb[80].mxu0 %v1766_v29  ;;  %3261 = vmatprep.subr.bf16.mxu1 %v3512_v13 }
 0x15c   : > { %3233 = vmatprep.mubr.msk.bf16.mxu0 %vm3513_vm0, %v3512_v13  ;;  %3302 = vmatpush3.bf16.msra.mxu0 %v3432_v6  ;;  %v2160_v6 = vsel %vm2147_vm6, %v2157_v25, %v2159_v23 }
 0x15d   : > { %3190 = vmatmul.mubr.bf16.gmra.mrb[80].mxu1 %v1579_v11  ;;  %3303 = vmatprep.subr.bf16.mxu0 %v3512_v13 }
 0x15e   : > { %3193 = vmatprep.mubr.msk.bf16.mxu1 %vm3513_vm0, %v3512_v13  ;;  %3262 = vmatpush3.bf16.msra.mxu1 %v3435_v63 }
 0x15f   : > { %3263 = vmatprep.subr.bf16.mxu1 %v3512_v13 }
 0x160   : > { %3304 = vmatpush3.bf16.msra.mxu0 %v3434_v39 }
 0x161   : > { %3305 = vmatprep.subr.bf16.mxu0 %v3512_v13 }
 0x162   : > { %3264 = vmatpush3.bf16.msra.mxu1 %v3437_v26 }
 0x163   : > { %3234 = vmatmul.mubr.bf16.gmra.mrb[84].mxu0 %v1768_v18 }
 0x164   : > { %3237 = vmatprep.mubr.msk.bf16.mxu0 %vm3513_vm0, %v3512_v13  ;;  %3306 = vmatpush3.bf16.msra.mxu0 %v3436_v51 }
 0x165   : > { %3194 = vmatmul.mubr.bf16.gmra.mrb[84].mxu1 %v1581_v4  ;;  %3307 = vmatprep.subr.bf16.mxu0 %v3512_v13 }
 0x166   : > { %3197 = vmatprep.mubr.msk.bf16.mxu1 %vm3513_vm0, %v3512_v13 }
 0x168   : > { %3308 = vmatpush3.bf16.msra.mxu0 %v3438_v19 }
 0x16b   : > { %3238 = vmatmul.mubr.bf16.gmra.mrb[88].mxu0 %v1770_v37 }
 0x16c   : > { %3241 = vmatprep.mubr.msk.bf16.mxu0 %vm3513_vm0, %v3512_v13 }
 0x16d   : > { %3198 = vmatmul.mubr.bf16.gmra.mrb[88].mxu1 %v1583_v45 }
 0x16e   : > { %3201 = vmatprep.mubr.msk.bf16.mxu1 %vm3513_vm0, %v3512_v13 }
 0x173   : > { %3242 = vmatmul.mubr.bf16.gmra.mrb[92].mxu0 %v1772_v10 }
 0x174   : > { %3245 = vmatprep.mubr.msk.bf16.mxu0 %vm3513_vm0, %v3512_v13 }
 0x175   : > { %3202 = vmatmul.mubr.bf16.gmra.mrb[92].mxu1 %v1585_v14 }
 0x176   : > { %3265 = vmatprep.mubr.msk.bf16.mxu1 %vm3513_vm0, %v3512_v13 }
 0x17b   : > { %3246 = vmatmul.mubr.bf16.gmra.mrb[96].mxu0 %v1771_v50 }
 0x17c   : > { %3309 = vmatprep.mubr.msk.bf16.mxu0 %vm3513_vm0, %v3512_v13 }
 0x17d   : > { %3266 = vmatmul.mubr.bf16.vlgmr.msra.gmra.mrb[96].mxu1 %v4064_v17 }
 0x17e   : > { %3269 = vmatprep.mubr.msk.bf16.mxu1 %vm3513_vm0, %v3512_v13 }
 0x183   : > { %3310 = vmatmul.mubr.bf16.vlgmr.msra.gmra.mrb[100].mxu0 %v4045_v7 }
 0x184   : > { %3313 = vmatprep.mubr.msk.bf16.mxu0 %vm3513_vm0, %v3512_v13 }
 0x185   : > { %3270 = vmatmul.mubr.bf16.gmra.mrb[100].mxu1 %v4068_v54 }
 0x186   : > { %3273 = vmatprep.mubr.msk.bf16.mxu1 %vm3513_vm0, %v3512_v13 }
 0x188   : > { %v4429_v49 = vpop.f32.mrb[0].mxu1 }
 0x189   : > { %v2975_v41 = vpop.f32.mrb[1].mxu1 }
 0x18a   : > { %v4431_v47 = vpop.f32.mrb[2].mxu1 }
 0x18b   : > { %3314 = vmatmul.mubr.bf16.gmra.mrb[104].mxu0 %v4053_v33  ;;  %v2976_v17 = vpop.f32.mrb[3].mxu1 }
 0x18c   : > { %3317 = vmatprep.mubr.msk.bf16.mxu0 %vm3513_vm0, %v3512_v13 }
 0x18d   : > { %3274 = vmatmul.mubr.bf16.gmra.mrb[104].mxu1 %v4077_v31 }
 0x18e   : > { %v769_v7 = vpop.f32.mrb[0].mxu0  ;;  %3277 = vmatprep.mubr.msk.bf16.mxu1 %vm3513_vm0, %v3512_v13 }
 0x18f   : > { %v2959_v54 = vpop.f32.mrb[1].mxu0 }
 0x190   : > { %v772_v58 = vpop.f32.mrb[2].mxu0 }
 0x191   : > { %v2960_v24 = vpop.f32.mrb[3].mxu0 }
 0x193   : > { %3318 = vmatmul.mubr.bf16.gmra.mrb[108].mxu0 %v2154_v9 }
 0x194   : > { %3321 = vmatprep.mubr.msk.bf16.mxu0 %vm3513_vm0, %v3512_v13 }
 0x195   : > { %3278 = vmatmul.mubr.bf16.gmra.mrb[108].mxu1 %v4083_v15 }
 0x196   : > { %v777_v33 = vpop.f32.mrb[4].mxu0  ;;  %v4446_v31 = vpop.f32.mrb[4].mxu1  ;;  %3281 = vmatprep.mubr.msk.bf16.mxu1 %vm3513_vm0, %v3512_v13 }
 0x197   : > { %v2963_v46 = vpop.f32.mrb[5].mxu0  ;;  %v2979_v44 = vpop.f32.mrb[5].mxu1 }
 0x198   : > { %v780_v55 = vpop.f32.mrb[6].mxu0  ;;  %v4451_v12 = vpop.f32.mrb[6].mxu1 }
 0x199   : > { %v2964_v61 = vpop.f32.mrb[7].mxu0  ;;  %v2980_v22 = vpop.f32.mrb[7].mxu1 }
 0x19b   : > { %3322 = vmatmul.mubr.bf16.gmra.mrb[112].mxu0 %v2156_v3 }
 0x19c   : > { %3325 = vmatprep.mubr.msk.bf16.mxu0 %vm3513_vm0, %v3512_v13 }
 0x19d   : > { %3282 = vmatmul.mubr.bf16.gmra.mrb[112].mxu1 %v4093_v60 }
 0x19e   : > { %v785_v15 = vpop.f32.mrb[8].mxu0  ;;  %v4457_v62 = vpop.f32.mrb[8].mxu1  ;;  %3285 = vmatprep.mubr.msk.bf16.mxu1 %vm3513_vm0, %v3512_v13 }
 0x19f   : > { %v2967_v42 = vpop.f32.mrb[9].mxu0  ;;  %v2983_v53 = vpop.f32.mrb[9].mxu1 }
 0x1a0   : > { %v788_v59 = vpop.f32.mrb[10].mxu0  ;;  %v820_v2 = vpop.f32.mrb[10].mxu1 }
 0x1a1   : > { %v2968_v1 = vpop.f32.mrb[11].mxu0  ;;  %v2984_v56 = vpop.f32.mrb[11].mxu1 }
 0x1a3   : > { %3326 = vmatmul.mubr.bf16.gmra.mrb[116].mxu0 %v2158_v28 }
 0x1a4   : > { %3329 = vmatprep.mubr.msk.bf16.mxu0 %vm3513_vm0, %v3512_v13 }
 0x1a5   : > { %3286 = vmatmul.mubr.bf16.gmra.mrb[116].mxu1 %v4106_v8 }
 0x1a6   : > { %v793_v60 = vpop.f32.mrb[12].mxu0  ;;  %3289 = vmatprep.mubr.msk.bf16.mxu1 %vm3513_vm0, %v3512_v13 }
 0x1a7   : > { %v2971_v20 = vpop.f32.mrb[13].mxu0 }
 0x1a8   : > { %v796_v38 = vpop.f32.mrb[14].mxu0  ;;  %v905_v21 = vpop.f32.mrb[12].mxu1 }
 0x1a9   : > { %v2972_v35 = vpop.f32.mrb[15].mxu0  ;;  %v906_v30 = vadd.f32 %v905_v21, %v769_v7  ;;  %v3003_v40 = vpop.f32.mrb[13].mxu1 }
 0x1aa   : > { %v908_v52 = vpop.f32.mrb[14].mxu1 }
 0x1ab   : > { %v909_v29 = vadd.f32 %v908_v52, %v772_v58  ;;  %3330 = vmatmul.mubr.bf16.gmra.mrb[120].mxu0 %v2160_v6  ;;  %v3004_v34 = vpop.f32.mrb[15].mxu1 }
 0x1ac   : > { %3333 = vmatprep.mubr.msk.bf16.mxu0 %vm3513_vm0, %v3512_v13 }
 0x1ad   : > { %3290 = vmatmul.mubr.bf16.gmra.mrb[120].mxu1 %v4095_v57 }
 0x1ae   : > { %v1086_v43 = vpop.f32.mrb[16].mxu0 }
 0x1af   : > { %v4473_v8 = vadd.f32 %v1086_v43, %v906_v30  ;;  %v3047_v63 = vpop.f32.mrb[17].mxu0 }
 0x1b0   : > { %v1089_v11 = vpop.f32.mrb[18].mxu0  ;;  %v913_v39 = vpop.f32.mrb[16].mxu1 }
 0x1b1   : > { %v4475_v36 = vadd.f32 %v1089_v11, %v909_v29  ;;  %v914_v26 = vadd.f32 %v913_v39, %v777_v33  ;;  %v3048_v16 = vpop.f32.mrb[19].mxu0  ;;  %v3007_v51 = vpop.f32.mrb[17].mxu1 }
 0x1b2   : > { %v916_v18 = vpop.f32.mrb[18].mxu1 }
 0x1b3   : > { %v917_v4 = vadd.f32 %v916_v18, %v780_v55  ;;  %3334 = vmatmul.mubr.bf16.gmra.mrb[124].mxu0 %v2159_v23  ;;  %v3008_v19 = vpop.f32.mrb[19].mxu1 }
 0x1b6   : > { %v1094_v27 = vpop.f32.mrb[20].mxu0 }
 0x1b7   : > { %v4477_v32 = vadd.f32 %v1094_v27, %v914_v26  ;;  %v3051_v13 = vpop.f32.mrb[21].mxu0 }
 0x1b8   : > { %v1097_v57 = vpop.f32.mrb[22].mxu0  ;;  %v921_v37 = vpop.f32.mrb[20].mxu1 }
 0x1b9   : > { %v4479_v45 = vadd.f32 %v1097_v57, %v917_v4  ;;  %v922_v50 = vadd.f32 %v921_v37, %v785_v15  ;;  %v3052_v5 = vpop.f32.mrb[23].mxu0  ;;  %v3011_v10 = vpop.f32.mrb[21].mxu1 }
 0x1ba   : > { %v924_v14 = vpop.f32.mrb[22].mxu1 }
 0x1bb   : > { %v925_v41 = vadd.f32 %v924_v14, %v788_v59  ;;  %v3012_v17 = vpop.f32.mrb[23].mxu1 }
 0x1be   : > { %v1102_v7 = vpop.f32.mrb[24].mxu0 }
 0x1bf   : > { %v4481_v54 = vadd.f32 %v1102_v7, %v922_v50  ;;  %v3055_v58 = vpop.f32.mrb[25].mxu0 }
 0x1c0   : > { %v1105_v48 = vpop.f32.mrb[26].mxu0  ;;  %v929_v24 = vpop.f32.mrb[24].mxu1 }
 0x1c1   : > { %v4483_v9 = vadd.f32 %v1105_v48, %v925_v41  ;;  %v930_v33 = vadd.f32 %v929_v24, %v793_v60  ;;  %v3056_v0 = vpop.f32.mrb[27].mxu0  ;;  %v3015_v46 = vpop.f32.mrb[25].mxu1 }
 0x1c2   : > { %v932_v44 = vpop.f32.mrb[26].mxu1 }
 0x1c3   : > { %v933_v55 = vadd.f32 %v932_v44, %v796_v38  ;;  %v3016_v61 = vpop.f32.mrb[27].mxu1 }
 0x1c6   : > { %v1110_v22 = vpop.f32.mrb[28].mxu0 }
 0x1c7   : > { %v4485_v3 = vadd.f32 %v1110_v22, %v930_v33  ;;  %v3059_v15 = vpop.f32.mrb[29].mxu0 }
 0x1c8   : > { %v1113_v25 = vpop.f32.mrb[30].mxu0  ;;  %v937_v42 = vpop.f32.mrb[28].mxu1 }
 0x1c9   : > { %v4487_v53 = vadd.f32 %v1113_v25, %v933_v55  ;;  %v938_v59 = vadd.f32 %v937_v42, %v4429_v49  ;;  %v3060_v2 = vpop.f32.mrb[31].mxu0  ;;  %v3019_v1 = vpop.f32.mrb[29].mxu1 }
 0x1ca   : > { %v940_v56 = vpop.f32.mrb[30].mxu1 }
 0x1cb   : > { %v941_v28 = vadd.f32 %v940_v56, %v4431_v47  ;;  %v3020_v60 = vpop.f32.mrb[31].mxu1 }
 0x1ce   : > { %v1118_v23 = vpop.f32.mrb[32].mxu0 }
 0x1cf   : > { %v4491_v20 = vadd.f32 %v1118_v23, %v938_v59  ;;  %v3063_v38 = vpop.f32.mrb[33].mxu0 }
 0x1d0   : > { %v1121_v21 = vpop.f32.mrb[34].mxu0  ;;  %v945_v35 = vpop.f32.mrb[32].mxu1 }
 0x1d1   : > { %v4493_v30 = vadd.f32 %v1121_v21, %v941_v28  ;;  %v946_v40 = vadd.f32 %v945_v35, %v4446_v31  ;;  %v3064_v52 = vpop.f32.mrb[35].mxu0  ;;  %v3023_v6 = vpop.f32.mrb[33].mxu1 }
 0x1d2   : > { %v948_v29 = vpop.f32.mrb[34].mxu1 }
 0x1d3   : > { %v949_v49 = vadd.f32 %v948_v29, %v4451_v12  ;;  %v3024_v34 = vpop.f32.mrb[35].mxu1 }
 0x1d6   : > { %v1126_v43 = vpop.f32.mrb[36].mxu0 }
 0x1d7   : > { %v4497_v63 = vadd.f32 %v1126_v43, %v946_v40  ;;  %v3067_v47 = vpop.f32.mrb[37].mxu0 }
 0x1d8   : > { %v1129_v11 = vpop.f32.mrb[38].mxu0  ;;  %v953_v39 = vpop.f32.mrb[36].mxu1 }
 0x1d9   : > { %v4499_v26 = vadd.f32 %v1129_v11, %v949_v49  ;;  %v954_v16 = vadd.f32 %v953_v39, %v4457_v62  ;;  %v3068_v51 = vpop.f32.mrb[39].mxu0  ;;  %v3027_v18 = vpop.f32.mrb[37].mxu1 }
 0x1da   : > { %v956_v4 = vpop.f32.mrb[38].mxu1 }
 0x1db   : > { %v3028_v31 = vpop.f32.mrb[39].mxu1 }
 0x1de   : > { %v1134_v19 = vpop.f32.mrb[40].mxu0 }
 0x1df   : > { %v4502_v27 = vadd.f32 %v1134_v19, %v954_v16  ;;  %v3071_v13 = vpop.f32.mrb[41].mxu0 }
 0x1e0   : > { %v1137_v12 = vpop.f32.mrb[42].mxu0  ;;  %v1276_v57 = vpop.f32.mrb[40].mxu1 }
 0x1e1   : > { %v3072_v37 = vpop.f32.mrb[43].mxu0  ;;  %v1330_v50 = vadd.f32 %v1276_v57, %v4473_v8  ;;  %v3091_v5 = vpop.f32.mrb[41].mxu1 }
 0x1e2   : > { %v1279_v10 = vpop.f32.mrb[42].mxu1 }
 0x1e3   : > { %v1331_v14 = vadd.f32 %v1279_v10, %v4475_v36  ;;  %v3092_v41 = vpop.f32.mrb[43].mxu1 }
 0x1e6   : > { %v1486_v17 = vpop.f32.mrb[44].mxu0 }
 0x1e7   : > { %v4506_v62 = vadd.f32 %v1486_v17, %v1330_v50  ;;  %v3135_v7 = vpop.f32.mrb[45].mxu0 }
 0x1e8   : > { %v1489_v58 = vpop.f32.mrb[46].mxu0  ;;  %v1284_v48 = vpop.f32.mrb[44].mxu1 }
 0x1e9   : > { %v4508_v24 = vadd.f32 %v1489_v58, %v1331_v14  ;;  %v1332_v33 = vadd.f32 %v1284_v48, %v4477_v32  ;;  %v3136_v0 = vpop.f32.mrb[47].mxu0  ;;  %v3095_v46 = vpop.f32.mrb[45].mxu1 }
 0x1ea   : > { %v1287_v44 = vpop.f32.mrb[46].mxu1 }
 0x1eb   : > { %v1333_v8 = vadd.f32 %v1287_v44, %v4479_v45  ;;  %v3096_v55 = vpop.f32.mrb[47].mxu1 }
 0x1ee   : > { %v1494_v61 = vpop.f32.mrb[48].mxu0 }
 0x1ef   : > { %v4512_v22 = vadd.f32 %v1494_v61, %v1332_v33  ;;  %v3139_v36 = vpop.f32.mrb[49].mxu0 }
 0x1f0   : > { %v1497_v15 = vpop.f32.mrb[50].mxu0  ;;  %v1292_v25 = vpop.f32.mrb[48].mxu1 }
 0x1f1   : > { %v4514_v42 = vadd.f32 %v1497_v15, %v1333_v8  ;;  %v1334_v59 = vadd.f32 %v1292_v25, %v4481_v54  ;;  %v3140_v2 = vpop.f32.mrb[51].mxu0  ;;  %v3099_v1 = vpop.f32.mrb[49].mxu1 }
 0x1f2   : > { %v1295_v56 = vpop.f32.mrb[50].mxu1 }
 0x1f3   : > { %v1335_v32 = vadd.f32 %v1295_v56, %v4483_v9  ;;  %v3100_v28 = vpop.f32.mrb[51].mxu1 }
 0x1f6   : > { %v1502_v60 = vpop.f32.mrb[52].mxu0 }
 0x1f7   : > { %v4518_v23 = vadd.f32 %v1502_v60, %v1334_v59  ;;  %v3143_v45 = vpop.f32.mrb[53].mxu0 }
 0x1f8   : > { %v1505_v38 = vpop.f32.mrb[54].mxu0  ;;  %v1300_v21 = vpop.f32.mrb[52].mxu1 }
 0x1f9   : > { %v4520_v35 = vadd.f32 %v1505_v38, %v1335_v32  ;;  %v1336_v40 = vadd.f32 %v1300_v21, %v4485_v3  ;;  %v3144_v52 = vpop.f32.mrb[55].mxu0  ;;  %v3103_v6 = vpop.f32.mrb[53].mxu1 }
 0x1fa   : > { %v1303_v29 = vpop.f32.mrb[54].mxu1 }
 0x1fb   : > { %v1337_v54 = vadd.f32 %v1303_v29, %v4487_v53  ;;  %v3104_v49 = vpop.f32.mrb[55].mxu1 }
 0x1fe   : > { %v1510_v34 = vpop.f32.mrb[56].mxu0 }
 0x1ff   : > { %v4524_v43 = vadd.f32 %v1510_v34, %v1336_v40  ;;  %v3147_v9 = vpop.f32.mrb[57].mxu0 }
 0x200   : > { %v1513_v47 = vpop.f32.mrb[58].mxu0  ;;  %v1308_v11 = vpop.f32.mrb[56].mxu1 }
 0x201   : > { %v4526_v39 = vadd.f32 %v1513_v47, %v1337_v54  ;;  %v1338_v16 = vadd.f32 %v1308_v11, %v4491_v20  ;;  %v3148_v51 = vpop.f32.mrb[59].mxu0  ;;  %v3107_v18 = vpop.f32.mrb[57].mxu1 }
 0x202   : > { %v1311_v4 = vpop.f32.mrb[58].mxu1 }
 0x203   : > { %v1339_v3 = vadd.f32 %v1311_v4, %v4493_v30  ;;  %v3108_v31 = vpop.f32.mrb[59].mxu1 }
 0x206   : > { %v1518_v19 = vpop.f32.mrb[60].mxu0 }
 0x207   : > { %v4530_v13 = vadd.f32 %v1518_v19, %v1338_v16  ;;  %v3151_v53 = vpop.f32.mrb[61].mxu0 }
 0x208   : > { %v1521_v12 = vpop.f32.mrb[62].mxu0  ;;  %v1316_v57 = vpop.f32.mrb[60].mxu1 }
 0x209   : > { %v4532_v37 = vadd.f32 %v1521_v12, %v1339_v3  ;;  %v1340_v50 = vadd.f32 %v1316_v57, %v4497_v63  ;;  %v3152_v5 = vpop.f32.mrb[63].mxu0  ;;  %v3111_v10 = vpop.f32.mrb[61].mxu1 }
 0x20a   : > { %v1319_v14 = vpop.f32.mrb[62].mxu1 }
 0x20b   : > { %v1341_v20 = vadd.f32 %v1319_v14, %v4499_v26  ;;  %v3112_v41 = vpop.f32.mrb[63].mxu1 }
 0x20e   : > { %v1526_v17 = vpop.f32.mrb[64].mxu0 }
 0x20f   : > { %v4536_v7 = vadd.f32 %v1526_v17, %v1340_v50  ;;  %v3155_v30 = vpop.f32.mrb[65].mxu0 }
 0x210   : > { %v1529_v58 = vpop.f32.mrb[66].mxu0  ;;  %v1324_v48 = vpop.f32.mrb[64].mxu1 }
 0x211   : > { %v4538_v33 = vadd.f32 %v1529_v58, %v1341_v20  ;;  %v1342_v0 = vadd.f32 %v1324_v48, %v4502_v27  ;;  %v3156_v46 = vpop.f32.mrb[67].mxu0  ;;  %v3115_v44 = vpop.f32.mrb[65].mxu1 }
 0x212   : > { %v1327_v8 = vpop.f32.mrb[66].mxu1 }
 0x213   : > { %v3116_v63 = vpop.f32.mrb[67].mxu1 }
 0x216   : > { %v1534_v55 = vpop.f32.mrb[68].mxu0 }
 0x217   : > { %v4541_v61 = vadd.f32 %v1534_v55, %v1342_v0  ;;  %v3159_v36 = vpop.f32.mrb[69].mxu0 }
 0x218   : > { %v1537_v26 = vpop.f32.mrb[70].mxu0  ;;  %v1675_v15 = vpop.f32.mrb[68].mxu1 }
 0x219   : > { %v3160_v25 = vpop.f32.mrb[71].mxu0  ;;  %v1729_v59 = vadd.f32 %v1675_v15, %v4506_v62  ;;  %v3179_v2 = vpop.f32.mrb[69].mxu1 }
 0x21a   : > { %v1678_v1 = vpop.f32.mrb[70].mxu1 }
 0x21b   : > { %v1730_v56 = vadd.f32 %v1678_v1, %v4508_v24  ;;  %v3180_v32 = vpop.f32.mrb[71].mxu1 }
 0x21e   : > { %v1862_v28 = vpop.f32.mrb[72].mxu0 }
 0x21f   : > { %v4545_v27 = vadd.f32 %v1862_v28, %v1729_v59  ;;  %v3223_v60 = vpop.f32.mrb[73].mxu0 }
 0x220   : > { %v1865_v45 = vpop.f32.mrb[74].mxu0  ;;  %v1683_v38 = vpop.f32.mrb[72].mxu1 }
 0x221   : > { %v4547_v21 = vadd.f32 %v1865_v45, %v1730_v56  ;;  %v1731_v40 = vadd.f32 %v1683_v38, %v4512_v22  ;;  %v3224_v52 = vpop.f32.mrb[75].mxu0  ;;  %v3183_v6 = vpop.f32.mrb[73].mxu1 }
 0x222   : > { %v1686_v29 = vpop.f32.mrb[74].mxu1 }
 0x223   : > { %v1732_v62 = vadd.f32 %v1686_v29, %v4514_v42  ;;  %v3184_v54 = vpop.f32.mrb[75].mxu1 }
 0x226   : > { %v1870_v49 = vpop.f32.mrb[76].mxu0 }
 0x227   : > { %v4551_v34 = vadd.f32 %v1870_v49, %v1731_v40  ;;  %v3227_v24 = vpop.f32.mrb[77].mxu0 }
 0x228   : > { %v1873_v9 = vpop.f32.mrb[78].mxu0  ;;  %v1691_v47 = vpop.f32.mrb[76].mxu1 }
 0x229   : > { %v4553_v11 = vadd.f32 %v1873_v9, %v1732_v62  ;;  %v1733_v16 = vadd.f32 %v1691_v47, %v4518_v23  ;;  %v3228_v51 = vpop.f32.mrb[79].mxu0  ;;  %v3187_v18 = vpop.f32.mrb[77].mxu1 }
 0x22a   : > { %v1694_v4 = vpop.f32.mrb[78].mxu1 }
 0x22b   : > { %v1734_v22 = vadd.f32 %v1694_v4, %v4520_v35  ;;  %v3188_v3 = vpop.f32.mrb[79].mxu1 }
 0x22e   : > { %v1878_v31 = vpop.f32.mrb[80].mxu0 }
 0x22f   : > { %v4557_v19 = vadd.f32 %v1878_v31, %v1733_v16  ;;  %v3231_v42 = vpop.f32.mrb[81].mxu0 }
 0x230   : > { %v1881_v53 = vpop.f32.mrb[82].mxu0  ;;  %v1699_v12 = vpop.f32.mrb[80].mxu1  ;;  %v4587_v42 = vld [vmem:[%s4631_s2] ss:$0 sm:$0xff] }
 0x231   : > { %v4559_v57 = vadd.f32 %v1881_v53, %v1734_v22  ;;  %v1735_v50 = vadd.f32 %v1699_v12, %v4524_v43  ;;  %v3232_v5 = vpop.f32.mrb[83].mxu0  ;;  %v3191_v10 = vpop.f32.mrb[81].mxu1 }
 0x232   : > { %v1702_v14 = vpop.f32.mrb[82].mxu1 }
 0x233   : > { %v1736_v23 = vadd.f32 %v1702_v14, %v4526_v39  ;;  %v3192_v20 = vpop.f32.mrb[83].mxu1 }
 0x236   : > { %v1886_v41 = vpop.f32.mrb[84].mxu0 }
 0x237   : > { %v4563_v17 = vadd.f32 %v1886_v41, %v1735_v50  ;;  %v3235_v35 = vpop.f32.mrb[85].mxu0 }
 0x238   : > { %v1889_v30 = vpop.f32.mrb[86].mxu0  ;;  %v1707_v58 = vpop.f32.mrb[84].mxu1 }
 0x239   : > { %v4565_v48 = vadd.f32 %v1889_v30, %v1736_v23  ;;  %v1737_v0 = vadd.f32 %v1707_v58, %v4530_v13  ;;  %v3236_v46 = vpop.f32.mrb[87].mxu0  ;;  %v3195_v44 = vpop.f32.mrb[85].mxu1 }
 0x23a   : > { %v1710_v8 = vpop.f32.mrb[86].mxu1 }
 0x23b   : > { %v1738_v43 = vadd.f32 %v1710_v8, %v4532_v37  ;;  %v3196_v63 = vpop.f32.mrb[87].mxu1 }
 0x23e   : > { %v1894_v55 = vpop.f32.mrb[88].mxu0 }
 0x23f   : > { %v4569_v36 = vadd.f32 %v1894_v55, %v1737_v0  ;;  %v3239_v39 = vpop.f32.mrb[89].mxu0 }
 0x240   : > { %v1897_v26 = vpop.f32.mrb[90].mxu0  ;;  %v1715_v15 = vpop.f32.mrb[88].mxu1 }
 0x241   : > { %v4571_v25 = vadd.f32 %v1897_v26, %v1738_v43  ;;  %v1739_v59 = vadd.f32 %v1715_v15, %v4536_v7  ;;  %v3240_v2 = vpop.f32.mrb[91].mxu0  ;;  %v3199_v1 = vpop.f32.mrb[89].mxu1 }
 0x242   : > { %v1718_v56 = vpop.f32.mrb[90].mxu1 }
 0x243   : > { %v1740_v13 = vadd.f32 %v1718_v56, %v4538_v33  ;;  %v3200_v32 = vpop.f32.mrb[91].mxu1 }
 0x246   : > { %v1902_v28 = vpop.f32.mrb[92].mxu0 }
 0x247   : > { %v4575_v60 = vadd.f32 %v1902_v28, %v1739_v59  ;;  %v3243_v37 = vpop.f32.mrb[93].mxu0 }
 0x248   : > { %v1905_v45 = vpop.f32.mrb[94].mxu0  ;;  %v1723_v38 = vpop.f32.mrb[92].mxu1 }
 0x249   : > { %v4577_v40 = vadd.f32 %v1905_v45, %v1740_v13  ;;  %v1741_v52 = vadd.f32 %v1723_v38, %v4541_v61  ;;  %v3244_v6 = vpop.f32.mrb[95].mxu0  ;;  %v3203_v29 = vpop.f32.mrb[93].mxu1 }
 0x24a   : > { %v1726_v62 = vpop.f32.mrb[94].mxu1 }
 0x24b   : > { %v3204_v7 = vpop.f32.mrb[95].mxu1 }
 0x24e   : > { %v1910_v54 = vpop.f32.mrb[96].mxu0 }
 0x24f   : > { %v4580_v49 = vadd.f32 %v1910_v54, %v1741_v52  ;;  %v3247_v33 = vpop.f32.mrb[97].mxu0 }
 0x250   : > { %v1913_v24 = vpop.f32.mrb[98].mxu0  ;;  %v2063_v9 = vpop.f32.mrb[96].mxu1 }
 0x251   : > { %v3248_v47 = vpop.f32.mrb[99].mxu0  ;;  %v2117_v16 = vadd.f32 %v2063_v9, %v4545_v27  ;;  %v3267_v51 = vpop.f32.mrb[97].mxu1 }
 0x252   : > { %v2066_v18 = vpop.f32.mrb[98].mxu1 }
 0x253   : > { %v2118_v4 = vadd.f32 %v2066_v18, %v4547_v21  ;;  %v3268_v22 = vpop.f32.mrb[99].mxu1 }
 0x256   : > { %v2250_v61 = vpop.f32.mrb[100].mxu0 }
 0x257   : > { %v2304_v3 = vadd.f32 %v2250_v61, %v2117_v16  ;;  %v3311_v31 = vpop.f32.mrb[101].mxu0 }
 0x258   : > { %v2253_v53 = vpop.f32.mrb[102].mxu0  ;;  %v2071_v12 = vpop.f32.mrb[100].mxu1 }
 0x259   : > { %v2305_v50 = vadd.f32 %v2253_v53, %v2118_v4  ;;  %v2119_v5 = vadd.f32 %v2071_v12, %v4551_v34  ;;  %v3312_v27 = vpop.f32.mrb[103].mxu0  ;;  %v3271_v10 = vpop.f32.mrb[101].mxu1  ;;  %v2324_v21 = vadd.f32 %v4587_v42, %v2304_v3 }
 0x25a   : > { %v2074_v14 = vpop.f32.mrb[102].mxu1 }
 0x25b   : > { %v2325_v23 = vadd.f32 %v4587_v42, %v2305_v50  ;;  %v2120_v20 = vadd.f32 %v2074_v14, %v4553_v11  ;;  %v3272_v41 = vpop.f32.mrb[103].mxu1 }
 0x25d   : > { %v2767_v35 = vpack.c.bf16 %v2325_v23, %v2324_v21 }
 0x25e   : > { %v2258_v30 = vpop.f32.mrb[104].mxu0 }
 0x25f   : > { %2768 = vst [vmem:[%s4597_s14] sm:$0xff] %v2767_v35   ;;  %v2306_v34 = vadd.f32 %v2258_v30, %v2119_v5  ;;  %v3315_v58 = vpop.f32.mrb[105].mxu0 }
 0x260   : > { %v2261_v0 = vpop.f32.mrb[106].mxu0  ;;  %v2079_v46 = vpop.f32.mrb[104].mxu1 }
 0x261   : > { %v2307_v44 = vadd.f32 %v2261_v0, %v2120_v20  ;;  %v2121_v8 = vadd.f32 %v2079_v46, %v4557_v19  ;;  %v3316_v43 = vpop.f32.mrb[107].mxu0  ;;  %v3275_v11 = vpop.f32.mrb[105].mxu1  ;;  %v2326_v55 = vadd.f32 %v4587_v42, %v2306_v34 }
 0x262   : > { %v2082_v63 = vpop.f32.mrb[106].mxu1 }
 0x263   : > { %v2327_v39 = vadd.f32 %v4587_v42, %v2307_v44  ;;  %v2122_v26 = vadd.f32 %v2082_v63, %v4559_v57  ;;  %v3276_v15 = vpop.f32.mrb[107].mxu1 }
 0x265   : > { %v2772_v59 = vpack.c.bf16 %v2327_v39, %v2326_v55 }
 0x266   : > { %v2266_v2 = vpop.f32.mrb[108].mxu0 }
 0x267   : > { %2801 = vst [vmem:[%s4597_s14 + $0x8] sm:$0xff] %v2772_v59   ;;  %v2308_v1 = vadd.f32 %v2266_v2, %v2121_v8  ;;  %v3319_v56 = vpop.f32.mrb[109].mxu0 }
 0x268   : > { %v2269_v13 = vpop.f32.mrb[110].mxu0  ;;  %v2087_v32 = vpop.f32.mrb[108].mxu1 }
 0x269   : > { %v2309_v28 = vadd.f32 %v2269_v13, %v2122_v26  ;;  %v2123_v19 = vadd.f32 %v2087_v32, %v4563_v17  ;;  %v3320_v37 = vpop.f32.mrb[111].mxu0  ;;  %v3279_v45 = vpop.f32.mrb[109].mxu1  ;;  %v2328_v52 = vadd.f32 %v4587_v42, %v2308_v1 }
 0x26a   : > { %v2090_v38 = vpop.f32.mrb[110].mxu1 }
 0x26b   : > { %v2329_v6 = vadd.f32 %v4587_v42, %v2309_v28  ;;  %v2124_v57 = vadd.f32 %v2090_v38, %v4565_v48  ;;  %v3280_v29 = vpop.f32.mrb[111].mxu1 }
 0x26d   : > { %v2777_v62 = vpack.c.bf16 %v2329_v6, %v2328_v52 }
 0x26e   : > { %v2274_v7 = vpop.f32.mrb[112].mxu0 }
 0x26f   : > { %2802 = vst [vmem:[%s4597_s14 + $0x10] sm:$0xff] %v2777_v62   ;;  %v2310_v54 = vadd.f32 %v2274_v7, %v2123_v19  ;;  %v3323_v33 = vpop.f32.mrb[113].mxu0 }
 0x270   : > { %v2277_v24 = vpop.f32.mrb[114].mxu0  ;;  %v2095_v9 = vpop.f32.mrb[112].mxu1 }
 0x271   : > { %v2311_v47 = vadd.f32 %v2277_v24, %v2124_v57  ;;  %v2125_v17 = vadd.f32 %v2095_v9, %v4569_v36  ;;  %v3324_v16 = vpop.f32.mrb[115].mxu0  ;;  %v3283_v51 = vpop.f32.mrb[113].mxu1  ;;  %v2330_v4 = vadd.f32 %v4587_v42, %v2310_v54 }
 0x272   : > { %v2098_v18 = vpop.f32.mrb[114].mxu1 }
 0x273   : > { %v2331_v22 = vadd.f32 %v4587_v42, %v2311_v47  ;;  %v2126_v48 = vadd.f32 %v2098_v18, %v4571_v25  ;;  %v3284_v61 = vpop.f32.mrb[115].mxu1 }
 0x275   : > { %v2782_v3 = vpack.c.bf16 %v2331_v22, %v2330_v4 }
 0x276   : > { %v2282_v31 = vpop.f32.mrb[116].mxu0 }
 0x277   : > { %2803 = vst [vmem:[%s4597_s14 + $0x18] sm:$0xff] %v2782_v3   ;;  %v2312_v53 = vadd.f32 %v2282_v31, %v2125_v17  ;;  %v3327_v12 = vpop.f32.mrb[117].mxu0 }
 0x278   : > { %v2285_v50 = vpop.f32.mrb[118].mxu0  ;;  %v2103_v5 = vpop.f32.mrb[116].mxu1 }
 0x279   : > { %v2313_v27 = vadd.f32 %v2285_v50, %v2126_v48  ;;  %v2127_v36 = vadd.f32 %v2103_v5, %v4575_v60  ;;  %v3328_v10 = vpop.f32.mrb[119].mxu0  ;;  %v3287_v14 = vpop.f32.mrb[117].mxu1  ;;  %v2332_v23 = vadd.f32 %v4587_v42, %v2312_v53 }
 0x27a   : > { %v2106_v21 = vpop.f32.mrb[118].mxu1 }
 0x27b   : > { %v2333_v20 = vadd.f32 %v4587_v42, %v2313_v27  ;;  %v2128_v25 = vadd.f32 %v2106_v21, %v4577_v40  ;;  %v3288_v41 = vpop.f32.mrb[119].mxu1 }
 0x27d   : > { %v2787_v35 = vpack.c.bf16 %v2333_v20, %v2332_v23 }
 0x27e   : > { %v2290_v30 = vpop.f32.mrb[120].mxu0 }
 0x27f   : > { %2804 = vst [vmem:[%s4597_s14 + $0x20] sm:$0xff] %v2787_v35   ;;  %v2314_v34 = vadd.f32 %v2290_v30, %v2127_v36  ;;  %v3331_v58 = vpop.f32.mrb[121].mxu0 }
 0x280   : > { %v2293_v0 = vpop.f32.mrb[122].mxu0  ;;  %v2111_v46 = vpop.f32.mrb[120].mxu1 }
 0x281   : > { %v2315_v44 = vadd.f32 %v2293_v0, %v2128_v25  ;;  %v2129_v60 = vadd.f32 %v2111_v46, %v4580_v49  ;;  %v3332_v8 = vpop.f32.mrb[123].mxu0  ;;  %v3291_v43 = vpop.f32.mrb[121].mxu1  ;;  %v2334_v63 = vadd.f32 %v4587_v42, %v2314_v34 }
 0x282   : > { %v2114_v11 = vpop.f32.mrb[122].mxu1 }
 0x283   : > { %v2335_v40 = vadd.f32 %v4587_v42, %v2315_v44  ;;  %v3292_v55 = vpop.f32.mrb[123].mxu1 }
 0x285   : > { %v2792_v39 = vpack.c.bf16 %v2335_v40, %v2334_v63 }
 0x286   : > { %v2298_v26 = vpop.f32.mrb[124].mxu0 }
 0x287   : > { %2805 = vst [vmem:[%s4597_s14 + $0x28] sm:$0xff] %v2792_v39   ;;  %v2316_v15 = vadd.f32 %v2298_v26, %v2129_v60  ;;  %v3335_v59 = vpop.f32.mrb[125].mxu0 }
 0x288   : > { %v2301_v2 = vpop.f32.mrb[126].mxu0 }
 0x289   : > { %v2336_v1 = vadd.f32 %v4587_v42, %v2316_v15  ;;  %v3336_v56 = vpop.f32.mrb[127].mxu0 }
 0x28b   : > { %v2731_v13 = vpack.c.bf16 %v2336_v1, %v2336_v1 }
 0x28d   : > { %2402 = vst [vmem:[%s4597_s14 + $0x30] sm:$0xf] %v2731_v13 }
 0x28e PF: > { %s16_s21 = sadd.s32 1, %s3509_s21  }
 0x28f   : > { %p13_p4 = scmp.ge.s32.totalorder %s16_s21, 6  }
 0x291   :  { %15 = sbr.rel (!%p13_p4) target bundleno = 1 (0x1), region = 88 }

// kernel: sd_featurizer_forward.30
= control target key start
LH: loop header
LB: loop body
LE: loop exit
PB: predicated region body
PF: predicated region fallthrough
CT: control target
= control target key end

     0   :  { %s803_s1 = inlined_call_operand.vmem [shape: bf16[384,128], index: 1, kind: input, shape index: {}]   ;;  %s804_s0 = inlined_call_operand.vmem [shape: bf16[64,384], index: 0, kind: input, shape index: {}]   ;;  %s805_s2 = inlined_call_operand.vmem [shape: f32[1,128], index: 2, kind: input, shape index: {}]   ;;  %s806_s3 = inlined_call_operand.vmem [shape: bf16[64,128], index: 3, kind: output, shape index: {}]  }
   0x1   :  { %v620_v0 = vld [vmem:[%s803_s1 + $0x40] sm:$0xff]   ;;  %v622_v2 = vld [vmem:[%s803_s1 + $0x48] sm:$0xff]   ;;  %v625_v5 = vld [vmem:[%s803_s1 + $0x50] sm:$0xff]  }
   0x2   :  { %v621_v1 = vld [vmem:[%s803_s1] sm:$0xff]   ;;  %544 = vmatprep.subr.bf16.mxu0 %v620_v0  ;;  %v624_v4 = vld [vmem:[%s803_s1 + $0x8] sm:$0xff]   ;;  %v627_v7 = vld [vmem:[%s803_s1 + $0x10] sm:$0xff]  }
   0x3   :  { %545 = vmatpush3.bf16.msra.mxu0 %v621_v1  ;;  %v623_v3 = vld [vmem:[%s803_s1 + $0x80] sm:$0xff]   ;;  %v626_v6 = vld [vmem:[%s803_s1 + $0x88] sm:$0xff]   ;;  %v628_v8 = vld [vmem:[%s803_s1 + $0x58] sm:$0xff]  }
   0x4   :  { %546 = vmatprep.subr.bf16.mxu0 %v622_v2  ;;  %596 = vmatprep.subr.bf16.mxu1 %v623_v3  ;;  %v629_v9 = vld [vmem:[%s803_s1 + $0x90] sm:$0xff]   ;;  %v630_v10 = vld [vmem:[%s803_s1 + $0x18] sm:$0xff]   ;;  %v631_v11 = vld [vmem:[%s803_s1 + $0x60] sm:$0xff]  }
   0x5   :  { %597 = vmatpush3.bf16.msra.mxu1 %v623_v3  ;;  %v632_v12 = vld [vmem:[%s803_s1 + $0x98] sm:$0xff]   ;;  %v633_v13 = vld [vmem:[%s803_s1 + $0x20] sm:$0xff]   ;;  %v634_v15 = vld [vmem:[%s803_s1 + $0x68] sm:$0xff]  }
   0x6   :  { %598 = vmatprep.subr.bf16.mxu1 %v626_v6  ;;  %v635_v14 = vld [vmem:[%s803_s1 + $0xa0] sm:$0xff]   ;;  %v636_v16 = vld [vmem:[%s803_s1 + $0x28] sm:$0xff]   ;;  %v637_v18 = vld [vmem:[%s803_s1 + $0x70] sm:$0xff]  }
   0x7   :  { %547 = vmatpush3.bf16.msra.mxu0 %v624_v4  ;;  %v638_v17 = vld [vmem:[%s803_s1 + $0xa8] sm:$0xff]   ;;  %v639_v19 = vld [vmem:[%s803_s1 + $0x30] sm:$0xff]   ;;  %v640_v20 = vld [vmem:[%s803_s1 + $0x78] sm:$0xff]  }
   0x8   :  { %548 = vmatprep.subr.bf16.mxu0 %v625_v5  ;;  %v641_v21 = vld [vmem:[%s803_s1 + $0xb0] sm:$0xff]   ;;  %v642_v23 = vld [vmem:[%s803_s1 + $0x38] sm:$0xff]   ;;  %v643_v26 = vld [vmem:[%s804_s0] ss:$12 sps:$4 sm:$0xff]  }
   0x9   :  { %599 = vmatpush3.bf16.msra.mxu1 %v626_v6  ;;  %v645_v22 = vld [vmem:[%s804_s0 + $0x4] ss:$12 sps:$4 sm:$0xff]   ;;  %v647_v24 = vld [vmem:[%s804_s0 + $0x8] ss:$12 sps:$4 sm:$0xff]   ;;  %v646_v25 = vld [vmem:[%s803_s1 + $0xb8] sm:$0xff]  }
   0xa   :  { %600 = vmatprep.subr.bf16.mxu1 %v629_v9  ;;  %326 = vmatprep.mubr.bf16.mxu0 %v645_v22  ;;  %v649_v27 = vld [vmem:[%s804_s0 + $0x1c] ss:$12 sps:$4 sm:$0xff]   ;;  %v648_v28 = vld [vmem:[%s804_s0 + $0x20] ss:$12 sps:$4 sm:$0xff]   ;;  %v655_v29 = vld [vmem:[%s804_s0 + $0x38] ss:$12 sps:$4 sm:$0xff]  }
   0xb   :  { %549 = vmatpush3.bf16.msra.mxu0 %v627_v7  ;;  %612 = vmatprep.mubr.bf16.mxu1 %v647_v24  ;;  %v651_v30 = vld [vmem:[%s804_s0 + $0x18] ss:$12 sps:$4 sm:$0xff]   ;;  %v652_v31 = vld [vmem:[%s804_s0 + $0x34] ss:$12 sps:$4 sm:$0xff]   ;;  %v656_v32 = vld [vmem:[%s804_s0 + $0x50] ss:$12 sps:$4 sm:$0xff]  }
   0xc   :  { %550 = vmatprep.subr.bf16.mxu0 %v628_v8  ;;  %v654_v33 = vld [vmem:[%s804_s0 + $0x30] ss:$12 sps:$4 sm:$0xff]   ;;  %v657_v34 = vld [vmem:[%s804_s0 + $0x4c] ss:$12 sps:$4 sm:$0xff]   ;;  %v659_v35 = vld [vmem:[%s804_s0 + $0x48] ss:$12 sps:$4 sm:$0xff]  }
   0xd   :  { %601 = vmatpush3.bf16.msra.mxu1 %v629_v9  ;;  %v468_v38 = vld [vmem:[%s805_s2] ss:$0 sm:$0xff] }
   0xe   :  { %602 = vmatprep.subr.bf16.mxu1 %v632_v12 }
   0xf   :  { %551 = vmatpush3.bf16.msra.mxu0 %v630_v10 }
  0x10   :  { %552 = vmatprep.subr.bf16.mxu0 %v631_v11 }
  0x11   :  { %603 = vmatpush3.bf16.msra.mxu1 %v632_v12 }
  0x12   :  { %604 = vmatprep.subr.bf16.mxu1 %v635_v14 }
  0x13   :  { %553 = vmatpush3.bf16.msra.mxu0 %v633_v13 }
  0x14   :  { %554 = vmatprep.subr.bf16.mxu0 %v634_v15 }
  0x15   :  { %605 = vmatpush3.bf16.msra.mxu1 %v635_v14 }
  0x16   :  { %606 = vmatprep.subr.bf16.mxu1 %v638_v17 }
  0x17   :  { %555 = vmatpush3.bf16.msra.mxu0 %v636_v16 }
  0x18   :  { %556 = vmatprep.subr.bf16.mxu0 %v637_v18 }
  0x19   :  { %607 = vmatpush3.bf16.msra.mxu1 %v638_v17 }
  0x1a   :  { %608 = vmatprep.subr.bf16.mxu1 %v641_v21 }
  0x1b   :  { %557 = vmatpush3.bf16.msra.mxu0 %v639_v19 }
  0x1c   :  { %558 = vmatprep.subr.bf16.mxu0 %v640_v20 }
  0x1d   :  { %609 = vmatpush3.bf16.msra.mxu1 %v641_v21 }
  0x1e   :  { %610 = vmatprep.subr.bf16.mxu1 %v646_v25 }
  0x1f   :  { %559 = vmatpush3.bf16.msra.mxu0 %v642_v23 }
  0x21   :  { %611 = vmatpush3.bf16.msra.mxu1 %v646_v25 }
  0x22   :  { %327 = vmatmul.mubr.bf16.vlgmr.msra.gmra.mrb[0].mxu0 %v643_v26 }
  0x23   :  { %334 = vmatprep.mubr.bf16.mxu0 %v649_v27 }
  0x24   :  { %613 = vmatmul.mubr.bf16.vlgmr.msra.gmra.mrb[0].mxu1 %v648_v28 }
  0x25   :  { %616 = vmatprep.mubr.bf16.mxu1 %v655_v29 }
  0x2a   :  { %335 = vmatmul.mubr.bf16.gmra.mrb[4].mxu0 %v651_v30 }
  0x2b   :  { %342 = vmatprep.mubr.bf16.mxu0 %v652_v31 }
  0x2c   :  { %617 = vmatmul.mubr.bf16.gmra.mrb[4].mxu1 %v656_v32 }
  0x32   :  { %343 = vmatmul.mubr.bf16.gmra.mrb[8].mxu0 %v654_v33 }
  0x33   :  { %350 = vmatprep.mubr.bf16.mxu0 %v657_v34 }
  0x3a   :  { %351 = vmatmul.mubr.bf16.gmra.mrb[12].mxu0 %v659_v35 }
  0xf5   :  { %v560_v36 = vpop.f32.mrb[0].mxu0 }
  0xf6   :  { %v561_v37 = vpop.f32.mrb[1].mxu0 }
  0xf7   :  { %v562_v39 = vadd.f32 %v561_v37, %v560_v36  ;;  %v563_v40 = vpop.f32.mrb[2].mxu0  ;;  %v614_v42 = vpop.f32.mrb[0].mxu1 }
  0xf8   :  { %v564_v41 = vpop.f32.mrb[3].mxu0  ;;  %v393_v45 = vpop.f32.mrb[1].mxu1 }
  0xf9   :  { %v565_v43 = vadd.f32 %v564_v41, %v563_v40  ;;  %v329_v44 = vadd.f32 %v562_v39, %v468_v38  ;;  %v615_v46 = vpop.f32.mrb[2].mxu1 }
  0xfa   :  { %v396_v49 = vpop.f32.mrb[3].mxu1 }
  0xfb   :  { %v394_v47 = vadd.f32 %v393_v45, %v329_v44  ;;  %v332_v48 = vadd.f32 %v565_v43, %v468_v38 }
  0xfd   :  { %v397_v50 = vadd.f32 %v396_v49, %v332_v48  ;;  %v566_v51 = vpop.f32.mrb[4].mxu0 }
  0xfe   :  { %v567_v52 = vpop.f32.mrb[5].mxu0 }
  0xff   :  { %v524_v53 = vpack.c.bf16 %v397_v50, %v394_v47  ;;  %v568_v54 = vadd.f32 %v567_v52, %v566_v51  ;;  %v569_v55 = vpop.f32.mrb[6].mxu0  ;;  %v618_v57 = vpop.f32.mrb[4].mxu1 }
 0x100   :  { %v570_v56 = vpop.f32.mrb[7].mxu0  ;;  %v409_v60 = vpop.f32.mrb[5].mxu1 }
 0x101   :  { %525 = vst [vmem:[%s806_s3] sm:$0xff] %v524_v53   ;;  %v337_v58 = vadd.f32 %v568_v54, %v468_v38  ;;  %v571_v59 = vadd.f32 %v570_v56, %v569_v55  ;;  %v619_v61 = vpop.f32.mrb[6].mxu1 }
 0x102   :  { %v412_v0 = vpop.f32.mrb[7].mxu1 }
 0x103   :  { %v402_v62 = vadd.f32 %v614_v42, %v337_v58  ;;  %v340_v63 = vadd.f32 %v571_v59, %v468_v38 }
 0x105   :  { %v405_v1 = vadd.f32 %v615_v46, %v340_v63  ;;  %v572_v2 = vpop.f32.mrb[8].mxu0 }
 0x106   :  { %v573_v3 = vpop.f32.mrb[9].mxu0 }
 0x107   :  { %v529_v4 = vpack.c.bf16 %v405_v1, %v402_v62  ;;  %v574_v5 = vadd.f32 %v573_v3, %v572_v2  ;;  %v575_v6 = vpop.f32.mrb[10].mxu0 }
 0x108   :  { %v576_v7 = vpop.f32.mrb[11].mxu0 }
 0x109   :  { %541 = vst [vmem:[%s806_s3 + $0x8] sm:$0xff] %v529_v4   ;;  %v577_v8 = vadd.f32 %v576_v7, %v575_v6  ;;  %v345_v9 = vadd.f32 %v574_v5, %v468_v38 }
 0x10b   :  { %v410_v10 = vadd.f32 %v409_v60, %v345_v9  ;;  %v348_v11 = vadd.f32 %v577_v8, %v468_v38 }
 0x10d   :  { %v413_v12 = vadd.f32 %v412_v0, %v348_v11  ;;  %v578_v13 = vpop.f32.mrb[12].mxu0 }
 0x10e   :  { %v579_v14 = vpop.f32.mrb[13].mxu0 }
 0x10f   :  { %v534_v15 = vpack.c.bf16 %v413_v12, %v410_v10  ;;  %v580_v16 = vadd.f32 %v579_v14, %v578_v13  ;;  %v581_v17 = vpop.f32.mrb[14].mxu0 }
 0x110   :  { %v582_v18 = vpop.f32.mrb[15].mxu0 }
 0x111   :  { %542 = vst [vmem:[%s806_s3 + $0x10] sm:$0xff] %v534_v15   ;;  %v353_v19 = vadd.f32 %v580_v16, %v468_v38  ;;  %v583_v20 = vadd.f32 %v582_v18, %v581_v17 }
 0x113   :  { %v418_v21 = vadd.f32 %v618_v57, %v353_v19  ;;  %v356_v22 = vadd.f32 %v583_v20, %v468_v38 }
 0x115   :  { %v421_v23 = vadd.f32 %v619_v61, %v356_v22 }
 0x117   :  { %v539_v24 = vpack.c.bf16 %v421_v23, %v418_v21 }
 0x119   :  { %543 = vst [vmem:[%s806_s3 + $0x18] sm:$0xff] %v539_v24  }

// kernel: sd_featurizer_forward.31
= control target key start
LH: loop header
LB: loop body
LE: loop exit
PB: predicated region body
PF: predicated region fallthrough
CT: control target
= control target key end

     0   :  { %s2560_s21 = smov 0   ;;  %s3100_s0 = inlined_call_operand.vmem [shape: bf16[4,56,128], index: 0, kind: input, shape index: {}]   ;;  %s3101_s1 = inlined_call_operand.vmem [shape: bf16[9,128,128], index: 1, kind: input, shape index: {}]   ;;  %s3102_s2 = inlined_call_operand.vmem [shape: f32[1,128], index: 2, kind: input, shape index: {}]   ;;  %s3103_s3 = inlined_call_operand.vmem [shape: f32[4,1,128], index: 3, kind: input, shape index: {}]   ;;  %s3104_s4 = inlined_call_operand.vmem [shape: f32[4,1,128], index: 4, kind: input, shape index: {}]   ;;  %s3105_s5 = inlined_call_operand.vmem [shape: f32[56,1], index: 5, kind: input, shape index: {}]   ;;  %s3106_s6 = inlined_call_operand.vmem [shape: bf16[4,40,128], index: 6, kind: output, shape index: {}]  }
   0x1 LB: > { %s1778_s22 = sadd.s32 4294967295, %s2520_s21   ;;  %p1782_p0 = scmp.ge.s32.totalorder %s2520_s21, 1  ;;  %s2520_s21 = sphi %s2560_s21, %s16_s21  }
   0x2   : > { %p228_p1 = scmp.lt.s32.totalorder %s2520_s21, 5 }
   0x4   : > { %p229_p2 = pnand %p1782_p0, %p228_p1 }
   0x5   : > { %v325_v0 = vld [vmem:[%s3105_s5 + $0x10] sm:$0xff] (!%p229_p2)  ;;  %v323_v1 = vld [vmem:[%s3105_s5] sm:$0xff] (!%p229_p2)  ;;  %p264_p3 = scmp.lt.s32.totalorder (!%p229_p2), %s1778_s22, 3  ;;  %v2522_v2 = vmov (!%p229_p2), 0   ;;  %v326_v3 = vld [vmem:[%s3105_s5 + $0x18] sm:$0xff] (!%p229_p2)  ;;  %v2523_v8 = vmov (!%p229_p2), 0.0  }
   0x6   : > { %232 = sbr.rel (%p229_p2) target bundleno = 528 (0x210), region = 44  ;;  %2413 = vset.pattern.permute.xlu1 (!%p229_p2), %v2522_v2  ;;  %2412 = vset.pattern.permute.xlu0 (!%p229_p2), %v2522_v2  ;;  %v324_v4 = vld [vmem:[%s3105_s5 + $0x8] sm:$0xff] (!%p229_p2)  ;;  %v2414_v5 = vld [vmem:[%s3101_s1] sm:$0xff] (!%p229_p2)   ;;  %v329_v11 = vld [vmem:[%s3105_s5 + $0x30] sm:$0xff] (!%p229_p2)  ;;  %vm2524_vm0 = vmmov (!%p229_p2), 0   ;;  %vm1260_vm2 = vcmask (!%p229_p2), 1041408  }
   0x7   : > { %342 = vperm.xlu1 (!%p229_p2), %2413, %v325_v0   ;;  %332 = vperm.xlu0 (!%p229_p2), %2412, %v323_v1   ;;  %v328_v6 = vld [vmem:[%s3105_s5 + $0x28] sm:$0xff] (!%p229_p2)  ;;  %v327_v7 = vld [vmem:[%s3105_s5 + $0x20] sm:$0xff] (!%p229_p2)  ;;  %v2417_v18 = vld [vmem:[%s3101_s1 + $0x10] sm:$0xff] (!%p229_p2)   ;;  %vm458_vm1 = vsmask.f32 (!%p229_p2), 7424  ;;  %vm1547_vm3 = vcmask (!%p229_p2), 1040384  }
   0x8   : > { %2159 = vmatprep.subr.bf16.mxu1 (!%p229_p2), %v2523_v8  ;;  %2131 = vmatprep.subr.bf16.mxu0 (!%p229_p2), %v2523_v8  ;;  %v2415_v12 = vld [vmem:[%s3101_s1 + $0x8] sm:$0xff] (!%p229_p2)   ;;  %v2416_v16 = vld [vmem:[%s3101_s1 + $0x40] sm:$0xff] (!%p229_p2)   ;;  %v2419_v20 = vld [vmem:[%s3101_s1 + $0x18] sm:$0xff] (!%p229_p2)   ;;  %vm1397_vm4 = vsmask.f32 (!%p229_p2), 1280  ;;  %vm848_vm5 = vcmask (!%p229_p2), 1044480  }
   0x9   : > { %2160 = vmatpush3.bf16.msra.mxu1 (!%p229_p2), %v2414_v5  ;;  %2132 = vmatpush3.bf16.msra.mxu0 (!%p229_p2), %v2416_v16  ;;  %v2418_v19 = vld [vmem:[%s3101_s1 + $0x48] sm:$0xff] (!%p229_p2)   ;;  %v2420_v21 = vld [vmem:[%s3101_s1 + $0x50] sm:$0xff] (!%p229_p2)   ;;  %v2421_v22 = vld [vmem:[%s3101_s1 + $0x20] sm:$0xff] (!%p229_p2)   ;;  %vm713_vm6 = vcmask (!%p229_p2), 1046528   ;;  %vm1124_vm7 = vcmask (!%p229_p2), 1043456  }
   0xa   : > { %2161 = vmatprep.subr.bf16.mxu1 (!%p229_p2), %v2523_v8  ;;  %2133 = vmatprep.subr.bf16.mxu0 (!%p229_p2), %v2523_v8  ;;  %v2422_v23 = vld [vmem:[%s3101_s1 + $0x58] sm:$0xff] (!%p229_p2)   ;;  %v2423_v24 = vld [vmem:[%s3101_s1 + $0x28] sm:$0xff] (!%p229_p2)   ;;  %v2424_v25 = vld [vmem:[%s3101_s1 + $0x60] sm:$0xff] (!%p229_p2)   ;;  %vm983_vm8 = vsmask.f32 (!%p229_p2), 4352 }
   0xb   : > { %347 = vperm.xlu1 (!%p229_p2), %2413, %v326_v3   ;;  %337 = vperm.xlu0 (!%p229_p2), %2412, %v324_v4   ;;  %v2425_v26 = vld [vmem:[%s3101_s1 + $0x30] sm:$0xff] (!%p229_p2)   ;;  %v2426_v27 = vld [vmem:[%s3101_s1 + $0x68] sm:$0xff] (!%p229_p2)   ;;  %v2427_v28 = vld [vmem:[%s3101_s1 + $0x38] sm:$0xff] (!%p229_p2)  }
   0xc   : > { %v2428_v29 = vld [vmem:[%s3101_s1 + $0x70] sm:$0xff] (!%p229_p2)   ;;  %2175 = vmatprep.mubr.msk.bf16.mxu1 (!%p229_p2), %vm2524_vm0, %v2523_v8  ;;  %2147 = vmatprep.mubr.msk.bf16.mxu0 (!%p229_p2), %vm2524_vm0, %v2523_v8  ;;  %v2430_v30 = vld [vmem:[%s3101_s1 + $0x78] sm:$0xff] (!%p229_p2)  }
   0xd   : > { %s3108_s22 = smov (!%p264_p3, %s1778_s22), 3  ;;  %2162 = vmatpush3.bf16.msra.mxu1 %v2415_v12  ;;  %2134 = vmatpush3.bf16.msra.mxu0 %v2418_v19 }
   0xe   : > { %s2399_s7 = smul.u32 28, %s3108_s22  ;;  %s271_s10 = scalar_lea.vmem %s3103_s3, %s3108_s22  ;;  %2163 = vmatprep.subr.bf16.mxu1 %v2523_v8  ;;  %2135 = vmatprep.subr.bf16.mxu0 %v2523_v8 }
   0xf   : > { %s274_s24 = scalar_lea.vmem %s3104_s4, %s3108_s22  ;;  %v2607_v9 = vld [vmem:[%s271_s10] ss:$0 sm:$0xff]  ;;  %357 = vperm.xlu1 %2413, %v328_v6   ;;  %352 = vperm.xlu0 %2412, %v327_v7   ;;  %s2400_s15 = smul.u32 20, %s3108_s22 }
  0x10   : > { %s2599_s19 = scalar_lea.vmem %s3100_s0, %s2399_s7  ;;  %v2617_v14 = vld [vmem:[%s274_s24] ss:$0 sm:$0xff] }
  0x11   : > { %v287_v10 = vld [vmem:[%s2599_s19 + $0x18] sm:$0xf]  ;;  %2164 = vmatpush3.bf16.msra.mxu1 %v2417_v18  ;;  %2136 = vmatpush3.bf16.msra.mxu0 %v2420_v21  ;;  %v2029_v31 = vld [vmem:[%s2599_s19 + $0x8] sm:$0xff]   ;;  %v2008_v32 = vld [vmem:[%s2599_s19] sm:$0xff]   ;;  %s279_s18 = scalar_lea.vmem %s3106_s6, %s2400_s15 }
  0x12   : > { %v294_v13 = vunpack.c.l.bf16 %v287_v10  ;;  %2165 = vmatprep.subr.bf16.mxu1 %v2523_v8  ;;  %2137 = vmatprep.subr.bf16.mxu0 %v2523_v8  ;;  %v2013_v33 = vunpack.c.l.bf16 %v2029_v31  ;;  %v2009_v34 = vunpack.c.l.bf16 %v2008_v32  ;;  %v2014_v37 = vunpack.c.h.bf16 %v2029_v31  ;;  %v2030_v39 = vld [vmem:[%s2599_s19 + $0x10] sm:$0xff]  }
  0x13   : > { %362 = vperm.xlu0 %2412, %v329_v11   ;;  %v2010_v38 = vunpack.c.h.bf16 %v2008_v32  ;;  %v2018_v40 = vunpack.c.h.bf16 %v2030_v39  ;;  %v2017_v41 = vunpack.c.l.bf16 %v2030_v39 }
  0x14   : > { %v308_v15 = vmul.f32 %v2607_v9, %v294_v13  ;;  %v304_v35 = vmul.f32 %v2013_v33, %v2607_v9  ;;  %v302_v36 = vmul.f32 %v2009_v34, %v2607_v9  ;;  %v305_v44 = vmul.f32 %v2014_v37, %v2607_v9  ;;  %v2429_v33 = vld [vmem:[%s3101_s1 + $0xc0] sm:$0xff]  }
  0x15   : > { %2166 = vmatpush3.bf16.msra.mxu1 %v2419_v20  ;;  %2138 = vmatpush3.bf16.msra.mxu0 %v2422_v23  ;;  %v303_v45 = vmul.f32 %v2010_v38, %v2607_v9  ;;  %v307_v48 = vmul.f32 %v2018_v40, %v2607_v9  ;;  %v306_v49 = vmul.f32 %v2017_v41, %v2607_v9  ;;  %v2431_v41 = vld [vmem:[%s3101_s1 + $0xc8] sm:$0xff]  }
  0x16   : > { %v2625_v17 = vadd.f32 %v2617_v14, %v308_v15  ;;  %2167 = vmatprep.subr.bf16.mxu1 %v2523_v8  ;;  %2139 = vmatprep.subr.bf16.mxu0 %v2523_v8  ;;  %v318_v42 = vadd.f32 %v2617_v14, %v304_v35  ;;  %v316_v43 = vadd.f32 %v2617_v14, %v302_v36 }
  0x17   : > { %v319_v52 = vadd.f32 %v2617_v14, %v305_v44  ;;  %v317_v53 = vadd.f32 %v2617_v14, %v303_v45  ;;  %v321_v58 = vadd.f32 %v2617_v14, %v307_v48  ;;  %v320_v61 = vadd.f32 %v2617_v14, %v306_v49  ;;  %v2432_v48 = vld [vmem:[%s3101_s1 + $0x80] sm:$0xff]  }
  0x19   : > { %2168 = vmatpush3.bf16.msra.mxu1 %v2421_v22  ;;  %2140 = vmatpush3.bf16.msra.mxu0 %v2424_v25 }
  0x1a   : > { %2169 = vmatprep.subr.bf16.mxu1 %v2523_v8  ;;  %2141 = vmatprep.subr.bf16.mxu0 %v2523_v8 }
  0x1d   : > { %2170 = vmatpush3.bf16.msra.mxu1 %v2423_v24  ;;  %2142 = vmatpush3.bf16.msra.mxu0 %v2426_v27 }
  0x1e   : > { %2171 = vmatprep.subr.bf16.mxu1 %v2523_v8  ;;  %2143 = vmatprep.subr.bf16.mxu0 %v2523_v8 }
  0x21   : > { %2172 = vmatpush3.bf16.msra.mxu1 %v2425_v26  ;;  %2144 = vmatpush3.bf16.msra.mxu0 %v2428_v29 }
  0x22   : > { %2173 = vmatprep.subr.bf16.mxu1 %v2523_v8  ;;  %2145 = vmatprep.subr.bf16.mxu0 %v2523_v8 }
  0x25   : > { %2174 = vmatpush3.bf16.msra.mxu1 %v2427_v28  ;;  %2146 = vmatpush3.bf16.msra.mxu0 %v2430_v30 }
  0x26   : > { %2215 = vmatprep.subr.bf16.mxu1 %v2523_v8  ;;  %2187 = vmatprep.subr.bf16.mxu0 %v2523_v8 }
  0x86   : > { %v343_v46 = vpop.permute.xlu1 %342  ;;  %v333_v47 = vpop.permute.xlu0 %332 }
  0x87   : > { %v367_v50 = vmul.f32 %v343_v46, %v318_v42  ;;  %v365_v51 = vmul.f32 %v333_v47, %v316_v43 }
  0x89   : > { %v1789_v54 = vmul.f32 -1.442695, %v367_v50  ;;  %v1787_v55 = vmul.f32 -1.442695, %v365_v51 }
  0x8a   : > { %v348_v56 = vpop.permute.xlu1 %347  ;;  %v338_v57 = vpop.permute.xlu0 %337 }
  0x8b   : > { %2486 = vpow2.f32 %v1789_v54  ;;  %v368_v59 = vmul.f32 %v348_v56, %v319_v52  ;;  %v366_v60 = vmul.f32 %v338_v57, %v317_v53 }
  0x8c   : > { %2488 = vpow2.f32 %v1787_v55  ;;  %v2434_v55 = vld [vmem:[%s3101_s1 + $0x88] sm:$0xff]  }
  0x8d   : > { %v1790_v62 = vmul.f32 -1.442695, %v368_v59  ;;  %v1788_v63 = vmul.f32 -1.442695, %v366_v60 }
  0x8e   : > { %v358_v0 = vpop.permute.xlu1 %357  ;;  %v353_v1 = vpop.permute.xlu0 %352 }
  0x8f   : > { %2490 = vpow2.f32 %v1790_v62  ;;  %v370_v2 = vmul.f32 %v358_v0, %v321_v58  ;;  %v369_v3 = vmul.f32 %v353_v1, %v320_v61  ;;  %v2435_v58 = vld [vmem:[%s3101_s1 + $0xd8] sm:$0xff]  }
  0x90   : > { %2492 = vpow2.f32 %v1788_v63 }
  0x91   : > { %v1792_v4 = vmul.f32 -1.442695, %v370_v2  ;;  %v1791_v5 = vmul.f32 -1.442695, %v369_v3 }
  0x92   : > { %v363_v6 = vpop.permute.xlu0 %362 }
  0x93   : > { %2494 = vpow2.f32 %v1792_v4  ;;  %v371_v7 = vmul.f32 %v363_v6, %v2625_v17 }
  0x94   : > { %2496 = vpow2.f32 %v1791_v5  ;;  %v2436_v5 = vld [vmem:[%s3101_s1 + $0x90] sm:$0xff]  }
  0x95   : > { %v2487_v9 = vpop.eup %2486  ;;  %v1793_v10 = vmul.f32 -1.442695, %v371_v7 }
  0x96   : > { %v2489_v11 = vpop.eup %2488  ;;  %v395_v12 = vadd.f32 1.0, %v2487_v9 }
  0x97   : > { %v393_v13 = vadd.f32 1.0, %v2489_v11  ;;  %2498 = vpow2.f32 %v1793_v10  ;;  %v2437_v10 = vld [vmem:[%s3101_s1 + $0xe0] sm:$0xff]  }
  0x98   : > { %2500 = vrcp.f32 %v395_v12 }
  0x99   : > { %v2491_v14 = vpop.eup %2490  ;;  %2502 = vrcp.f32 %v393_v13 }
  0x9a   : > { %v2493_v15 = vpop.eup %2492  ;;  %v396_v16 = vadd.f32 1.0, %v2491_v14 }
  0x9b   : > { %v394_v18 = vadd.f32 1.0, %v2493_v15 }
  0x9c   : > { %2504 = vrcp.f32 %v396_v16 }
  0x9d   : > { %v2495_v19 = vpop.eup %2494  ;;  %2506 = vrcp.f32 %v394_v18 }
  0x9e   : > { %v2497_v20 = vpop.eup %2496  ;;  %v398_v21 = vadd.f32 1.0, %v2495_v19 }
  0x9f   : > { %v397_v22 = vadd.f32 1.0, %v2497_v20 }
  0xa0   : > { %2508 = vrcp.f32 %v398_v21 }
  0xa1   : > { %v2499_v17 = vpop.eup %2498  ;;  %2510 = vrcp.f32 %v397_v22 }
  0xa2   : > { %v399_v23 = vadd.f32 1.0, %v2499_v17  ;;  %v2501_v24 = vpop.eup %2500 }
  0xa3   : > { %v2503_v25 = vpop.eup %2502  ;;  %v416_v28 = vmul.f32 %v2501_v24, %v367_v50 }
  0xa4   : > { %2512 = vrcp.f32 %v399_v23  ;;  %v414_v30 = vmul.f32 %v2503_v25, %v365_v51  ;;  %v2433_v51 = vld [vmem:[%s3101_s1 + $0xd0] sm:$0xff]   ;;  %v2438_v23 = vld [vmem:[%s3101_s1 + $0x98] sm:$0xff]  }
  0xa6   : > { %v2505_v26 = vpop.eup %2504 }
  0xa7   : > { %v2507_v27 = vpop.eup %2506  ;;  %v417_v29 = vmul.f32 %v2505_v26, %v368_v59 }
  0xa8   : > { %v415_v31 = vmul.f32 %v2507_v27, %v366_v60  ;;  %v2439_v27 = vld [vmem:[%s3101_s1 + $0xe8] sm:$0xff]  }
  0xa9   : > { %v2700_v32 = vpack.c.bf16 %v417_v29, %v416_v28 }
  0xaa   : > { %v2509_v34 = vpop.eup %2508  ;;  %v2705_v35 = vpack.c.bf16 %v415_v31, %v414_v30 }
  0xab   : > { %v2511_v36 = vpop.eup %2510  ;;  %v419_v37 = vmul.f32 %v2509_v34, %v370_v2  ;;  %v2712_v40 = vshll.u32 %v2700_v32, 16  ;;  %v2740_v53 = vshrl.u32 %v2700_v32, 16  ;;  %v1262_v2 = vrot.slane %v2700_v32, 6  ;;  %v2440_v34 = vld [vmem:[%s3101_s1 + $0xa0] sm:$0xff]  }
  0xac   : > { %v418_v38 = vmul.f32 %v2511_v36, %v369_v3  ;;  %2176 = vmatmul.mubr.bf16.vlgmr.msra.gmra.mrb[0].mxu1 %v2705_v35  ;;  %v2709_v39 = vshll.u32 %v2705_v35, 16  ;;  %v2723_v44 = vshrl.u32 %v2705_v35, 16  ;;  %v1261_v0 = vrot.slane %v2705_v35, 6 }
  0xad   : > { %2216 = vmatpush3.bf16.msra.mxu1 %v2429_v33  ;;  %2179 = vmatprep.mubr.msk.bf16.mxu1 %vm2524_vm0, %v2523_v8  ;;  %v469_v47 = vrot.slane %v2712_v40, 1  ;;  %v1401_v62 = vrot.slane %v2740_v53, 6  ;;  %v1402_v63 = vrot.slane %v2712_v40, 7  ;;  %v1549_v19 = vrot.slane %v2700_v32, 7 }
  0xae   : > { %v2513_v42 = vpop.eup %2512  ;;  %v2719_v43 = vpack.c.bf16 %v419_v37, %v418_v38  ;;  %2217 = vmatprep.subr.bf16.mxu1 %v2523_v8  ;;  %v464_v45 = vrot.slane %v2709_v39, 1  ;;  %v1398_v59 = vrot.slane %v2723_v44, 6  ;;  %v1399_v60 = vrot.slane %v2709_v39, 7  ;;  %v2441_v37 = vld [vmem:[%s3101_s1 + $0xf0] sm:$0xff]   ;;  %v2442_v38 = vld [vmem:[%s3101_s1 + $0xa8] sm:$0xff]  }
  0xaf   : > { %v420_v50 = vmul.f32 %v2513_v42, %v371_v7  ;;  %v473_v61 = vor.u32 %v2740_v53, %v469_v47  ;;  %v1403_v6 = vor.u32 %v1402_v63, %v1401_v62  ;;  %v2780_v11 = vsel %vm1260_vm2, %v1261_v0, %v1262_v2  ;;  %v2451_v62 = vld [vmem:[%s3101_s1 + $0x158] sm:$0xff]   ;;  %v2452_v0 = vld [vmem:[%s3101_s1 + $0x110] sm:$0xff]  }
  0xb0   : > { %v465_v46 = vor.u32 %v464_v45, %v2723_v44  ;;  %v2732_v49 = vshll.u32 %v2719_v43, 16  ;;  %v2743_v54 = vshrl.u32 %v2719_v43, 16  ;;  %v1400_v1 = vor.u32 %v1399_v60, %v1398_v59 }
  0xb1   : > { %2218 = vmatpush3.bf16.msra.mxu1 %v2431_v41  ;;  %v424_v57 = vpack.c.bf16 %v420_v50, %v420_v50  ;;  %v1264_v9 = vrot.slane %v2719_v43, 6  ;;  %v1551_v17 = vrot.slane %v2719_v43, 7  ;;  %v1548_v25 = vrot.slane %v2705_v35, 7  ;;  %v2443_v41 = vld [vmem:[%s3101_s1 + $0xf8] sm:$0xff]  }
  0xb2   : > { %v470_v52 = vsel %vm458_vm1, %v465_v46, %v469_v47  ;;  %2219 = vmatprep.subr.bf16.mxu1 %v2523_v8  ;;  %v477_v56 = vrot.slane %v2732_v49, 1  ;;  %v1405_v3 = vrot.slane %v2743_v54, 6  ;;  %v1406_v7 = vrot.slane %v2732_v49, 7  ;;  %v2444_v46 = vld [vmem:[%s3101_s1 + $0xb0] sm:$0xff]   ;;  %v2445_v47 = vld [vmem:[%s3101_s1 + $0x140] sm:$0xff]   ;;  %v2446_v50 = vld [vmem:[%s3101_s1 + $0xb8] sm:$0xff]  }
  0xb3   : > { %2148 = vmatmul.mubr.bf16.vlgmr.msra.gmra.mrb[0].mxu0 %v470_v52  ;;  %v1410_v12 = vshrl.u32 %v424_v57, 16  ;;  %v1413_v13 = vshll.u32 %v424_v57, 16  ;;  %v1266_v14 = vrot.slane %v424_v57, 6  ;;  %v2784_v15 = vsel %vm1397_vm4, %v1400_v1, %v1403_v6  ;;  %v2453_v1 = vld [vmem:[%s3101_s1 + $0x160] sm:$0xff]  }
  0xb4   : > { %2188 = vmatpush3.bf16.msra.mxu0 %v2432_v48  ;;  %2180 = vmatmul.mubr.bf16.gmra.mrb[4].mxu1 %v2700_v32  ;;  %v478_v4 = vsel %vm458_vm1, %v473_v61, %v477_v56  ;;  %v1407_v16 = vor.u32 %v1406_v7, %v1405_v3  ;;  %v2787_v18 = vsel %vm1260_vm2, %v1262_v2, %v1264_v9  ;;  %v1553_v26 = vrot.slane %v424_v57, 7  ;;  %v2448_v57 = vld [vmem:[%s3101_s1 + $0x100] sm:$0xff]   ;;  %v2450_v61 = vld [vmem:[%s3101_s1 + $0x108] sm:$0xff]   ;;  %v2454_v3 = vld [vmem:[%s3101_s1 + $0x118] sm:$0xff]  }
  0xb5   : > { %2220 = vmatpush3.bf16.msra.mxu1 %v2433_v51  ;;  %2189 = vmatprep.subr.bf16.mxu0 %v2523_v8  ;;  %v1412_v20 = vrot.slane %v1410_v12, 6  ;;  %v1415_v21 = vrot.slane %v1413_v13, 7  ;;  %v2791_v22 = vsel %vm1260_vm2, %v1264_v9, %v1266_v14  ;;  %v2807_v29 = vsel %vm1547_vm3, %v1549_v19, %v1551_v17  ;;  %v2447_v51 = vld [vmem:[%s3101_s1 + $0x148] sm:$0xff]   ;;  %v2459_v9 = vld [vmem:[%s3101_s1 + $0x178] sm:$0xff]   ;;  %v2460_v13 = vld [vmem:[%s3101_s1 + $0x130] sm:$0xff]  }
  0xb6   : > { %2221 = vmatprep.subr.bf16.mxu1 %v2523_v8  ;;  %2151 = vmatprep.mubr.msk.bf16.mxu0 %vm2524_vm0, %v2523_v8  ;;  %v2799_v24 = vsel %vm1397_vm4, %v1403_v6, %v1407_v16  ;;  %v2813_v30 = vsel %vm1547_vm3, %v1548_v25, %v1549_v19  ;;  %v2816_v31 = vsel %vm1547_vm3, %v1551_v17, %v1553_v26  ;;  %v849_v42 = vrot.slane %v2705_v35, 3  ;;  %v2457_v6 = vld [vmem:[%s3101_s1 + $0x170] sm:$0xff]   ;;  %v2458_v7 = vld [vmem:[%s3101_s1 + $0x128] sm:$0xff]   ;;  %v2461_v14 = vld [vmem:[%s3101_s1 + $0x1c0] sm:$0xff]  }
  0xb7   : > { %2183 = vmatprep.mubr.msk.bf16.mxu1 %vm2524_vm0, %v2523_v8  ;;  %v1416_v28 = vor.u32 %v1415_v21, %v1412_v20  ;;  %v481_v36 = vor.u32 %v2743_v54, %v477_v56  ;;  %v850_v45 = vrot.slane %v2700_v32, 3  ;;  %v714_v52 = vrot.slane %v2705_v35, 1  ;;  %v2462_v21 = vld [vmem:[%s3101_s1 + $0x138] sm:$0xff]   ;;  %v2464_v17 = vld [vmem:[%s3101_s1 + $0x180] sm:$0xff]  }
  0xb8   : > { %2190 = vmatpush3.bf16.msra.mxu0 %v2434_v55  ;;  %v715_v55 = vrot.slane %v2700_v32, 1  ;;  %v852_v56 = vrot.slane %v2719_v43, 3  ;;  %v717_v63 = vrot.slane %v2719_v43, 1  ;;  %v1126_v12 = vrot.slane %v2700_v32, 4 }
  0xb9   : > { %2222 = vmatpush3.bf16.msra.mxu1 %v2435_v58  ;;  %2191 = vmatprep.subr.bf16.mxu0 %v2523_v8  ;;  %v2821_v33 = vsel %vm1397_vm4, %v1407_v16, %v1416_v28  ;;  %v851_v48 = vsel %vm848_vm5, %v849_v42, %v850_v45  ;;  %v2449_v58 = vld [vmem:[%s3101_s1 + $0x150] sm:$0xff]   ;;  %v984_v16 = vrot.slane %v2723_v44, 3  ;;  %v987_v32 = vrot.slane %v2740_v53, 3  ;;  %v2463_v44 = vld [vmem:[%s3101_s1 + $0x1c8] sm:$0xff]   ;;  %v2472_v42 = vld [vmem:[%s3101_s1 + $0x1a0] sm:$0xff]  }
  0xba   : > { %2223 = vmatprep.subr.bf16.mxu1 %v2523_v8  ;;  %v716_v59 = vsel %vm713_vm6, %v714_v52, %v715_v55  ;;  %v853_v60 = vsel %vm848_vm5, %v850_v45, %v852_v56  ;;  %v718_v2 = vsel %vm713_vm6, %v715_v55, %v717_v63  ;;  %v988_v19 = vrot.slane %v2712_v40, 4  ;;  %v2466_v28 = vld [vmem:[%s3101_s1 + $0x188] sm:$0xff]   ;;  %v2473_v45 = vld [vmem:[%s3101_s1 + $0x1f0] sm:$0xff]   ;;  %v2481_v55 = vld [vmem:[%s3101_s1 + $0x218] sm:$0xff]  }
  0xbb   : > { %2152 = vmatmul.mubr.bf16.gmra.mrb[4].mxu0 %v478_v4  ;;  %v2455_v4 = vld [vmem:[%s3101_s1 + $0x168] sm:$0xff]   ;;  %v1128_v40 = vrot.slane %v2719_v43, 4  ;;  %v991_v26 = vrot.slane %v2743_v54, 3  ;;  %v2468_v54 = vld [vmem:[%s3101_s1 + $0x190] sm:$0xff]  }
  0xbc   : > { %2192 = vmatpush3.bf16.msra.mxu0 %v2436_v5  ;;  %2184 = vmatmul.mubr.bf16.gmra.mrb[8].mxu1 %v2719_v43  ;;  %v2456_v5 = vld [vmem:[%s3101_s1 + $0x120] sm:$0xff]   ;;  %v989_v53 = vor.u32 %v988_v19, %v987_v32  ;;  %v992_v43 = vrot.slane %v2732_v49, 4  ;;  %v2479_v52 = vld [vmem:[%s3101_s1 + $0x208] sm:$0xff]  }
  0xbd   : > { %2224 = vmatpush3.bf16.msra.mxu1 %v2437_v10  ;;  %2193 = vmatprep.subr.bf16.mxu0 %v2523_v8  ;;  %v1125_v10 = vrot.slane %v2705_v35, 4  ;;  %v985_v35 = vrot.slane %v2709_v39, 4 }
  0xbe   : > { %2225 = vmatprep.subr.bf16.mxu1 %v2523_v8  ;;  %2155 = vmatprep.mubr.msk.bf16.mxu0 %vm2524_vm0, %v2523_v8  ;;  %v993_v49 = vor.u32 %v992_v43, %v991_v26 }
  0xbf   : > { %2231 = vmatprep.mubr.msk.bf16.mxu1 %vm2524_vm0, %v2523_v8  ;;  %v1127_v20 = vsel %vm1124_vm7, %v1125_v10, %v1126_v12  ;;  %v986_v39 = vor.u32 %v985_v35, %v984_v16 }
  0xc0   : > { %2194 = vmatpush3.bf16.msra.mxu0 %v2438_v23  ;;  %v2465_v23 = vld [vmem:[%s3101_s1 + $0x1d0] sm:$0xff]  }
  0xc1   : > { %2226 = vmatpush3.bf16.msra.mxu1 %v2439_v27  ;;  %2195 = vmatprep.subr.bf16.mxu0 %v2523_v8  ;;  %v990_v25 = vsel %vm983_vm8, %v986_v39, %v989_v53  ;;  %v1129_v27 = vsel %vm1124_vm7, %v1126_v12, %v1128_v40 }
  0xc2   : > { %2227 = vmatprep.subr.bf16.mxu1 %v2523_v8 }
  0xc3   : > { %2156 = vmatmul.mubr.bf16.gmra.mrb[8].mxu0 %v481_v36  ;;  %v2469_v36 = vld [vmem:[%s3101_s1 + $0x1e0] sm:$0xff]  }
  0xc4   : > { %2196 = vmatpush3.bf16.msra.mxu0 %v2440_v34  ;;  %2203 = vmatprep.mubr.msk.bf16.mxu0 %vm2524_vm0, %v2523_v8  ;;  %v2467_v34 = vld [vmem:[%s3101_s1 + $0x1d8] sm:$0xff]  }
  0xc5   : > { %2228 = vmatpush3.bf16.msra.mxu1 %v2441_v37  ;;  %2197 = vmatprep.subr.bf16.mxu0 %v2523_v8  ;;  %v994_v37 = vsel %vm983_vm8, %v989_v53, %v993_v49 }
  0xc6   : > { %2229 = vmatprep.subr.bf16.mxu1 %v2523_v8 }
  0xc8   : > { %2198 = vmatpush3.bf16.msra.mxu0 %v2442_v38  ;;  %v2470_v38 = vld [vmem:[%s3101_s1 + $0x198] sm:$0xff]  }
  0xc9   : > { %2230 = vmatpush3.bf16.msra.mxu1 %v2443_v41  ;;  %2199 = vmatprep.subr.bf16.mxu0 %v2523_v8  ;;  %v2471_v41 = vld [vmem:[%s3101_s1 + $0x1e8] sm:$0xff]  }
  0xca   : > { %2271 = vmatprep.subr.bf16.mxu1 %v2523_v8 }
  0xcc   : > { %2200 = vmatpush3.bf16.msra.mxu0 %v2444_v46  ;;  %2232 = vmatmul.mubr.bf16.vlgmr.msra.gmra.mrb[12].mxu1 %v851_v48  ;;  %v2474_v46 = vld [vmem:[%s3101_s1 + $0x1a8] sm:$0xff]   ;;  %v2476_v48 = vld [vmem:[%s3101_s1 + $0x1b0] sm:$0xff]  }
  0xcd   : > { %2272 = vmatpush3.bf16.msra.mxu1 %v2445_v47  ;;  %2201 = vmatprep.subr.bf16.mxu0 %v2523_v8  ;;  %v2475_v47 = vld [vmem:[%s3101_s1 + $0x1f8] sm:$0xff]  }
  0xce   : > { %2273 = vmatprep.subr.bf16.mxu1 %v2523_v8  ;;  %2235 = vmatprep.mubr.msk.bf16.mxu1 %vm2524_vm0, %v2523_v8 }
  0xd0   : > { %2202 = vmatpush3.bf16.msra.mxu0 %v2446_v50  ;;  %v2477_v50 = vld [vmem:[%s3101_s1 + $0x200] sm:$0xff]  }
  0xd1   : > { %2274 = vmatpush3.bf16.msra.mxu1 %v2447_v51  ;;  %2243 = vmatprep.subr.bf16.mxu0 %v2523_v8  ;;  %v2478_v51 = vld [vmem:[%s3101_s1 + $0x1b8] sm:$0xff]  }
  0xd2   : > { %2275 = vmatprep.subr.bf16.mxu1 %v2523_v8 }
  0xd3   : > { %2204 = vmatmul.mubr.bf16.vlgmr.msra.gmra.mrb[12].mxu0 %v716_v59 }
  0xd4   : > { %2236 = vmatmul.mubr.bf16.gmra.mrb[16].mxu1 %v853_v60  ;;  %2244 = vmatpush3.bf16.msra.mxu0 %v2448_v57 }
  0xd5   : > { %2276 = vmatpush3.bf16.msra.mxu1 %v2449_v58  ;;  %2245 = vmatprep.subr.bf16.mxu0 %v2523_v8 }
  0xd6   : > { %2277 = vmatprep.subr.bf16.mxu1 %v2523_v8  ;;  %2207 = vmatprep.mubr.msk.bf16.mxu0 %vm2524_vm0, %v2523_v8 }
  0xd7   : > { %2239 = vmatprep.mubr.msk.bf16.mxu1 %vm2524_vm0, %v2523_v8 }
  0xd8   : > { %2246 = vmatpush3.bf16.msra.mxu0 %v2450_v61 }
  0xd9   : > { %2278 = vmatpush3.bf16.msra.mxu1 %v2451_v62  ;;  %2247 = vmatprep.subr.bf16.mxu0 %v2523_v8 }
  0xda   : > { %2279 = vmatprep.subr.bf16.mxu1 %v2523_v8 }
  0xdb   : > { %2208 = vmatmul.mubr.bf16.gmra.mrb[16].mxu0 %v718_v2 }
  0xdc   : > { %2240 = vmatmul.mubr.bf16.gmra.mrb[20].mxu1 %v852_v56  ;;  %2248 = vmatpush3.bf16.msra.mxu0 %v2452_v0 }
  0xdd   : > { %2280 = vmatpush3.bf16.msra.mxu1 %v2453_v1  ;;  %2249 = vmatprep.subr.bf16.mxu0 %v2523_v8 }
  0xde   : > { %2281 = vmatprep.subr.bf16.mxu1 %v2523_v8  ;;  %2211 = vmatprep.mubr.msk.bf16.mxu0 %vm2524_vm0, %v2523_v8 }
  0xdf   : > { %2287 = vmatprep.mubr.msk.bf16.mxu1 %vm2524_vm0, %v2523_v8 }
  0xe0   : > { %2250 = vmatpush3.bf16.msra.mxu0 %v2454_v3 }
  0xe1   : > { %2282 = vmatpush3.bf16.msra.mxu1 %v2455_v4  ;;  %2251 = vmatprep.subr.bf16.mxu0 %v2523_v8 }
  0xe2   : > { %2283 = vmatprep.subr.bf16.mxu1 %v2523_v8 }
  0xe3   : > { %2212 = vmatmul.mubr.bf16.gmra.mrb[20].mxu0 %v717_v63 }
  0xe4   : > { %2252 = vmatpush3.bf16.msra.mxu0 %v2456_v5  ;;  %2259 = vmatprep.mubr.msk.bf16.mxu0 %vm2524_vm0, %v2523_v8 }
  0xe5   : > { %2284 = vmatpush3.bf16.msra.mxu1 %v2457_v6  ;;  %2253 = vmatprep.subr.bf16.mxu0 %v2523_v8 }
  0xe6   : > { %2285 = vmatprep.subr.bf16.mxu1 %v2523_v8 }
  0xe8   : > { %2254 = vmatpush3.bf16.msra.mxu0 %v2458_v7 }
  0xe9   : > { %2286 = vmatpush3.bf16.msra.mxu1 %v2459_v9  ;;  %2255 = vmatprep.subr.bf16.mxu0 %v2523_v8 }
  0xea   : > { %2327 = vmatprep.subr.bf16.mxu1 %v2523_v8 }
  0xec   : > { %2256 = vmatpush3.bf16.msra.mxu0 %v2460_v13  ;;  %2288 = vmatmul.mubr.bf16.vlgmr.msra.gmra.mrb[24].mxu1 %v1127_v20 }
  0xed   : > { %2328 = vmatpush3.bf16.msra.mxu1 %v2461_v14  ;;  %2257 = vmatprep.subr.bf16.mxu0 %v2523_v8 }
  0xee   : > { %2329 = vmatprep.subr.bf16.mxu1 %v2523_v8  ;;  %2291 = vmatprep.mubr.msk.bf16.mxu1 %vm2524_vm0, %v2523_v8 }
  0xf0   : > { %2258 = vmatpush3.bf16.msra.mxu0 %v2462_v21 }
  0xf1   : > { %2330 = vmatpush3.bf16.msra.mxu1 %v2463_v44  ;;  %2299 = vmatprep.subr.bf16.mxu0 %v2523_v8 }
  0xf2   : > { %2331 = vmatprep.subr.bf16.mxu1 %v2523_v8 }
  0xf3   : > { %2260 = vmatmul.mubr.bf16.vlgmr.msra.gmra.mrb[24].mxu0 %v990_v25 }
  0xf4   : > { %2292 = vmatmul.mubr.bf16.gmra.mrb[28].mxu1 %v1129_v27  ;;  %2300 = vmatpush3.bf16.msra.mxu0 %v2464_v17 }
  0xf5   : > { %2332 = vmatpush3.bf16.msra.mxu1 %v2465_v23  ;;  %2301 = vmatprep.subr.bf16.mxu0 %v2523_v8 }
  0xf6   : > { %2333 = vmatprep.subr.bf16.mxu1 %v2523_v8  ;;  %2263 = vmatprep.mubr.msk.bf16.mxu0 %vm2524_vm0, %v2523_v8 }
  0xf7   : > { %2295 = vmatprep.mubr.msk.bf16.mxu1 %vm2524_vm0, %v2523_v8 }
  0xf8   : > { %2302 = vmatpush3.bf16.msra.mxu0 %v2466_v28 }
  0xf9   : > { %2334 = vmatpush3.bf16.msra.mxu1 %v2467_v34  ;;  %2303 = vmatprep.subr.bf16.mxu0 %v2523_v8 }
  0xfa   : > { %2335 = vmatprep.subr.bf16.mxu1 %v2523_v8 }
  0xfb   : > { %2264 = vmatmul.mubr.bf16.gmra.mrb[28].mxu0 %v994_v37 }
  0xfc   : > { %2296 = vmatmul.mubr.bf16.gmra.mrb[32].mxu1 %v1128_v40  ;;  %2304 = vmatpush3.bf16.msra.mxu0 %v2468_v54 }
  0xfd   : > { %2336 = vmatpush3.bf16.msra.mxu1 %v2469_v36  ;;  %2305 = vmatprep.subr.bf16.mxu0 %v2523_v8 }
  0xfe   : > { %2337 = vmatprep.subr.bf16.mxu1 %v2523_v8  ;;  %2267 = vmatprep.mubr.msk.bf16.mxu0 %vm2524_vm0, %v2523_v8 }
  0xff   : > { %2343 = vmatprep.mubr.msk.bf16.mxu1 %vm2524_vm0, %v2523_v8 }
 0x100   : > { %2306 = vmatpush3.bf16.msra.mxu0 %v2470_v38 }
 0x101   : > { %2338 = vmatpush3.bf16.msra.mxu1 %v2471_v41  ;;  %2307 = vmatprep.subr.bf16.mxu0 %v2523_v8 }
 0x102   : > { %2339 = vmatprep.subr.bf16.mxu1 %v2523_v8 }
 0x103   : > { %2268 = vmatmul.mubr.bf16.gmra.mrb[32].mxu0 %v993_v49 }
 0x104   : > { %2308 = vmatpush3.bf16.msra.mxu0 %v2472_v42  ;;  %2315 = vmatprep.mubr.msk.bf16.mxu0 %vm2524_vm0, %v2523_v8 }
 0x105   : > { %2340 = vmatpush3.bf16.msra.mxu1 %v2473_v45  ;;  %2309 = vmatprep.subr.bf16.mxu0 %v2523_v8 }
 0x106   : > { %2341 = vmatprep.subr.bf16.mxu1 %v2523_v8 }
 0x108   : > { %2310 = vmatpush3.bf16.msra.mxu0 %v2474_v46 }
 0x109   : > { %2342 = vmatpush3.bf16.msra.mxu1 %v2475_v47  ;;  %2311 = vmatprep.subr.bf16.mxu0 %v2523_v8 }
 0x10a   : > { %2383 = vmatprep.subr.bf16.mxu1 %v2523_v8 }
 0x10c   : > { %2312 = vmatpush3.bf16.msra.mxu0 %v2476_v48  ;;  %2344 = vmatmul.mubr.bf16.vlgmr.msra.gmra.mrb[36].mxu1 %v2784_v15  ;;  %v2480_v15 = vld [vmem:[%s3101_s1 + $0x210] sm:$0xff]  }
 0x10d   : > { %2391 = vmatpush3.bf16.msra.mxu1 %v2477_v50  ;;  %2313 = vmatprep.subr.bf16.mxu0 %v2523_v8 }
 0x10e   : > { %2384 = vmatprep.subr.bf16.mxu1 %v2523_v8  ;;  %2347 = vmatprep.mubr.msk.bf16.mxu1 %vm2524_vm0, %v2523_v8 }
 0x110   : > { %2314 = vmatpush3.bf16.msra.mxu0 %v2478_v51 }
 0x111   : > { %2392 = vmatpush3.bf16.msra.mxu1 %v2479_v52  ;;  %2355 = vmatprep.subr.bf16.mxu0 %v2523_v8 }
 0x112   : > { %2385 = vmatprep.subr.bf16.mxu1 %v2523_v8 }
 0x113   : > { %2316 = vmatmul.mubr.bf16.vlgmr.msra.gmra.mrb[36].mxu0 %v2780_v11  ;;  %v2482_v11 = vld [vmem:[%s3101_s1 + $0x220] sm:$0xff]  }
 0x114   : > { %2348 = vmatmul.mubr.bf16.gmra.mrb[40].mxu1 %v2799_v24  ;;  %2356 = vmatpush3.bf16.msra.mxu0 %v2477_v50  ;;  %v2483_v24 = vld [vmem:[%s3101_s1 + $0x228] sm:$0xff]  }
 0x115   : > { %2393 = vmatpush3.bf16.msra.mxu1 %v2480_v15  ;;  %2357 = vmatprep.subr.bf16.mxu0 %v2523_v8 }
 0x116   : > { %2386 = vmatprep.subr.bf16.mxu1 %v2523_v8  ;;  %2319 = vmatprep.mubr.msk.bf16.mxu0 %vm2524_vm0, %v2523_v8 }
 0x117   : > { %2351 = vmatprep.mubr.msk.bf16.mxu1 %vm2524_vm0, %v2523_v8 }
 0x118   : > { %2358 = vmatpush3.bf16.msra.mxu0 %v2479_v52 }
 0x119   : > { %2394 = vmatpush3.bf16.msra.mxu1 %v2481_v55  ;;  %2359 = vmatprep.subr.bf16.mxu0 %v2523_v8 }
 0x11a   : > { %2387 = vmatprep.subr.bf16.mxu1 %v2523_v8 }
 0x11b   : > { %2320 = vmatmul.mubr.bf16.gmra.mrb[40].mxu0 %v2787_v18  ;;  %v2484_v18 = vld [vmem:[%s3101_s1 + $0x230] sm:$0xff]  }
 0x11c   : > { %2352 = vmatmul.mubr.bf16.gmra.mrb[44].mxu1 %v2821_v33  ;;  %2360 = vmatpush3.bf16.msra.mxu0 %v2480_v15  ;;  %v2485_v33 = vld [vmem:[%s3101_s1 + $0x238] sm:$0xff]  }
 0x11d   : > { %2395 = vmatpush3.bf16.msra.mxu1 %v2482_v11  ;;  %2361 = vmatprep.subr.bf16.mxu0 %v2523_v8 }
 0x11e   : > { %2388 = vmatprep.subr.bf16.mxu1 %v2523_v8  ;;  %2323 = vmatprep.mubr.msk.bf16.mxu0 %vm2524_vm0, %v2523_v8 }
 0x11f   : > { %2375 = vmatprep.mubr.msk.bf16.mxu1 %vm2524_vm0, %v2523_v8 }
 0x120   : > { %2362 = vmatpush3.bf16.msra.mxu0 %v2481_v55 }
 0x121   : > { %2396 = vmatpush3.bf16.msra.mxu1 %v2483_v24  ;;  %2363 = vmatprep.subr.bf16.mxu0 %v2523_v8 }
 0x122   : > { %2389 = vmatprep.subr.bf16.mxu1 %v2523_v8 }
 0x123   : > { %2324 = vmatmul.mubr.bf16.gmra.mrb[44].mxu0 %v2791_v22 }
 0x124   : > { %2364 = vmatpush3.bf16.msra.mxu0 %v2482_v11  ;;  %2371 = vmatprep.mubr.msk.bf16.mxu0 %vm2524_vm0, %v2523_v8 }
 0x125   : > { %2397 = vmatpush3.bf16.msra.mxu1 %v2484_v18  ;;  %2365 = vmatprep.subr.bf16.mxu0 %v2523_v8 }
 0x126   : > { %2390 = vmatprep.subr.bf16.mxu1 %v2523_v8 }
 0x128   : > { %2366 = vmatpush3.bf16.msra.mxu0 %v2483_v24 }
 0x129   : > { %2398 = vmatpush3.bf16.msra.mxu1 %v2485_v33  ;;  %2367 = vmatprep.subr.bf16.mxu0 %v2523_v8 }
 0x12c   : > { %2368 = vmatpush3.bf16.msra.mxu0 %v2484_v18  ;;  %2376 = vmatmul.mubr.bf16.vlgmr.msra.gmra.mrb[48].mxu1 %v2807_v29 }
 0x12d   : > { %2369 = vmatprep.subr.bf16.mxu0 %v2523_v8  ;;  %2379 = vmatprep.mubr.msk.bf16.mxu1 %vm2524_vm0, %v2523_v8 }
 0x130   : > { %2370 = vmatpush3.bf16.msra.mxu0 %v2485_v33 }
 0x133   : > { %2372 = vmatmul.mubr.bf16.vlgmr.msra.gmra.mrb[48].mxu0 %v2813_v30 }
 0x134   : > { %2380 = vmatmul.mubr.bf16.gmra.mrb[52].mxu1 %v2816_v31 }
 0x17f   : > { %v671_v22 = vpop.f32.mrb[0].mxu1 }
 0x180   : > { %v2177_v56 = vpop.f32.mrb[1].mxu1 }
 0x181   : > { %v674_v57 = vpop.f32.mrb[2].mxu1 }
 0x182   : > { %v2178_v58 = vpop.f32.mrb[3].mxu1 }
 0x186   : > { %v567_v59 = vpop.f32.mrb[0].mxu0 }
 0x187   : > { %v672_v60 = vadd.f32 %v671_v22, %v567_v59  ;;  %v2149_v61 = vpop.f32.mrb[1].mxu0  ;;  %v679_v62 = vpop.f32.mrb[4].mxu1 }
 0x188   : > { %v570_v63 = vpop.f32.mrb[2].mxu0  ;;  %v2181_v29 = vpop.f32.mrb[5].mxu1 }
 0x189   : > { %v675_v0 = vadd.f32 %v674_v57, %v570_v63  ;;  %v2150_v1 = vpop.f32.mrb[3].mxu0  ;;  %v682_v2 = vpop.f32.mrb[6].mxu1 }
 0x18a   : > { %v2182_v3 = vpop.f32.mrb[7].mxu1 }
 0x18e   : > { %v575_v8 = vpop.f32.mrb[4].mxu0 }
 0x18f   : > { %v680_v4 = vadd.f32 %v679_v62, %v575_v8  ;;  %v2153_v5 = vpop.f32.mrb[5].mxu0  ;;  %v687_v30 = vpop.f32.mrb[8].mxu1 }
 0x190   : > { %v578_v6 = vpop.f32.mrb[6].mxu0  ;;  %v2185_v31 = vpop.f32.mrb[9].mxu1 }
 0x191   : > { %v683_v7 = vadd.f32 %v682_v2, %v578_v6  ;;  %v2154_v9 = vpop.f32.mrb[7].mxu0  ;;  %v690_v10 = vpop.f32.mrb[10].mxu1 }
 0x192   : > { %v2186_v12 = vpop.f32.mrb[11].mxu1 }
 0x196   : > { %v583_v13 = vpop.f32.mrb[8].mxu0 }
 0x197   : > { %v688_v14 = vadd.f32 %v687_v30, %v583_v13  ;;  %v2157_v16 = vpop.f32.mrb[9].mxu0 }
 0x198   : > { %v586_v35 = vpop.f32.mrb[10].mxu0 }
 0x199   : > { %v2158_v32 = vpop.f32.mrb[11].mxu0 }
 0x19f   : > { %v939_v19 = vpop.f32.mrb[12].mxu1 }
 0x1a0   : > { %v2233_v20 = vpop.f32.mrb[13].mxu1 }
 0x1a1   : > { %v942_v21 = vpop.f32.mrb[14].mxu1 }
 0x1a2   : > { %v2234_v44 = vpop.f32.mrb[15].mxu1 }
 0x1a6   : > { %v804_v39 = vpop.f32.mrb[12].mxu0 }
 0x1a7   : > { %v826_v53 = vadd.f32 %v804_v39, %v672_v60  ;;  %v2205_v40 = vpop.f32.mrb[13].mxu0  ;;  %v947_v17 = vpop.f32.mrb[16].mxu1 }
 0x1a8   : > { %v807_v23 = vpop.f32.mrb[14].mxu0  ;;  %v2237_v25 = vpop.f32.mrb[17].mxu1 }
 0x1a9   : > { %v827_v26 = vadd.f32 %v807_v23, %v675_v0  ;;  %v2206_v43 = vpop.f32.mrb[15].mxu0  ;;  %v950_v27 = vpop.f32.mrb[18].mxu1  ;;  %v961_v28 = vadd.f32 %v939_v19, %v826_v53 }
 0x1aa   : > { %v2238_v34 = vpop.f32.mrb[19].mxu1 }
 0x1ab   : > { %v962_v49 = vadd.f32 %v942_v21, %v827_v26 }
 0x1ae   : > { %v812_v54 = vpop.f32.mrb[16].mxu0 }
 0x1af   : > { %v828_v36 = vadd.f32 %v812_v54, %v680_v4  ;;  %v2209_v37 = vpop.f32.mrb[17].mxu0  ;;  %v955_v38 = vpop.f32.mrb[20].mxu1 }
 0x1b0   : > { %v815_v41 = vpop.f32.mrb[18].mxu0  ;;  %v2241_v42 = vpop.f32.mrb[21].mxu1 }
 0x1b1   : > { %v829_v45 = vadd.f32 %v815_v41, %v683_v7  ;;  %v2210_v46 = vpop.f32.mrb[19].mxu0  ;;  %v958_v47 = vpop.f32.mrb[22].mxu1  ;;  %v963_v48 = vadd.f32 %v947_v17, %v828_v36 }
 0x1b2   : > { %v2242_v50 = vpop.f32.mrb[23].mxu1 }
 0x1b3   : > { %v964_v51 = vadd.f32 %v950_v27, %v829_v45 }
 0x1b6   : > { %v820_v52 = vpop.f32.mrb[20].mxu0 }
 0x1b7   : > { %v830_v15 = vadd.f32 %v820_v52, %v688_v14  ;;  %v2213_v55 = vpop.f32.mrb[21].mxu0 }
 0x1b8   : > { %v823_v11 = vpop.f32.mrb[22].mxu0 }
 0x1b9   : > { %v2214_v24 = vpop.f32.mrb[23].mxu0  ;;  %v965_v18 = vadd.f32 %v955_v38, %v830_v15 }
 0x1bf   : > { %v1215_v33 = vpop.f32.mrb[24].mxu1 }
 0x1c0   : > { %v2289_v22 = vpop.f32.mrb[25].mxu1 }
 0x1c1   : > { %v1218_v56 = vpop.f32.mrb[26].mxu1 }
 0x1c2   : > { %v2290_v57 = vpop.f32.mrb[27].mxu1 }
 0x1c6   : > { %v1080_v58 = vpop.f32.mrb[24].mxu0 }
 0x1c7   : > { %v1102_v59 = vadd.f32 %v1080_v58, %v961_v28  ;;  %v2261_v60 = vpop.f32.mrb[25].mxu0  ;;  %v1223_v61 = vpop.f32.mrb[28].mxu1 }
 0x1c8   : > { %v1083_v62 = vpop.f32.mrb[26].mxu0  ;;  %v2293_v63 = vpop.f32.mrb[29].mxu1 }
 0x1c9   : > { %v1103_v29 = vadd.f32 %v1083_v62, %v962_v49  ;;  %v2262_v0 = vpop.f32.mrb[27].mxu0  ;;  %v1226_v1 = vpop.f32.mrb[30].mxu1  ;;  %v1237_v2 = vadd.f32 %v1215_v33, %v1102_v59 }
 0x1ca   : > { %v2294_v3 = vpop.f32.mrb[31].mxu1 }
 0x1cb   : > { %v1238_v8 = vadd.f32 %v1218_v56, %v1103_v29 }
 0x1ce   : > { %v1088_v4 = vpop.f32.mrb[28].mxu0 }
 0x1cf   : > { %v1104_v5 = vadd.f32 %v1088_v4, %v963_v48  ;;  %v2265_v30 = vpop.f32.mrb[29].mxu0  ;;  %v1231_v6 = vpop.f32.mrb[32].mxu1 }
 0x1d0   : > { %v1091_v31 = vpop.f32.mrb[30].mxu0  ;;  %v2297_v7 = vpop.f32.mrb[33].mxu1 }
 0x1d1   : > { %v1105_v9 = vadd.f32 %v1091_v31, %v964_v51  ;;  %v2266_v10 = vpop.f32.mrb[31].mxu0  ;;  %v1234_v12 = vpop.f32.mrb[34].mxu1  ;;  %v1239_v13 = vadd.f32 %v1223_v61, %v1104_v5  ;;  %v1994_v61 = vld [vmem:[%s3102_s2] ss:$0 sm:$0xff] }
 0x1d2   : > { %v2298_v14 = vpop.f32.mrb[35].mxu1 }
 0x1d3   : > { %v1240_v16 = vadd.f32 %v1226_v1, %v1105_v9 }
 0x1d6   : > { %v1096_v35 = vpop.f32.mrb[32].mxu0 }
 0x1d7   : > { %v1106_v32 = vadd.f32 %v1096_v35, %v965_v18  ;;  %v2269_v19 = vpop.f32.mrb[33].mxu0 }
 0x1d8   : > { %v1099_v20 = vpop.f32.mrb[34].mxu0 }
 0x1d9   : > { %v2270_v21 = vpop.f32.mrb[35].mxu0  ;;  %v1241_v44 = vadd.f32 %v1231_v6, %v1106_v32 }
 0x1df   : > { %v1503_v39 = vpop.f32.mrb[36].mxu1 }
 0x1e0   : > { %v2345_v53 = vpop.f32.mrb[37].mxu1 }
 0x1e1   : > { %v1506_v40 = vpop.f32.mrb[38].mxu1 }
 0x1e2   : > { %v2346_v17 = vpop.f32.mrb[39].mxu1 }
 0x1e6   : > { %v1353_v23 = vpop.f32.mrb[36].mxu0 }
 0x1e7   : > { %v1375_v25 = vadd.f32 %v1353_v23, %v1237_v2  ;;  %v2317_v26 = vpop.f32.mrb[37].mxu0  ;;  %v1511_v43 = vpop.f32.mrb[40].mxu1 }
 0x1e8   : > { %v1356_v27 = vpop.f32.mrb[38].mxu0  ;;  %v2349_v28 = vpop.f32.mrb[41].mxu1 }
 0x1e9   : > { %v1376_v34 = vadd.f32 %v1356_v27, %v1238_v8  ;;  %v2318_v49 = vpop.f32.mrb[39].mxu0  ;;  %v1514_v54 = vpop.f32.mrb[42].mxu1  ;;  %v1525_v36 = vadd.f32 %v1503_v39, %v1375_v25 }
 0x1ea   : > { %v2350_v37 = vpop.f32.mrb[43].mxu1 }
 0x1eb   : > { %v1526_v38 = vadd.f32 %v1506_v40, %v1376_v34 }
 0x1ee   : > { %v1361_v41 = vpop.f32.mrb[40].mxu0 }
 0x1ef   : > { %v1377_v42 = vadd.f32 %v1361_v41, %v1239_v13  ;;  %v2321_v45 = vpop.f32.mrb[41].mxu0  ;;  %v1519_v46 = vpop.f32.mrb[44].mxu1 }
 0x1f0   : > { %v1364_v47 = vpop.f32.mrb[42].mxu0  ;;  %v2353_v48 = vpop.f32.mrb[45].mxu1 }
 0x1f1   : > { %v1378_v50 = vadd.f32 %v1364_v47, %v1240_v16  ;;  %v2322_v51 = vpop.f32.mrb[43].mxu0  ;;  %v1522_v52 = vpop.f32.mrb[46].mxu1  ;;  %v1527_v15 = vadd.f32 %v1511_v43, %v1377_v42 }
 0x1f2   : > { %v2354_v55 = vpop.f32.mrb[47].mxu1 }
 0x1f3   : > { %v1528_v11 = vadd.f32 %v1514_v54, %v1378_v50 }
 0x1f6   : > { %v1369_v24 = vpop.f32.mrb[44].mxu0 }
 0x1f7   : > { %v1379_v18 = vadd.f32 %v1369_v24, %v1241_v44  ;;  %v2325_v33 = vpop.f32.mrb[45].mxu0 }
 0x1f8   : > { %v1372_v22 = vpop.f32.mrb[46].mxu0 }
 0x1f9   : > { %v2326_v56 = vpop.f32.mrb[47].mxu0  ;;  %v1529_v57 = vadd.f32 %v1519_v46, %v1379_v18 }
 0x1ff   : > { %v1648_v58 = vpop.f32.mrb[48].mxu1 }
 0x200   : > { %v1664_v59 = vadd.f32 %v1648_v58, %v1527_v15  ;;  %v2377_v60 = vpop.f32.mrb[49].mxu1 }
 0x201   : > { %v1651_v62 = vpop.f32.mrb[50].mxu1 }
 0x202   : > { %v1665_v63 = vadd.f32 %v1651_v62, %v1528_v11  ;;  %v2378_v29 = vpop.f32.mrb[51].mxu1  ;;  %v1676_v0 = vadd.f32 %v1994_v61, %v1664_v59 }
 0x204   : > { %v1677_v1 = vadd.f32 %v1994_v61, %v1665_v63 }
 0x206   : > { %v2027_v2 = vpack.c.bf16 %v1677_v1, %v1676_v0  ;;  %v1640_v3 = vpop.f32.mrb[48].mxu0 }
 0x207   : > { %v1662_v8 = vadd.f32 %v1640_v3, %v1525_v36  ;;  %v2373_v4 = vpop.f32.mrb[49].mxu0  ;;  %v1656_v5 = vpop.f32.mrb[52].mxu1 }
 0x208   : > { %2031 = vst [vmem:[%s279_s18 + $0x8] sm:$0xff] %v2027_v2   ;;  %v1666_v30 = vadd.f32 %v1656_v5, %v1529_v57  ;;  %v1643_v6 = vpop.f32.mrb[50].mxu0  ;;  %v2381_v31 = vpop.f32.mrb[53].mxu1 }
 0x209   : > { %v1663_v7 = vadd.f32 %v1643_v6, %v1526_v38  ;;  %v2374_v9 = vpop.f32.mrb[51].mxu0  ;;  %v1659_v10 = vpop.f32.mrb[54].mxu1  ;;  %v1674_v14 = vadd.f32 %v1994_v61, %v1662_v8 }
 0x20a   : > { %v1678_v12 = vadd.f32 %v1994_v61, %v1666_v30  ;;  %v2382_v13 = vpop.f32.mrb[55].mxu1 }
 0x20b   : > { %v1675_v16 = vadd.f32 %v1994_v61, %v1663_v7 }
 0x20c   : > { %v2006_v35 = vpack.c.bf16 %v1678_v12, %v1678_v12 }
 0x20d   : > { %v2022_v32 = vpack.c.bf16 %v1675_v16, %v1674_v14 }
 0x20e   : > { %1704 = vst [vmem:[%s279_s18 + $0x10] sm:$0xf] %v2006_v35 }
 0x20f   : > { %2023 = vst [vmem:[%s279_s18] sm:$0xff] %v2022_v32  }
 0x210 PF: > { %s16_s21 = sadd.s32 1, %s2520_s21  }
 0x211   : > { %p13_p4 = scmp.ge.s32.totalorder %s16_s21, 6  }
 0x213   :  { %15 = sbr.rel (!%p13_p4) target bundleno = 1 (0x1), region = 88 }

// kernel: sd_featurizer_forward.33
= control target key start
LH: loop header
LB: loop body
LE: loop exit
PB: predicated region body
PF: predicated region fallthrough
CT: control target
= control target key end

     0   :  { %s1598_s30 = smov 0   ;;  %s1821_s0 = inlined_call_operand.vmem [shape: bf16[4,16,128], index: 0, kind: input, shape index: {}]   ;;  %s1822_s1 = inlined_call_operand.vmem [shape: f32[4,1,128], index: 1, kind: input, shape index: {}]   ;;  %s1823_s2 = inlined_call_operand.vmem [shape: f32[4,1,128], index: 2, kind: input, shape index: {}]   ;;  %s1824_s3 = inlined_call_operand.vmem [shape: bf16[128,128], index: 3, kind: input, shape index: {}]   ;;  %s1825_s4 = inlined_call_operand.vmem [shape: bf16[128,128], index: 4, kind: input, shape index: {}]   ;;  %s1826_s5 = inlined_call_operand.vmem [shape: bf16[128,128], index: 5, kind: input, shape index: {}]   ;;  %s1827_s6 = inlined_call_operand.vmem [shape: bf16[128,128], index: 6, kind: input, shape index: {}]   ;;  %s1828_s7 = inlined_call_operand.vmem [shape: bf16[128,128], index: 7, kind: input, shape index: {}]   ;;  %s1829_s8 = inlined_call_operand.vmem [shape: f32[1,128], index: 8, kind: input, shape index: {}]   ;;  %s1830_s9 = inlined_call_operand.vmem [shape: bf16[4,16,128], index: 9, kind: output, shape index: {}]  }
   0x1 LB: > { %s1199_s10 = sadd.s32 4294967295, %s1544_s30   ;;  %p1203_p0 = scmp.ge.s32.totalorder %s1544_s30, 1  ;;  %s1544_s30 = sphi %s1598_s30, %s19_s30  }
   0x2   : > { %p303_p1 = scmp.lt.s32.totalorder %s1544_s30, 5 }
   0x4   : > { %p304_p2 = pnand %p1203_p0, %p303_p1 }
   0x5   : > { %v1490_v0 = vld [vmem:[%s1826_s5] sm:$0xff] (!%p304_p2)   ;;  %v1491_v1 = vld [vmem:[%s1826_s5 + $0x8] sm:$0xff] (!%p304_p2)   ;;  %v1492_v2 = vld [vmem:[%s1826_s5 + $0x10] sm:$0xff] (!%p304_p2)   ;;  %p345_p3 = scmp.lt.s32.totalorder (!%p304_p2), %s1199_s10, 3  ;;  %v1546_v15 = vmov (!%p304_p2), 0.0   ;;  %vm1547_vm0 = vmmov (!%p304_p2), 0  }
   0x6   : > { %307 = sbr.rel (%p304_p2) target bundleno = 1288 (0x508), region = 56  ;;  %1336 = vmatprep.subr.bf16.mxu0 (!%p304_p2), %v1490_v0  ;;  %v1493_v3 = vld [vmem:[%s1826_s5 + $0x18] sm:$0xff] (!%p304_p2)   ;;  %v1498_v4 = vld [vmem:[%s1824_s3] sm:$0xff] (!%p304_p2)   ;;  %v1495_v6 = vld [vmem:[%s1826_s5 + $0x28] sm:$0xff] (!%p304_p2)  }
   0x7   : > { %1337 = vmatpush3.bf16.msra.mxu0 (!%p304_p2), %v1490_v0  ;;  %1352 = vmatprep.mubr.bf16.mxu0 (!%p304_p2), %v1498_v4  ;;  %v1494_v5 = vld [vmem:[%s1826_s5 + $0x20] sm:$0xff] (!%p304_p2)   ;;  %v1496_v7 = vld [vmem:[%s1826_s5 + $0x30] sm:$0xff] (!%p304_p2)   ;;  %v1497_v8 = vld [vmem:[%s1826_s5 + $0x38] sm:$0xff] (!%p304_p2)  }
   0x8   : > { %1338 = vmatprep.subr.bf16.mxu0 (!%p304_p2), %v1491_v1  ;;  %1384 = vmatprep.mubr.bf16.mxu1 (!%p304_p2), %v1498_v4  ;;  %v1514_v9 = vld [vmem:[%s1827_s6] sm:$0xff] (!%p304_p2)   ;;  %v1515_v10 = vld [vmem:[%s1827_s6 + $0x8] sm:$0xff] (!%p304_p2)   ;;  %v1516_v12 = vld [vmem:[%s1827_s6 + $0x10] sm:$0xff] (!%p304_p2)  }
   0x9   : > { %1368 = vmatprep.subr.bf16.mxu1 (!%p304_p2), %v1514_v9  ;;  %v1642_v11 = vld [vmem:[%s1824_s3 + $0x8] sm:$0xff] (!%p304_p2)   ;;  %v1652_v13 = vld [vmem:[%s1824_s3 + $0x10] sm:$0xff] (!%p304_p2)   ;;  %v1504_v14 = vld [vmem:[%s1825_s4] sm:$0xff] (!%p304_p2)  }
   0xa   : > { %1369 = vmatpush3.bf16.msra.mxu1 (!%p304_p2), %v1514_v9  ;;  %v1517_v16 = vld [vmem:[%s1827_s6 + $0x18] sm:$0xff] (!%p304_p2)   ;;  %v1505_v17 = vld [vmem:[%s1825_s4 + $0x8] sm:$0xff] (!%p304_p2)   ;;  %v1518_v18 = vld [vmem:[%s1827_s6 + $0x20] sm:$0xff] (!%p304_p2)  }
   0xb   : > { %1339 = vmatpush3.bf16.msra.mxu0 (!%p304_p2), %v1491_v1  ;;  %1370 = vmatprep.subr.bf16.mxu1 (!%p304_p2), %v1515_v10  ;;  %v1677_v19 = vld [vmem:[%s1824_s3 + $0x18] sm:$0xff] (!%p304_p2)   ;;  %v1502_v20 = vld [vmem:[%s1824_s3 + $0x20] sm:$0xff] (!%p304_p2)   ;;  %v1506_v21 = vld [vmem:[%s1825_s4 + $0x10] sm:$0xff] (!%p304_p2)  }
   0xc   : > { %1340 = vmatprep.subr.bf16.mxu0 (!%p304_p2), %v1492_v2  ;;  %v1519_v22 = vld [vmem:[%s1827_s6 + $0x28] sm:$0xff] (!%p304_p2)   ;;  %v1507_v23 = vld [vmem:[%s1825_s4 + $0x18] sm:$0xff] (!%p304_p2)   ;;  %v1520_v24 = vld [vmem:[%s1827_s6 + $0x30] sm:$0xff] (!%p304_p2)  }
   0xd   : > { %s1832_s10 = smov (!%p345_p3, %s1199_s10), 3  ;;  %v1503_v25 = vld [vmem:[%s1824_s3 + $0x28] sm:$0xff]   ;;  %v1508_v26 = vld [vmem:[%s1824_s3 + $0x30] sm:$0xff]   ;;  %v1510_v27 = vld [vmem:[%s1825_s4 + $0x20] sm:$0xff]  }
   0xe   : > { %1371 = vmatpush3.bf16.msra.mxu1 %v1515_v10  ;;  %s1255_s15 = sshll.u32 %s1832_s10, 3  ;;  %s352_s14 = scalar_lea.vmem %s1822_s1, %s1832_s10  ;;  %v1521_v29 = vld [vmem:[%s1827_s6 + $0x38] sm:$0xff]   ;;  %v1511_v32 = vld [vmem:[%s1825_s4 + $0x28] sm:$0xff]   ;;  %v1512_v37 = vld [vmem:[%s1825_s4 + $0x30] sm:$0xff]  }
   0xf   : > { %1341 = vmatpush3.bf16.msra.mxu0 %v1492_v2  ;;  %1372 = vmatprep.subr.bf16.mxu1 %v1516_v12  ;;  %s349_s22 = scalar_lea.vmem %s1821_s0, %s1255_s15  ;;  %v1208_v33 = vld [vmem:[%s352_s14] ss:$0 sm:$0xff]  ;;  %v1509_v34 = vld [vmem:[%s1824_s3 + $0x38] sm:$0xff]   ;;  %s360_s12 = scalar_lea.vmem %s1830_s9, %s1255_s15 }
  0x10   : > { %1342 = vmatprep.subr.bf16.mxu0 %v1493_v3  ;;  %v1712_v28 = vld [vmem:[%s349_s22] sm:$0xff]   ;;  %s355_s22 = scalar_lea.vmem %s1823_s2, %s1832_s10  ;;  %v1513_v41 = vld [vmem:[%s1825_s4 + $0x38] sm:$0xff]  }
  0x11   : > { %v1261_v30 = vunpack.c.l.bf16 %v1712_v28  ;;  %v1262_v31 = vunpack.c.h.bf16 %v1712_v28  ;;  %v1209_v38 = vld [vmem:[%s355_s22] ss:$0 sm:$0xff] }
  0x12   : > { %1373 = vmatpush3.bf16.msra.mxu1 %v1516_v12 }
  0x13   : > { %1343 = vmatpush3.bf16.msra.mxu0 %v1493_v3  ;;  %1374 = vmatprep.subr.bf16.mxu1 %v1517_v16  ;;  %v373_v35 = vmul.f32 %v1261_v30, %v1208_v33  ;;  %v374_v36 = vmul.f32 %v1262_v31, %v1208_v33 }
  0x14   : > { %1344 = vmatprep.subr.bf16.mxu0 %v1494_v5 }
  0x15   : > { %v382_v39 = vadd.f32 %v1209_v38, %v373_v35  ;;  %v383_v40 = vadd.f32 %v1209_v38, %v374_v36  ;;  %v928_v36 = vlaneseq }
  0x16   : > { %1375 = vmatpush3.bf16.msra.mxu1 %v1517_v16 }
  0x17   : > { %1345 = vmatpush3.bf16.msra.mxu0 %v1494_v5  ;;  %1376 = vmatprep.subr.bf16.mxu1 %v1518_v18  ;;  %v384_v42 = vpack.c.bf16 %v383_v40, %v382_v39 }
  0x18   : > { %1346 = vmatprep.subr.bf16.mxu0 %v1495_v6 }
  0x1a   : > { %1377 = vmatpush3.bf16.msra.mxu1 %v1518_v18 }
  0x1b   : > { %1347 = vmatpush3.bf16.msra.mxu0 %v1495_v6  ;;  %1378 = vmatprep.subr.bf16.mxu1 %v1519_v22 }
  0x1c   : > { %1348 = vmatprep.subr.bf16.mxu0 %v1496_v7 }
  0x1e   : > { %1379 = vmatpush3.bf16.msra.mxu1 %v1519_v22 }
  0x1f   : > { %1349 = vmatpush3.bf16.msra.mxu0 %v1496_v7  ;;  %1380 = vmatprep.subr.bf16.mxu1 %v1520_v24 }
  0x20   : > { %1350 = vmatprep.subr.bf16.mxu0 %v1497_v8 }
  0x22   : > { %1381 = vmatpush3.bf16.msra.mxu1 %v1520_v24 }
  0x23   : > { %1351 = vmatpush3.bf16.msra.mxu0 %v1497_v8  ;;  %1382 = vmatprep.subr.bf16.mxu1 %v1521_v29 }
  0x24   : > { %1400 = vmatprep.subr.bf16.mxu0 %v1546_v15 }
  0x26   : > { %1353 = vmatmul.mubr.bf16.vlgmr.msra.gmra.mrb[0].mxu0 %v1642_v11  ;;  %1383 = vmatpush3.bf16.msra.mxu1 %v1521_v29 }
  0x27   : > { %1356 = vmatprep.mubr.bf16.mxu0 %v1652_v13  ;;  %1401 = vmatpush3.bf16.msra.mxu0 %v1504_v14 }
  0x28   : > { %1402 = vmatprep.subr.bf16.mxu0 %v1546_v15  ;;  %1420 = vmatprep.subr.bf16.mxu1 %v1546_v15 }
  0x29   : > { %1385 = vmatmul.mubr.bf16.vlgmr.msra.gmra.mrb[0].mxu1 %v1642_v11 }
  0x2a   : > { %1388 = vmatprep.mubr.bf16.mxu1 %v1652_v13 }
  0x2b   : > { %1403 = vmatpush3.bf16.msra.mxu0 %v1505_v17 }
  0x2c   : > { %1404 = vmatprep.subr.bf16.mxu0 %v1546_v15 }
  0x2e   : > { %1357 = vmatmul.mubr.bf16.gmra.mrb[4].mxu0 %v1677_v19 }
  0x2f   : > { %1360 = vmatprep.mubr.bf16.mxu0 %v1502_v20  ;;  %1405 = vmatpush3.bf16.msra.mxu0 %v1506_v21 }
  0x30   : > { %1406 = vmatprep.subr.bf16.mxu0 %v1546_v15 }
  0x31   : > { %1389 = vmatmul.mubr.bf16.gmra.mrb[4].mxu1 %v1677_v19 }
  0x32   : > { %1392 = vmatprep.mubr.bf16.mxu1 %v1502_v20 }
  0x33   : > { %1407 = vmatpush3.bf16.msra.mxu0 %v1507_v23 }
  0x34   : > { %1408 = vmatprep.subr.bf16.mxu0 %v1546_v15 }
  0x36   : > { %1361 = vmatmul.mubr.bf16.gmra.mrb[8].mxu0 %v1503_v25 }
  0x37   : > { %1364 = vmatprep.mubr.bf16.mxu0 %v1508_v26  ;;  %1409 = vmatpush3.bf16.msra.mxu0 %v1510_v27 }
  0x38   : > { %1410 = vmatprep.subr.bf16.mxu0 %v1546_v15 }
  0x39   : > { %1393 = vmatmul.mubr.bf16.gmra.mrb[8].mxu1 %v1503_v25 }
  0x3a   : > { %1396 = vmatprep.mubr.bf16.mxu1 %v1508_v26 }
  0x3b   : > { %1411 = vmatpush3.bf16.msra.mxu0 %v1511_v32 }
  0x3c   : > { %1412 = vmatprep.subr.bf16.mxu0 %v1546_v15 }
  0x3e   : > { %1365 = vmatmul.mubr.bf16.gmra.mrb[12].mxu0 %v1509_v34 }
  0x3f   : > { %1413 = vmatpush3.bf16.msra.mxu0 %v1512_v37  ;;  %1416 = vmatprep.mubr.msk.bf16.mxu0 %vm1547_vm0, %v1546_v15  ;;  %v929_v37 = vand.u32 127, %v928_v36 }
  0x40   : > { %1414 = vmatprep.subr.bf16.mxu0 %v1546_v15 }
  0x41   : > { %1397 = vmatmul.mubr.bf16.gmra.mrb[12].mxu1 %v1509_v34  ;;  %vm930_vm1 = vcmp.lt.s32.totalorder %v929_v37, 8 }
  0x42   : > { %1436 = vmatprep.mubr.msk.bf16.mxu1 %vm1547_vm0, %v1546_v15 }
  0x43   : > { %1415 = vmatpush3.bf16.msra.mxu0 %v1513_v41 }
  0x44   : > { %1440 = vmatprep.subr.bf16.mxu0 %v1546_v15 }
  0x46   : > { %1417 = vmatmul.mubr.bf16.vlgmr.msra.gmra.mrb[16].mxu0 %v384_v42 }
  0x47   : > { %1456 = vmatprep.mubr.msk.bf16.mxu0 %vm1547_vm0, %v1546_v15 }
  0xf9   : > { %v1354_v43 = vpop.f32.mrb[0].mxu0 }
  0xfa   : > { %v547_v44 = vpop.f32.mrb[1].mxu0 }
  0xfb   : > { %v1355_v45 = vpop.f32.mrb[2].mxu0 }
  0xfc   : > { %v878_v46 = vpack.c.bf16 %v1355_v45, %v1354_v43  ;;  %v550_v47 = vpop.f32.mrb[3].mxu0  ;;  %v1386_v0 = vpop.f32.mrb[0].mxu1 }
  0xfd   : > { %v877_v48 = vpack.c.bf16 %v550_v47, %v547_v44  ;;  %v708_v3 = vpop.f32.mrb[1].mxu1 }
  0xfe   : > { %v1387_v5 = vpop.f32.mrb[2].mxu1 }
  0xff   : > { %1421 = vmatpush3.bf16.xpose.msra.mxu1 %v877_v48  ;;  %v953_v6 = vpack.c.bf16 %v1387_v5, %v1386_v0  ;;  %v711_v7 = vpop.f32.mrb[3].mxu1  ;;  %v1525_v0 = vld [vmem:[%s1828_s7 + $0x18] sm:$0xff]  }
 0x100   : > { %1422 = vmatprep.subr.bf16.mxu1 %v1546_v15  ;;  %v952_v8 = vpack.c.bf16 %v711_v7, %v708_v3  ;;  %v1528_v3 = vld [vmem:[%s1828_s7 + $0x30] sm:$0xff]  }
 0x101   : > { %v1358_v49 = vpop.f32.mrb[4].mxu0 }
 0x102   : > { %v563_v50 = vpop.f32.mrb[5].mxu0  ;;  %1441 = vmatpush3.bf16.msra.mxu0 %v952_v8 }
 0x103   : > { %v1359_v51 = vpop.f32.mrb[6].mxu0  ;;  %1442 = vmatprep.subr.bf16.mxu0 %v1546_v15 }
 0x104   : > { %v880_v52 = vpack.c.bf16 %v1359_v51, %v1358_v49  ;;  %v566_v53 = vpop.f32.mrb[7].mxu0  ;;  %v1390_v12 = vpop.f32.mrb[4].mxu1 }
 0x105   : > { %v879_v54 = vpack.c.bf16 %v566_v53, %v563_v50  ;;  %v724_v16 = vpop.f32.mrb[5].mxu1 }
 0x106   : > { %1443 = vmatpush3.bf16.msra.mxu0 %v953_v6  ;;  %v1391_v17 = vpop.f32.mrb[6].mxu1 }
 0x107   : > { %1423 = vmatpush3.bf16.xpose.msra.mxu1 %v878_v46  ;;  %v955_v18 = vpack.c.bf16 %v1391_v17, %v1390_v12  ;;  %v727_v19 = vpop.f32.mrb[7].mxu1  ;;  %1444 = vmatprep.subr.bf16.mxu0 %v1546_v15 }
 0x108   : > { %1424 = vmatprep.subr.bf16.mxu1 %v1546_v15  ;;  %v954_v20 = vpack.c.bf16 %v727_v19, %v724_v16 }
 0x109   : > { %v1362_v55 = vpop.f32.mrb[8].mxu0 }
 0x10a   : > { %v579_v56 = vpop.f32.mrb[9].mxu0  ;;  %1445 = vmatpush3.bf16.msra.mxu0 %v954_v20 }
 0x10b   : > { %v1363_v57 = vpop.f32.mrb[10].mxu0  ;;  %1446 = vmatprep.subr.bf16.mxu0 %v1546_v15 }
 0x10c   : > { %v882_v58 = vpack.c.bf16 %v1363_v57, %v1362_v55  ;;  %v582_v59 = vpop.f32.mrb[11].mxu0  ;;  %v1394_v21 = vpop.f32.mrb[8].mxu1 }
 0x10d   : > { %v881_v60 = vpack.c.bf16 %v582_v59, %v579_v56  ;;  %v740_v22 = vpop.f32.mrb[9].mxu1 }
 0x10e   : > { %v1395_v23 = vpop.f32.mrb[10].mxu1  ;;  %1447 = vmatpush3.bf16.msra.mxu0 %v955_v18 }
 0x10f   : > { %1425 = vmatpush3.bf16.xpose.msra.mxu1 %v879_v54  ;;  %v957_v24 = vpack.c.bf16 %v1395_v23, %v1394_v21  ;;  %v743_v25 = vpop.f32.mrb[11].mxu1  ;;  %1448 = vmatprep.subr.bf16.mxu0 %v1546_v15 }
 0x110   : > { %1426 = vmatprep.subr.bf16.mxu1 %v1546_v15  ;;  %v956_v26 = vpack.c.bf16 %v743_v25, %v740_v22 }
 0x111   : > { %v1366_v61 = vpop.f32.mrb[12].mxu0 }
 0x112   : > { %v595_v62 = vpop.f32.mrb[13].mxu0  ;;  %1449 = vmatpush3.bf16.msra.mxu0 %v956_v26 }
 0x113   : > { %v1367_v63 = vpop.f32.mrb[14].mxu0  ;;  %1450 = vmatprep.subr.bf16.mxu0 %v1546_v15 }
 0x114   : > { %v884_v1 = vpack.c.bf16 %v1367_v63, %v1366_v61  ;;  %v598_v2 = vpop.f32.mrb[15].mxu0  ;;  %v1398_v27 = vpop.f32.mrb[12].mxu1  ;;  %v1524_v63 = vld [vmem:[%s1828_s7 + $0x10] sm:$0xff]  }
 0x115   : > { %v883_v4 = vpack.c.bf16 %v598_v2, %v595_v62  ;;  %v756_v29 = vpop.f32.mrb[13].mxu1  ;;  %v1523_v62 = vld [vmem:[%s1828_s7 + $0x8] sm:$0xff]  }
 0x116   : > { %v1399_v32 = vpop.f32.mrb[14].mxu1  ;;  %1451 = vmatpush3.bf16.msra.mxu0 %v957_v24  ;;  %v1527_v2 = vld [vmem:[%s1828_s7 + $0x28] sm:$0xff]  }
 0x117   : > { %1427 = vmatpush3.bf16.xpose.msra.mxu1 %v880_v52  ;;  %v959_v33 = vpack.c.bf16 %v1399_v32, %v1398_v27  ;;  %v759_v34 = vpop.f32.mrb[15].mxu1  ;;  %1452 = vmatprep.subr.bf16.mxu0 %v1546_v15 }
 0x118   : > { %1428 = vmatprep.subr.bf16.mxu1 %v1546_v15  ;;  %v958_v35 = vpack.c.bf16 %v759_v34, %v756_v29 }
 0x119   : > { %v869_v9 = vpop.f32.mrb[16].mxu0 }
 0x11a   : > { %v1418_v10 = vpop.f32.mrb[17].mxu0  ;;  %1453 = vmatpush3.bf16.msra.mxu0 %v958_v35 }
 0x11b   : > { %v872_v11 = vpop.f32.mrb[18].mxu0  ;;  %1454 = vmatprep.subr.bf16.mxu0 %v1546_v15  ;;  %v1242_v10 = vld [vmem:[%s1829_s8] ss:$0 sm:$0xff] }
 0x11c   : > { %v876_v13 = vpack.c.bf16 %v872_v11, %v869_v9  ;;  %v1419_v14 = vpop.f32.mrb[19].mxu0 }
 0x11e   : > { %1455 = vmatpush3.bf16.msra.mxu0 %v959_v33 }
 0x11f   : > { %1429 = vmatpush3.bf16.xpose.msra.mxu1 %v881_v60  ;;  %1460 = vmatprep.subr.bf16.mxu0 %v1546_v15  ;;  %v1522_v60 = vld [vmem:[%s1828_s7] sm:$0xff]  }
 0x120   : > { %1430 = vmatprep.subr.bf16.mxu1 %v1546_v15 }
 0x127   : > { %1431 = vmatpush3.bf16.xpose.msra.mxu1 %v882_v58 }
 0x128   : > { %1432 = vmatprep.subr.bf16.mxu1 %v1546_v15 }
 0x12f   : > { %1433 = vmatpush3.bf16.xpose.msra.mxu1 %v883_v4  ;;  %v1529_v4 = vld [vmem:[%s1828_s7 + $0x38] sm:$0xff]  }
 0x130   : > { %1434 = vmatprep.subr.bf16.mxu1 %v1546_v15 }
 0x137   : > { %1435 = vmatpush3.bf16.xpose.msra.mxu1 %v884_v1  ;;  %v1526_v1 = vld [vmem:[%s1828_s7 + $0x20] sm:$0xff]  }
 0x13e   : > { %1437 = vmatmul.mubr.bf16.vlgmr.msra.gmra.mrb[16].mxu1 %v876_v13 }
 0x211   : > { %v919_v38 = vpop.f32.mrb[16].mxu1 }
 0x212   : > { %v926_v39 = vmul.f32 0.17677669, %v919_v38  ;;  %v1438_v40 = vpop.f32.mrb[17].mxu1 }
 0x213   : > { %v922_v41 = vpop.f32.mrb[18].mxu1 }
 0x214   : > { %v927_v42 = vmul.f32 0.17677669, %v922_v41  ;;  %v1439_v43 = vpop.f32.mrb[19].mxu1  ;;  %v931_v44 = vsel %vm930_vm1, %v926_v39, -1e+30 }
 0x215   : > { %933 = vmax.xlane.f32.xlu0 %v931_v44 }
 0x216   : > { %v932_v45 = vsel %vm930_vm1, %v927_v42, -1e+30 }
 0x219   : > { %935 = vmax.xlane.f32.xlu0 %v932_v45 }
 0x2a2   : > { %v934_v46 = vpop.xlane.xlu0 %933 }
 0x2a3   : > { %v937_v47 = vsub.f32 %v931_v44, %v934_v46 }
 0x2a5   : > { %v939_v48 = vmul.f32 1.442695, %v937_v47 }
 0x2a6   : > { %v936_v49 = vpop.xlane.xlu0 %935 }
 0x2a7   : > { %1530 = vpow2.f32 %v939_v48  ;;  %v938_v50 = vsub.f32 %v932_v45, %v936_v49 }
 0x2a9   : > { %v941_v51 = vmul.f32 1.442695, %v938_v50 }
 0x2ab   : > { %1532 = vpow2.f32 %v941_v51 }
 0x2b1   : > { %v1531_v52 = vpop.eup %1530 }
 0x2b2   : > { %943 = vadd.xlane.f32.xlu1 %v1531_v52 }
 0x2b5   : > { %v1533_v53 = vpop.eup %1532 }
 0x2b6   : > { %945 = vadd.xlane.f32.xlu1 %v1533_v53 }
 0x33f   : > { %v944_v54 = vpop.xlane.xlu1 %943 }
 0x340   : > { %1534 = vrcp.f32 %v944_v54 }
 0x343   : > { %v946_v55 = vpop.xlane.xlu1 %945 }
 0x344   : > { %1536 = vrcp.f32 %v946_v55 }
 0x34a   : > { %v1535_v56 = vpop.eup %1534 }
 0x34b   : > { %v949_v58 = vmul.f32 %v1535_v56, %v1531_v52 }
 0x34e   : > { %v1537_v57 = vpop.eup %1536 }
 0x34f   : > { %v950_v59 = vmul.f32 %v1537_v57, %v1533_v53 }
 0x351   : > { %v951_v61 = vpack.c.bf16 %v950_v59, %v949_v58 }
 0x353   : > { %1457 = vmatmul.mubr.bf16.vlgmr.msra.gmra.mrb[20].mxu0 %v951_v61 }
 0x354   : > { %1461 = vmatpush3.bf16.msra.mxu0 %v1522_v60  ;;  %1476 = vmatprep.mubr.msk.bf16.mxu0 %vm1547_vm0, %v1546_v15 }
 0x355   : > { %1462 = vmatprep.subr.bf16.mxu0 %v1546_v15 }
 0x358   : > { %1463 = vmatpush3.bf16.msra.mxu0 %v1523_v62 }
 0x359   : > { %1464 = vmatprep.subr.bf16.mxu0 %v1546_v15 }
 0x35c   : > { %1465 = vmatpush3.bf16.msra.mxu0 %v1524_v63 }
 0x35d   : > { %1466 = vmatprep.subr.bf16.mxu0 %v1546_v15 }
 0x360   : > { %1467 = vmatpush3.bf16.msra.mxu0 %v1525_v0 }
 0x361   : > { %1468 = vmatprep.subr.bf16.mxu0 %v1546_v15 }
 0x364   : > { %1469 = vmatpush3.bf16.msra.mxu0 %v1526_v1 }
 0x365   : > { %1470 = vmatprep.subr.bf16.mxu0 %v1546_v15 }
 0x368   : > { %1471 = vmatpush3.bf16.msra.mxu0 %v1527_v2 }
 0x369   : > { %1472 = vmatprep.subr.bf16.mxu0 %v1546_v15 }
 0x36c   : > { %1473 = vmatpush3.bf16.msra.mxu0 %v1528_v3 }
 0x36d   : > { %1474 = vmatprep.subr.bf16.mxu0 %v1546_v15 }
 0x370   : > { %1475 = vmatpush3.bf16.msra.mxu0 %v1529_v4 }
 0x426   : > { %v994_v5 = vpop.f32.mrb[20].mxu0 }
 0x427   : > { %v1458_v6 = vpop.f32.mrb[21].mxu0 }
 0x428   : > { %v997_v7 = vpop.f32.mrb[22].mxu0 }
 0x429   : > { %v1001_v8 = vpack.c.bf16 %v997_v7, %v994_v5  ;;  %v1459_v9 = vpop.f32.mrb[23].mxu0 }
 0x42b   : > { %1477 = vmatmul.mubr.bf16.vlgmr.msra.gmra.mrb[24].mxu0 %v1001_v8 }
 0x4fe   : > { %v1107_v11 = vpop.f32.mrb[24].mxu0 }
 0x4ff   : > { %v1108_v12 = vadd.f32 %v1242_v10, %v1107_v11  ;;  %v1478_v13 = vpop.f32.mrb[25].mxu0 }
 0x500   : > { %v1110_v15 = vpop.f32.mrb[26].mxu0 }
 0x501   : > { %v1111_v14 = vadd.f32 %v1242_v10, %v1110_v15  ;;  %v1479_v16 = vpop.f32.mrb[27].mxu0  ;;  %v1114_v17 = vadd.f32 %v1261_v30, %v1108_v12 }
 0x503   : > { %v1115_v18 = vadd.f32 %v1262_v31, %v1111_v14 }
 0x505   : > { %v1266_v19 = vpack.c.bf16 %v1115_v18, %v1114_v17 }
 0x507   : > { %1267 = vst [vmem:[%s360_s12] sm:$0xff] %v1266_v19  }
 0x508 PF: > { %s19_s30 = sadd.s32 1, %s1544_s30  }
 0x509   : > { %p16_p4 = scmp.ge.s32.totalorder %s19_s30, 6  }
 0x50b   :  { %18 = sbr.rel (!%p16_p4) target bundleno = 1 (0x1), region = 92 }

// kernel: sd_featurizer_forward.36
= control target key start
LH: loop header
LB: loop body
LE: loop exit
PB: predicated region body
PF: predicated region fallthrough
CT: control target
= control target key end

     0   :  { %s414_s1 = inlined_call_operand.vmem [shape: bf16[128,128], index: 1, kind: input, shape index: {}]   ;;  %s415_s0 = inlined_call_operand.vmem [shape: bf16[64,128], index: 0, kind: input, shape index: {}]   ;;  %s416_s2 = inlined_call_operand.vmem [shape: f32[1,128], index: 2, kind: input, shape index: {}]   ;;  %s417_s3 = inlined_call_operand.vmem [shape: bf16[64,128], index: 3, kind: output, shape index: {}]  }
   0x1   :  { %v331_v0 = vld [vmem:[%s414_s1] sm:$0xff]   ;;  %v332_v1 = vld [vmem:[%s414_s1 + $0x8] sm:$0xff]   ;;  %v333_v2 = vld [vmem:[%s414_s1 + $0x10] sm:$0xff]  }
   0x2   :  { %291 = vmatprep.subr.bf16.mxu0 %v331_v0  ;;  %315 = vmatprep.subr.bf16.mxu1 %v331_v0  ;;  %v334_v3 = vld [vmem:[%s414_s1 + $0x18] sm:$0xff]   ;;  %v339_v4 = vld [vmem:[%s415_s0] sm:$0xff]   ;;  %v340_v5 = vld [vmem:[%s415_s0 + $0x10] sm:$0xff]  }
   0x3   :  { %292 = vmatpush3.bf16.msra.mxu0 %v331_v0  ;;  %323 = vmatpush3.bf16.msra.mxu1 %v331_v0  ;;  %v335_v6 = vld [vmem:[%s414_s1 + $0x20] sm:$0xff]   ;;  %v336_v7 = vld [vmem:[%s414_s1 + $0x28] sm:$0xff]   ;;  %v337_v8 = vld [vmem:[%s414_s1 + $0x30] sm:$0xff]  }
   0x4   :  { %293 = vmatprep.subr.bf16.mxu0 %v332_v1  ;;  %316 = vmatprep.subr.bf16.mxu1 %v332_v1  ;;  %v338_v9 = vld [vmem:[%s414_s1 + $0x38] sm:$0xff]   ;;  %v341_v10 = vld [vmem:[%s415_s0 + $0x8] sm:$0xff]   ;;  %v227_v13 = vld [vmem:[%s416_s2] ss:$0 sm:$0xff] }
   0x5   :  { %307 = vmatprep.mubr.bf16.mxu0 %v339_v4  ;;  %311 = vmatprep.mubr.bf16.mxu1 %v340_v5  ;;  %v342_v11 = vld [vmem:[%s415_s0 + $0x18] sm:$0xff]  }
   0x7   :  { %294 = vmatpush3.bf16.msra.mxu0 %v332_v1  ;;  %324 = vmatpush3.bf16.msra.mxu1 %v332_v1 }
   0x8   :  { %295 = vmatprep.subr.bf16.mxu0 %v333_v2  ;;  %317 = vmatprep.subr.bf16.mxu1 %v333_v2 }
   0xb   :  { %296 = vmatpush3.bf16.msra.mxu0 %v333_v2  ;;  %325 = vmatpush3.bf16.msra.mxu1 %v333_v2 }
   0xc   :  { %297 = vmatprep.subr.bf16.mxu0 %v334_v3  ;;  %318 = vmatprep.subr.bf16.mxu1 %v334_v3 }
   0xf   :  { %298 = vmatpush3.bf16.msra.mxu0 %v334_v3  ;;  %326 = vmatpush3.bf16.msra.mxu1 %v334_v3 }
  0x10   :  { %299 = vmatprep.subr.bf16.mxu0 %v335_v6  ;;  %319 = vmatprep.subr.bf16.mxu1 %v335_v6 }
  0x13   :  { %300 = vmatpush3.bf16.msra.mxu0 %v335_v6  ;;  %327 = vmatpush3.bf16.msra.mxu1 %v335_v6 }
  0x14   :  { %301 = vmatprep.subr.bf16.mxu0 %v336_v7  ;;  %320 = vmatprep.subr.bf16.mxu1 %v336_v7 }
  0x17   :  { %302 = vmatpush3.bf16.msra.mxu0 %v336_v7  ;;  %328 = vmatpush3.bf16.msra.mxu1 %v336_v7 }
  0x18   :  { %303 = vmatprep.subr.bf16.mxu0 %v337_v8  ;;  %321 = vmatprep.subr.bf16.mxu1 %v337_v8 }
  0x1b   :  { %304 = vmatpush3.bf16.msra.mxu0 %v337_v8  ;;  %329 = vmatpush3.bf16.msra.mxu1 %v337_v8 }
  0x1c   :  { %305 = vmatprep.subr.bf16.mxu0 %v338_v9  ;;  %322 = vmatprep.subr.bf16.mxu1 %v338_v9 }
  0x1f   :  { %306 = vmatpush3.bf16.msra.mxu0 %v338_v9  ;;  %330 = vmatpush3.bf16.msra.mxu1 %v338_v9 }
  0x22   :  { %308 = vmatmul.mubr.bf16.vlgmr.msra.gmra.mrb[0].mxu0 %v341_v10  ;;  %312 = vmatmul.mubr.bf16.vlgmr.msra.gmra.mrb[0].mxu1 %v342_v11 }
  0xf5   :  { %v309_v12 = vpop.f32.mrb[0].mxu0  ;;  %v313_v14 = vpop.f32.mrb[0].mxu1 }
  0xf6   :  { %v152_v15 = vpop.f32.mrb[1].mxu0  ;;  %v168_v16 = vpop.f32.mrb[1].mxu1  ;;  %v161_v19 = vadd.f32 %v309_v12, %v227_v13  ;;  %v177_v20 = vadd.f32 %v313_v14, %v227_v13 }
  0xf7   :  { %v310_v17 = vpop.f32.mrb[2].mxu0  ;;  %v314_v18 = vpop.f32.mrb[2].mxu1  ;;  %v153_v25 = vadd.f32 %v227_v13, %v152_v15  ;;  %v169_v26 = vadd.f32 %v227_v13, %v168_v16 }
  0xf8   :  { %v164_v21 = vadd.f32 %v310_v17, %v227_v13  ;;  %v180_v22 = vadd.f32 %v314_v18, %v227_v13  ;;  %v155_v23 = vpop.f32.mrb[3].mxu0  ;;  %v171_v24 = vpop.f32.mrb[3].mxu1 }
  0xf9   :  { %v156_v27 = vadd.f32 %v227_v13, %v155_v23  ;;  %v172_v28 = vadd.f32 %v227_v13, %v171_v24 }
  0xfa   :  { %v264_v29 = vpack.c.bf16 %v164_v21, %v161_v19  ;;  %v274_v30 = vpack.c.bf16 %v180_v22, %v177_v20 }
  0xfb   :  { %v259_v31 = vpack.c.bf16 %v156_v27, %v153_v25  ;;  %v269_v32 = vpack.c.bf16 %v172_v28, %v169_v26 }
  0xfc   :  { %276 = vst [vmem:[%s417_s3 + $0x8] sm:$0xff] %v264_v29   ;;  %278 = vst [vmem:[%s417_s3 + $0x18] sm:$0xff] %v274_v30  }
  0xfd   :  { %260 = vst [vmem:[%s417_s3] sm:$0xff] %v259_v31   ;;  %277 = vst [vmem:[%s417_s3 + $0x10] sm:$0xff] %v269_v32  }

// kernel: sd_featurizer_forward.40
= control target key start
LH: loop header
LB: loop body
LE: loop exit
PB: predicated region body
PF: predicated region fallthrough
CT: control target
= control target key end

     0   :  { %s1012_s1 = inlined_call_operand.vmem [shape: bf16[128,128], index: 1, kind: input, shape index: {}]   ;;  %s1013_s0 = inlined_call_operand.vmem [shape: bf16[256,128], index: 0, kind: input, shape index: {}]   ;;  %s1014_s2 = inlined_call_operand.vmem [shape: f32[1,128], index: 2, kind: input, shape index: {}]   ;;  %s1015_s3 = inlined_call_operand.vmem [shape: bf16[256,128], index: 3, kind: output, shape index: {}]  }
   0x1   :  { %v811_v0 = vld [vmem:[%s1012_s1] sm:$0xff]   ;;  %v812_v1 = vld [vmem:[%s1012_s1 + $0x8] sm:$0xff]   ;;  %v813_v2 = vld [vmem:[%s1012_s1 + $0x10] sm:$0xff]  }
   0x2   :  { %747 = vmatprep.subr.bf16.mxu0 %v811_v0  ;;  %795 = vmatprep.subr.bf16.mxu1 %v811_v0  ;;  %v814_v3 = vld [vmem:[%s1012_s1 + $0x18] sm:$0xff]   ;;  %v819_v4 = vld [vmem:[%s1013_s0] sm:$0xff]   ;;  %v816_v7 = vld [vmem:[%s1012_s1 + $0x28] sm:$0xff]  }
   0x3   :  { %748 = vmatpush3.bf16.msra.mxu0 %v811_v0  ;;  %803 = vmatpush3.bf16.msra.mxu1 %v811_v0  ;;  %v820_v5 = vld [vmem:[%s1013_s0 + $0x40] sm:$0xff]   ;;  %v817_v8 = vld [vmem:[%s1012_s1 + $0x30] sm:$0xff]   ;;  %v818_v9 = vld [vmem:[%s1012_s1 + $0x38] sm:$0xff]  }
   0x4   :  { %749 = vmatprep.subr.bf16.mxu0 %v812_v1  ;;  %796 = vmatprep.subr.bf16.mxu1 %v812_v1  ;;  %v815_v6 = vld [vmem:[%s1012_s1 + $0x20] sm:$0xff]   ;;  %v821_v10 = vld [vmem:[%s1013_s0 + $0x8] sm:$0xff]   ;;  %v823_v12 = vld [vmem:[%s1013_s0 + $0x10] sm:$0xff]  }
   0x5   :  { %763 = vmatprep.mubr.bf16.mxu0 %v819_v4  ;;  %779 = vmatprep.mubr.bf16.mxu1 %v820_v5  ;;  %v822_v11 = vld [vmem:[%s1013_s0 + $0x48] sm:$0xff]   ;;  %v824_v13 = vld [vmem:[%s1013_s0 + $0x50] sm:$0xff]   ;;  %v825_v14 = vld [vmem:[%s1013_s0 + $0x18] sm:$0xff]  }
   0x6   :  { %v826_v15 = vld [vmem:[%s1013_s0 + $0x58] sm:$0xff]   ;;  %v827_v16 = vld [vmem:[%s1013_s0 + $0x20] sm:$0xff]   ;;  %v829_v18 = vld [vmem:[%s1013_s0 + $0x28] sm:$0xff]  }
   0x7   :  { %750 = vmatpush3.bf16.msra.mxu0 %v812_v1  ;;  %804 = vmatpush3.bf16.msra.mxu1 %v812_v1  ;;  %v828_v17 = vld [vmem:[%s1013_s0 + $0x60] sm:$0xff]   ;;  %v830_v19 = vld [vmem:[%s1013_s0 + $0x68] sm:$0xff]   ;;  %v831_v20 = vld [vmem:[%s1013_s0 + $0x30] sm:$0xff]  }
   0x8   :  { %751 = vmatprep.subr.bf16.mxu0 %v813_v2  ;;  %797 = vmatprep.subr.bf16.mxu1 %v813_v2  ;;  %v832_v21 = vld [vmem:[%s1013_s0 + $0x70] sm:$0xff]   ;;  %v833_v22 = vld [vmem:[%s1013_s0 + $0x38] sm:$0xff]   ;;  %v930_v25 = vld [vmem:[%s1014_s2] ss:$0 sm:$0xff] }
   0x9   :  { %v834_v23 = vld [vmem:[%s1013_s0 + $0x78] sm:$0xff]  }
   0xb   :  { %752 = vmatpush3.bf16.msra.mxu0 %v813_v2  ;;  %805 = vmatpush3.bf16.msra.mxu1 %v813_v2 }
   0xc   :  { %753 = vmatprep.subr.bf16.mxu0 %v814_v3  ;;  %798 = vmatprep.subr.bf16.mxu1 %v814_v3 }
   0xf   :  { %754 = vmatpush3.bf16.msra.mxu0 %v814_v3  ;;  %806 = vmatpush3.bf16.msra.mxu1 %v814_v3 }
  0x10   :  { %755 = vmatprep.subr.bf16.mxu0 %v815_v6  ;;  %799 = vmatprep.subr.bf16.mxu1 %v815_v6 }
  0x13   :  { %756 = vmatpush3.bf16.msra.mxu0 %v815_v6  ;;  %807 = vmatpush3.bf16.msra.mxu1 %v815_v6 }
  0x14   :  { %757 = vmatprep.subr.bf16.mxu0 %v816_v7  ;;  %800 = vmatprep.subr.bf16.mxu1 %v816_v7 }
  0x17   :  { %758 = vmatpush3.bf16.msra.mxu0 %v816_v7  ;;  %808 = vmatpush3.bf16.msra.mxu1 %v816_v7 }
  0x18   :  { %759 = vmatprep.subr.bf16.mxu0 %v817_v8  ;;  %801 = vmatprep.subr.bf16.mxu1 %v817_v8 }
  0x1b   :  { %760 = vmatpush3.bf16.msra.mxu0 %v817_v8  ;;  %809 = vmatpush3.bf16.msra.mxu1 %v817_v8 }
  0x1c   :  { %761 = vmatprep.subr.bf16.mxu0 %v818_v9  ;;  %802 = vmatprep.subr.bf16.mxu1 %v818_v9 }
  0x1f   :  { %762 = vmatpush3.bf16.msra.mxu0 %v818_v9  ;;  %810 = vmatpush3.bf16.msra.mxu1 %v818_v9 }
  0x22   :  { %764 = vmatmul.mubr.bf16.vlgmr.msra.gmra.mrb[0].mxu0 %v821_v10  ;;  %780 = vmatmul.mubr.bf16.vlgmr.msra.gmra.mrb[0].mxu1 %v822_v11 }
  0x23   :  { %767 = vmatprep.mubr.bf16.mxu0 %v823_v12  ;;  %783 = vmatprep.mubr.bf16.mxu1 %v824_v13 }
  0x2a   :  { %768 = vmatmul.mubr.bf16.gmra.mrb[4].mxu0 %v825_v14  ;;  %784 = vmatmul.mubr.bf16.gmra.mrb[4].mxu1 %v826_v15 }
  0x2b   :  { %771 = vmatprep.mubr.bf16.mxu0 %v827_v16  ;;  %787 = vmatprep.mubr.bf16.mxu1 %v828_v17 }
  0x32   :  { %772 = vmatmul.mubr.bf16.gmra.mrb[8].mxu0 %v829_v18  ;;  %788 = vmatmul.mubr.bf16.gmra.mrb[8].mxu1 %v830_v19 }
  0x33   :  { %775 = vmatprep.mubr.bf16.mxu0 %v831_v20  ;;  %791 = vmatprep.mubr.bf16.mxu1 %v832_v21 }
  0x3a   :  { %776 = vmatmul.mubr.bf16.gmra.mrb[12].mxu0 %v833_v22  ;;  %792 = vmatmul.mubr.bf16.gmra.mrb[12].mxu1 %v834_v23 }
  0xf5   :  { %v765_v24 = vpop.f32.mrb[0].mxu0  ;;  %v781_v26 = vpop.f32.mrb[0].mxu1 }
  0xf6   :  { %v248_v27 = vpop.f32.mrb[1].mxu0  ;;  %v312_v28 = vpop.f32.mrb[1].mxu1  ;;  %v257_v31 = vadd.f32 %v765_v24, %v930_v25  ;;  %v321_v32 = vadd.f32 %v781_v26, %v930_v25 }
  0xf7   :  { %v766_v29 = vpop.f32.mrb[2].mxu0  ;;  %v782_v30 = vpop.f32.mrb[2].mxu1  ;;  %v249_v37 = vadd.f32 %v930_v25, %v248_v27  ;;  %v313_v38 = vadd.f32 %v930_v25, %v312_v28 }
  0xf8   :  { %v260_v33 = vadd.f32 %v766_v29, %v930_v25  ;;  %v324_v34 = vadd.f32 %v782_v30, %v930_v25  ;;  %v251_v35 = vpop.f32.mrb[3].mxu0  ;;  %v315_v36 = vpop.f32.mrb[3].mxu1 }
  0xf9   :  { %v252_v39 = vadd.f32 %v930_v25, %v251_v35  ;;  %v316_v40 = vadd.f32 %v930_v25, %v315_v36 }
  0xfa   :  { %v636_v41 = vpack.c.bf16 %v260_v33, %v257_v31  ;;  %v676_v42 = vpack.c.bf16 %v324_v34, %v321_v32 }
  0xfb   :  { %v631_v43 = vpack.c.bf16 %v252_v39, %v249_v37  ;;  %v671_v44 = vpack.c.bf16 %v316_v40, %v313_v38 }
  0xfc   :  { %708 = vst [vmem:[%s1015_s3 + $0x8] sm:$0xff] %v636_v41   ;;  %716 = vst [vmem:[%s1015_s3 + $0x48] sm:$0xff] %v676_v42  }
  0xfd   :  { %632 = vst [vmem:[%s1015_s3] sm:$0xff] %v631_v43   ;;  %715 = vst [vmem:[%s1015_s3 + $0x40] sm:$0xff] %v671_v44   ;;  %v769_v45 = vpop.f32.mrb[4].mxu0  ;;  %v785_v46 = vpop.f32.mrb[4].mxu1 }
  0xfe   :  { %v264_v47 = vpop.f32.mrb[5].mxu0  ;;  %v328_v48 = vpop.f32.mrb[5].mxu1  ;;  %v273_v51 = vadd.f32 %v769_v45, %v930_v25  ;;  %v337_v52 = vadd.f32 %v785_v46, %v930_v25 }
  0xff   :  { %v770_v49 = vpop.f32.mrb[6].mxu0  ;;  %v786_v50 = vpop.f32.mrb[6].mxu1  ;;  %v265_v57 = vadd.f32 %v930_v25, %v264_v47  ;;  %v329_v58 = vadd.f32 %v930_v25, %v328_v48 }
 0x100   :  { %v276_v53 = vadd.f32 %v770_v49, %v930_v25  ;;  %v340_v54 = vadd.f32 %v786_v50, %v930_v25  ;;  %v267_v55 = vpop.f32.mrb[7].mxu0  ;;  %v331_v56 = vpop.f32.mrb[7].mxu1 }
 0x101   :  { %v268_v59 = vadd.f32 %v930_v25, %v267_v55  ;;  %v332_v60 = vadd.f32 %v930_v25, %v331_v56 }
 0x102   :  { %v646_v61 = vpack.c.bf16 %v276_v53, %v273_v51  ;;  %v686_v62 = vpack.c.bf16 %v340_v54, %v337_v52 }
 0x103   :  { %v641_v63 = vpack.c.bf16 %v268_v59, %v265_v57  ;;  %v681_v0 = vpack.c.bf16 %v332_v60, %v329_v58 }
 0x104   :  { %710 = vst [vmem:[%s1015_s3 + $0x18] sm:$0xff] %v646_v61   ;;  %718 = vst [vmem:[%s1015_s3 + $0x58] sm:$0xff] %v686_v62  }
 0x105   :  { %709 = vst [vmem:[%s1015_s3 + $0x10] sm:$0xff] %v641_v63   ;;  %717 = vst [vmem:[%s1015_s3 + $0x50] sm:$0xff] %v681_v0   ;;  %v773_v1 = vpop.f32.mrb[8].mxu0  ;;  %v789_v2 = vpop.f32.mrb[8].mxu1 }
 0x106   :  { %v280_v3 = vpop.f32.mrb[9].mxu0  ;;  %v344_v4 = vpop.f32.mrb[9].mxu1  ;;  %v289_v7 = vadd.f32 %v773_v1, %v930_v25  ;;  %v353_v8 = vadd.f32 %v789_v2, %v930_v25 }
 0x107   :  { %v774_v5 = vpop.f32.mrb[10].mxu0  ;;  %v790_v6 = vpop.f32.mrb[10].mxu1  ;;  %v281_v13 = vadd.f32 %v930_v25, %v280_v3  ;;  %v345_v14 = vadd.f32 %v930_v25, %v344_v4 }
 0x108   :  { %v292_v9 = vadd.f32 %v774_v5, %v930_v25  ;;  %v356_v10 = vadd.f32 %v790_v6, %v930_v25  ;;  %v283_v11 = vpop.f32.mrb[11].mxu0  ;;  %v347_v12 = vpop.f32.mrb[11].mxu1 }
 0x109   :  { %v284_v15 = vadd.f32 %v930_v25, %v283_v11  ;;  %v348_v16 = vadd.f32 %v930_v25, %v347_v12 }
 0x10a   :  { %v656_v17 = vpack.c.bf16 %v292_v9, %v289_v7  ;;  %v696_v18 = vpack.c.bf16 %v356_v10, %v353_v8 }
 0x10b   :  { %v651_v19 = vpack.c.bf16 %v284_v15, %v281_v13  ;;  %v691_v20 = vpack.c.bf16 %v348_v16, %v345_v14 }
 0x10c   :  { %712 = vst [vmem:[%s1015_s3 + $0x28] sm:$0xff] %v656_v17   ;;  %720 = vst [vmem:[%s1015_s3 + $0x68] sm:$0xff] %v696_v18  }
 0x10d   :  { %711 = vst [vmem:[%s1015_s3 + $0x20] sm:$0xff] %v651_v19   ;;  %719 = vst [vmem:[%s1015_s3 + $0x60] sm:$0xff] %v691_v20   ;;  %v777_v21 = vpop.f32.mrb[12].mxu0  ;;  %v793_v22 = vpop.f32.mrb[12].mxu1 }
 0x10e   :  { %v296_v23 = vpop.f32.mrb[13].mxu0  ;;  %v360_v24 = vpop.f32.mrb[13].mxu1  ;;  %v305_v28 = vadd.f32 %v777_v21, %v930_v25  ;;  %v369_v29 = vadd.f32 %v793_v22, %v930_v25 }
 0x10f   :  { %v778_v26 = vpop.f32.mrb[14].mxu0  ;;  %v794_v27 = vpop.f32.mrb[14].mxu1  ;;  %v297_v34 = vadd.f32 %v930_v25, %v296_v23  ;;  %v361_v35 = vadd.f32 %v930_v25, %v360_v24 }
 0x110   :  { %v308_v30 = vadd.f32 %v778_v26, %v930_v25  ;;  %v372_v31 = vadd.f32 %v794_v27, %v930_v25  ;;  %v299_v32 = vpop.f32.mrb[15].mxu0  ;;  %v363_v33 = vpop.f32.mrb[15].mxu1 }
 0x111   :  { %v300_v36 = vadd.f32 %v930_v25, %v299_v32  ;;  %v364_v37 = vadd.f32 %v930_v25, %v363_v33 }
 0x112   :  { %v666_v38 = vpack.c.bf16 %v308_v30, %v305_v28  ;;  %v706_v39 = vpack.c.bf16 %v372_v31, %v369_v29 }
 0x113   :  { %v661_v40 = vpack.c.bf16 %v300_v36, %v297_v34  ;;  %v701_v41 = vpack.c.bf16 %v364_v37, %v361_v35 }
 0x114   :  { %714 = vst [vmem:[%s1015_s3 + $0x38] sm:$0xff] %v666_v38   ;;  %722 = vst [vmem:[%s1015_s3 + $0x78] sm:$0xff] %v706_v39  }
 0x115   :  { %713 = vst [vmem:[%s1015_s3 + $0x30] sm:$0xff] %v661_v40   ;;  %721 = vst [vmem:[%s1015_s3 + $0x70] sm:$0xff] %v701_v41  }

// kernel: sd_featurizer_forward.43
= control target key start
LH: loop header
LB: loop body
LE: loop exit
PB: predicated region body
PF: predicated region fallthrough
CT: control target
= control target key end

     0   :  { %s1941_s30 = smov 0   ;;  %s2190_s0 = inlined_call_operand.vmem [shape: bf16[4,64,128], index: 0, kind: input, shape index: {}]   ;;  %s2191_s1 = inlined_call_operand.vmem [shape: f32[4,1,128], index: 1, kind: input, shape index: {}]   ;;  %s2192_s2 = inlined_call_operand.vmem [shape: f32[4,1,128], index: 2, kind: input, shape index: {}]   ;;  %s2193_s3 = inlined_call_operand.vmem [shape: bf16[128,128], index: 3, kind: input, shape index: {}]   ;;  %s2194_s4 = inlined_call_operand.vmem [shape: bf16[128,128], index: 4, kind: input, shape index: {}]   ;;  %s2195_s5 = inlined_call_operand.vmem [shape: bf16[128,128], index: 5, kind: input, shape index: {}]   ;;  %s2196_s6 = inlined_call_operand.vmem [shape: bf16[128,128], index: 6, kind: input, shape index: {}]   ;;  %s2197_s7 = inlined_call_operand.vmem [shape: bf16[128,128], index: 7, kind: input, shape index: {}]   ;;  %s2198_s8 = inlined_call_operand.vmem [shape: f32[1,128], index: 8, kind: input, shape index: {}]   ;;  %s2199_s9 = inlined_call_operand.vmem [shape: bf16[4,64,128], index: 9, kind: output, shape index: {}]  }
   0x1 LB: > { %s1433_s10 = sadd.s32 4294967295, %s1889_s30   ;;  %p1437_p0 = scmp.ge.s32.totalorder %s1889_s30, 1  ;;  %s1889_s30 = sphi %s1941_s30, %s19_s30  }
   0x2   : > { %p303_p1 = scmp.lt.s32.totalorder %s1889_s30, 5 }
   0x4   : > { %p304_p2 = pnand %p1437_p0, %p303_p1 }
   0x5   : > { %v1811_v0 = vld [vmem:[%s2195_s5] sm:$0xff] (!%p304_p2)   ;;  %v1812_v1 = vld [vmem:[%s2195_s5 + $0x8] sm:$0xff] (!%p304_p2)   ;;  %v1813_v2 = vld [vmem:[%s2195_s5 + $0x10] sm:$0xff] (!%p304_p2)   ;;  %p345_p3 = scmp.lt.s32.totalorder (!%p304_p2), %s1433_s10, 3 }
   0x6   : > { %307 = sbr.rel (%p304_p2) target bundleno = 1305 (0x519), region = 56  ;;  %1627 = vmatprep.subr.bf16.mxu0 (!%p304_p2), %v1811_v0  ;;  %v1814_v3 = vld [vmem:[%s2195_s5 + $0x18] sm:$0xff] (!%p304_p2)   ;;  %v1819_v4 = vld [vmem:[%s2193_s3] sm:$0xff] (!%p304_p2)   ;;  %v1816_v6 = vld [vmem:[%s2195_s5 + $0x28] sm:$0xff] (!%p304_p2)  }
   0x7   : > { %1628 = vmatpush3.bf16.msra.mxu0 (!%p304_p2), %v1811_v0  ;;  %1643 = vmatprep.mubr.bf16.mxu0 (!%p304_p2), %v1819_v4  ;;  %v1815_v5 = vld [vmem:[%s2195_s5 + $0x20] sm:$0xff] (!%p304_p2)   ;;  %v1817_v7 = vld [vmem:[%s2195_s5 + $0x30] sm:$0xff] (!%p304_p2)   ;;  %v1818_v8 = vld [vmem:[%s2195_s5 + $0x38] sm:$0xff] (!%p304_p2)  }
   0x8   : > { %1629 = vmatprep.subr.bf16.mxu0 (!%p304_p2), %v1812_v1  ;;  %1675 = vmatprep.mubr.bf16.mxu1 (!%p304_p2), %v1819_v4  ;;  %v1835_v9 = vld [vmem:[%s2196_s6] sm:$0xff] (!%p304_p2)   ;;  %v1836_v10 = vld [vmem:[%s2196_s6 + $0x8] sm:$0xff] (!%p304_p2)   ;;  %v1999_v13 = vld [vmem:[%s2193_s3 + $0x10] sm:$0xff] (!%p304_p2)  }
   0x9   : > { %v1824_v11 = vld [vmem:[%s2194_s4] sm:$0xff] (!%p304_p2)   ;;  %v1990_v12 = vld [vmem:[%s2193_s3 + $0x8] sm:$0xff] (!%p304_p2)   ;;  %1659 = vmatprep.subr.bf16.mxu1 (!%p304_p2), %v1835_v9  ;;  %v1837_v15 = vld [vmem:[%s2196_s6 + $0x10] sm:$0xff] (!%p304_p2)  }
   0xa   : > { %1660 = vmatpush3.bf16.msra.mxu1 (!%p304_p2), %v1835_v9  ;;  %v1826_v14 = vld [vmem:[%s2194_s4 + $0x8] sm:$0xff] (!%p304_p2)   ;;  %v1838_v16 = vld [vmem:[%s2196_s6 + $0x18] sm:$0xff] (!%p304_p2)   ;;  %v1827_v17 = vld [vmem:[%s2194_s4 + $0x10] sm:$0xff] (!%p304_p2)  }
   0xb   : > { %1630 = vmatpush3.bf16.msra.mxu0 (!%p304_p2), %v1812_v1  ;;  %1661 = vmatprep.subr.bf16.mxu1 (!%p304_p2), %v1836_v10  ;;  %v2019_v18 = vld [vmem:[%s2193_s3 + $0x18] sm:$0xff] (!%p304_p2)   ;;  %v2031_v19 = vld [vmem:[%s2193_s3 + $0x20] sm:$0xff] (!%p304_p2)   ;;  %v1840_v25 = vld [vmem:[%s2196_s6 + $0x28] sm:$0xff] (!%p304_p2)  }
   0xc   : > { %1631 = vmatprep.subr.bf16.mxu0 (!%p304_p2), %v1813_v2  ;;  %v1828_v20 = vld [vmem:[%s2194_s4 + $0x18] sm:$0xff] (!%p304_p2)   ;;  %v1839_v22 = vld [vmem:[%s2196_s6 + $0x20] sm:$0xff] (!%p304_p2)   ;;  %v2063_v28 = vld [vmem:[%s2193_s3 + $0x28] sm:$0xff] (!%p304_p2)  }
   0xd   : > { %s2201_s10 = smov (!%p345_p3, %s1433_s10), 3  ;;  %v1830_v26 = vld [vmem:[%s2194_s4 + $0x20] sm:$0xff]   ;;  %v1829_v29 = vld [vmem:[%s2193_s3 + $0x30] sm:$0xff]   ;;  %v1832_v30 = vld [vmem:[%s2194_s4 + $0x28] sm:$0xff]  }
   0xe   : > { %s1495_s24 = sshll.u32 %s2201_s10, 5  ;;  %1662 = vmatpush3.bf16.msra.mxu1 %v1836_v10  ;;  %s352_s23 = scalar_lea.vmem %s2191_s1, %s2201_s10  ;;  %v1841_v36 = vld [vmem:[%s2196_s6 + $0x30] sm:$0xff]   ;;  %v1842_v43 = vld [vmem:[%s2196_s6 + $0x38] sm:$0xff]  }
   0xf   : > { %1632 = vmatpush3.bf16.msra.mxu0 %v1813_v2  ;;  %1663 = vmatprep.subr.bf16.mxu1 %v1837_v15  ;;  %s2026_s14 = scalar_lea.vmem %s2190_s0, %s1495_s24  ;;  %v1442_v27 = vld [vmem:[%s352_s23] ss:$0 sm:$0xff]  ;;  %s355_s12 = scalar_lea.vmem %s2192_s2, %s2201_s10  ;;  %v1833_v44 = vld [vmem:[%s2194_s4 + $0x30] sm:$0xff]   ;;  %v1831_v45 = vld [vmem:[%s2193_s3 + $0x38] sm:$0xff]  }
  0x10   : > { %1633 = vmatprep.subr.bf16.mxu0 %v1814_v3  ;;  %v2037_v21 = vld [vmem:[%s2026_s14] sm:$0xff]   ;;  %v2076_v33 = vld [vmem:[%s2026_s14 + $0x8] sm:$0xff]   ;;  %v2079_v35 = vld [vmem:[%s2026_s14 + $0x10] sm:$0xff]   ;;  %s360_s13 = scalar_lea.vmem %s2199_s9, %s1495_s24 }
  0x11   : > { %v1507_v23 = vunpack.c.l.bf16 %v2037_v21  ;;  %v1508_v24 = vunpack.c.h.bf16 %v2037_v21  ;;  %v1443_v34 = vld [vmem:[%s355_s12] ss:$0 sm:$0xff]  ;;  %v1511_v37 = vunpack.c.l.bf16 %v2076_v33  ;;  %v1512_v38 = vunpack.c.h.bf16 %v2076_v33  ;;  %v2107_v51 = vld [vmem:[%s2026_s14 + $0x18] sm:$0xff]  }
  0x12   : > { %1664 = vmatpush3.bf16.msra.mxu1 %v1837_v15  ;;  %v1515_v41 = vunpack.c.l.bf16 %v2079_v35  ;;  %v1516_v42 = vunpack.c.h.bf16 %v2079_v35  ;;  %v1834_v52 = vld [vmem:[%s2194_s4 + $0x38] sm:$0xff]   ;;  %v1519_v55 = vunpack.c.l.bf16 %v2107_v51  ;;  %v1520_v56 = vunpack.c.h.bf16 %v2107_v51 }
  0x13   : > { %1634 = vmatpush3.bf16.msra.mxu0 %v1814_v3  ;;  %1665 = vmatprep.subr.bf16.mxu1 %v1838_v16  ;;  %v385_v31 = vmul.f32 %v1507_v23, %v1442_v27  ;;  %v386_v32 = vmul.f32 %v1508_v24, %v1442_v27  ;;  %v387_v46 = vmul.f32 %v1511_v37, %v1442_v27 }
  0x14   : > { %1635 = vmatprep.subr.bf16.mxu0 %v1815_v5  ;;  %v388_v47 = vmul.f32 %v1512_v38, %v1442_v27  ;;  %v389_v49 = vmul.f32 %v1515_v41, %v1442_v27  ;;  %v390_v50 = vmul.f32 %v1516_v42, %v1442_v27  ;;  %v391_v60 = vmul.f32 %v1519_v55, %v1442_v27 }
  0x15   : > { %v400_v39 = vadd.f32 %v1443_v34, %v385_v31  ;;  %v401_v40 = vadd.f32 %v1443_v34, %v386_v32  ;;  %v402_v53 = vadd.f32 %v1443_v34, %v387_v46  ;;  %v392_v61 = vmul.f32 %v1520_v56, %v1442_v27 }
  0x16   : > { %1666 = vmatpush3.bf16.msra.mxu1 %v1838_v16  ;;  %v403_v54 = vadd.f32 %v1443_v34, %v388_v47  ;;  %v404_v57 = vadd.f32 %v1443_v34, %v389_v49  ;;  %v405_v58 = vadd.f32 %v1443_v34, %v390_v50  ;;  %v406_v63 = vadd.f32 %v1443_v34, %v391_v60 }
  0x17   : > { %1636 = vmatpush3.bf16.msra.mxu0 %v1815_v5  ;;  %1667 = vmatprep.subr.bf16.mxu1 %v1839_v22  ;;  %v408_v48 = vpack.c.bf16 %v401_v40, %v400_v39  ;;  %v407_v0 = vadd.f32 %v1443_v34, %v392_v61 }
  0x18   : > { %1637 = vmatprep.subr.bf16.mxu0 %v1816_v6  ;;  %v409_v59 = vpack.c.bf16 %v403_v54, %v402_v53  ;;  %v410_v62 = vpack.c.bf16 %v405_v58, %v404_v57 }
  0x19   : > { %v411_v1 = vpack.c.bf16 %v407_v0, %v406_v63 }
  0x1a   : > { %1668 = vmatpush3.bf16.msra.mxu1 %v1839_v22 }
  0x1b   : > { %1638 = vmatpush3.bf16.msra.mxu0 %v1816_v6  ;;  %1669 = vmatprep.subr.bf16.mxu1 %v1840_v25 }
  0x1c   : > { %1639 = vmatprep.subr.bf16.mxu0 %v1817_v7 }
  0x1e   : > { %1670 = vmatpush3.bf16.msra.mxu1 %v1840_v25 }
  0x1f   : > { %1640 = vmatpush3.bf16.msra.mxu0 %v1817_v7  ;;  %1671 = vmatprep.subr.bf16.mxu1 %v1841_v36 }
  0x20   : > { %1641 = vmatprep.subr.bf16.mxu0 %v1818_v8 }
  0x22   : > { %1672 = vmatpush3.bf16.msra.mxu1 %v1841_v36 }
  0x23   : > { %1642 = vmatpush3.bf16.msra.mxu0 %v1818_v8  ;;  %1673 = vmatprep.subr.bf16.mxu1 %v1842_v43 }
  0x24   : > { %1691 = vmatprep.subr.bf16.mxu0 %v1824_v11 }
  0x26   : > { %1644 = vmatmul.mubr.bf16.vlgmr.msra.gmra.mrb[0].mxu0 %v1990_v12  ;;  %1674 = vmatpush3.bf16.msra.mxu1 %v1842_v43 }
  0x27   : > { %1647 = vmatprep.mubr.bf16.mxu0 %v1999_v13  ;;  %1692 = vmatpush3.bf16.msra.mxu0 %v1824_v11 }
  0x28   : > { %1693 = vmatprep.subr.bf16.mxu0 %v1826_v14 }
  0x29   : > { %1676 = vmatmul.mubr.bf16.vlgmr.msra.gmra.mrb[0].mxu1 %v1990_v12 }
  0x2a   : > { %1679 = vmatprep.mubr.bf16.mxu1 %v1999_v13 }
  0x2b   : > { %1694 = vmatpush3.bf16.msra.mxu0 %v1826_v14 }
  0x2c   : > { %1695 = vmatprep.subr.bf16.mxu0 %v1827_v17 }
  0x2e   : > { %1648 = vmatmul.mubr.bf16.gmra.mrb[4].mxu0 %v2019_v18 }
  0x2f   : > { %1651 = vmatprep.mubr.bf16.mxu0 %v2031_v19  ;;  %1696 = vmatpush3.bf16.msra.mxu0 %v1827_v17 }
  0x30   : > { %1697 = vmatprep.subr.bf16.mxu0 %v1828_v20 }
  0x31   : > { %1680 = vmatmul.mubr.bf16.gmra.mrb[4].mxu1 %v2019_v18 }
  0x32   : > { %1683 = vmatprep.mubr.bf16.mxu1 %v2031_v19 }
  0x33   : > { %1698 = vmatpush3.bf16.msra.mxu0 %v1828_v20 }
  0x34   : > { %1699 = vmatprep.subr.bf16.mxu0 %v1830_v26 }
  0x36   : > { %1652 = vmatmul.mubr.bf16.gmra.mrb[8].mxu0 %v2063_v28 }
  0x37   : > { %1655 = vmatprep.mubr.bf16.mxu0 %v1829_v29  ;;  %1700 = vmatpush3.bf16.msra.mxu0 %v1830_v26 }
  0x38   : > { %1701 = vmatprep.subr.bf16.mxu0 %v1832_v30 }
  0x39   : > { %1684 = vmatmul.mubr.bf16.gmra.mrb[8].mxu1 %v2063_v28 }
  0x3a   : > { %1687 = vmatprep.mubr.bf16.mxu1 %v1829_v29 }
  0x3b   : > { %1702 = vmatpush3.bf16.msra.mxu0 %v1832_v30 }
  0x3c   : > { %1703 = vmatprep.subr.bf16.mxu0 %v1833_v44 }
  0x3e   : > { %1656 = vmatmul.mubr.bf16.gmra.mrb[12].mxu0 %v1831_v45 }
  0x3f   : > { %1704 = vmatpush3.bf16.msra.mxu0 %v1833_v44  ;;  %1707 = vmatprep.mubr.bf16.mxu0 %v408_v48 }
  0x40   : > { %1705 = vmatprep.subr.bf16.mxu0 %v1834_v52 }
  0x41   : > { %1688 = vmatmul.mubr.bf16.gmra.mrb[12].mxu1 %v1831_v45 }
  0x43   : > { %1706 = vmatpush3.bf16.msra.mxu0 %v1834_v52 }
  0x46   : > { %1708 = vmatmul.mubr.bf16.vlgmr.msra.gmra.mrb[16].mxu0 %v409_v59 }
  0x47   : > { %1711 = vmatprep.mubr.bf16.mxu0 %v410_v62 }
  0x4e   : > { %1712 = vmatmul.mubr.bf16.gmra.mrb[20].mxu0 %v411_v1 }
  0xf9   : > { %v1645_v2 = vpop.f32.mrb[0].mxu0 }
  0xfa   : > { %v574_v3 = vpop.f32.mrb[1].mxu0 }
  0xfb   : > { %v1646_v4 = vpop.f32.mrb[2].mxu0 }
  0xfc   : > { %v932_v5 = vpack.c.bf16 %v1646_v4, %v1645_v2  ;;  %v577_v6 = vpop.f32.mrb[3].mxu0  ;;  %v1677_v28 = vpop.f32.mrb[0].mxu1 }
  0xfd   : > { %v931_v7 = vpack.c.bf16 %v577_v6, %v574_v3  ;;  %v735_v30 = vpop.f32.mrb[1].mxu1 }
  0xfe   : > { %v1678_v31 = vpop.f32.mrb[2].mxu1 }
  0xff   : > { %1715 = vmatprep.subr.bf16.mxu1 %v931_v7  ;;  %v1100_v32 = vpack.c.bf16 %v1678_v31, %v1677_v28  ;;  %v738_v34 = vpop.f32.mrb[3].mxu1 }
 0x100   : > { %1716 = vmatpush3.bf16.xpose.msra.mxu1 %v931_v7  ;;  %v1099_v36 = vpack.c.bf16 %v738_v34, %v735_v30 }
 0x101   : > { %1717 = vmatprep.subr.bf16.mxu1 %v932_v5  ;;  %v1649_v8 = vpop.f32.mrb[4].mxu0 }
 0x102   : > { %v590_v9 = vpop.f32.mrb[5].mxu0  ;;  %1739 = vmatprep.subr.bf16.mxu0 %v1099_v36 }
 0x103   : > { %v1650_v10 = vpop.f32.mrb[6].mxu0  ;;  %1740 = vmatpush3.bf16.msra.mxu0 %v1099_v36 }
 0x104   : > { %v934_v11 = vpack.c.bf16 %v1650_v10, %v1649_v8  ;;  %v593_v12 = vpop.f32.mrb[7].mxu0  ;;  %1741 = vmatprep.subr.bf16.mxu0 %v1100_v32  ;;  %v1681_v46 = vpop.f32.mrb[4].mxu1  ;;  %v1012_v10 = vlaneseq }
 0x105   : > { %v933_v13 = vpack.c.bf16 %v593_v12, %v590_v9  ;;  %v751_v48 = vpop.f32.mrb[5].mxu1 }
 0x106   : > { %v1682_v49 = vpop.f32.mrb[6].mxu1 }
 0x107   : > { %1742 = vmatpush3.bf16.msra.mxu0 %v1100_v32  ;;  %v1102_v50 = vpack.c.bf16 %v1682_v49, %v1681_v46  ;;  %v754_v52 = vpop.f32.mrb[7].mxu1 }
 0x108   : > { %1718 = vmatpush3.bf16.xpose.msra.mxu1 %v932_v5  ;;  %v1101_v53 = vpack.c.bf16 %v754_v52, %v751_v48 }
 0x109   : > { %1719 = vmatprep.subr.bf16.mxu1 %v933_v13  ;;  %v1653_v14 = vpop.f32.mrb[8].mxu0 }
 0x10a   : > { %v606_v15 = vpop.f32.mrb[9].mxu0  ;;  %1743 = vmatprep.subr.bf16.mxu0 %v1101_v53 }
 0x10b   : > { %v1654_v16 = vpop.f32.mrb[10].mxu0  ;;  %1744 = vmatpush3.bf16.msra.mxu0 %v1101_v53 }
 0x10c   : > { %v936_v17 = vpack.c.bf16 %v1654_v16, %v1653_v14  ;;  %v609_v18 = vpop.f32.mrb[11].mxu0  ;;  %v1685_v61 = vpop.f32.mrb[8].mxu1  ;;  %1745 = vmatprep.subr.bf16.mxu0 %v1102_v50 }
 0x10d   : > { %v935_v19 = vpack.c.bf16 %v609_v18, %v606_v15  ;;  %v767_v63 = vpop.f32.mrb[9].mxu1 }
 0x10e   : > { %v1686_v0 = vpop.f32.mrb[10].mxu1 }
 0x10f   : > { %v1104_v1 = vpack.c.bf16 %v1686_v0, %v1685_v61  ;;  %v770_v2 = vpop.f32.mrb[11].mxu1  ;;  %1746 = vmatpush3.bf16.msra.mxu0 %v1102_v50 }
 0x110   : > { %1720 = vmatpush3.bf16.xpose.msra.mxu1 %v933_v13  ;;  %v1103_v3 = vpack.c.bf16 %v770_v2, %v767_v63 }
 0x111   : > { %1721 = vmatprep.subr.bf16.mxu1 %v934_v11  ;;  %v1657_v20 = vpop.f32.mrb[12].mxu0 }
 0x112   : > { %v622_v22 = vpop.f32.mrb[13].mxu0  ;;  %1747 = vmatprep.subr.bf16.mxu0 %v1103_v3 }
 0x113   : > { %v1658_v25 = vpop.f32.mrb[14].mxu0  ;;  %1748 = vmatpush3.bf16.msra.mxu0 %v1103_v3 }
 0x114   : > { %v2123_v26 = vpack.c.bf16 %v1658_v25, %v1657_v20  ;;  %v625_v27 = vpop.f32.mrb[15].mxu0  ;;  %v1689_v4 = vpop.f32.mrb[12].mxu1  ;;  %1749 = vmatprep.subr.bf16.mxu0 %v1104_v1 }
 0x115   : > { %v937_v29 = vpack.c.bf16 %v625_v27, %v622_v22  ;;  %v783_v5 = vpop.f32.mrb[13].mxu1 }
 0x116   : > { %v1690_v6 = vpop.f32.mrb[14].mxu1 }
 0x117   : > { %v1106_v7 = vpack.c.bf16 %v1690_v6, %v1689_v4  ;;  %v786_v8 = vpop.f32.mrb[15].mxu1  ;;  %1750 = vmatpush3.bf16.msra.mxu0 %v1104_v1 }
 0x118   : > { %1722 = vmatpush3.bf16.xpose.msra.mxu1 %v934_v11  ;;  %v1105_v9 = vpack.c.bf16 %v786_v8, %v783_v5  ;;  %v1013_v11 = vand.u32 127, %v1012_v10 }
 0x119   : > { %1723 = vmatprep.subr.bf16.mxu1 %v935_v19  ;;  %v1709_v39 = vpop.f32.mrb[16].mxu0 }
 0x11a   : > { %v896_v40 = vpop.f32.mrb[17].mxu0  ;;  %1751 = vmatprep.subr.bf16.mxu0 %v1105_v9  ;;  %vm1014_vm0 = vcmp.lt.s32.totalorder %v1013_v11, 8 }
 0x11b   : > { %v1710_v43 = vpop.f32.mrb[18].mxu0  ;;  %1752 = vmatpush3.bf16.msra.mxu0 %v1105_v9 }
 0x11c   : > { %v928_v44 = vpack.c.bf16 %v1710_v43, %v1709_v39  ;;  %v899_v45 = vpop.f32.mrb[19].mxu0  ;;  %1753 = vmatprep.subr.bf16.mxu0 %v1106_v7 }
 0x11d   : > { %v927_v47 = vpack.c.bf16 %v899_v45, %v896_v40 }
 0x11f   : > { %1731 = vmatprep.mubr.bf16.mxu1 %v927_v47  ;;  %1754 = vmatpush3.bf16.msra.mxu0 %v1106_v7 }
 0x120   : > { %1724 = vmatpush3.bf16.xpose.msra.mxu1 %v935_v19 }
 0x121   : > { %1725 = vmatprep.subr.bf16.mxu1 %v936_v17  ;;  %v1713_v54 = vpop.f32.mrb[20].mxu0 }
 0x122   : > { %v912_v57 = vpop.f32.mrb[21].mxu0 }
 0x123   : > { %v1714_v58 = vpop.f32.mrb[22].mxu0 }
 0x124   : > { %v930_v59 = vpack.c.bf16 %v1714_v58, %v1713_v54  ;;  %v915_v60 = vpop.f32.mrb[23].mxu0 }
 0x125   : > { %v929_v62 = vpack.c.bf16 %v915_v60, %v912_v57 }
 0x128   : > { %1726 = vmatpush3.bf16.xpose.msra.mxu1 %v936_v17 }
 0x129   : > { %1727 = vmatprep.subr.bf16.mxu1 %v937_v29 }
 0x130   : > { %1728 = vmatpush3.bf16.xpose.msra.mxu1 %v937_v29 }
 0x131   : > { %1729 = vmatprep.subr.bf16.mxu1 %v2123_v26 }
 0x138   : > { %1730 = vmatpush3.bf16.xpose.msra.mxu1 %v2123_v26 }
 0x13f   : > { %1732 = vmatmul.mubr.bf16.vlgmr.msra.gmra.mrb[16].mxu1 %v928_v44 }
 0x140   : > { %1735 = vmatprep.mubr.bf16.mxu1 %v929_v62 }
 0x147   : > { %1736 = vmatmul.mubr.bf16.gmra.mrb[20].mxu1 %v930_v59 }
 0x212   : > { %v1733_v12 = vpop.f32.mrb[16].mxu1 }
 0x213   : > { %v1006_v13 = vmul.f32 0.17677669, %v1733_v12  ;;  %v973_v14 = vpop.f32.mrb[17].mxu1 }
 0x214   : > { %v1004_v15 = vmul.f32 0.17677669, %v973_v14  ;;  %v1734_v16 = vpop.f32.mrb[18].mxu1 }
 0x215   : > { %v1007_v17 = vmul.f32 0.17677669, %v1734_v16  ;;  %v976_v18 = vpop.f32.mrb[19].mxu1  ;;  %v1017_v19 = vsel %vm1014_vm0, %v1006_v13, -1e+30  ;;  %v1843_v16 = vld [vmem:[%s2197_s7] sm:$0xff]  }
 0x216   : > { %v1005_v20 = vmul.f32 0.17677669, %v976_v18  ;;  %1027 = vmax.xlane.f32.xlu1 %v1017_v19  ;;  %v1015_v22 = vsel %vm1014_vm0, %v1004_v15, -1e+30  ;;  %1763 = vmatprep.subr.bf16.mxu0 %v1843_v16  ;;  %v1845_v18 = vld [vmem:[%s2197_s7 + $0x10] sm:$0xff]  }
 0x217   : > { %1023 = vmax.xlane.f32.xlu0 %v1015_v22  ;;  %v1018_v25 = vsel %vm1014_vm0, %v1007_v17, -1e+30  ;;  %v1844_v17 = vld [vmem:[%s2197_s7 + $0x8] sm:$0xff]   ;;  %1787 = vmatprep.subr.bf16.mxu1 %v1843_v16 }
 0x218   : > { %v1016_v27 = vsel %vm1014_vm0, %v1005_v20, -1e+30  ;;  %1795 = vmatpush3.bf16.msra.mxu1 %v1843_v16  ;;  %v1847_v20 = vld [vmem:[%s2197_s7 + $0x20] sm:$0xff]  }
 0x219   : > { %1788 = vmatprep.subr.bf16.mxu1 %v1844_v17 }
 0x21a   : > { %1029 = vmax.xlane.f32.xlu1 %v1018_v25  ;;  %v1737_v26 = vpop.f32.mrb[20].mxu1 }
 0x21b   : > { %1025 = vmax.xlane.f32.xlu0 %v1016_v27  ;;  %v989_v28 = vpop.f32.mrb[21].mxu1  ;;  %v1010_v32 = vmul.f32 0.17677669, %v1737_v26 }
 0x21c   : > { %v1008_v29 = vmul.f32 0.17677669, %v989_v28  ;;  %v1738_v30 = vpop.f32.mrb[22].mxu1  ;;  %1796 = vmatpush3.bf16.msra.mxu1 %v1844_v17 }
 0x21d   : > { %v992_v31 = vpop.f32.mrb[23].mxu1  ;;  %v1011_v39 = vmul.f32 0.17677669, %v1738_v30  ;;  %v1021_v43 = vsel %vm1014_vm0, %v1010_v32, -1e+30  ;;  %1789 = vmatprep.subr.bf16.mxu1 %v1845_v18 }
 0x21e   : > { %v1009_v34 = vmul.f32 0.17677669, %v992_v31  ;;  %v1019_v36 = vsel %vm1014_vm0, %v1008_v29, -1e+30 }
 0x21f   : > { %1031 = vmax.xlane.f32.xlu0 %v1019_v36  ;;  %v1022_v44 = vsel %vm1014_vm0, %v1011_v39, -1e+30 }
 0x220   : > { %v1020_v40 = vsel %vm1014_vm0, %v1009_v34, -1e+30  ;;  %1797 = vmatpush3.bf16.msra.mxu1 %v1845_v18 }
 0x221   : > { %1033 = vmax.xlane.f32.xlu1 %v1020_v40 }
 0x223   : > { %1035 = vmax.xlane.f32.xlu0 %v1021_v43 }
 0x225   : > { %1037 = vmax.xlane.f32.xlu1 %v1022_v44 }
 0x2a3   : > { %v1028_v45 = vpop.xlane.xlu1 %1027 }
 0x2a4   : > { %v1041_v46 = vsub.f32 %v1017_v19, %v1028_v45  ;;  %v1024_v47 = vpop.xlane.xlu0 %1023  ;;  %v1846_v19 = vld [vmem:[%s2197_s7 + $0x18] sm:$0xff]  }
 0x2a5   : > { %v1039_v48 = vsub.f32 %v1015_v22, %v1024_v47  ;;  %1790 = vmatprep.subr.bf16.mxu1 %v1846_v19  ;;  %v1848_v22 = vld [vmem:[%s2197_s7 + $0x28] sm:$0xff]  }
 0x2a6   : > { %v1051_v52 = vmul.f32 1.442695, %v1041_v46  ;;  %1798 = vmatpush3.bf16.msra.mxu1 %v1846_v19 }
 0x2a7   : > { %v1047_v49 = vmul.f32 1.442695, %v1039_v48  ;;  %v1030_v50 = vpop.xlane.xlu1 %1029  ;;  %1791 = vmatprep.subr.bf16.mxu1 %v1847_v20 }
 0x2a8   : > { %v1042_v53 = vsub.f32 %v1018_v25, %v1030_v50  ;;  %v1026_v54 = vpop.xlane.xlu0 %1025  ;;  %v1849_v25 = vld [vmem:[%s2197_s7 + $0x30] sm:$0xff]  }
 0x2a9   : > { %1851 = vpow2.f32 %v1047_v49  ;;  %v1040_v57 = vsub.f32 %v1016_v27, %v1026_v54 }
 0x2aa   : > { %1853 = vpow2.f32 %v1051_v52  ;;  %v1053_v59 = vmul.f32 1.442695, %v1042_v53  ;;  %1799 = vmatpush3.bf16.msra.mxu1 %v1847_v20 }
 0x2ab   : > { %v1049_v58 = vmul.f32 1.442695, %v1040_v57  ;;  %1792 = vmatprep.subr.bf16.mxu1 %v1848_v22 }
 0x2ac   : > { %v1032_v60 = vpop.xlane.xlu0 %1031 }
 0x2ad   : > { %1855 = vpow2.f32 %v1049_v58  ;;  %v1043_v61 = vsub.f32 %v1019_v36, %v1032_v60 }
 0x2ae   : > { %v1034_v62 = vpop.xlane.xlu1 %1033  ;;  %1857 = vpow2.f32 %v1053_v59  ;;  %1800 = vmatpush3.bf16.msra.mxu1 %v1848_v22 }
 0x2af   : > { %v1055_v63 = vmul.f32 1.442695, %v1043_v61  ;;  %v1044_v0 = vsub.f32 %v1020_v40, %v1034_v62  ;;  %1793 = vmatprep.subr.bf16.mxu1 %v1849_v25 }
 0x2b0   : > { %v1036_v1 = vpop.xlane.xlu0 %1035 }
 0x2b1   : > { %1859 = vpow2.f32 %v1055_v63  ;;  %v1057_v2 = vmul.f32 1.442695, %v1044_v0  ;;  %v1045_v3 = vsub.f32 %v1021_v43, %v1036_v1  ;;  %v1850_v63 = vld [vmem:[%s2197_s7 + $0x38] sm:$0xff]  }
 0x2b2   : > { %v1038_v4 = vpop.xlane.xlu1 %1037  ;;  %1801 = vmatpush3.bf16.msra.mxu1 %v1849_v25 }
 0x2b3   : > { %v1852_v5 = vpop.eup %1851  ;;  %v1059_v6 = vmul.f32 1.442695, %v1045_v3  ;;  %v1046_v7 = vsub.f32 %v1022_v44, %v1038_v4  ;;  %1861 = vpow2.f32 %v1057_v2  ;;  %1794 = vmatprep.subr.bf16.mxu1 %v1850_v63 }
 0x2b4   : > { %1063 = vadd.xlane.f32.xlu0 %v1852_v5  ;;  %v1854_v9 = vpop.eup %1853 }
 0x2b5   : > { %1863 = vpow2.f32 %v1059_v6  ;;  %v1061_v8 = vmul.f32 1.442695, %v1046_v7 }
 0x2b6   : > { %1802 = vmatpush3.bf16.msra.mxu1 %v1850_v63 }
 0x2b7   : > { %v1856_v10 = vpop.eup %1855  ;;  %1865 = vpow2.f32 %v1061_v8 }
 0x2b8   : > { %1067 = vadd.xlane.f32.xlu0 %v1854_v9  ;;  %1065 = vadd.xlane.f32.xlu1 %v1856_v10  ;;  %v1858_v11 = vpop.eup %1857 }
 0x2bb   : > { %v1860_v12 = vpop.eup %1859 }
 0x2bc   : > { %1071 = vadd.xlane.f32.xlu0 %v1860_v12  ;;  %1069 = vadd.xlane.f32.xlu1 %v1858_v11 }
 0x2bd   : > { %v1862_v13 = vpop.eup %1861 }
 0x2bf   : > { %v2135_v14 = vpop.eup %1863 }
 0x2c0   : > { %1075 = vadd.xlane.f32.xlu0 %v2135_v14  ;;  %1073 = vadd.xlane.f32.xlu1 %v1862_v13 }
 0x2c1   : > { %v1866_v15 = vpop.eup %1865 }
 0x2c4   : > { %1077 = vadd.xlane.f32.xlu1 %v1866_v15 }
 0x341   : > { %v1064_v26 = vpop.xlane.xlu0 %1063 }
 0x342   : > { %1867 = vrcp.f32 %v1064_v26 }
 0x345   : > { %v1068_v27 = vpop.xlane.xlu0 %1067  ;;  %v1066_v28 = vpop.xlane.xlu1 %1065 }
 0x346   : > { %1869 = vrcp.f32 %v1066_v28 }
 0x347   : > { %1871 = vrcp.f32 %v1068_v27 }
 0x349   : > { %v1072_v29 = vpop.xlane.xlu0 %1071  ;;  %v1070_v30 = vpop.xlane.xlu1 %1069 }
 0x34a   : > { %1873 = vrcp.f32 %v1070_v30 }
 0x34b   : > { %1875 = vrcp.f32 %v1072_v29 }
 0x34c   : > { %v1868_v34 = vpop.eup %1867 }
 0x34d   : > { %v1076_v31 = vpop.xlane.xlu0 %1075  ;;  %v1074_v32 = vpop.xlane.xlu1 %1073  ;;  %v1087_v40 = vmul.f32 %v1868_v34, %v1852_v5 }
 0x34e   : > { %1877 = vrcp.f32 %v1074_v32 }
 0x34f   : > { %1879 = vrcp.f32 %v1076_v31 }
 0x350   : > { %v1870_v36 = vpop.eup %1869 }
 0x351   : > { %v1078_v39 = vpop.xlane.xlu1 %1077  ;;  %v1088_v43 = vmul.f32 %v1870_v36, %v1856_v10  ;;  %v1872_v44 = vpop.eup %1871 }
 0x352   : > { %1881 = vrcp.f32 %v1078_v39  ;;  %v1089_v47 = vmul.f32 %v1872_v44, %v1854_v9 }
 0x353   : > { %v1095_v45 = vpack.c.bf16 %v1088_v43, %v1087_v40 }
 0x354   : > { %v1874_v46 = vpop.eup %1873 }
 0x355   : > { %v1090_v48 = vmul.f32 %v1874_v46, %v1858_v11  ;;  %1755 = vmatprep.mubr.bf16.mxu0 %v1095_v45  ;;  %v1876_v49 = vpop.eup %1875 }
 0x356   : > { %v1091_v54 = vmul.f32 %v1876_v49, %v1860_v12  ;;  %v1476_v12 = vld [vmem:[%s2198_s8] ss:$0 sm:$0xff] }
 0x357   : > { %v1096_v50 = vpack.c.bf16 %v1090_v48, %v1089_v47 }
 0x358   : > { %v1878_v52 = vpop.eup %1877 }
 0x359   : > { %v1880_v53 = vpop.eup %1879  ;;  %1756 = vmatmul.mubr.bf16.vlgmr.msra.gmra.mrb[24].mxu0 %v1096_v50  ;;  %v1092_v57 = vmul.f32 %v1878_v52, %v1862_v13 }
 0x35a   : > { %1764 = vmatpush3.bf16.msra.mxu0 %v1843_v16  ;;  %v1093_v60 = vmul.f32 %v1880_v53, %v2135_v14 }
 0x35b   : > { %v1097_v59 = vpack.c.bf16 %v1092_v57, %v1091_v54  ;;  %1765 = vmatprep.subr.bf16.mxu0 %v1844_v17 }
 0x35c   : > { %v1882_v58 = vpop.eup %1881 }
 0x35d   : > { %v1094_v61 = vmul.f32 %v1882_v58, %v1866_v15  ;;  %1759 = vmatprep.mubr.bf16.mxu0 %v1097_v59 }
 0x35e   : > { %1766 = vmatpush3.bf16.msra.mxu0 %v1844_v17 }
 0x35f   : > { %v1098_v62 = vpack.c.bf16 %v1094_v61, %v1093_v60  ;;  %1767 = vmatprep.subr.bf16.mxu0 %v1845_v18 }
 0x361   : > { %1760 = vmatmul.mubr.bf16.gmra.mrb[28].mxu0 %v1098_v62 }
 0x362   : > { %1768 = vmatpush3.bf16.msra.mxu0 %v1845_v18 }
 0x363   : > { %1769 = vmatprep.subr.bf16.mxu0 %v1846_v19 }
 0x366   : > { %1770 = vmatpush3.bf16.msra.mxu0 %v1846_v19 }
 0x367   : > { %1771 = vmatprep.subr.bf16.mxu0 %v1847_v20 }
 0x36a   : > { %1772 = vmatpush3.bf16.msra.mxu0 %v1847_v20 }
 0x36b   : > { %1773 = vmatprep.subr.bf16.mxu0 %v1848_v22 }
 0x36e   : > { %1774 = vmatpush3.bf16.msra.mxu0 %v1848_v22 }
 0x36f   : > { %1775 = vmatprep.subr.bf16.mxu0 %v1849_v25 }
 0x372   : > { %1776 = vmatpush3.bf16.msra.mxu0 %v1849_v25 }
 0x373   : > { %1777 = vmatprep.subr.bf16.mxu0 %v1850_v63 }
 0x376   : > { %1778 = vmatpush3.bf16.msra.mxu0 %v1850_v63 }
 0x42c   : > { %v1757_v0 = vpop.f32.mrb[24].mxu0 }
 0x42d   : > { %v1141_v1 = vpop.f32.mrb[25].mxu0 }
 0x42e   : > { %v1758_v2 = vpop.f32.mrb[26].mxu0 }
 0x42f   : > { %v1173_v3 = vpack.c.bf16 %v1758_v2, %v1757_v0  ;;  %v1144_v4 = vpop.f32.mrb[27].mxu0 }
 0x430   : > { %v1172_v5 = vpack.c.bf16 %v1144_v4, %v1141_v1 }
 0x432   : > { %1779 = vmatprep.mubr.bf16.mxu0 %v1172_v5 }
 0x433   : > { %1780 = vmatmul.mubr.bf16.vlgmr.msra.gmra.mrb[32].mxu0 %v1173_v3 }
 0x434   : > { %v1761_v6 = vpop.f32.mrb[28].mxu0 }
 0x435   : > { %v1157_v7 = vpop.f32.mrb[29].mxu0 }
 0x436   : > { %v1762_v8 = vpop.f32.mrb[30].mxu0 }
 0x437   : > { %v1175_v9 = vpack.c.bf16 %v1762_v8, %v1761_v6  ;;  %v1160_v10 = vpop.f32.mrb[31].mxu0 }
 0x438   : > { %v1174_v11 = vpack.c.bf16 %v1160_v10, %v1157_v7 }
 0x43a   : > { %1783 = vmatprep.mubr.bf16.mxu1 %v1174_v11 }
 0x43b   : > { %1784 = vmatmul.mubr.bf16.vlgmr.msra.gmra.mrb[24].mxu1 %v1175_v9 }
 0x506   : > { %v1781_v13 = vpop.f32.mrb[32].mxu0 }
 0x507   : > { %v1290_v14 = vadd.f32 %v1781_v13, %v1476_v12  ;;  %v1281_v15 = vpop.f32.mrb[33].mxu0 }
 0x508   : > { %v1282_v16 = vadd.f32 %v1476_v12, %v1281_v15  ;;  %v1782_v17 = vpop.f32.mrb[34].mxu0 }
 0x509   : > { %v1293_v18 = vadd.f32 %v1782_v17, %v1476_v12  ;;  %v1284_v19 = vpop.f32.mrb[35].mxu0  ;;  %v1314_v22 = vadd.f32 %v1511_v37, %v1290_v14 }
 0x50a   : > { %v1285_v20 = vadd.f32 %v1476_v12, %v1284_v19  ;;  %v1312_v26 = vadd.f32 %v1507_v23, %v1282_v16 }
 0x50b   : > { %v1315_v25 = vadd.f32 %v1512_v38, %v1293_v18 }
 0x50c   : > { %v1313_v27 = vadd.f32 %v1508_v24, %v1285_v20 }
 0x50d   : > { %v1529_v28 = vpack.c.bf16 %v1315_v25, %v1314_v22 }
 0x50e   : > { %v1524_v29 = vpack.c.bf16 %v1313_v27, %v1312_v26  ;;  %v1785_v30 = vpop.f32.mrb[24].mxu1 }
 0x50f   : > { %1544 = vst [vmem:[%s360_s13 + $0x8] sm:$0xff] %v1529_v28   ;;  %v1306_v31 = vadd.f32 %v1785_v30, %v1476_v12  ;;  %v1297_v37 = vpop.f32.mrb[25].mxu1 }
 0x510   : > { %1525 = vst [vmem:[%s360_s13] sm:$0xff] %v1524_v29   ;;  %v1298_v33 = vadd.f32 %v1476_v12, %v1297_v37  ;;  %v1786_v38 = vpop.f32.mrb[26].mxu1 }
 0x511   : > { %v1309_v32 = vadd.f32 %v1786_v38, %v1476_v12  ;;  %v1300_v34 = vpop.f32.mrb[27].mxu1  ;;  %v1318_v36 = vadd.f32 %v1519_v55, %v1306_v31 }
 0x512   : > { %v1301_v23 = vadd.f32 %v1476_v12, %v1300_v34  ;;  %v1316_v21 = vadd.f32 %v1515_v41, %v1298_v33 }
 0x513   : > { %v1319_v39 = vadd.f32 %v1520_v56, %v1309_v32 }
 0x514   : > { %v1317_v24 = vadd.f32 %v1516_v42, %v1301_v23 }
 0x515   : > { %v1539_v40 = vpack.c.bf16 %v1319_v39, %v1318_v36 }
 0x516   : > { %v1534_v43 = vpack.c.bf16 %v1317_v24, %v1316_v21 }
 0x517   : > { %1546 = vst [vmem:[%s360_s13 + $0x18] sm:$0xff] %v1539_v40  }
 0x518   : > { %1545 = vst [vmem:[%s360_s13 + $0x10] sm:$0xff] %v1534_v43  }
 0x519 PF: > { %s19_s30 = sadd.s32 1, %s1889_s30  }
 0x51a   : > { %p16_p4 = scmp.ge.s32.totalorder %s19_s30, 6  }
 0x51c   :  { %18 = sbr.rel (!%p16_p4) target bundleno = 1 (0x1), region = 92 }

// kernel: sd_featurizer_forward.47
= control target key start
LH: loop header
LB: loop body
LE: loop exit
PB: predicated region body
PF: predicated region fallthrough
CT: control target
= control target key end

     0   :  { %s283_s6 = smov 0   ;;  %s304_s0 = inlined_call_operand.vmem [shape: bf16[4,2048], index: 0, kind: input, shape index: {}]   ;;  %s305_s1 = inlined_call_operand.vmem [shape: f32[1,2048], index: 1, kind: output, shape index: {}]  }
   0x1 LB: > { %s245_s7 = sadd.s32 4294967295, %s270_s6   ;;  %p249_p0 = scmp.ge.s32.totalorder %s270_s6, 1  ;;  %s270_s6 = sphi %s283_s6, %s11_s6  }
   0x2   : > { %p88_p1 = scmp.lt.s32.totalorder %s270_s6, 5 }
   0x4   : > { %p89_p2 = pnand %p249_p0, %p88_p1 }
   0x5   : > { %s250_s8 = sshll.u32 (!%p89_p2), %s245_s7, 2  ;;  %vm127_vm0 = vcmask (!%p89_p2), 1043456   ;;  %v272_v19 = vmov (!%p89_p2), 1966171168   ;;  %v170_v21 = vlaneseq (!%p89_p2) }
   0x6   : > { %92 = sbr.rel (%p89_p2) target bundleno = 45 (0x2d), region = 24  ;;  %p108_p3 = scmp.lt.s32.totalorder (!%p89_p2), %s250_s8, 15  ;;  %v168_v20 = vunpack.c.l.s4 (!%p89_p2), %v272_v19 }
   0x7   : > { %v171_v31 = vshrl.u32 (!%p89_p2), %v170_v21, 7  ;;  %vm192_vm1 = vcmp.lt.s32.totalorder (!%p89_p2), %v170_v21, 512 }
   0x8   : > { %v169_v30 = vunpack.c.0.s8 (!%p89_p2), %v168_v20 }
   0xa   : > { %v172_v42 = vsub.s32 (!%p89_p2), %v169_v30, %v171_v31 }
   0xd   : > { %s307_s8 = smov (!%p108_p3, %s250_s8), 15 }
   0xe   : > { %s251_s9 = sshll.u32 %s307_s8, 1  ;;  %s116_s15 = scalar_lea.vmem %s305_s1, %s307_s8 }
   0xf   : > { %s111_s12 = scalar_lea.vmem %s304_s0, %s251_s9 }
  0x10   : > { %v118_v0 = vld [vmem:[%s111_s12] sm:$0xff] }
  0x11   : > { %v119_v1 = vunpack.c.l.bf16 %v118_v0  ;;  %v120_v2 = vunpack.c.h.bf16 %v118_v0 }
  0x13   : > { %v123_v3 = vcombine.high %v119_v1, %v119_v1  ;;  %v124_v4 = vcombine.high %v120_v2, %v120_v2  ;;  %v128_v5 = vsel %vm127_vm0, %v119_v1, 0.0  ;;  %v142_v6 = vsel %vm127_vm0, %v120_v2, 0.0 }
  0x14   : > { %v129_v7 = vrot.slane %v128_v5, 4  ;;  %v143_v8 = vrot.slane %v142_v6, 4 }
  0x15   : > { %v135_v9 = vsel %vm127_vm0, %v123_v3, 0.0  ;;  %v149_v10 = vsel %vm127_vm0, %v124_v4, 0.0 }
  0x16   : > { %v130_v11 = vadd.f32 %v129_v7, %v128_v5  ;;  %v136_v12 = vrot.slane %v135_v9, 4  ;;  %v144_v13 = vadd.f32 %v143_v8, %v142_v6  ;;  %v150_v14 = vrot.slane %v149_v10, 4 }
  0x18   : > { %v131_v15 = vrot.slane %v130_v11, 2  ;;  %v137_v16 = vadd.f32 %v136_v12, %v135_v9  ;;  %v145_v17 = vrot.slane %v144_v13, 2  ;;  %v151_v18 = vadd.f32 %v150_v14, %v149_v10 }
  0x1a   : > { %v132_v22 = vadd.f32 %v131_v15, %v130_v11  ;;  %v138_v23 = vrot.slane %v137_v16, 2  ;;  %v146_v24 = vadd.f32 %v145_v17, %v144_v13  ;;  %v152_v25 = vrot.slane %v151_v18, 2 }
  0x1c   : > { %v133_v26 = vrot.slane %v132_v22, 1  ;;  %v139_v27 = vadd.f32 %v138_v23, %v137_v16  ;;  %v147_v28 = vrot.slane %v146_v24, 1  ;;  %v153_v29 = vadd.f32 %v152_v25, %v151_v18 }
  0x1e   : > { %v134_v32 = vadd.f32 %v133_v26, %v132_v22  ;;  %v140_v33 = vrot.slane %v139_v27, 1  ;;  %v148_v34 = vadd.f32 %v147_v28, %v146_v24  ;;  %v154_v35 = vrot.slane %v153_v29, 1 }
  0x20   : > { %v141_v36 = vadd.f32 %v140_v33, %v139_v27  ;;  %v155_v37 = vadd.f32 %v154_v35, %v153_v29  ;;  %v157_v38 = vmul.f32 0.25, %v134_v32  ;;  %v159_v39 = vmul.f32 0.25, %v148_v34 }
  0x22   : > { %v158_v40 = vmul.f32 0.25, %v141_v36  ;;  %v160_v41 = vmul.f32 0.25, %v155_v37 }
  0x24   : > { %v165_v43 = vcombine.low %v157_v38, %v158_v40  ;;  %v166_v44 = vcombine.low %v159_v39, %v160_v41 }
  0x26   : > { %v173_v45 = vrot.slane %v165_v43, %v172_v42  ;;  %v180_v46 = vrot.slane %v166_v44, %v172_v42 }
  0x28   : > { %v181_v47 = vcombine.low %v173_v45, %v180_v46 }
  0x2a   : > { %v188_v48 = vrot.slane %v181_v47, %v172_v42 }
  0x2c   : > { %194 = vst.msk [vmem:[%s116_s15] sm:$0xf] %vm192_vm1, %v188_v48 }
  0x2d PF: > { %s11_s6 = sadd.s32 1, %s270_s6  }
  0x2e   : > { %p8_p4 = scmp.ge.s32.totalorder %s11_s6, 6  }
  0x30   :  { %10 = sbr.rel (!%p8_p4) target bundleno = 1 (0x1), region = 54 }

</bundles_post_ra>
